<compile_context>
chip_gen: v7x
topology: tpu7x:2x2x1
jax: 0.10.0
libtpu: 0.0.40
codegen_flags: <defaults>
</compile_context>

<pallas_src>
import jax
import jax.numpy as jnp
from jax import lax
from jax.experimental import pallas as pl
from jax.experimental.pallas import tpu as pltpu


# --------------------------------------------------------------------------- #
# Fused Pallas kernel
# --------------------------------------------------------------------------- #
def _affinity_fused_kernel(p1_ref, w1_ref, w2_ref, w3_hbm_ref, consts_ref, waff_ref,
                           out_ref, y1_ref, y2_ref, w3_ref, w3_sem):
    """Whole AffinityLayer forward in one invocation.

    Layouts (prepared by the wrapper):
      p1  : (4*49*NP, 4*C) bf16, rows (kh2, kw2, h2, w2, n), cols (kh1, kw1, cin)
      y1  : (4*49*NP, C)   f32 scratch, same row order
      y2  : (49*NP, C)     f32 scratch, rows (h2, w2, n)
      w2  : (4*C, C)  bf16 with BN1 folded in;  w3 : (49*C, C) bf16 with BN2 folded in
      consts : (5, C) f32 = [b1, b2', b3', bn3_scale, bn3_shift * sum(waff)]
      waff   : (NP, 1) f32 = batch_to_feat_mat @ batch_to_feat_vec, zero-padded
    """
    C = out_ref.shape[1]
    NP = waff_ref.shape[0]            # padded batch rows (multiple of 8)
    M2 = y2_ref.shape[0]              # (H//4)*(W//4)*NP   (= 49*NP here)
    P = M2 // NP                      # 49 taps of the 7x7 conv
    KT = w2_ref.shape[0] // C         # 4 taps of the 2x2 conv

    # Prefetch the big stage-3 weight; the DMA overlaps stage-1/2 MXU work.
    w3_copy = pltpu.make_async_copy(w3_hbm_ref, w3_ref, w3_sem)
    w3_copy.start()

    b1 = consts_ref[0:1, :]
    b2 = consts_ref[1:2, :]
    b3 = consts_ref[2:3, :]
    scale3 = consts_ref[3:4, :]
    shift_out = consts_ref[4:5, :]    # bn3 shift pre-multiplied by sum(waff)

    # Stage 1: 2x2/stride-2 conv as one im2col'd matmul, + bias + ReLU.
    y1 = jnp.dot(p1_ref[...], w1_ref[...], preferred_element_type=jnp.float32)
    y1_ref[...] = jnp.maximum(y1 + b1, 0.0)

    # Stage 2: 2x2/stride-2 conv.  Its im2col is a lane-concatenation of 4 contiguous
    # row blocks of y1 (columns ordered (kh2, kw2, c1), matching w2's rows).
    # BN1 is already folded into w2 / b2.
    z1 = jnp.concatenate([y1_ref[j * M2:(j + 1) * M2, :] for j in range(KT)], axis=1)
    y2 = jnp.dot(z1.astype(jnp.bfloat16), w2_ref[...],
                 preferred_element_type=jnp.float32)
    y2_ref[...] = jnp.maximum(y2 + b2, 0.0)           # rows ordered (h2, w2, n)

    # Stage 3: 7x7 valid conv (spatial collapses to 1x1).  Its im2col is again a lane
    # concatenation of P contiguous NP-row blocks of y2 (columns (h2, w2, c2),
    # matching w3's rows).  BN2 is folded into w3 / b3.
    z2 = jnp.concatenate([y2_ref[p * NP:(p + 1) * NP, :] for p in range(P)], axis=1)
    w3_copy.wait()
    f = jnp.dot(z2.astype(jnp.bfloat16), w3_ref[...],
                preferred_element_type=jnp.float32)
    x_relu = jnp.maximum(f + b3, 0.0)                                # (NP, C)

    # BN3 affine + affinity reduce, folded:
    #   out[c] = scale3[c] * sum_n waff[n]*relu(f+b3)[n,c] + shift3[c]*sum_n waff[n]
    out_ref[...] = (scale3 * jnp.sum(waff_ref[...] * x_relu, axis=0, keepdims=True)
                    + shift_out)


# --------------------------------------------------------------------------- #
# JAX glue: input permutation, BN folding, parameter prep, forward
# --------------------------------------------------------------------------- #
def _prep_inputs(x_nchw, params):
    eps = 1e-5
    x = jnp.transpose(x_nchw, (0, 2, 3, 1)).astype(jnp.float32)    # NCHW -> NHWC
    N, H, W, C = x.shape
    if H % 4 or W % 4 or (H // 4, W // 4) != (7, 7):
        raise ValueError("conv_d_final is 7x7: input spatial must be 28x28")
    H2, W2 = H // 4, W // 4
    NP = ((N + 7) // 8) * 8      # pad batch so every in-kernel slice is 8-row aligned

    # Input im2col for the fused kernel: rows (kh2, kw2, h2, w2, n) [n padded to NP],
    # cols (kh1, kw1, cin) to match transpose(W, (2,3,1,0)).reshape(4C, C).
    x8 = x.reshape(N, H2, 2, 2, W2, 2, 2, C)           # n,h2,kh2,kh1,w2,kw2,kw1,c
    p1 = jnp.transpose(x8, (2, 5, 1, 4, 0, 3, 6, 7))   # kh2,kw2,h2,w2,n,kh1,kw1,c
    p1 = p1.reshape(4, H2 * W2, N, 4 * C)
    p1 = jnp.pad(p1, ((0, 0), (0, 0), (0, NP - N), (0, 0)))
    p1 = p1.reshape(4 * H2 * W2 * NP, 4 * C).astype(jnp.bfloat16)

    # Weights in im2col layout + eval-mode BN folding.
    def bn_affine(bn):
        scale = bn["gamma"] / jnp.sqrt(bn["var"] + eps)
        return scale, bn["beta"] - bn["mean"] * scale

    s1, t1 = bn_affine(params["bn1"])
    s2, t2 = bn_affine(params["bn2"])
    s3, t3 = bn_affine(params["bn3"])

    w1m = jnp.transpose(params["w1"], (2, 3, 1, 0)).reshape(4 * C, C)
    w2m = jnp.transpose(params["w2"], (2, 3, 1, 0)).reshape(4 * C, C)
    w3m = jnp.transpose(params["w3"], (2, 3, 1, 0)).reshape(H2 * W2 * C, C)

    w2f = w2m * jnp.tile(s1, 4)[:, None]                  # fold BN1 into conv2
    b2f = params["b2"] + jnp.tile(t1, 4) @ w2m
    w3f = w3m * jnp.tile(s2, H2 * W2)[:, None]            # fold BN2 into conv3
    b3f = params["b3"] + jnp.tile(t2, H2 * W2) @ w3m

    # (Bmat.T @ xf).T @ Bvec  ==  (Bmat @ Bvec).T @ xf  -> parameter-only weight vector.
    waff = params["batch_to_feat_mat"] @ params["batch_to_feat_vec"]   # (N, 1)
    shift_out = t3 * jnp.sum(waff)            # fold BN3 shift into the reduce epilogue
    waff = jnp.pad(waff, ((0, NP - N), (0, 0))).astype(jnp.float32)

    consts = jnp.stack([params["b1"], b2f, b3f, s3, shift_out],
                       axis=0).astype(jnp.float32)

    dims = dict(C=C, NP=NP, M1=4 * H2 * W2 * NP, M2=H2 * W2 * NP)
    return (p1, w1m.astype(jnp.bfloat16), w2f.astype(jnp.bfloat16),
            w3f.astype(jnp.bfloat16), consts, waff, dims)


def affinity_layer_forward(x_nchw, params):
    # TODO(synk): sieve_layer is an externally injected module; treated as identity here.
    p1, w1b, w2b, w3b, consts, waff, d = _prep_inputs(x_nchw, params)
    C, NP, M1, M2 = d["C"], d["NP"], d["M1"], d["M2"]

    out = pl.pallas_call(
        _affinity_fused_kernel,
        out_shape=jax.ShapeDtypeStruct((1, C), jnp.float32),
        in_specs=[
            pl.BlockSpec(memory_space=pltpu.MemorySpace.VMEM),   # p1 patches
            pl.BlockSpec(memory_space=pltpu.MemorySpace.VMEM),   # w1
            pl.BlockSpec(memory_space=pltpu.MemorySpace.VMEM),   # w2 (BN1 folded)
            pl.BlockSpec(memory_space=pl.ANY),                   # w3 (manual DMA)
            pl.BlockSpec(memory_space=pltpu.MemorySpace.VMEM),   # consts (5, C)
            pl.BlockSpec(memory_space=pltpu.MemorySpace.VMEM),   # waff (NP, 1)
        ],
        out_specs=pl.BlockSpec(memory_space=pltpu.MemorySpace.VMEM),
        scratch_shapes=[
            pltpu.VMEM((M1, C), jnp.float32),        # y1
            pltpu.VMEM((M2, C), jnp.float32),        # y2
            pltpu.VMEM(w3b.shape, jnp.bfloat16),     # w3 VMEM landing buffer
            pltpu.SemaphoreType.DMA(()),             # w3 prefetch semaphore
        ],
        compiler_params=pltpu.CompilerParams(vmem_limit_bytes=32 * 1024 * 1024),
    )(p1, w1b, w2b, w3b, consts, waff)
    # TODO(synk): normalize=True calls undefined x_sigmoid() in the original; skipped.
    return out


# --------------------------------------------------------------------------- #
# Parameters (mirrors the module's init; running BN stats made non-trivial so the
# fold is actually exercised) and a pure-JAX reference for correctness.
# --------------------------------------------------------------------------- #
def init_params(key, num_features, affinity_matrix_size, num_affinities):
    C = num_features
    ks = jax.random.split(key, 11)

    def kaiming(k, shape):   # kaiming_normal_(mode='fan_out', relu) on (O, I, kh, kw)
        fan_out = shape[0] * shape[2] * shape[3]
        return ((2.0 / fan_out) ** 0.5) * jax.random.normal(k, shape, jnp.float32)

    def bn(km, kv):          # eval-mode BatchNorm2d; module init: gamma=1, beta=0.01
        return dict(gamma=jnp.ones((C,), jnp.float32),
                    beta=jnp.full((C,), 0.01, jnp.float32),
                    mean=0.1 * jax.random.normal(km, (C,), jnp.float32),
                    var=0.5 + jax.random.uniform(kv, (C,), minval=0.0, maxval=1.0))

    return dict(
        w1=kaiming(ks[0], (C, C, 2, 2)), b1=jnp.full((C,), 0.01, jnp.float32),
        w2=kaiming(ks[1], (C, C, 2, 2)), b2=jnp.full((C,), 0.01, jnp.float32),
        w3=kaiming(ks[2], (C, C, 7, 7)), b3=jnp.full((C,), 0.01, jnp.float32),
        bn1=bn(ks[3], ks[4]), bn2=bn(ks[5], ks[6]), bn3=bn(ks[7], ks[8]),
        batch_to_feat_mat=jax.random.normal(
            ks[9], (affinity_matrix_size, num_affinities), jnp.float32),
        batch_to_feat_vec=jax.random.normal(
            ks[10], (num_affinities, 1), jnp.float32),
    )


def reference_forward(x_nchw, params):
    eps = 1e-5

    def bn(y, p):
        return p["gamma"] * (y - p["mean"]) / jnp.sqrt(p["var"] + eps) + p["beta"]

    def conv(x, w, b, stride):
        w_hwio = jnp.transpose(w, (2, 3, 1, 0))
        y = lax.conv_general_dilated(x, w_hwio, (stride, stride), "VALID",
                                     dimension_numbers=("NHWC", "HWIO", "NHWC"))
        return y + b

    x = jnp.transpose(x_nchw, (0, 2, 3, 1)).astype(jnp.float32)
    x = bn(jax.nn.relu(conv(x, params["w1"], params["b1"], 2)), params["bn1"])
    x = bn(jax.nn.relu(conv(x, params["w2"], params["b2"], 2)), params["bn2"])
    x = bn(jax.nn.relu(conv(x, params["w3"], params["b3"], 1)), params["bn3"])
    xf = x.reshape(x.shape[0], -1)                        # (N, C), H = W = 1
    t = params["batch_to_feat_mat"].T @ xf                # (num_affinities, C)
    return (t.T @ params["batch_to_feat_vec"]).reshape(1, -1)


if __name__ == "__main__":
    num_features = 128          # module default
    affinity_matrix_size = 4    # must equal batch size (required by the final .view)
    num_affinities = 8
    H = W = 28                  # 28 -> 14 -> 7 -> 1 through the three convs

    key = jax.random.PRNGKey(0)
    kx, kp = jax.random.split(key)
    x = jax.random.normal(
        kx, (affinity_matrix_size, num_features, H, W), jnp.float32)
    params = init_params(kp, num_features, affinity_matrix_size, num_affinities)

    fwd = jax.jit(affinity_layer_forward)
    out = jax.block_until_ready(fwd(x, params))
    assert out.shape == (1, num_features), out.shape

    ref = reference_forward(x, params)
    # bf16 matmul operands (f32 accumulate) -> small drift vs the f32 reference.
    err = float(jnp.max(jnp.abs(out - ref)) / (jnp.max(jnp.abs(ref)) + 1e-6))
    if err > 5e-2:
        raise AssertionError(f"mismatch vs reference, normalized max err = {err}")

    print("KERNEL_OK")
</pallas_src>

<mosaic_0001>
module attributes {stable_mosaic.version = 11 : i64} {
  func.func @_affinity_fused_kernel(%arg0: memref<1568x512xbf16, #tpu.memory_space<vmem>>, %arg1: memref<512x128xbf16, #tpu.memory_space<vmem>>, %arg2: memref<512x128xbf16, #tpu.memory_space<vmem>>, %arg3: memref<6272x128xbf16, #tpu.memory_space<any>>, %arg4: memref<5x128xf32, #tpu.memory_space<vmem>>, %arg5: memref<8x1xf32, #tpu.memory_space<vmem>>, %arg6: memref<1x128xf32, #tpu.memory_space<vmem>>, %arg7: memref<1568x128xf32, #tpu.memory_space<vmem>>, %arg8: memref<392x128xf32, #tpu.memory_space<vmem>>, %arg9: memref<6272x128xbf16, #tpu.memory_space<vmem>>, %arg10: memref<!tpu.dma_semaphore, #tpu.memory_space<semaphore_mem>>) attributes {dimension_semantics = [], scalar_prefetch = 0 : i64, scratch_operands = 4 : i64, tpu.core_type = #tpu.core_type<tc>} {
    tpu.enqueue_dma source(%arg3 : memref<6272x128xbf16, #tpu.memory_space<any>>) target(%arg9 : memref<6272x128xbf16, #tpu.memory_space<vmem>>) target_semaphore(%arg10 : memref<!tpu.dma_semaphore, #tpu.memory_space<semaphore_mem>>)
    %c0 = arith.constant 0 : index
    %c0_0 = arith.constant 0 : index
    %0 = vector.load %arg4[%c0, %c0_0] : memref<5x128xf32, #tpu.memory_space<vmem>>, vector<1x128xf32>
    %c1 = arith.constant 1 : index
    %c0_1 = arith.constant 0 : index
    %1 = vector.load %arg4[%c1, %c0_1] : memref<5x128xf32, #tpu.memory_space<vmem>>, vector<1x128xf32>
    %c2 = arith.constant 2 : index
    %c0_2 = arith.constant 0 : index
    %2 = vector.load %arg4[%c2, %c0_2] : memref<5x128xf32, #tpu.memory_space<vmem>>, vector<1x128xf32>
    %c3 = arith.constant 3 : index
    %c0_3 = arith.constant 0 : index
    %3 = vector.load %arg4[%c3, %c0_3] : memref<5x128xf32, #tpu.memory_space<vmem>>, vector<1x128xf32>
    %c4 = arith.constant 4 : index
    %c0_4 = arith.constant 0 : index
    %4 = vector.load %arg4[%c4, %c0_4] : memref<5x128xf32, #tpu.memory_space<vmem>>, vector<1x128xf32>
    %c0_5 = arith.constant 0 : index
    %c0_6 = arith.constant 0 : index
    %5 = vector.load %arg0[%c0_5, %c0_6] : memref<1568x512xbf16, #tpu.memory_space<vmem>>, vector<1568x512xbf16>
    %c0_7 = arith.constant 0 : index
    %c0_8 = arith.constant 0 : index
    %6 = vector.load %arg1[%c0_7, %c0_8] : memref<512x128xbf16, #tpu.memory_space<vmem>>, vector<512x128xbf16>
    %cst = arith.constant dense<0.000000e+00> : vector<1568x128xf32>
    %7 = tpu.matmul %5, %6, %cst {dimension_numbers = #tpu.dot_dimension_numbers<[1], [0], [0], [1], [0, 0, 1, 1], [], []>} : vector<1568x512xbf16>, vector<512x128xbf16>, vector<1568x128xf32> -> vector<1568x128xf32>
    %8 = vector.broadcast %0 : vector<1x128xf32> to vector<1568x128xf32>
    %9 = arith.addf %7, %8 : vector<1568x128xf32>
    %cst_9 = arith.constant 0.000000e+00 : f32
    %10 = vector.broadcast %cst_9 : f32 to vector<1568x128xf32>
    %11 = arith.maximumf %9, %10 : vector<1568x128xf32>
    %c0_10 = arith.constant 0 : index
    %c0_11 = arith.constant 0 : index
    %12 = vector.load %arg7[%c0_10, %c0_11] : memref<1568x128xf32, #tpu.memory_space<vmem>>, vector<1568x128xf32>
    tpu.vector_store %arg7[%c0_10, %c0_11], %11 {strides = array<i32>} : memref<1568x128xf32, #tpu.memory_space<vmem>>, vector<1568x128xf32>,
    %c0_12 = arith.constant 0 : index
    %c0_13 = arith.constant 0 : index
    %13 = vector.load %arg7[%c0_12, %c0_13] : memref<1568x128xf32, #tpu.memory_space<vmem>>, vector<392x128xf32>
    %c392 = arith.constant 392 : index
    %c0_14 = arith.constant 0 : index
    %14 = vector.load %arg7[%c392, %c0_14] : memref<1568x128xf32, #tpu.memory_space<vmem>>, vector<392x128xf32>
    %c784 = arith.constant 784 : index
    %c0_15 = arith.constant 0 : index
    %15 = vector.load %arg7[%c784, %c0_15] : memref<1568x128xf32, #tpu.memory_space<vmem>>, vector<392x128xf32>
    %c1176 = arith.constant 1176 : index
    %c0_16 = arith.constant 0 : index
    %16 = vector.load %arg7[%c1176, %c0_16] : memref<1568x128xf32, #tpu.memory_space<vmem>>, vector<392x128xf32>
    %17 = tpu.concatenate %13, %14, %15, %16 in 1 : vector<392x128xf32>, vector<392x128xf32>, vector<392x128xf32>, vector<392x128xf32> -> vector<392x512xf32>
    %18 = arith.truncf %17 : vector<392x512xf32> to vector<392x512xbf16>
    %c0_17 = arith.constant 0 : index
    %c0_18 = arith.constant 0 : index
    %19 = vector.load %arg2[%c0_17, %c0_18] : memref<512x128xbf16, #tpu.memory_space<vmem>>, vector<512x128xbf16>
    %cst_19 = arith.constant dense<0.000000e+00> : vector<392x128xf32>
    %20 = tpu.matmul %18, %19, %cst_19 {dimension_numbers = #tpu.dot_dimension_numbers<[1], [0], [0], [1], [0, 0, 1, 1], [], []>} : vector<392x512xbf16>, vector<512x128xbf16>, vector<392x128xf32> -> vector<392x128xf32>
    %21 = vector.broadcast %1 : vector<1x128xf32> to vector<392x128xf32>
    %22 = arith.addf %20, %21 : vector<392x128xf32>
    %cst_20 = arith.constant 0.000000e+00 : f32
    %23 = vector.broadcast %cst_20 : f32 to vector<392x128xf32>
    %24 = arith.maximumf %22, %23 : vector<392x128xf32>
    %c0_21 = arith.constant 0 : index
    %c0_22 = arith.constant 0 : index
    %25 = vector.load %arg8[%c0_21, %c0_22] : memref<392x128xf32, #tpu.memory_space<vmem>>, vector<392x128xf32>
    tpu.vector_store %arg8[%c0_21, %c0_22], %24 {strides = array<i32>} : memref<392x128xf32, #tpu.memory_space<vmem>>, vector<392x128xf32>,
    %c0_23 = arith.constant 0 : index
    %c0_24 = arith.constant 0 : index
    %26 = vector.load %arg8[%c0_23, %c0_24] : memref<392x128xf32, #tpu.memory_space<vmem>>, vector<8x128xf32>
    %c8 = arith.constant 8 : index
    %c0_25 = arith.constant 0 : index
    %27 = vector.load %arg8[%c8, %c0_25] : memref<392x128xf32, #tpu.memory_space<vmem>>, vector<8x128xf32>
    %c16 = arith.constant 16 : index
    %c0_26 = arith.constant 0 : index
    %28 = vector.load %arg8[%c16, %c0_26] : memref<392x128xf32, #tpu.memory_space<vmem>>, vector<8x128xf32>
    %c24 = arith.constant 24 : index
    %c0_27 = arith.constant 0 : index
    %29 = vector.load %arg8[%c24, %c0_27] : memref<392x128xf32, #tpu.memory_space<vmem>>, vector<8x128xf32>
    %c32 = arith.constant 32 : index
    %c0_28 = arith.constant 0 : index
    %30 = vector.load %arg8[%c32, %c0_28] : memref<392x128xf32, #tpu.memory_space<vmem>>, vector<8x128xf32>
    %c40 = arith.constant 40 : index
    %c0_29 = arith.constant 0 : index
    %31 = vector.load %arg8[%c40, %c0_29] : memref<392x128xf32, #tpu.memory_space<vmem>>, vector<8x128xf32>
    %c48 = arith.constant 48 : index
    %c0_30 = arith.constant 0 : index
    %32 = vector.load %arg8[%c48, %c0_30] : memref<392x128xf32, #tpu.memory_space<vmem>>, vector<8x128xf32>
    %c56 = arith.constant 56 : index
    %c0_31 = arith.constant 0 : index
    %33 = vector.load %arg8[%c56, %c0_31] : memref<392x128xf32, #tpu.memory_space<vmem>>, vector<8x128xf32>
    %c64 = arith.constant 64 : index
    %c0_32 = arith.constant 0 : index
    %34 = vector.load %arg8[%c64, %c0_32] : memref<392x128xf32, #tpu.memory_space<vmem>>, vector<8x128xf32>
    %c72 = arith.constant 72 : index
    %c0_33 = arith.constant 0 : index
    %35 = vector.load %arg8[%c72, %c0_33] : memref<392x128xf32, #tpu.memory_space<vmem>>, vector<8x128xf32>
    %c80 = arith.constant 80 : index
    %c0_34 = arith.constant 0 : index
    %36 = vector.load %arg8[%c80, %c0_34] : memref<392x128xf32, #tpu.memory_space<vmem>>, vector<8x128xf32>
    %c88 = arith.constant 88 : index
    %c0_35 = arith.constant 0 : index
    %37 = vector.load %arg8[%c88, %c0_35] : memref<392x128xf32, #tpu.memory_space<vmem>>, vector<8x128xf32>
    %c96 = arith.constant 96 : index
    %c0_36 = arith.constant 0 : index
    %38 = vector.load %arg8[%c96, %c0_36] : memref<392x128xf32, #tpu.memory_space<vmem>>, vector<8x128xf32>
    %c104 = arith.constant 104 : index
    %c0_37 = arith.constant 0 : index
    %39 = vector.load %arg8[%c104, %c0_37] : memref<392x128xf32, #tpu.memory_space<vmem>>, vector<8x128xf32>
    %c112 = arith.constant 112 : index
    %c0_38 = arith.constant 0 : index
    %40 = vector.load %arg8[%c112, %c0_38] : memref<392x128xf32, #tpu.memory_space<vmem>>, vector<8x128xf32>
    %c120 = arith.constant 120 : index
    %c0_39 = arith.constant 0 : index
    %41 = vector.load %arg8[%c120, %c0_39] : memref<392x128xf32, #tpu.memory_space<vmem>>, vector<8x128xf32>
    %c128 = arith.constant 128 : index
    %c0_40 = arith.constant 0 : index
    %42 = vector.load %arg8[%c128, %c0_40] : memref<392x128xf32, #tpu.memory_space<vmem>>, vector<8x128xf32>
    %c136 = arith.constant 136 : index
    %c0_41 = arith.constant 0 : index
    %43 = vector.load %arg8[%c136, %c0_41] : memref<392x128xf32, #tpu.memory_space<vmem>>, vector<8x128xf32>
    %c144 = arith.constant 144 : index
    %c0_42 = arith.constant 0 : index
    %44 = vector.load %arg8[%c144, %c0_42] : memref<392x128xf32, #tpu.memory_space<vmem>>, vector<8x128xf32>
    %c152 = arith.constant 152 : index
    %c0_43 = arith.constant 0 : index
    %45 = vector.load %arg8[%c152, %c0_43] : memref<392x128xf32, #tpu.memory_space<vmem>>, vector<8x128xf32>
    %c160 = arith.constant 160 : index
    %c0_44 = arith.constant 0 : index
    %46 = vector.load %arg8[%c160, %c0_44] : memref<392x128xf32, #tpu.memory_space<vmem>>, vector<8x128xf32>
    %c168 = arith.constant 168 : index
    %c0_45 = arith.constant 0 : index
    %47 = vector.load %arg8[%c168, %c0_45] : memref<392x128xf32, #tpu.memory_space<vmem>>, vector<8x128xf32>
    %c176 = arith.constant 176 : index
    %c0_46 = arith.constant 0 : index
    %48 = vector.load %arg8[%c176, %c0_46] : memref<392x128xf32, #tpu.memory_space<vmem>>, vector<8x128xf32>
    %c184 = arith.constant 184 : index
    %c0_47 = arith.constant 0 : index
    %49 = vector.load %arg8[%c184, %c0_47] : memref<392x128xf32, #tpu.memory_space<vmem>>, vector<8x128xf32>
    %c192 = arith.constant 192 : index
    %c0_48 = arith.constant 0 : index
    %50 = vector.load %arg8[%c192, %c0_48] : memref<392x128xf32, #tpu.memory_space<vmem>>, vector<8x128xf32>
    %c200 = arith.constant 200 : index
    %c0_49 = arith.constant 0 : index
    %51 = vector.load %arg8[%c200, %c0_49] : memref<392x128xf32, #tpu.memory_space<vmem>>, vector<8x128xf32>
    %c208 = arith.constant 208 : index
    %c0_50 = arith.constant 0 : index
    %52 = vector.load %arg8[%c208, %c0_50] : memref<392x128xf32, #tpu.memory_space<vmem>>, vector<8x128xf32>
    %c216 = arith.constant 216 : index
    %c0_51 = arith.constant 0 : index
    %53 = vector.load %arg8[%c216, %c0_51] : memref<392x128xf32, #tpu.memory_space<vmem>>, vector<8x128xf32>
    %c224 = arith.constant 224 : index
    %c0_52 = arith.constant 0 : index
    %54 = vector.load %arg8[%c224, %c0_52] : memref<392x128xf32, #tpu.memory_space<vmem>>, vector<8x128xf32>
    %c232 = arith.constant 232 : index
    %c0_53 = arith.constant 0 : index
    %55 = vector.load %arg8[%c232, %c0_53] : memref<392x128xf32, #tpu.memory_space<vmem>>, vector<8x128xf32>
    %c240 = arith.constant 240 : index
    %c0_54 = arith.constant 0 : index
    %56 = vector.load %arg8[%c240, %c0_54] : memref<392x128xf32, #tpu.memory_space<vmem>>, vector<8x128xf32>
    %c248 = arith.constant 248 : index
    %c0_55 = arith.constant 0 : index
    %57 = vector.load %arg8[%c248, %c0_55] : memref<392x128xf32, #tpu.memory_space<vmem>>, vector<8x128xf32>
    %c256 = arith.constant 256 : index
    %c0_56 = arith.constant 0 : index
    %58 = vector.load %arg8[%c256, %c0_56] : memref<392x128xf32, #tpu.memory_space<vmem>>, vector<8x128xf32>
    %c264 = arith.constant 264 : index
    %c0_57 = arith.constant 0 : index
    %59 = vector.load %arg8[%c264, %c0_57] : memref<392x128xf32, #tpu.memory_space<vmem>>, vector<8x128xf32>
    %c272 = arith.constant 272 : index
    %c0_58 = arith.constant 0 : index
    %60 = vector.load %arg8[%c272, %c0_58] : memref<392x128xf32, #tpu.memory_space<vmem>>, vector<8x128xf32>
    %c280 = arith.constant 280 : index
    %c0_59 = arith.constant 0 : index
    %61 = vector.load %arg8[%c280, %c0_59] : memref<392x128xf32, #tpu.memory_space<vmem>>, vector<8x128xf32>
    %c288 = arith.constant 288 : index
    %c0_60 = arith.constant 0 : index
    %62 = vector.load %arg8[%c288, %c0_60] : memref<392x128xf32, #tpu.memory_space<vmem>>, vector<8x128xf32>
    %c296 = arith.constant 296 : index
    %c0_61 = arith.constant 0 : index
    %63 = vector.load %arg8[%c296, %c0_61] : memref<392x128xf32, #tpu.memory_space<vmem>>, vector<8x128xf32>
    %c304 = arith.constant 304 : index
    %c0_62 = arith.constant 0 : index
    %64 = vector.load %arg8[%c304, %c0_62] : memref<392x128xf32, #tpu.memory_space<vmem>>, vector<8x128xf32>
    %c312 = arith.constant 312 : index
    %c0_63 = arith.constant 0 : index
    %65 = vector.load %arg8[%c312, %c0_63] : memref<392x128xf32, #tpu.memory_space<vmem>>, vector<8x128xf32>
    %c320 = arith.constant 320 : index
    %c0_64 = arith.constant 0 : index
    %66 = vector.load %arg8[%c320, %c0_64] : memref<392x128xf32, #tpu.memory_space<vmem>>, vector<8x128xf32>
    %c328 = arith.constant 328 : index
    %c0_65 = arith.constant 0 : index
    %67 = vector.load %arg8[%c328, %c0_65] : memref<392x128xf32, #tpu.memory_space<vmem>>, vector<8x128xf32>
    %c336 = arith.constant 336 : index
    %c0_66 = arith.constant 0 : index
    %68 = vector.load %arg8[%c336, %c0_66] : memref<392x128xf32, #tpu.memory_space<vmem>>, vector<8x128xf32>
    %c344 = arith.constant 344 : index
    %c0_67 = arith.constant 0 : index
    %69 = vector.load %arg8[%c344, %c0_67] : memref<392x128xf32, #tpu.memory_space<vmem>>, vector<8x128xf32>
    %c352 = arith.constant 352 : index
    %c0_68 = arith.constant 0 : index
    %70 = vector.load %arg8[%c352, %c0_68] : memref<392x128xf32, #tpu.memory_space<vmem>>, vector<8x128xf32>
    %c360 = arith.constant 360 : index
    %c0_69 = arith.constant 0 : index
    %71 = vector.load %arg8[%c360, %c0_69] : memref<392x128xf32, #tpu.memory_space<vmem>>, vector<8x128xf32>
    %c368 = arith.constant 368 : index
    %c0_70 = arith.constant 0 : index
    %72 = vector.load %arg8[%c368, %c0_70] : memref<392x128xf32, #tpu.memory_space<vmem>>, vector<8x128xf32>
    %c376 = arith.constant 376 : index
    %c0_71 = arith.constant 0 : index
    %73 = vector.load %arg8[%c376, %c0_71] : memref<392x128xf32, #tpu.memory_space<vmem>>, vector<8x128xf32>
    %c384 = arith.constant 384 : index
    %c0_72 = arith.constant 0 : index
    %74 = vector.load %arg8[%c384, %c0_72] : memref<392x128xf32, #tpu.memory_space<vmem>>, vector<8x128xf32>
    %75 = tpu.concatenate %26, %27, %28, %29, %30, %31, %32, %33, %34, %35, %36, %37, %38, %39, %40, %41 in 1 : vector<8x128xf32>, vector<8x128xf32>, vector<8x128xf32>, vector<8x128xf32>, vector<8x128xf32>, vector<8x128xf32>, vector<8x128xf32>, vector<8x128xf32>, vector<8x128xf32>, vector<8x128xf32>, vector<8x128xf32>, vector<8x128xf32>, vector<8x128xf32>, vector<8x128xf32>, vector<8x128xf32>, vector<8x128xf32> -> vector<8x2048xf32>
    %76 = tpu.concatenate %42, %43, %44, %45, %46, %47, %48, %49, %50, %51, %52, %53, %54, %55, %56, %57 in 1 : vector<8x128xf32>, vector<8x128xf32>, vector<8x128xf32>, vector<8x128xf32>, vector<8x128xf32>, vector<8x128xf32>, vector<8x128xf32>, vector<8x128xf32>, vector<8x128xf32>, vector<8x128xf32>, vector<8x128xf32>, vector<8x128xf32>, vector<8x128xf32>, vector<8x128xf32>, vector<8x128xf32>, vector<8x128xf32> -> vector<8x2048xf32>
    %77 = tpu.concatenate %58, %59, %60, %61, %62, %63, %64, %65, %66, %67, %68, %69, %70, %71, %72, %73 in 1 : vector<8x128xf32>, vector<8x128xf32>, vector<8x128xf32>, vector<8x128xf32>, vector<8x128xf32>, vector<8x128xf32>, vector<8x128xf32>, vector<8x128xf32>, vector<8x128xf32>, vector<8x128xf32>, vector<8x128xf32>, vector<8x128xf32>, vector<8x128xf32>, vector<8x128xf32>, vector<8x128xf32>, vector<8x128xf32> -> vector<8x2048xf32>
    %78 = tpu.concatenate %75, %76, %77, %74 in 1 : vector<8x2048xf32>, vector<8x2048xf32>, vector<8x2048xf32>, vector<8x128xf32> -> vector<8x6272xf32>
    tpu.wait_dma2 semaphore(%arg10 : memref<!tpu.dma_semaphore, #tpu.memory_space<semaphore_mem>>) src(%arg3 : memref<6272x128xbf16, #tpu.memory_space<any>>) dst(%arg9 : memref<6272x128xbf16, #tpu.memory_space<vmem>>)
    %79 = arith.truncf %78 : vector<8x6272xf32> to vector<8x6272xbf16>
    %c0_73 = arith.constant 0 : index
    %c0_74 = arith.constant 0 : index
    %80 = vector.load %arg9[%c0_73, %c0_74] : memref<6272x128xbf16, #tpu.memory_space<vmem>>, vector<6272x128xbf16>
    %cst_75 = arith.constant dense<0.000000e+00> : vector<8x128xf32>
    %81 = tpu.matmul %79, %80, %cst_75 {dimension_numbers = #tpu.dot_dimension_numbers<[1], [0], [0], [1], [0, 0, 1, 1], [], []>} : vector<8x6272xbf16>, vector<6272x128xbf16>, vector<8x128xf32> -> vector<8x128xf32>
    %82 = vector.broadcast %2 : vector<1x128xf32> to vector<8x128xf32>
    %83 = arith.addf %81, %82 : vector<8x128xf32>
    %cst_76 = arith.constant 0.000000e+00 : f32
    %84 = vector.broadcast %cst_76 : f32 to vector<8x128xf32>
    %85 = arith.maximumf %83, %84 : vector<8x128xf32>
    %c0_77 = arith.constant 0 : index
    %c0_78 = arith.constant 0 : index
    %86 = vector.load %arg5[%c0_77, %c0_78] : memref<8x1xf32, #tpu.memory_space<vmem>>, vector<8x1xf32>
    %87 = vector.broadcast %86 : vector<8x1xf32> to vector<8x128xf32>
    %88 = arith.mulf %87, %85 : vector<8x128xf32>
    %cst_79 = arith.constant dense<0.000000e+00> : vector<128xf32>
    %89 = vector.multi_reduction <add>, %88, %cst_79 [0] : vector<8x128xf32> to vector<128xf32>
    %90 = vector.shape_cast %89 : vector<128xf32> to vector<1x128xf32>
    %91 = arith.mulf %3, %90 : vector<1x128xf32>
    %92 = arith.addf %91, %4 : vector<1x128xf32>
    %c0_80 = arith.constant 0 : index
    %c0_81 = arith.constant 0 : index
    %93 = vector.load %arg6[%c0_80, %c0_81] : memref<1x128xf32, #tpu.memory_space<vmem>>, vector<1x128xf32>
    tpu.vector_store %arg6[%c0_80, %c0_81], %92 {strides = array<i32>} : memref<1x128xf32, #tpu.memory_space<vmem>>, vector<1x128xf32>,
    return
  }
}

</mosaic_0001>

<bundles_post_ra>
// kernel: affinity_layer_forward.1
= control target key start
LH: loop header
LB: loop body
LE: loop exit
PB: predicated region body
PF: predicated region fallthrough
CT: control target
= control target key end

     0   :  { %11 = vsyncpa [#allocation7], 0  ;;  %s15341_s0 = inlined_call_operand.vmem [shape: bf16[1568,512], index: 0, kind: input, shape index: {}]   ;;  %s15342_s1 = inlined_call_operand.vmem [shape: bf16[512,128], index: 1, kind: input, shape index: {}]   ;;  %s15343_s2 = inlined_call_operand.vmem [shape: bf16[512,128], index: 2, kind: input, shape index: {}]   ;;  %s15344_s3 = inlined_call_operand.vmem [shape: bf16[6272,128], index: 3, kind: input, shape index: {}]   ;;  %s15345_s4 = inlined_call_operand.vmem [shape: f32[5,128], index: 4, kind: input, shape index: {}]   ;;  %s15346_s5 = inlined_call_operand.vmem [shape: f32[8,1], index: 5, kind: input, shape index: {}]   ;;  %s15347_s6 = inlined_call_operand.hbm [shape: f32[1,128], index: 6, kind: output, shape index: {}]  }
   0x1   :  { %v10597_v0 = vld [vmem:[%s15344_s3] sm:$0xff]  ;;  %v10602_v1 = vld [vmem:[%s15344_s3 + $0x8] sm:$0xff]  ;;  %v10607_v2 = vld [vmem:[%s15344_s3 + $0x10] sm:$0xff] }
   0x2   :  { %15351 = vst [vmem:[#allocation11_spill] sm:$0xff] %v10597_v0  ;;  %15352 = vst [vmem:[#allocation12_spill] sm:$0xff] %v10602_v1  ;;  %v10612_v3 = vld [vmem:[%s15344_s3 + $0x18] sm:$0xff]  ;;  %v10617_v4 = vld [vmem:[%s15344_s3 + $0x20] sm:$0xff] }
   0x3   :  { %15353 = vst [vmem:[#allocation13_spill] sm:$0xff] %v10607_v2  ;;  %15354 = vst [vmem:[#allocation14_spill] sm:$0xff] %v10612_v3  ;;  %v10622_v5 = vld [vmem:[%s15344_s3 + $0x28] sm:$0xff]  ;;  %v10627_v6 = vld [vmem:[%s15344_s3 + $0x30] sm:$0xff] }
   0x4   :  { %15355 = vst [vmem:[#allocation15_spill] sm:$0xff] %v10617_v4  ;;  %15356 = vst [vmem:[#allocation16_spill] sm:$0xff] %v10622_v5  ;;  %v10632_v7 = vld [vmem:[%s15344_s3 + $0x38] sm:$0xff]  ;;  %v10637_v8 = vld [vmem:[%s15344_s3 + $0x40] sm:$0xff] }
   0x5   :  { %15357 = vst [vmem:[#allocation17_spill] sm:$0xff] %v10627_v6  ;;  %15358 = vst [vmem:[#allocation18_spill] sm:$0xff] %v10632_v7  ;;  %v10642_v9 = vld [vmem:[%s15344_s3 + $0x48] sm:$0xff]  ;;  %v10647_v10 = vld [vmem:[%s15344_s3 + $0x50] sm:$0xff] }
   0x6   :  { %15359 = vst [vmem:[#allocation19_spill] sm:$0xff] %v10637_v8  ;;  %15360 = vst [vmem:[#allocation20_spill] sm:$0xff] %v10642_v9  ;;  %v10652_v11 = vld [vmem:[%s15344_s3 + $0x58] sm:$0xff]  ;;  %v10657_v12 = vld [vmem:[%s15344_s3 + $0x60] sm:$0xff] }
   0x7   :  { %15361 = vst [vmem:[#allocation21_spill] sm:$0xff] %v10647_v10  ;;  %15362 = vst [vmem:[#allocation22_spill] sm:$0xff] %v10652_v11  ;;  %v10662_v13 = vld [vmem:[%s15344_s3 + $0x68] sm:$0xff]  ;;  %v10667_v14 = vld [vmem:[%s15344_s3 + $0x70] sm:$0xff] }
   0x8   :  { %15363 = vst [vmem:[#allocation23_spill] sm:$0xff] %v10657_v12  ;;  %15364 = vst [vmem:[#allocation24_spill] sm:$0xff] %v10662_v13  ;;  %v10672_v15 = vld [vmem:[%s15344_s3 + $0x78] sm:$0xff]  ;;  %v10677_v16 = vld [vmem:[%s15344_s3 + $0x80] sm:$0xff] }
   0x9   :  { %15365 = vst [vmem:[#allocation25_spill] sm:$0xff] %v10667_v14  ;;  %15366 = vst [vmem:[#allocation26_spill] sm:$0xff] %v10672_v15  ;;  %v10682_v17 = vld [vmem:[%s15344_s3 + $0x88] sm:$0xff]  ;;  %v10687_v18 = vld [vmem:[%s15344_s3 + $0x90] sm:$0xff] }
   0xa   :  { %15367 = vst [vmem:[#allocation27_spill] sm:$0xff] %v10677_v16  ;;  %15368 = vst [vmem:[#allocation28_spill] sm:$0xff] %v10682_v17  ;;  %v10692_v19 = vld [vmem:[%s15344_s3 + $0x98] sm:$0xff]  ;;  %v10697_v20 = vld [vmem:[%s15344_s3 + $0xa0] sm:$0xff] }
   0xb   :  { %15369 = vst [vmem:[#allocation29_spill] sm:$0xff] %v10687_v18  ;;  %15370 = vst [vmem:[#allocation30_spill] sm:$0xff] %v10692_v19  ;;  %v10702_v21 = vld [vmem:[%s15344_s3 + $0xa8] sm:$0xff]  ;;  %v10707_v22 = vld [vmem:[%s15344_s3 + $0xb0] sm:$0xff] }
   0xc   :  { %15371 = vst [vmem:[#allocation31_spill] sm:$0xff] %v10697_v20  ;;  %15372 = vst [vmem:[#allocation32_spill] sm:$0xff] %v10702_v21  ;;  %v10712_v23 = vld [vmem:[%s15344_s3 + $0xb8] sm:$0xff]  ;;  %v10717_v24 = vld [vmem:[%s15344_s3 + $0xc0] sm:$0xff] }
   0xd   :  { %15373 = vst [vmem:[#allocation33_spill] sm:$0xff] %v10707_v22  ;;  %15374 = vst [vmem:[#allocation34_spill] sm:$0xff] %v10712_v23  ;;  %v10722_v25 = vld [vmem:[%s15344_s3 + $0xc8] sm:$0xff]  ;;  %v10727_v26 = vld [vmem:[%s15344_s3 + $0xd0] sm:$0xff] }
   0xe   :  { %15375 = vst [vmem:[#allocation35_spill] sm:$0xff] %v10717_v24  ;;  %15376 = vst [vmem:[#allocation36_spill] sm:$0xff] %v10722_v25  ;;  %v10732_v27 = vld [vmem:[%s15344_s3 + $0xd8] sm:$0xff]  ;;  %v10737_v28 = vld [vmem:[%s15344_s3 + $0xe0] sm:$0xff] }
   0xf   :  { %15377 = vst [vmem:[#allocation37_spill] sm:$0xff] %v10727_v26  ;;  %15378 = vst [vmem:[#allocation38_spill] sm:$0xff] %v10732_v27  ;;  %v10742_v29 = vld [vmem:[%s15344_s3 + $0xe8] sm:$0xff]  ;;  %v10747_v30 = vld [vmem:[%s15344_s3 + $0xf0] sm:$0xff] }
  0x10   :  { %15379 = vst [vmem:[#allocation39_spill] sm:$0xff] %v10737_v28  ;;  %15380 = vst [vmem:[#allocation40_spill] sm:$0xff] %v10742_v29  ;;  %v10752_v31 = vld [vmem:[%s15344_s3 + $0xf8] sm:$0xff]  ;;  %v10757_v32 = vld [vmem:[%s15344_s3 + $0x100] sm:$0xff] }
  0x11   :  { %15381 = vst [vmem:[#allocation41_spill] sm:$0xff] %v10747_v30  ;;  %15382 = vst [vmem:[#allocation42_spill] sm:$0xff] %v10752_v31  ;;  %v10762_v33 = vld [vmem:[%s15344_s3 + $0x108] sm:$0xff]  ;;  %v10767_v34 = vld [vmem:[%s15344_s3 + $0x110] sm:$0xff] }
  0x12   :  { %15383 = vst [vmem:[#allocation43_spill] sm:$0xff] %v10757_v32  ;;  %15384 = vst [vmem:[#allocation44_spill] sm:$0xff] %v10762_v33  ;;  %v10772_v35 = vld [vmem:[%s15344_s3 + $0x118] sm:$0xff]  ;;  %v10777_v36 = vld [vmem:[%s15344_s3 + $0x120] sm:$0xff] }
  0x13   :  { %15385 = vst [vmem:[#allocation45_spill] sm:$0xff] %v10767_v34  ;;  %15386 = vst [vmem:[#allocation46_spill] sm:$0xff] %v10772_v35  ;;  %v10782_v37 = vld [vmem:[%s15344_s3 + $0x128] sm:$0xff]  ;;  %v10787_v38 = vld [vmem:[%s15344_s3 + $0x130] sm:$0xff] }
  0x14   :  { %15387 = vst [vmem:[#allocation47_spill] sm:$0xff] %v10777_v36  ;;  %15388 = vst [vmem:[#allocation48_spill] sm:$0xff] %v10782_v37  ;;  %v10792_v39 = vld [vmem:[%s15344_s3 + $0x138] sm:$0xff]  ;;  %v10797_v40 = vld [vmem:[%s15344_s3 + $0x140] sm:$0xff] }
  0x15   :  { %15389 = vst [vmem:[#allocation49_spill] sm:$0xff] %v10787_v38  ;;  %15390 = vst [vmem:[#allocation50_spill] sm:$0xff] %v10792_v39  ;;  %v10802_v41 = vld [vmem:[%s15344_s3 + $0x148] sm:$0xff]  ;;  %v10807_v42 = vld [vmem:[%s15344_s3 + $0x150] sm:$0xff] }
  0x16   :  { %15391 = vst [vmem:[#allocation51_spill] sm:$0xff] %v10797_v40  ;;  %15392 = vst [vmem:[#allocation52_spill] sm:$0xff] %v10802_v41  ;;  %v10812_v43 = vld [vmem:[%s15344_s3 + $0x158] sm:$0xff]  ;;  %v10817_v44 = vld [vmem:[%s15344_s3 + $0x160] sm:$0xff] }
  0x17   :  { %15393 = vst [vmem:[#allocation53_spill] sm:$0xff] %v10807_v42  ;;  %15394 = vst [vmem:[#allocation54_spill] sm:$0xff] %v10812_v43  ;;  %v10822_v45 = vld [vmem:[%s15344_s3 + $0x168] sm:$0xff]  ;;  %v10827_v46 = vld [vmem:[%s15344_s3 + $0x170] sm:$0xff] }
  0x18   :  { %15395 = vst [vmem:[#allocation55_spill] sm:$0xff] %v10817_v44  ;;  %15396 = vst [vmem:[#allocation56_spill] sm:$0xff] %v10822_v45  ;;  %v10832_v47 = vld [vmem:[%s15344_s3 + $0x178] sm:$0xff]  ;;  %v10837_v48 = vld [vmem:[%s15344_s3 + $0x180] sm:$0xff] }
  0x19   :  { %15397 = vst [vmem:[#allocation57_spill] sm:$0xff] %v10827_v46  ;;  %15398 = vst [vmem:[#allocation58_spill] sm:$0xff] %v10832_v47  ;;  %v10842_v49 = vld [vmem:[%s15344_s3 + $0x188] sm:$0xff]  ;;  %v10847_v50 = vld [vmem:[%s15344_s3 + $0x190] sm:$0xff] }
  0x1a   :  { %15399 = vst [vmem:[#allocation59_spill] sm:$0xff] %v10837_v48  ;;  %15400 = vst [vmem:[#allocation60_spill] sm:$0xff] %v10842_v49  ;;  %v10852_v51 = vld [vmem:[%s15344_s3 + $0x198] sm:$0xff]  ;;  %v10857_v52 = vld [vmem:[%s15344_s3 + $0x1a0] sm:$0xff] }
  0x1b   :  { %15401 = vst [vmem:[#allocation61_spill] sm:$0xff] %v10847_v50  ;;  %15402 = vst [vmem:[#allocation62_spill] sm:$0xff] %v10852_v51  ;;  %v10862_v53 = vld [vmem:[%s15344_s3 + $0x1a8] sm:$0xff]  ;;  %v10867_v54 = vld [vmem:[%s15344_s3 + $0x1b0] sm:$0xff] }
  0x1c   :  { %15403 = vst [vmem:[#allocation63_spill] sm:$0xff] %v10857_v52  ;;  %15404 = vst [vmem:[#allocation64_spill] sm:$0xff] %v10862_v53  ;;  %v10872_v55 = vld [vmem:[%s15344_s3 + $0x1b8] sm:$0xff]  ;;  %v10877_v56 = vld [vmem:[%s15344_s3 + $0x1c0] sm:$0xff] }
  0x1d   :  { %15405 = vst [vmem:[#allocation65_spill] sm:$0xff] %v10867_v54  ;;  %15406 = vst [vmem:[#allocation66_spill] sm:$0xff] %v10872_v55  ;;  %v10882_v57 = vld [vmem:[%s15344_s3 + $0x1c8] sm:$0xff]  ;;  %v10887_v58 = vld [vmem:[%s15344_s3 + $0x1d0] sm:$0xff] }
  0x1e   :  { %15407 = vst [vmem:[#allocation67_spill] sm:$0xff] %v10877_v56  ;;  %15408 = vst [vmem:[#allocation68_spill] sm:$0xff] %v10882_v57  ;;  %v10892_v59 = vld [vmem:[%s15344_s3 + $0x1d8] sm:$0xff]  ;;  %v10897_v60 = vld [vmem:[%s15344_s3 + $0x1e0] sm:$0xff] }
  0x1f   :  { %15409 = vst [vmem:[#allocation69_spill] sm:$0xff] %v10887_v58  ;;  %15410 = vst [vmem:[#allocation70_spill] sm:$0xff] %v10892_v59  ;;  %v10902_v61 = vld [vmem:[%s15344_s3 + $0x1e8] sm:$0xff]  ;;  %v10907_v62 = vld [vmem:[%s15344_s3 + $0x1f0] sm:$0xff] }
  0x20   :  { %15411 = vst [vmem:[#allocation71_spill] sm:$0xff] %v10897_v60  ;;  %15412 = vst [vmem:[#allocation72_spill] sm:$0xff] %v10902_v61  ;;  %v10912_v63 = vld [vmem:[%s15344_s3 + $0x1f8] sm:$0xff]  ;;  %v10917_v55 = vld [vmem:[%s15344_s3 + $0x200] sm:$0xff] }
  0x21   :  { %15413 = vst [vmem:[#allocation73_spill] sm:$0xff] %v10907_v62  ;;  %15414 = vst [vmem:[#allocation74_spill] sm:$0xff] %v10912_v63  ;;  %v10922_v54 = vld [vmem:[%s15344_s3 + $0x208] sm:$0xff]  ;;  %v10927_v53 = vld [vmem:[%s15344_s3 + $0x210] sm:$0xff] }
  0x22   :  { %15415 = vst [vmem:[#allocation75_spill] sm:$0xff] %v10917_v55  ;;  %15416 = vst [vmem:[#allocation76_spill] sm:$0xff] %v10922_v54  ;;  %v10932_v62 = vld [vmem:[%s15344_s3 + $0x218] sm:$0xff]  ;;  %v10937_v63 = vld [vmem:[%s15344_s3 + $0x220] sm:$0xff] }
  0x23   :  { %15417 = vst [vmem:[#allocation77_spill] sm:$0xff] %v10927_v53  ;;  %15418 = vst [vmem:[#allocation78_spill] sm:$0xff] %v10932_v62  ;;  %v10942_v55 = vld [vmem:[%s15344_s3 + $0x228] sm:$0xff]  ;;  %v10947_v54 = vld [vmem:[%s15344_s3 + $0x230] sm:$0xff] }
  0x24   :  { %15419 = vst [vmem:[#allocation79_spill] sm:$0xff] %v10937_v63  ;;  %15420 = vst [vmem:[#allocation80_spill] sm:$0xff] %v10942_v55  ;;  %v10952_v53 = vld [vmem:[%s15344_s3 + $0x238] sm:$0xff]  ;;  %v10957_v62 = vld [vmem:[%s15344_s3 + $0x240] sm:$0xff] }
  0x25   :  { %15421 = vst [vmem:[#allocation81_spill] sm:$0xff] %v10947_v54  ;;  %15422 = vst [vmem:[#allocation82_spill] sm:$0xff] %v10952_v53  ;;  %v10962_v63 = vld [vmem:[%s15344_s3 + $0x248] sm:$0xff]  ;;  %v10967_v55 = vld [vmem:[%s15344_s3 + $0x250] sm:$0xff] }
  0x26   :  { %15423 = vst [vmem:[#allocation83_spill] sm:$0xff] %v10957_v62  ;;  %15424 = vst [vmem:[#allocation84_spill] sm:$0xff] %v10962_v63  ;;  %v10972_v54 = vld [vmem:[%s15344_s3 + $0x258] sm:$0xff]  ;;  %v10977_v53 = vld [vmem:[%s15344_s3 + $0x260] sm:$0xff] }
  0x27   :  { %15425 = vst [vmem:[#allocation85_spill] sm:$0xff] %v10967_v55  ;;  %15426 = vst [vmem:[#allocation86_spill] sm:$0xff] %v10972_v54  ;;  %v10982_v62 = vld [vmem:[%s15344_s3 + $0x268] sm:$0xff]  ;;  %v10987_v63 = vld [vmem:[%s15344_s3 + $0x270] sm:$0xff] }
  0x28   :  { %15427 = vst [vmem:[#allocation87_spill] sm:$0xff] %v10977_v53  ;;  %15428 = vst [vmem:[#allocation88_spill] sm:$0xff] %v10982_v62  ;;  %v10992_v55 = vld [vmem:[%s15344_s3 + $0x278] sm:$0xff]  ;;  %v10997_v54 = vld [vmem:[%s15344_s3 + $0x280] sm:$0xff] }
  0x29   :  { %15429 = vst [vmem:[#allocation89_spill] sm:$0xff] %v10987_v63  ;;  %15430 = vst [vmem:[#allocation90_spill] sm:$0xff] %v10992_v55  ;;  %v11002_v53 = vld [vmem:[%s15344_s3 + $0x288] sm:$0xff]  ;;  %v11007_v62 = vld [vmem:[%s15344_s3 + $0x290] sm:$0xff] }
  0x2a   :  { %15431 = vst [vmem:[#allocation91_spill] sm:$0xff] %v10997_v54  ;;  %15432 = vst [vmem:[#allocation92_spill] sm:$0xff] %v11002_v53  ;;  %v11012_v63 = vld [vmem:[%s15344_s3 + $0x298] sm:$0xff]  ;;  %v11017_v55 = vld [vmem:[%s15344_s3 + $0x2a0] sm:$0xff] }
  0x2b   :  { %15433 = vst [vmem:[#allocation93_spill] sm:$0xff] %v11007_v62  ;;  %15434 = vst [vmem:[#allocation94_spill] sm:$0xff] %v11012_v63  ;;  %v11022_v54 = vld [vmem:[%s15344_s3 + $0x2a8] sm:$0xff]  ;;  %v11027_v53 = vld [vmem:[%s15344_s3 + $0x2b0] sm:$0xff] }
  0x2c   :  { %15435 = vst [vmem:[#allocation95_spill] sm:$0xff] %v11017_v55  ;;  %15436 = vst [vmem:[#allocation96_spill] sm:$0xff] %v11022_v54  ;;  %v11032_v62 = vld [vmem:[%s15344_s3 + $0x2b8] sm:$0xff]  ;;  %v11037_v63 = vld [vmem:[%s15344_s3 + $0x2c0] sm:$0xff] }
  0x2d   :  { %15437 = vst [vmem:[#allocation97_spill] sm:$0xff] %v11027_v53  ;;  %15438 = vst [vmem:[#allocation98_spill] sm:$0xff] %v11032_v62  ;;  %v11042_v55 = vld [vmem:[%s15344_s3 + $0x2c8] sm:$0xff]  ;;  %v11047_v54 = vld [vmem:[%s15344_s3 + $0x2d0] sm:$0xff] }
  0x2e   :  { %15439 = vst [vmem:[#allocation99_spill] sm:$0xff] %v11037_v63  ;;  %15440 = vst [vmem:[#allocation100_spill] sm:$0xff] %v11042_v55  ;;  %v11052_v53 = vld [vmem:[%s15344_s3 + $0x2d8] sm:$0xff]  ;;  %v11057_v62 = vld [vmem:[%s15344_s3 + $0x2e0] sm:$0xff] }
  0x2f   :  { %15441 = vst [vmem:[#allocation101_spill] sm:$0xff] %v11047_v54  ;;  %15442 = vst [vmem:[#allocation102_spill] sm:$0xff] %v11052_v53  ;;  %v11062_v63 = vld [vmem:[%s15344_s3 + $0x2e8] sm:$0xff]  ;;  %v11067_v55 = vld [vmem:[%s15344_s3 + $0x2f0] sm:$0xff] }
  0x30   :  { %15443 = vst [vmem:[#allocation103_spill] sm:$0xff] %v11057_v62  ;;  %15444 = vst [vmem:[#allocation104_spill] sm:$0xff] %v11062_v63  ;;  %v11072_v54 = vld [vmem:[%s15344_s3 + $0x2f8] sm:$0xff]  ;;  %v11077_v53 = vld [vmem:[%s15344_s3 + $0x300] sm:$0xff] }
  0x31   :  { %15445 = vst [vmem:[#allocation105_spill] sm:$0xff] %v11067_v55  ;;  %15446 = vst [vmem:[#allocation106_spill] sm:$0xff] %v11072_v54  ;;  %v11082_v62 = vld [vmem:[%s15344_s3 + $0x308] sm:$0xff]  ;;  %v11087_v63 = vld [vmem:[%s15344_s3 + $0x310] sm:$0xff] }
  0x32   :  { %15447 = vst [vmem:[#allocation107_spill] sm:$0xff] %v11077_v53  ;;  %15448 = vst [vmem:[#allocation108_spill] sm:$0xff] %v11082_v62  ;;  %v11092_v55 = vld [vmem:[%s15344_s3 + $0x318] sm:$0xff]  ;;  %v11097_v54 = vld [vmem:[%s15344_s3 + $0x320] sm:$0xff] }
  0x33   :  { %15449 = vst [vmem:[#allocation109_spill] sm:$0xff] %v11087_v63  ;;  %15450 = vst [vmem:[#allocation110_spill] sm:$0xff] %v11092_v55  ;;  %v11102_v53 = vld [vmem:[%s15344_s3 + $0x328] sm:$0xff]  ;;  %v11107_v62 = vld [vmem:[%s15344_s3 + $0x330] sm:$0xff] }
  0x34   :  { %15451 = vst [vmem:[#allocation111_spill] sm:$0xff] %v11097_v54  ;;  %15452 = vst [vmem:[#allocation112_spill] sm:$0xff] %v11102_v53  ;;  %v11112_v63 = vld [vmem:[%s15344_s3 + $0x338] sm:$0xff]  ;;  %v11117_v55 = vld [vmem:[%s15344_s3 + $0x340] sm:$0xff] }
  0x35   :  { %15453 = vst [vmem:[#allocation113_spill] sm:$0xff] %v11107_v62  ;;  %15454 = vst [vmem:[#allocation114_spill] sm:$0xff] %v11112_v63  ;;  %v11122_v54 = vld [vmem:[%s15344_s3 + $0x348] sm:$0xff]  ;;  %v11127_v53 = vld [vmem:[%s15344_s3 + $0x350] sm:$0xff] }
  0x36   :  { %15455 = vst [vmem:[#allocation115_spill] sm:$0xff] %v11117_v55  ;;  %15456 = vst [vmem:[#allocation116_spill] sm:$0xff] %v11122_v54  ;;  %v11132_v62 = vld [vmem:[%s15344_s3 + $0x358] sm:$0xff]  ;;  %v11137_v63 = vld [vmem:[%s15344_s3 + $0x360] sm:$0xff] }
  0x37   :  { %15457 = vst [vmem:[#allocation117_spill] sm:$0xff] %v11127_v53  ;;  %15458 = vst [vmem:[#allocation118_spill] sm:$0xff] %v11132_v62  ;;  %v11142_v55 = vld [vmem:[%s15344_s3 + $0x368] sm:$0xff]  ;;  %v11147_v54 = vld [vmem:[%s15344_s3 + $0x370] sm:$0xff] }
  0x38   :  { %15459 = vst [vmem:[#allocation119_spill] sm:$0xff] %v11137_v63  ;;  %15460 = vst [vmem:[#allocation120_spill] sm:$0xff] %v11142_v55  ;;  %v11152_v53 = vld [vmem:[%s15344_s3 + $0x378] sm:$0xff]  ;;  %v11157_v62 = vld [vmem:[%s15344_s3 + $0x380] sm:$0xff] }
  0x39   :  { %15461 = vst [vmem:[#allocation121_spill] sm:$0xff] %v11147_v54  ;;  %15462 = vst [vmem:[#allocation122_spill] sm:$0xff] %v11152_v53  ;;  %v11162_v63 = vld [vmem:[%s15344_s3 + $0x388] sm:$0xff]  ;;  %v11167_v55 = vld [vmem:[%s15344_s3 + $0x390] sm:$0xff] }
  0x3a   :  { %15463 = vst [vmem:[#allocation123_spill] sm:$0xff] %v11157_v62  ;;  %15464 = vst [vmem:[#allocation124_spill] sm:$0xff] %v11162_v63  ;;  %v11172_v54 = vld [vmem:[%s15344_s3 + $0x398] sm:$0xff]  ;;  %v11177_v53 = vld [vmem:[%s15344_s3 + $0x3a0] sm:$0xff] }
  0x3b   :  { %15465 = vst [vmem:[#allocation125_spill] sm:$0xff] %v11167_v55  ;;  %15466 = vst [vmem:[#allocation126_spill] sm:$0xff] %v11172_v54  ;;  %v11182_v62 = vld [vmem:[%s15344_s3 + $0x3a8] sm:$0xff]  ;;  %v11187_v63 = vld [vmem:[%s15344_s3 + $0x3b0] sm:$0xff] }
  0x3c   :  { %15467 = vst [vmem:[#allocation127_spill] sm:$0xff] %v11177_v53  ;;  %15468 = vst [vmem:[#allocation128_spill] sm:$0xff] %v11182_v62  ;;  %v11192_v55 = vld [vmem:[%s15344_s3 + $0x3b8] sm:$0xff]  ;;  %v11197_v54 = vld [vmem:[%s15344_s3 + $0x3c0] sm:$0xff] }
  0x3d   :  { %15469 = vst [vmem:[#allocation129_spill] sm:$0xff] %v11187_v63  ;;  %15470 = vst [vmem:[#allocation130_spill] sm:$0xff] %v11192_v55  ;;  %v11202_v53 = vld [vmem:[%s15344_s3 + $0x3c8] sm:$0xff]  ;;  %v11207_v62 = vld [vmem:[%s15344_s3 + $0x3d0] sm:$0xff] }
  0x3e   :  { %15471 = vst [vmem:[#allocation131_spill] sm:$0xff] %v11197_v54  ;;  %15472 = vst [vmem:[#allocation132_spill] sm:$0xff] %v11202_v53  ;;  %v11212_v63 = vld [vmem:[%s15344_s3 + $0x3d8] sm:$0xff]  ;;  %v11217_v55 = vld [vmem:[%s15344_s3 + $0x3e0] sm:$0xff] }
  0x3f   :  { %15473 = vst [vmem:[#allocation133_spill] sm:$0xff] %v11207_v62  ;;  %15474 = vst [vmem:[#allocation134_spill] sm:$0xff] %v11212_v63  ;;  %v11222_v54 = vld [vmem:[%s15344_s3 + $0x3e8] sm:$0xff]  ;;  %v11227_v53 = vld [vmem:[%s15344_s3 + $0x3f0] sm:$0xff] }
  0x40   :  { %15475 = vst [vmem:[#allocation135_spill] sm:$0xff] %v11217_v55  ;;  %15476 = vst [vmem:[#allocation136_spill] sm:$0xff] %v11222_v54  ;;  %v11232_v62 = vld [vmem:[%s15344_s3 + $0x3f8] sm:$0xff]  ;;  %v11237_v63 = vld [vmem:[%s15344_s3 + $0x400] sm:$0xff] }
  0x41   :  { %15477 = vst [vmem:[#allocation137_spill] sm:$0xff] %v11227_v53  ;;  %15478 = vst [vmem:[#allocation138_spill] sm:$0xff] %v11232_v62  ;;  %v11242_v55 = vld [vmem:[%s15344_s3 + $0x408] sm:$0xff]  ;;  %v11247_v54 = vld [vmem:[%s15344_s3 + $0x410] sm:$0xff] }
  0x42   :  { %15479 = vst [vmem:[#allocation139_spill] sm:$0xff] %v11237_v63  ;;  %15480 = vst [vmem:[#allocation140_spill] sm:$0xff] %v11242_v55  ;;  %v11252_v53 = vld [vmem:[%s15344_s3 + $0x418] sm:$0xff]  ;;  %v11257_v62 = vld [vmem:[%s15344_s3 + $0x420] sm:$0xff] }
  0x43   :  { %15481 = vst [vmem:[#allocation141_spill] sm:$0xff] %v11247_v54  ;;  %15482 = vst [vmem:[#allocation142_spill] sm:$0xff] %v11252_v53  ;;  %v11262_v63 = vld [vmem:[%s15344_s3 + $0x428] sm:$0xff]  ;;  %v11267_v55 = vld [vmem:[%s15344_s3 + $0x430] sm:$0xff] }
  0x44   :  { %15483 = vst [vmem:[#allocation143_spill] sm:$0xff] %v11257_v62  ;;  %15484 = vst [vmem:[#allocation144_spill] sm:$0xff] %v11262_v63  ;;  %v11272_v54 = vld [vmem:[%s15344_s3 + $0x438] sm:$0xff]  ;;  %v11277_v53 = vld [vmem:[%s15344_s3 + $0x440] sm:$0xff] }
  0x45   :  { %15485 = vst [vmem:[#allocation145_spill] sm:$0xff] %v11267_v55  ;;  %15486 = vst [vmem:[#allocation146_spill] sm:$0xff] %v11272_v54  ;;  %v11282_v62 = vld [vmem:[%s15344_s3 + $0x448] sm:$0xff]  ;;  %v11287_v63 = vld [vmem:[%s15344_s3 + $0x450] sm:$0xff] }
  0x46   :  { %15487 = vst [vmem:[#allocation147_spill] sm:$0xff] %v11277_v53  ;;  %15488 = vst [vmem:[#allocation148_spill] sm:$0xff] %v11282_v62  ;;  %v11292_v55 = vld [vmem:[%s15344_s3 + $0x458] sm:$0xff]  ;;  %v11297_v54 = vld [vmem:[%s15344_s3 + $0x460] sm:$0xff] }
  0x47   :  { %15489 = vst [vmem:[#allocation149_spill] sm:$0xff] %v11287_v63  ;;  %15490 = vst [vmem:[#allocation150_spill] sm:$0xff] %v11292_v55  ;;  %v11302_v53 = vld [vmem:[%s15344_s3 + $0x468] sm:$0xff]  ;;  %v11307_v62 = vld [vmem:[%s15344_s3 + $0x470] sm:$0xff] }
  0x48   :  { %15491 = vst [vmem:[#allocation151_spill] sm:$0xff] %v11297_v54  ;;  %15492 = vst [vmem:[#allocation152_spill] sm:$0xff] %v11302_v53  ;;  %v11312_v63 = vld [vmem:[%s15344_s3 + $0x478] sm:$0xff]  ;;  %v11317_v55 = vld [vmem:[%s15344_s3 + $0x480] sm:$0xff] }
  0x49   :  { %15493 = vst [vmem:[#allocation153_spill] sm:$0xff] %v11307_v62  ;;  %15494 = vst [vmem:[#allocation154_spill] sm:$0xff] %v11312_v63  ;;  %v11322_v54 = vld [vmem:[%s15344_s3 + $0x488] sm:$0xff]  ;;  %v11327_v53 = vld [vmem:[%s15344_s3 + $0x490] sm:$0xff] }
  0x4a   :  { %15495 = vst [vmem:[#allocation155_spill] sm:$0xff] %v11317_v55  ;;  %15496 = vst [vmem:[#allocation156_spill] sm:$0xff] %v11322_v54  ;;  %v11332_v62 = vld [vmem:[%s15344_s3 + $0x498] sm:$0xff]  ;;  %v11337_v63 = vld [vmem:[%s15344_s3 + $0x4a0] sm:$0xff] }
  0x4b   :  { %15497 = vst [vmem:[#allocation157_spill] sm:$0xff] %v11327_v53  ;;  %15498 = vst [vmem:[#allocation158_spill] sm:$0xff] %v11332_v62  ;;  %v11342_v55 = vld [vmem:[%s15344_s3 + $0x4a8] sm:$0xff]  ;;  %v11347_v54 = vld [vmem:[%s15344_s3 + $0x4b0] sm:$0xff] }
  0x4c   :  { %15499 = vst [vmem:[#allocation159_spill] sm:$0xff] %v11337_v63  ;;  %15500 = vst [vmem:[#allocation160_spill] sm:$0xff] %v11342_v55  ;;  %v11352_v53 = vld [vmem:[%s15344_s3 + $0x4b8] sm:$0xff]  ;;  %v11357_v62 = vld [vmem:[%s15344_s3 + $0x4c0] sm:$0xff] }
  0x4d   :  { %15501 = vst [vmem:[#allocation161_spill] sm:$0xff] %v11347_v54  ;;  %15502 = vst [vmem:[#allocation162_spill] sm:$0xff] %v11352_v53  ;;  %v11362_v63 = vld [vmem:[%s15344_s3 + $0x4c8] sm:$0xff]  ;;  %v11367_v55 = vld [vmem:[%s15344_s3 + $0x4d0] sm:$0xff] }
  0x4e   :  { %15503 = vst [vmem:[#allocation163_spill] sm:$0xff] %v11357_v62  ;;  %15504 = vst [vmem:[#allocation164_spill] sm:$0xff] %v11362_v63  ;;  %v11372_v54 = vld [vmem:[%s15344_s3 + $0x4d8] sm:$0xff]  ;;  %v11377_v53 = vld [vmem:[%s15344_s3 + $0x4e0] sm:$0xff] }
  0x4f   :  { %15505 = vst [vmem:[#allocation165_spill] sm:$0xff] %v11367_v55  ;;  %15506 = vst [vmem:[#allocation166_spill] sm:$0xff] %v11372_v54  ;;  %v11382_v62 = vld [vmem:[%s15344_s3 + $0x4e8] sm:$0xff]  ;;  %v11387_v63 = vld [vmem:[%s15344_s3 + $0x4f0] sm:$0xff] }
  0x50   :  { %15507 = vst [vmem:[#allocation167_spill] sm:$0xff] %v11377_v53  ;;  %15508 = vst [vmem:[#allocation168_spill] sm:$0xff] %v11382_v62  ;;  %v11392_v55 = vld [vmem:[%s15344_s3 + $0x4f8] sm:$0xff]  ;;  %v11397_v54 = vld [vmem:[%s15344_s3 + $0x500] sm:$0xff] }
  0x51   :  { %15509 = vst [vmem:[#allocation169_spill] sm:$0xff] %v11387_v63  ;;  %15510 = vst [vmem:[#allocation170_spill] sm:$0xff] %v11392_v55  ;;  %v11402_v53 = vld [vmem:[%s15344_s3 + $0x508] sm:$0xff]  ;;  %v11407_v62 = vld [vmem:[%s15344_s3 + $0x510] sm:$0xff] }
  0x52   :  { %15511 = vst [vmem:[#allocation171_spill] sm:$0xff] %v11397_v54  ;;  %15512 = vst [vmem:[#allocation172_spill] sm:$0xff] %v11402_v53  ;;  %v11412_v63 = vld [vmem:[%s15344_s3 + $0x518] sm:$0xff]  ;;  %v11417_v55 = vld [vmem:[%s15344_s3 + $0x520] sm:$0xff] }
  0x53   :  { %15513 = vst [vmem:[#allocation173_spill] sm:$0xff] %v11407_v62  ;;  %15514 = vst [vmem:[#allocation174_spill] sm:$0xff] %v11412_v63  ;;  %v11422_v54 = vld [vmem:[%s15344_s3 + $0x528] sm:$0xff]  ;;  %v11427_v53 = vld [vmem:[%s15344_s3 + $0x530] sm:$0xff] }
  0x54   :  { %15515 = vst [vmem:[#allocation175_spill] sm:$0xff] %v11417_v55  ;;  %15516 = vst [vmem:[#allocation176_spill] sm:$0xff] %v11422_v54  ;;  %v11432_v62 = vld [vmem:[%s15344_s3 + $0x538] sm:$0xff]  ;;  %v11437_v63 = vld [vmem:[%s15344_s3 + $0x540] sm:$0xff] }
  0x55   :  { %15517 = vst [vmem:[#allocation177_spill] sm:$0xff] %v11427_v53  ;;  %15518 = vst [vmem:[#allocation178_spill] sm:$0xff] %v11432_v62  ;;  %v11442_v55 = vld [vmem:[%s15344_s3 + $0x548] sm:$0xff]  ;;  %v11447_v54 = vld [vmem:[%s15344_s3 + $0x550] sm:$0xff] }
  0x56   :  { %15519 = vst [vmem:[#allocation179_spill] sm:$0xff] %v11437_v63  ;;  %15520 = vst [vmem:[#allocation180_spill] sm:$0xff] %v11442_v55  ;;  %v11452_v53 = vld [vmem:[%s15344_s3 + $0x558] sm:$0xff]  ;;  %v11457_v62 = vld [vmem:[%s15344_s3 + $0x560] sm:$0xff] }
  0x57   :  { %15521 = vst [vmem:[#allocation181_spill] sm:$0xff] %v11447_v54  ;;  %15522 = vst [vmem:[#allocation182_spill] sm:$0xff] %v11452_v53  ;;  %v11462_v63 = vld [vmem:[%s15344_s3 + $0x568] sm:$0xff]  ;;  %v11467_v55 = vld [vmem:[%s15344_s3 + $0x570] sm:$0xff] }
  0x58   :  { %15523 = vst [vmem:[#allocation183_spill] sm:$0xff] %v11457_v62  ;;  %15524 = vst [vmem:[#allocation184_spill] sm:$0xff] %v11462_v63  ;;  %v11472_v54 = vld [vmem:[%s15344_s3 + $0x578] sm:$0xff]  ;;  %v11477_v53 = vld [vmem:[%s15344_s3 + $0x580] sm:$0xff] }
  0x59   :  { %15525 = vst [vmem:[#allocation185_spill] sm:$0xff] %v11467_v55  ;;  %15526 = vst [vmem:[#allocation186_spill] sm:$0xff] %v11472_v54  ;;  %v11482_v62 = vld [vmem:[%s15344_s3 + $0x588] sm:$0xff]  ;;  %v11487_v63 = vld [vmem:[%s15344_s3 + $0x590] sm:$0xff] }
  0x5a   :  { %15527 = vst [vmem:[#allocation187_spill] sm:$0xff] %v11477_v53  ;;  %15528 = vst [vmem:[#allocation188_spill] sm:$0xff] %v11482_v62  ;;  %v11492_v55 = vld [vmem:[%s15344_s3 + $0x598] sm:$0xff]  ;;  %v11497_v54 = vld [vmem:[%s15344_s3 + $0x5a0] sm:$0xff] }
  0x5b   :  { %15529 = vst [vmem:[#allocation189_spill] sm:$0xff] %v11487_v63  ;;  %15530 = vst [vmem:[#allocation190_spill] sm:$0xff] %v11492_v55  ;;  %v11502_v53 = vld [vmem:[%s15344_s3 + $0x5a8] sm:$0xff]  ;;  %v11507_v62 = vld [vmem:[%s15344_s3 + $0x5b0] sm:$0xff] }
  0x5c   :  { %15531 = vst [vmem:[#allocation191_spill] sm:$0xff] %v11497_v54  ;;  %15532 = vst [vmem:[#allocation192_spill] sm:$0xff] %v11502_v53  ;;  %v11512_v63 = vld [vmem:[%s15344_s3 + $0x5b8] sm:$0xff]  ;;  %v11517_v55 = vld [vmem:[%s15344_s3 + $0x5c0] sm:$0xff] }
  0x5d   :  { %15533 = vst [vmem:[#allocation193_spill] sm:$0xff] %v11507_v62  ;;  %15534 = vst [vmem:[#allocation194_spill] sm:$0xff] %v11512_v63  ;;  %v11522_v54 = vld [vmem:[%s15344_s3 + $0x5c8] sm:$0xff]  ;;  %v11527_v53 = vld [vmem:[%s15344_s3 + $0x5d0] sm:$0xff] }
  0x5e   :  { %15535 = vst [vmem:[#allocation195_spill] sm:$0xff] %v11517_v55  ;;  %15536 = vst [vmem:[#allocation196_spill] sm:$0xff] %v11522_v54  ;;  %v11532_v62 = vld [vmem:[%s15344_s3 + $0x5d8] sm:$0xff]  ;;  %v11537_v63 = vld [vmem:[%s15344_s3 + $0x5e0] sm:$0xff] }
  0x5f   :  { %15537 = vst [vmem:[#allocation197_spill] sm:$0xff] %v11527_v53  ;;  %15538 = vst [vmem:[#allocation198_spill] sm:$0xff] %v11532_v62  ;;  %v11542_v55 = vld [vmem:[%s15344_s3 + $0x5e8] sm:$0xff]  ;;  %v11547_v54 = vld [vmem:[%s15344_s3 + $0x5f0] sm:$0xff] }
  0x60   :  { %15539 = vst [vmem:[#allocation199_spill] sm:$0xff] %v11537_v63  ;;  %15540 = vst [vmem:[#allocation200_spill] sm:$0xff] %v11542_v55  ;;  %v11552_v53 = vld [vmem:[%s15344_s3 + $0x5f8] sm:$0xff]  ;;  %v11557_v62 = vld [vmem:[%s15344_s3 + $0x600] sm:$0xff] }
  0x61   :  { %15541 = vst [vmem:[#allocation201_spill] sm:$0xff] %v11547_v54  ;;  %15542 = vst [vmem:[#allocation202_spill] sm:$0xff] %v11552_v53  ;;  %v11562_v63 = vld [vmem:[%s15344_s3 + $0x608] sm:$0xff]  ;;  %v11567_v55 = vld [vmem:[%s15344_s3 + $0x610] sm:$0xff] }
  0x62   :  { %15543 = vst [vmem:[#allocation203_spill] sm:$0xff] %v11557_v62  ;;  %15544 = vst [vmem:[#allocation204_spill] sm:$0xff] %v11562_v63  ;;  %v11572_v54 = vld [vmem:[%s15344_s3 + $0x618] sm:$0xff]  ;;  %v11577_v53 = vld [vmem:[%s15344_s3 + $0x620] sm:$0xff] }
  0x63   :  { %15545 = vst [vmem:[#allocation205_spill] sm:$0xff] %v11567_v55  ;;  %15546 = vst [vmem:[#allocation206_spill] sm:$0xff] %v11572_v54  ;;  %v11582_v62 = vld [vmem:[%s15344_s3 + $0x628] sm:$0xff]  ;;  %v11587_v63 = vld [vmem:[%s15344_s3 + $0x630] sm:$0xff] }
  0x64   :  { %15547 = vst [vmem:[#allocation207_spill] sm:$0xff] %v11577_v53  ;;  %15548 = vst [vmem:[#allocation208_spill] sm:$0xff] %v11582_v62  ;;  %v11592_v55 = vld [vmem:[%s15344_s3 + $0x638] sm:$0xff]  ;;  %v11597_v54 = vld [vmem:[%s15344_s3 + $0x640] sm:$0xff] }
  0x65   :  { %15549 = vst [vmem:[#allocation209_spill] sm:$0xff] %v11587_v63  ;;  %15550 = vst [vmem:[#allocation210_spill] sm:$0xff] %v11592_v55  ;;  %v11602_v53 = vld [vmem:[%s15344_s3 + $0x648] sm:$0xff]  ;;  %v11607_v62 = vld [vmem:[%s15344_s3 + $0x650] sm:$0xff] }
  0x66   :  { %15551 = vst [vmem:[#allocation211_spill] sm:$0xff] %v11597_v54  ;;  %15552 = vst [vmem:[#allocation212_spill] sm:$0xff] %v11602_v53  ;;  %v11612_v63 = vld [vmem:[%s15344_s3 + $0x658] sm:$0xff]  ;;  %v11617_v55 = vld [vmem:[%s15344_s3 + $0x660] sm:$0xff] }
  0x67   :  { %15553 = vst [vmem:[#allocation213_spill] sm:$0xff] %v11607_v62  ;;  %15554 = vst [vmem:[#allocation214_spill] sm:$0xff] %v11612_v63  ;;  %v11622_v54 = vld [vmem:[%s15344_s3 + $0x668] sm:$0xff]  ;;  %v11627_v53 = vld [vmem:[%s15344_s3 + $0x670] sm:$0xff] }
  0x68   :  { %15555 = vst [vmem:[#allocation215_spill] sm:$0xff] %v11617_v55  ;;  %15556 = vst [vmem:[#allocation216_spill] sm:$0xff] %v11622_v54  ;;  %v11632_v62 = vld [vmem:[%s15344_s3 + $0x678] sm:$0xff]  ;;  %v11637_v63 = vld [vmem:[%s15344_s3 + $0x680] sm:$0xff] }
  0x69   :  { %15557 = vst [vmem:[#allocation217_spill] sm:$0xff] %v11627_v53  ;;  %15558 = vst [vmem:[#allocation218_spill] sm:$0xff] %v11632_v62  ;;  %v11642_v55 = vld [vmem:[%s15344_s3 + $0x688] sm:$0xff]  ;;  %v11647_v54 = vld [vmem:[%s15344_s3 + $0x690] sm:$0xff] }
  0x6a   :  { %15559 = vst [vmem:[#allocation219_spill] sm:$0xff] %v11637_v63  ;;  %15560 = vst [vmem:[#allocation220_spill] sm:$0xff] %v11642_v55  ;;  %v11652_v53 = vld [vmem:[%s15344_s3 + $0x698] sm:$0xff]  ;;  %v11657_v62 = vld [vmem:[%s15344_s3 + $0x6a0] sm:$0xff] }
  0x6b   :  { %15561 = vst [vmem:[#allocation221_spill] sm:$0xff] %v11647_v54  ;;  %15562 = vst [vmem:[#allocation222_spill] sm:$0xff] %v11652_v53  ;;  %v11662_v63 = vld [vmem:[%s15344_s3 + $0x6a8] sm:$0xff]  ;;  %v11667_v55 = vld [vmem:[%s15344_s3 + $0x6b0] sm:$0xff] }
  0x6c   :  { %15563 = vst [vmem:[#allocation223_spill] sm:$0xff] %v11657_v62  ;;  %15564 = vst [vmem:[#allocation224_spill] sm:$0xff] %v11662_v63  ;;  %v11672_v54 = vld [vmem:[%s15344_s3 + $0x6b8] sm:$0xff]  ;;  %v11677_v53 = vld [vmem:[%s15344_s3 + $0x6c0] sm:$0xff] }
  0x6d   :  { %15565 = vst [vmem:[#allocation225_spill] sm:$0xff] %v11667_v55  ;;  %15566 = vst [vmem:[#allocation226_spill] sm:$0xff] %v11672_v54  ;;  %v11682_v62 = vld [vmem:[%s15344_s3 + $0x6c8] sm:$0xff]  ;;  %v11687_v63 = vld [vmem:[%s15344_s3 + $0x6d0] sm:$0xff] }
  0x6e   :  { %15567 = vst [vmem:[#allocation227_spill] sm:$0xff] %v11677_v53  ;;  %15568 = vst [vmem:[#allocation228_spill] sm:$0xff] %v11682_v62  ;;  %v11692_v55 = vld [vmem:[%s15344_s3 + $0x6d8] sm:$0xff]  ;;  %v11697_v54 = vld [vmem:[%s15344_s3 + $0x6e0] sm:$0xff] }
  0x6f   :  { %15569 = vst [vmem:[#allocation229_spill] sm:$0xff] %v11687_v63  ;;  %15570 = vst [vmem:[#allocation230_spill] sm:$0xff] %v11692_v55  ;;  %v11702_v53 = vld [vmem:[%s15344_s3 + $0x6e8] sm:$0xff]  ;;  %v11707_v62 = vld [vmem:[%s15344_s3 + $0x6f0] sm:$0xff] }
  0x70   :  { %15571 = vst [vmem:[#allocation231_spill] sm:$0xff] %v11697_v54  ;;  %15572 = vst [vmem:[#allocation232_spill] sm:$0xff] %v11702_v53  ;;  %v11712_v63 = vld [vmem:[%s15344_s3 + $0x6f8] sm:$0xff]  ;;  %v11717_v55 = vld [vmem:[%s15344_s3 + $0x700] sm:$0xff] }
  0x71   :  { %15573 = vst [vmem:[#allocation233_spill] sm:$0xff] %v11707_v62  ;;  %15574 = vst [vmem:[#allocation234_spill] sm:$0xff] %v11712_v63  ;;  %v11722_v54 = vld [vmem:[%s15344_s3 + $0x708] sm:$0xff]  ;;  %v11727_v53 = vld [vmem:[%s15344_s3 + $0x710] sm:$0xff] }
  0x72   :  { %15575 = vst [vmem:[#allocation235_spill] sm:$0xff] %v11717_v55  ;;  %15576 = vst [vmem:[#allocation236_spill] sm:$0xff] %v11722_v54  ;;  %v11732_v62 = vld [vmem:[%s15344_s3 + $0x718] sm:$0xff]  ;;  %v11737_v63 = vld [vmem:[%s15344_s3 + $0x720] sm:$0xff] }
  0x73   :  { %15577 = vst [vmem:[#allocation237_spill] sm:$0xff] %v11727_v53  ;;  %15578 = vst [vmem:[#allocation238_spill] sm:$0xff] %v11732_v62  ;;  %v11742_v55 = vld [vmem:[%s15344_s3 + $0x728] sm:$0xff]  ;;  %v11747_v54 = vld [vmem:[%s15344_s3 + $0x730] sm:$0xff] }
  0x74   :  { %15579 = vst [vmem:[#allocation239_spill] sm:$0xff] %v11737_v63  ;;  %15580 = vst [vmem:[#allocation240_spill] sm:$0xff] %v11742_v55  ;;  %v11752_v53 = vld [vmem:[%s15344_s3 + $0x738] sm:$0xff]  ;;  %v11757_v62 = vld [vmem:[%s15344_s3 + $0x740] sm:$0xff] }
  0x75   :  { %15581 = vst [vmem:[#allocation241_spill] sm:$0xff] %v11747_v54  ;;  %15582 = vst [vmem:[#allocation242_spill] sm:$0xff] %v11752_v53  ;;  %v11762_v63 = vld [vmem:[%s15344_s3 + $0x748] sm:$0xff]  ;;  %v11767_v55 = vld [vmem:[%s15344_s3 + $0x750] sm:$0xff] }
  0x76   :  { %15583 = vst [vmem:[#allocation243_spill] sm:$0xff] %v11757_v62  ;;  %15584 = vst [vmem:[#allocation244_spill] sm:$0xff] %v11762_v63  ;;  %v11772_v54 = vld [vmem:[%s15344_s3 + $0x758] sm:$0xff]  ;;  %v11777_v53 = vld [vmem:[%s15344_s3 + $0x760] sm:$0xff] }
  0x77   :  { %15585 = vst [vmem:[#allocation245_spill] sm:$0xff] %v11767_v55  ;;  %15586 = vst [vmem:[#allocation246_spill] sm:$0xff] %v11772_v54  ;;  %v11782_v62 = vld [vmem:[%s15344_s3 + $0x768] sm:$0xff]  ;;  %v11787_v63 = vld [vmem:[%s15344_s3 + $0x770] sm:$0xff] }
  0x78   :  { %15587 = vst [vmem:[#allocation247_spill] sm:$0xff] %v11777_v53  ;;  %15588 = vst [vmem:[#allocation248_spill] sm:$0xff] %v11782_v62  ;;  %v11792_v55 = vld [vmem:[%s15344_s3 + $0x778] sm:$0xff]  ;;  %v11797_v54 = vld [vmem:[%s15344_s3 + $0x780] sm:$0xff] }
  0x79   :  { %15589 = vst [vmem:[#allocation249_spill] sm:$0xff] %v11787_v63  ;;  %15590 = vst [vmem:[#allocation250_spill] sm:$0xff] %v11792_v55  ;;  %v11802_v53 = vld [vmem:[%s15344_s3 + $0x788] sm:$0xff]  ;;  %v11807_v62 = vld [vmem:[%s15344_s3 + $0x790] sm:$0xff] }
  0x7a   :  { %15591 = vst [vmem:[#allocation251_spill] sm:$0xff] %v11797_v54  ;;  %15592 = vst [vmem:[#allocation252_spill] sm:$0xff] %v11802_v53  ;;  %v11812_v63 = vld [vmem:[%s15344_s3 + $0x798] sm:$0xff]  ;;  %v11817_v55 = vld [vmem:[%s15344_s3 + $0x7a0] sm:$0xff] }
  0x7b   :  { %15593 = vst [vmem:[#allocation253_spill] sm:$0xff] %v11807_v62  ;;  %15594 = vst [vmem:[#allocation254_spill] sm:$0xff] %v11812_v63  ;;  %v11822_v54 = vld [vmem:[%s15344_s3 + $0x7a8] sm:$0xff]  ;;  %v11827_v53 = vld [vmem:[%s15344_s3 + $0x7b0] sm:$0xff] }
  0x7c   :  { %15595 = vst [vmem:[#allocation255_spill] sm:$0xff] %v11817_v55  ;;  %15596 = vst [vmem:[#allocation256_spill] sm:$0xff] %v11822_v54  ;;  %v11832_v62 = vld [vmem:[%s15344_s3 + $0x7b8] sm:$0xff]  ;;  %v11837_v63 = vld [vmem:[%s15344_s3 + $0x7c0] sm:$0xff] }
  0x7d   :  { %15597 = vst [vmem:[#allocation257_spill] sm:$0xff] %v11827_v53  ;;  %15598 = vst [vmem:[#allocation258_spill] sm:$0xff] %v11832_v62  ;;  %v11842_v55 = vld [vmem:[%s15344_s3 + $0x7c8] sm:$0xff]  ;;  %v11847_v54 = vld [vmem:[%s15344_s3 + $0x7d0] sm:$0xff] }
  0x7e   :  { %15599 = vst [vmem:[#allocation259_spill] sm:$0xff] %v11837_v63  ;;  %15600 = vst [vmem:[#allocation260_spill] sm:$0xff] %v11842_v55  ;;  %v11852_v53 = vld [vmem:[%s15344_s3 + $0x7d8] sm:$0xff]  ;;  %v11857_v62 = vld [vmem:[%s15344_s3 + $0x7e0] sm:$0xff] }
  0x7f   :  { %15601 = vst [vmem:[#allocation261_spill] sm:$0xff] %v11847_v54  ;;  %15602 = vst [vmem:[#allocation262_spill] sm:$0xff] %v11852_v53  ;;  %v11862_v63 = vld [vmem:[%s15344_s3 + $0x7e8] sm:$0xff]  ;;  %v11867_v55 = vld [vmem:[%s15344_s3 + $0x7f0] sm:$0xff] }
  0x80   :  { %15603 = vst [vmem:[#allocation263_spill] sm:$0xff] %v11857_v62  ;;  %15604 = vst [vmem:[#allocation264_spill] sm:$0xff] %v11862_v63  ;;  %v11872_v54 = vld [vmem:[%s15344_s3 + $0x7f8] sm:$0xff]  ;;  %v11877_v53 = vld [vmem:[%s15344_s3 + $0x800] sm:$0xff] }
  0x81   :  { %15605 = vst [vmem:[#allocation265_spill] sm:$0xff] %v11867_v55  ;;  %15606 = vst [vmem:[#allocation266_spill] sm:$0xff] %v11872_v54  ;;  %v11882_v62 = vld [vmem:[%s15344_s3 + $0x808] sm:$0xff]  ;;  %v11887_v63 = vld [vmem:[%s15344_s3 + $0x810] sm:$0xff] }
  0x82   :  { %15607 = vst [vmem:[#allocation267_spill] sm:$0xff] %v11877_v53  ;;  %15608 = vst [vmem:[#allocation268_spill] sm:$0xff] %v11882_v62  ;;  %v11892_v55 = vld [vmem:[%s15344_s3 + $0x818] sm:$0xff]  ;;  %v11897_v54 = vld [vmem:[%s15344_s3 + $0x820] sm:$0xff] }
  0x83   :  { %15609 = vst [vmem:[#allocation269_spill] sm:$0xff] %v11887_v63  ;;  %15610 = vst [vmem:[#allocation270_spill] sm:$0xff] %v11892_v55  ;;  %v11902_v53 = vld [vmem:[%s15344_s3 + $0x828] sm:$0xff]  ;;  %v11907_v62 = vld [vmem:[%s15344_s3 + $0x830] sm:$0xff] }
  0x84   :  { %15611 = vst [vmem:[#allocation271_spill] sm:$0xff] %v11897_v54  ;;  %15612 = vst [vmem:[#allocation272_spill] sm:$0xff] %v11902_v53  ;;  %v11912_v63 = vld [vmem:[%s15344_s3 + $0x838] sm:$0xff]  ;;  %v11917_v55 = vld [vmem:[%s15344_s3 + $0x840] sm:$0xff] }
  0x85   :  { %15613 = vst [vmem:[#allocation273_spill] sm:$0xff] %v11907_v62  ;;  %15614 = vst [vmem:[#allocation274_spill] sm:$0xff] %v11912_v63  ;;  %v11922_v54 = vld [vmem:[%s15344_s3 + $0x848] sm:$0xff]  ;;  %v11927_v53 = vld [vmem:[%s15344_s3 + $0x850] sm:$0xff] }
  0x86   :  { %15615 = vst [vmem:[#allocation275_spill] sm:$0xff] %v11917_v55  ;;  %15616 = vst [vmem:[#allocation276_spill] sm:$0xff] %v11922_v54  ;;  %v11932_v62 = vld [vmem:[%s15344_s3 + $0x858] sm:$0xff]  ;;  %v11937_v63 = vld [vmem:[%s15344_s3 + $0x860] sm:$0xff] }
  0x87   :  { %15617 = vst [vmem:[#allocation277_spill] sm:$0xff] %v11927_v53  ;;  %15618 = vst [vmem:[#allocation278_spill] sm:$0xff] %v11932_v62  ;;  %v11942_v55 = vld [vmem:[%s15344_s3 + $0x868] sm:$0xff]  ;;  %v11947_v54 = vld [vmem:[%s15344_s3 + $0x870] sm:$0xff] }
  0x88   :  { %15619 = vst [vmem:[#allocation279_spill] sm:$0xff] %v11937_v63  ;;  %15620 = vst [vmem:[#allocation280_spill] sm:$0xff] %v11942_v55  ;;  %v11952_v53 = vld [vmem:[%s15344_s3 + $0x878] sm:$0xff]  ;;  %v11957_v62 = vld [vmem:[%s15344_s3 + $0x880] sm:$0xff] }
  0x89   :  { %15621 = vst [vmem:[#allocation281_spill] sm:$0xff] %v11947_v54  ;;  %15622 = vst [vmem:[#allocation282_spill] sm:$0xff] %v11952_v53  ;;  %v11962_v63 = vld [vmem:[%s15344_s3 + $0x888] sm:$0xff]  ;;  %v11967_v55 = vld [vmem:[%s15344_s3 + $0x890] sm:$0xff] }
  0x8a   :  { %15623 = vst [vmem:[#allocation283_spill] sm:$0xff] %v11957_v62  ;;  %15624 = vst [vmem:[#allocation284_spill] sm:$0xff] %v11962_v63  ;;  %v11972_v54 = vld [vmem:[%s15344_s3 + $0x898] sm:$0xff]  ;;  %v11977_v53 = vld [vmem:[%s15344_s3 + $0x8a0] sm:$0xff] }
  0x8b   :  { %15625 = vst [vmem:[#allocation285_spill] sm:$0xff] %v11967_v55  ;;  %15626 = vst [vmem:[#allocation286_spill] sm:$0xff] %v11972_v54  ;;  %v11982_v62 = vld [vmem:[%s15344_s3 + $0x8a8] sm:$0xff]  ;;  %v11987_v63 = vld [vmem:[%s15344_s3 + $0x8b0] sm:$0xff] }
  0x8c   :  { %15627 = vst [vmem:[#allocation287_spill] sm:$0xff] %v11977_v53  ;;  %15628 = vst [vmem:[#allocation288_spill] sm:$0xff] %v11982_v62  ;;  %v11992_v55 = vld [vmem:[%s15344_s3 + $0x8b8] sm:$0xff]  ;;  %v11997_v54 = vld [vmem:[%s15344_s3 + $0x8c0] sm:$0xff] }
  0x8d   :  { %15629 = vst [vmem:[#allocation289_spill] sm:$0xff] %v11987_v63  ;;  %15630 = vst [vmem:[#allocation290_spill] sm:$0xff] %v11992_v55  ;;  %v12002_v53 = vld [vmem:[%s15344_s3 + $0x8c8] sm:$0xff]  ;;  %v12007_v62 = vld [vmem:[%s15344_s3 + $0x8d0] sm:$0xff] }
  0x8e   :  { %15631 = vst [vmem:[#allocation291_spill] sm:$0xff] %v11997_v54  ;;  %15632 = vst [vmem:[#allocation292_spill] sm:$0xff] %v12002_v53  ;;  %v12012_v63 = vld [vmem:[%s15344_s3 + $0x8d8] sm:$0xff]  ;;  %v12017_v55 = vld [vmem:[%s15344_s3 + $0x8e0] sm:$0xff] }
  0x8f   :  { %15633 = vst [vmem:[#allocation293_spill] sm:$0xff] %v12007_v62  ;;  %15634 = vst [vmem:[#allocation294_spill] sm:$0xff] %v12012_v63  ;;  %v12022_v54 = vld [vmem:[%s15344_s3 + $0x8e8] sm:$0xff]  ;;  %v12027_v53 = vld [vmem:[%s15344_s3 + $0x8f0] sm:$0xff] }
  0x90   :  { %15635 = vst [vmem:[#allocation295_spill] sm:$0xff] %v12017_v55  ;;  %15636 = vst [vmem:[#allocation296_spill] sm:$0xff] %v12022_v54  ;;  %v12032_v62 = vld [vmem:[%s15344_s3 + $0x8f8] sm:$0xff]  ;;  %v12037_v63 = vld [vmem:[%s15344_s3 + $0x900] sm:$0xff] }
  0x91   :  { %15637 = vst [vmem:[#allocation297_spill] sm:$0xff] %v12027_v53  ;;  %15638 = vst [vmem:[#allocation298_spill] sm:$0xff] %v12032_v62  ;;  %v12042_v55 = vld [vmem:[%s15344_s3 + $0x908] sm:$0xff]  ;;  %v12047_v54 = vld [vmem:[%s15344_s3 + $0x910] sm:$0xff] }
  0x92   :  { %15639 = vst [vmem:[#allocation299_spill] sm:$0xff] %v12037_v63  ;;  %15640 = vst [vmem:[#allocation300_spill] sm:$0xff] %v12042_v55  ;;  %v12052_v53 = vld [vmem:[%s15344_s3 + $0x918] sm:$0xff]  ;;  %v12057_v62 = vld [vmem:[%s15344_s3 + $0x920] sm:$0xff] }
  0x93   :  { %15641 = vst [vmem:[#allocation301_spill] sm:$0xff] %v12047_v54  ;;  %15642 = vst [vmem:[#allocation302_spill] sm:$0xff] %v12052_v53  ;;  %v12062_v63 = vld [vmem:[%s15344_s3 + $0x928] sm:$0xff]  ;;  %v12067_v55 = vld [vmem:[%s15344_s3 + $0x930] sm:$0xff] }
  0x94   :  { %15643 = vst [vmem:[#allocation303_spill] sm:$0xff] %v12057_v62  ;;  %15644 = vst [vmem:[#allocation304_spill] sm:$0xff] %v12062_v63  ;;  %v12072_v54 = vld [vmem:[%s15344_s3 + $0x938] sm:$0xff]  ;;  %v12077_v53 = vld [vmem:[%s15344_s3 + $0x940] sm:$0xff] }
  0x95   :  { %15645 = vst [vmem:[#allocation305_spill] sm:$0xff] %v12067_v55  ;;  %15646 = vst [vmem:[#allocation306_spill] sm:$0xff] %v12072_v54  ;;  %v12082_v62 = vld [vmem:[%s15344_s3 + $0x948] sm:$0xff]  ;;  %v12087_v63 = vld [vmem:[%s15344_s3 + $0x950] sm:$0xff] }
  0x96   :  { %15647 = vst [vmem:[#allocation307_spill] sm:$0xff] %v12077_v53  ;;  %15648 = vst [vmem:[#allocation308_spill] sm:$0xff] %v12082_v62  ;;  %v12092_v55 = vld [vmem:[%s15344_s3 + $0x958] sm:$0xff]  ;;  %v12097_v54 = vld [vmem:[%s15344_s3 + $0x960] sm:$0xff] }
  0x97   :  { %15649 = vst [vmem:[#allocation309_spill] sm:$0xff] %v12087_v63  ;;  %15650 = vst [vmem:[#allocation310_spill] sm:$0xff] %v12092_v55  ;;  %v12102_v53 = vld [vmem:[%s15344_s3 + $0x968] sm:$0xff]  ;;  %v12107_v62 = vld [vmem:[%s15344_s3 + $0x970] sm:$0xff] }
  0x98   :  { %15651 = vst [vmem:[#allocation311_spill] sm:$0xff] %v12097_v54  ;;  %15652 = vst [vmem:[#allocation312_spill] sm:$0xff] %v12102_v53  ;;  %v12112_v63 = vld [vmem:[%s15344_s3 + $0x978] sm:$0xff]  ;;  %v12117_v55 = vld [vmem:[%s15344_s3 + $0x980] sm:$0xff] }
  0x99   :  { %15653 = vst [vmem:[#allocation313_spill] sm:$0xff] %v12107_v62  ;;  %15654 = vst [vmem:[#allocation314_spill] sm:$0xff] %v12112_v63  ;;  %v12122_v54 = vld [vmem:[%s15344_s3 + $0x988] sm:$0xff]  ;;  %v12127_v53 = vld [vmem:[%s15344_s3 + $0x990] sm:$0xff] }
  0x9a   :  { %15655 = vst [vmem:[#allocation315_spill] sm:$0xff] %v12117_v55  ;;  %15656 = vst [vmem:[#allocation316_spill] sm:$0xff] %v12122_v54  ;;  %v12132_v62 = vld [vmem:[%s15344_s3 + $0x998] sm:$0xff]  ;;  %v12137_v63 = vld [vmem:[%s15344_s3 + $0x9a0] sm:$0xff] }
  0x9b   :  { %15657 = vst [vmem:[#allocation317_spill] sm:$0xff] %v12127_v53  ;;  %15658 = vst [vmem:[#allocation318_spill] sm:$0xff] %v12132_v62  ;;  %v12142_v55 = vld [vmem:[%s15344_s3 + $0x9a8] sm:$0xff]  ;;  %v12147_v54 = vld [vmem:[%s15344_s3 + $0x9b0] sm:$0xff] }
  0x9c   :  { %15659 = vst [vmem:[#allocation319_spill] sm:$0xff] %v12137_v63  ;;  %15660 = vst [vmem:[#allocation320_spill] sm:$0xff] %v12142_v55  ;;  %v12152_v53 = vld [vmem:[%s15344_s3 + $0x9b8] sm:$0xff]  ;;  %v12157_v62 = vld [vmem:[%s15344_s3 + $0x9c0] sm:$0xff] }
  0x9d   :  { %15661 = vst [vmem:[#allocation321_spill] sm:$0xff] %v12147_v54  ;;  %15662 = vst [vmem:[#allocation322_spill] sm:$0xff] %v12152_v53  ;;  %v12162_v63 = vld [vmem:[%s15344_s3 + $0x9c8] sm:$0xff]  ;;  %v12167_v55 = vld [vmem:[%s15344_s3 + $0x9d0] sm:$0xff] }
  0x9e   :  { %15663 = vst [vmem:[#allocation323_spill] sm:$0xff] %v12157_v62  ;;  %15664 = vst [vmem:[#allocation324_spill] sm:$0xff] %v12162_v63  ;;  %v12172_v54 = vld [vmem:[%s15344_s3 + $0x9d8] sm:$0xff]  ;;  %v12177_v53 = vld [vmem:[%s15344_s3 + $0x9e0] sm:$0xff] }
  0x9f   :  { %15665 = vst [vmem:[#allocation325_spill] sm:$0xff] %v12167_v55  ;;  %15666 = vst [vmem:[#allocation326_spill] sm:$0xff] %v12172_v54  ;;  %v12182_v62 = vld [vmem:[%s15344_s3 + $0x9e8] sm:$0xff]  ;;  %v12187_v63 = vld [vmem:[%s15344_s3 + $0x9f0] sm:$0xff] }
  0xa0   :  { %15667 = vst [vmem:[#allocation327_spill] sm:$0xff] %v12177_v53  ;;  %15668 = vst [vmem:[#allocation328_spill] sm:$0xff] %v12182_v62  ;;  %v12192_v55 = vld [vmem:[%s15344_s3 + $0x9f8] sm:$0xff]  ;;  %v12197_v54 = vld [vmem:[%s15344_s3 + $0xa00] sm:$0xff] }
  0xa1   :  { %15669 = vst [vmem:[#allocation329_spill] sm:$0xff] %v12187_v63  ;;  %15670 = vst [vmem:[#allocation330_spill] sm:$0xff] %v12192_v55  ;;  %v12202_v53 = vld [vmem:[%s15344_s3 + $0xa08] sm:$0xff]  ;;  %v12207_v62 = vld [vmem:[%s15344_s3 + $0xa10] sm:$0xff] }
  0xa2   :  { %15671 = vst [vmem:[#allocation331_spill] sm:$0xff] %v12197_v54  ;;  %15672 = vst [vmem:[#allocation332_spill] sm:$0xff] %v12202_v53  ;;  %v12212_v63 = vld [vmem:[%s15344_s3 + $0xa18] sm:$0xff]  ;;  %v12217_v55 = vld [vmem:[%s15344_s3 + $0xa20] sm:$0xff] }
  0xa3   :  { %15673 = vst [vmem:[#allocation333_spill] sm:$0xff] %v12207_v62  ;;  %15674 = vst [vmem:[#allocation334_spill] sm:$0xff] %v12212_v63  ;;  %v12222_v54 = vld [vmem:[%s15344_s3 + $0xa28] sm:$0xff]  ;;  %v12227_v53 = vld [vmem:[%s15344_s3 + $0xa30] sm:$0xff] }
  0xa4   :  { %15675 = vst [vmem:[#allocation335_spill] sm:$0xff] %v12217_v55  ;;  %15676 = vst [vmem:[#allocation336_spill] sm:$0xff] %v12222_v54  ;;  %v12232_v62 = vld [vmem:[%s15344_s3 + $0xa38] sm:$0xff]  ;;  %v12237_v63 = vld [vmem:[%s15344_s3 + $0xa40] sm:$0xff] }
  0xa5   :  { %15677 = vst [vmem:[#allocation337_spill] sm:$0xff] %v12227_v53  ;;  %15678 = vst [vmem:[#allocation338_spill] sm:$0xff] %v12232_v62  ;;  %v12242_v55 = vld [vmem:[%s15344_s3 + $0xa48] sm:$0xff]  ;;  %v12247_v54 = vld [vmem:[%s15344_s3 + $0xa50] sm:$0xff] }
  0xa6   :  { %15679 = vst [vmem:[#allocation339_spill] sm:$0xff] %v12237_v63  ;;  %15680 = vst [vmem:[#allocation340_spill] sm:$0xff] %v12242_v55  ;;  %v12252_v53 = vld [vmem:[%s15344_s3 + $0xa58] sm:$0xff]  ;;  %v12257_v62 = vld [vmem:[%s15344_s3 + $0xa60] sm:$0xff] }
  0xa7   :  { %15681 = vst [vmem:[#allocation341_spill] sm:$0xff] %v12247_v54  ;;  %15682 = vst [vmem:[#allocation342_spill] sm:$0xff] %v12252_v53  ;;  %v12262_v63 = vld [vmem:[%s15344_s3 + $0xa68] sm:$0xff]  ;;  %v12267_v55 = vld [vmem:[%s15344_s3 + $0xa70] sm:$0xff] }
  0xa8   :  { %15683 = vst [vmem:[#allocation343_spill] sm:$0xff] %v12257_v62  ;;  %15684 = vst [vmem:[#allocation344_spill] sm:$0xff] %v12262_v63  ;;  %v12272_v54 = vld [vmem:[%s15344_s3 + $0xa78] sm:$0xff]  ;;  %v12277_v53 = vld [vmem:[%s15344_s3 + $0xa80] sm:$0xff] }
  0xa9   :  { %15685 = vst [vmem:[#allocation345_spill] sm:$0xff] %v12267_v55  ;;  %15686 = vst [vmem:[#allocation346_spill] sm:$0xff] %v12272_v54  ;;  %v12282_v62 = vld [vmem:[%s15344_s3 + $0xa88] sm:$0xff]  ;;  %v12287_v63 = vld [vmem:[%s15344_s3 + $0xa90] sm:$0xff] }
  0xaa   :  { %15687 = vst [vmem:[#allocation347_spill] sm:$0xff] %v12277_v53  ;;  %15688 = vst [vmem:[#allocation348_spill] sm:$0xff] %v12282_v62  ;;  %v12292_v55 = vld [vmem:[%s15344_s3 + $0xa98] sm:$0xff]  ;;  %v12297_v54 = vld [vmem:[%s15344_s3 + $0xaa0] sm:$0xff] }
  0xab   :  { %15689 = vst [vmem:[#allocation349_spill] sm:$0xff] %v12287_v63  ;;  %15690 = vst [vmem:[#allocation350_spill] sm:$0xff] %v12292_v55  ;;  %v12302_v53 = vld [vmem:[%s15344_s3 + $0xaa8] sm:$0xff]  ;;  %v12307_v62 = vld [vmem:[%s15344_s3 + $0xab0] sm:$0xff] }
  0xac   :  { %15691 = vst [vmem:[#allocation351_spill] sm:$0xff] %v12297_v54  ;;  %15692 = vst [vmem:[#allocation352_spill] sm:$0xff] %v12302_v53  ;;  %v12312_v63 = vld [vmem:[%s15344_s3 + $0xab8] sm:$0xff]  ;;  %v12317_v55 = vld [vmem:[%s15344_s3 + $0xac0] sm:$0xff] }
  0xad   :  { %15693 = vst [vmem:[#allocation353_spill] sm:$0xff] %v12307_v62  ;;  %15694 = vst [vmem:[#allocation354_spill] sm:$0xff] %v12312_v63  ;;  %v12322_v54 = vld [vmem:[%s15344_s3 + $0xac8] sm:$0xff]  ;;  %v12327_v53 = vld [vmem:[%s15344_s3 + $0xad0] sm:$0xff] }
  0xae   :  { %15695 = vst [vmem:[#allocation355_spill] sm:$0xff] %v12317_v55  ;;  %15696 = vst [vmem:[#allocation356_spill] sm:$0xff] %v12322_v54  ;;  %v12332_v62 = vld [vmem:[%s15344_s3 + $0xad8] sm:$0xff]  ;;  %v12337_v63 = vld [vmem:[%s15344_s3 + $0xae0] sm:$0xff] }
  0xaf   :  { %15697 = vst [vmem:[#allocation357_spill] sm:$0xff] %v12327_v53  ;;  %15698 = vst [vmem:[#allocation358_spill] sm:$0xff] %v12332_v62  ;;  %v12342_v55 = vld [vmem:[%s15344_s3 + $0xae8] sm:$0xff]  ;;  %v12347_v54 = vld [vmem:[%s15344_s3 + $0xaf0] sm:$0xff] }
  0xb0   :  { %15699 = vst [vmem:[#allocation359_spill] sm:$0xff] %v12337_v63  ;;  %15700 = vst [vmem:[#allocation360_spill] sm:$0xff] %v12342_v55  ;;  %v12352_v53 = vld [vmem:[%s15344_s3 + $0xaf8] sm:$0xff]  ;;  %v12357_v62 = vld [vmem:[%s15344_s3 + $0xb00] sm:$0xff] }
  0xb1   :  { %15701 = vst [vmem:[#allocation361_spill] sm:$0xff] %v12347_v54  ;;  %15702 = vst [vmem:[#allocation362_spill] sm:$0xff] %v12352_v53  ;;  %v12362_v63 = vld [vmem:[%s15344_s3 + $0xb08] sm:$0xff]  ;;  %v12367_v55 = vld [vmem:[%s15344_s3 + $0xb10] sm:$0xff] }
  0xb2   :  { %15703 = vst [vmem:[#allocation363_spill] sm:$0xff] %v12357_v62  ;;  %15704 = vst [vmem:[#allocation364_spill] sm:$0xff] %v12362_v63  ;;  %v12372_v54 = vld [vmem:[%s15344_s3 + $0xb18] sm:$0xff]  ;;  %v12377_v53 = vld [vmem:[%s15344_s3 + $0xb20] sm:$0xff] }
  0xb3   :  { %15705 = vst [vmem:[#allocation365_spill] sm:$0xff] %v12367_v55  ;;  %15706 = vst [vmem:[#allocation366_spill] sm:$0xff] %v12372_v54  ;;  %v12382_v62 = vld [vmem:[%s15344_s3 + $0xb28] sm:$0xff]  ;;  %v12387_v63 = vld [vmem:[%s15344_s3 + $0xb30] sm:$0xff] }
  0xb4   :  { %15707 = vst [vmem:[#allocation367_spill] sm:$0xff] %v12377_v53  ;;  %15708 = vst [vmem:[#allocation368_spill] sm:$0xff] %v12382_v62  ;;  %v12392_v55 = vld [vmem:[%s15344_s3 + $0xb38] sm:$0xff]  ;;  %v12397_v54 = vld [vmem:[%s15344_s3 + $0xb40] sm:$0xff] }
  0xb5   :  { %15709 = vst [vmem:[#allocation369_spill] sm:$0xff] %v12387_v63  ;;  %15710 = vst [vmem:[#allocation370_spill] sm:$0xff] %v12392_v55  ;;  %v12402_v53 = vld [vmem:[%s15344_s3 + $0xb48] sm:$0xff]  ;;  %v12407_v62 = vld [vmem:[%s15344_s3 + $0xb50] sm:$0xff] }
  0xb6   :  { %15711 = vst [vmem:[#allocation371_spill] sm:$0xff] %v12397_v54  ;;  %15712 = vst [vmem:[#allocation372_spill] sm:$0xff] %v12402_v53  ;;  %v12412_v63 = vld [vmem:[%s15344_s3 + $0xb58] sm:$0xff]  ;;  %v12417_v55 = vld [vmem:[%s15344_s3 + $0xb60] sm:$0xff] }
  0xb7   :  { %15713 = vst [vmem:[#allocation373_spill] sm:$0xff] %v12407_v62  ;;  %15714 = vst [vmem:[#allocation374_spill] sm:$0xff] %v12412_v63  ;;  %v12422_v54 = vld [vmem:[%s15344_s3 + $0xb68] sm:$0xff]  ;;  %v12427_v53 = vld [vmem:[%s15344_s3 + $0xb70] sm:$0xff] }
  0xb8   :  { %15715 = vst [vmem:[#allocation375_spill] sm:$0xff] %v12417_v55  ;;  %15716 = vst [vmem:[#allocation376_spill] sm:$0xff] %v12422_v54  ;;  %v12432_v62 = vld [vmem:[%s15344_s3 + $0xb78] sm:$0xff]  ;;  %v12437_v63 = vld [vmem:[%s15344_s3 + $0xb80] sm:$0xff] }
  0xb9   :  { %15717 = vst [vmem:[#allocation377_spill] sm:$0xff] %v12427_v53  ;;  %15718 = vst [vmem:[#allocation378_spill] sm:$0xff] %v12432_v62  ;;  %v12442_v55 = vld [vmem:[%s15344_s3 + $0xb88] sm:$0xff]  ;;  %v12447_v54 = vld [vmem:[%s15344_s3 + $0xb90] sm:$0xff] }
  0xba   :  { %15719 = vst [vmem:[#allocation379_spill] sm:$0xff] %v12437_v63  ;;  %15720 = vst [vmem:[#allocation380_spill] sm:$0xff] %v12442_v55  ;;  %v12452_v53 = vld [vmem:[%s15344_s3 + $0xb98] sm:$0xff]  ;;  %v12457_v62 = vld [vmem:[%s15344_s3 + $0xba0] sm:$0xff] }
  0xbb   :  { %15721 = vst [vmem:[#allocation381_spill] sm:$0xff] %v12447_v54  ;;  %15722 = vst [vmem:[#allocation382_spill] sm:$0xff] %v12452_v53  ;;  %v12462_v63 = vld [vmem:[%s15344_s3 + $0xba8] sm:$0xff]  ;;  %v12467_v55 = vld [vmem:[%s15344_s3 + $0xbb0] sm:$0xff] }
  0xbc   :  { %15723 = vst [vmem:[#allocation383_spill] sm:$0xff] %v12457_v62  ;;  %15724 = vst [vmem:[#allocation384_spill] sm:$0xff] %v12462_v63  ;;  %v12472_v54 = vld [vmem:[%s15344_s3 + $0xbb8] sm:$0xff]  ;;  %v12477_v53 = vld [vmem:[%s15344_s3 + $0xbc0] sm:$0xff] }
  0xbd   :  { %15725 = vst [vmem:[#allocation385_spill] sm:$0xff] %v12467_v55  ;;  %15726 = vst [vmem:[#allocation386_spill] sm:$0xff] %v12472_v54  ;;  %v12482_v62 = vld [vmem:[%s15344_s3 + $0xbc8] sm:$0xff]  ;;  %v12487_v63 = vld [vmem:[%s15344_s3 + $0xbd0] sm:$0xff] }
  0xbe   :  { %15727 = vst [vmem:[#allocation387_spill] sm:$0xff] %v12477_v53  ;;  %15728 = vst [vmem:[#allocation388_spill] sm:$0xff] %v12482_v62  ;;  %v12492_v55 = vld [vmem:[%s15344_s3 + $0xbd8] sm:$0xff]  ;;  %v12497_v54 = vld [vmem:[%s15344_s3 + $0xbe0] sm:$0xff] }
  0xbf   :  { %15729 = vst [vmem:[#allocation389_spill] sm:$0xff] %v12487_v63  ;;  %15730 = vst [vmem:[#allocation390_spill] sm:$0xff] %v12492_v55  ;;  %v12502_v53 = vld [vmem:[%s15344_s3 + $0xbe8] sm:$0xff]  ;;  %v12507_v62 = vld [vmem:[%s15344_s3 + $0xbf0] sm:$0xff] }
  0xc0   :  { %15731 = vst [vmem:[#allocation391_spill] sm:$0xff] %v12497_v54  ;;  %15732 = vst [vmem:[#allocation392_spill] sm:$0xff] %v12502_v53  ;;  %v12512_v63 = vld [vmem:[%s15344_s3 + $0xbf8] sm:$0xff]  ;;  %v12517_v55 = vld [vmem:[%s15344_s3 + $0xc00] sm:$0xff] }
  0xc1   :  { %15733 = vst [vmem:[#allocation393_spill] sm:$0xff] %v12507_v62  ;;  %15734 = vst [vmem:[#allocation394_spill] sm:$0xff] %v12512_v63  ;;  %v12522_v54 = vld [vmem:[%s15344_s3 + $0xc08] sm:$0xff]  ;;  %v12527_v53 = vld [vmem:[%s15344_s3 + $0xc10] sm:$0xff] }
  0xc2   :  { %15735 = vst [vmem:[#allocation395_spill] sm:$0xff] %v12517_v55  ;;  %15736 = vst [vmem:[#allocation396_spill] sm:$0xff] %v12522_v54  ;;  %v12532_v62 = vld [vmem:[%s15344_s3 + $0xc18] sm:$0xff]  ;;  %v12537_v63 = vld [vmem:[%s15344_s3 + $0xc20] sm:$0xff] }
  0xc3   :  { %15737 = vst [vmem:[#allocation397_spill] sm:$0xff] %v12527_v53  ;;  %15738 = vst [vmem:[#allocation398_spill] sm:$0xff] %v12532_v62  ;;  %v12542_v55 = vld [vmem:[%s15344_s3 + $0xc28] sm:$0xff]  ;;  %v12547_v54 = vld [vmem:[%s15344_s3 + $0xc30] sm:$0xff] }
  0xc4   :  { %15739 = vst [vmem:[#allocation399_spill] sm:$0xff] %v12537_v63  ;;  %15740 = vst [vmem:[#allocation400_spill] sm:$0xff] %v12542_v55  ;;  %v12552_v53 = vld [vmem:[%s15344_s3 + $0xc38] sm:$0xff] }
  0xc5   :  { %15741 = vst [vmem:[#allocation401_spill] sm:$0xff] %v12547_v54  ;;  %15742 = vst [vmem:[#allocation402_spill] sm:$0xff] %v12552_v53 }
  0xc6   :  { %846 = vsyncadd [#allocation5], 50176  ;;  %v12557_v63 = vld [vmem:[%s15345_s4 + $0x2] ss:$0 sm:$0xff]  ;;  %v12562_v55 = vld [vmem:[%s15345_s4 + $0x3] sm:$0x1] }
  0xc7   :  { %15743 = vst [vmem:[#allocation403_spill] sm:$0xff] %v12557_v63  ;;  %15744 = vst [vmem:[#allocation404_spill] sm:$0xff] %v12562_v55  ;;  %v12567_v54 = vld [vmem:[%s15345_s4 + $0x4] sm:$0x1]  ;;  %v15348_v62 = vmov 0   ;;  %v9874_v63 = vld [vmem:[%s15342_s1 + $0x8] sm:$0xff]  }
  0xc8   :  { %15745 = vst [vmem:[#allocation405_spill] sm:$0xff] %v12567_v54  ;;  %v9873_v53 = vld [vmem:[%s15342_s1] sm:$0xff]   ;;  %3464 = vmatprep.subr.bf16.mxu0 %v15348_v62  ;;  %9168 = vmatprep.subr.bf16.mxu1 %v15348_v62  ;;  %v9875_v54 = vld [vmem:[%s15342_s1 + $0x10] sm:$0xff]   ;;  %v9876_v55 = vld [vmem:[%s15342_s1 + $0x18] sm:$0xff]  }
  0xc9   :  { %3465 = vmatpush1.bf16.msra.mxu0 %v9873_v53  ;;  %9184 = vmatpush1.bf16.msra.mxu1 %v9873_v53  ;;  %v9877_v53 = vld [vmem:[%s15342_s1 + $0x20] sm:$0xff]   ;;  %v10210_v42 = vld [vmem:[%s15341_s0 + $0x368] ss:$16 sps:$4 sm:$0xff]   ;;  %v10370_v2 = vld [vmem:[%s15341_s0 + $0x68c] ss:$16 sps:$4 sm:$0xff]  }
  0xca   :  { %3466 = vmatprep.subr.bf16.mxu0 %v15348_v62  ;;  %9169 = vmatprep.subr.bf16.mxu1 %v15348_v62  ;;  %v9893_v61 = vld [vmem:[%s15341_s0 + $0x24] ss:$16 sps:$4 sm:$0xff]   ;;  %v9895_v52 = vld [vmem:[%s15341_s0 + $0x20] ss:$16 sps:$4 sm:$0xff]   ;;  %v10271_v17 = vld [vmem:[%s15341_s0 + $0x4c8] ss:$16 sps:$4 sm:$0xff]  }
  0xcb   :  { %v9899_v60 = vld [vmem:[%s15341_s0 + $0x64] ss:$16 sps:$4 sm:$0xff]   ;;  %v10320_v22 = vld [vmem:[%s15341_s0 + $0xb60] ss:$16 sps:$4 sm:$0xff]   ;;  %v10376_v1 = vld [vmem:[%s15341_s0 + $0x6a8] ss:$16 sps:$4 sm:$0xff]  }
  0xcc   :  { %v10104_v59 = vld [vmem:[%s15341_s0 + $0x844] ss:$16 sps:$4 sm:$0xff]   ;;  %v10328_v30 = vld [vmem:[%s15341_s0 + $0xb80] ss:$16 sps:$4 sm:$0xff]   ;;  %v10469_v0 = vld [vmem:[%s15341_s0 + $0xa68] ss:$16 sps:$4 sm:$0xff]  }
  0xcd   :  { %3467 = vmatpush1.bf16.msra.mxu0 %v9874_v63  ;;  %9185 = vmatpush1.bf16.msra.mxu1 %v9874_v63  ;;  %v9891_v63 = vld [vmem:[%s15341_s0 + $0x4] ss:$16 sps:$4 sm:$0xff]   ;;  %v10336_v21 = vld [vmem:[%s15341_s0 + $0xba0] ss:$16 sps:$4 sm:$0xff]  }
  0xce   :  { %3468 = vmatprep.subr.bf16.mxu0 %v15348_v62  ;;  %9170 = vmatprep.subr.bf16.mxu1 %v15348_v62  ;;  %v10344_v29 = vld [vmem:[%s15341_s0 + $0xbc0] ss:$16 sps:$4 sm:$0xff]  }
  0xcf   :  { %3496 = vmatprep.mubr.bf16.mxu0 %v9891_v63  ;;  %v9881_v63 = vld [vmem:[%s15342_s1 + $0x40] sm:$0xff]  }
  0xd0   :  { %v10352_v20 = vld [vmem:[%s15341_s0 + $0xbe0] ss:$16 sps:$4 sm:$0xff]  }
  0xd1   :  { %3469 = vmatpush1.bf16.msra.mxu0 %v9875_v54  ;;  %9186 = vmatpush1.bf16.msra.mxu1 %v9875_v54  ;;  %v9878_v54 = vld [vmem:[%s15342_s1 + $0x28] sm:$0xff]   ;;  %v10360_v28 = vld [vmem:[%s15341_s0 + $0xc00] ss:$16 sps:$4 sm:$0xff]  }
  0xd2   :  { %3470 = vmatprep.subr.bf16.mxu0 %v15348_v62  ;;  %9171 = vmatprep.subr.bf16.mxu1 %v15348_v62  ;;  %v10368_v19 = vld [vmem:[%s15341_s0 + $0xc20] ss:$16 sps:$4 sm:$0xff]  }
  0xd5   :  { %3471 = vmatpush1.bf16.msra.mxu0 %v9876_v55  ;;  %9187 = vmatpush1.bf16.msra.mxu1 %v9876_v55  ;;  %v9879_v55 = vld [vmem:[%s15342_s1 + $0x30] sm:$0xff]  }
  0xd6   :  { %3472 = vmatprep.subr.bf16.mxu0 %v15348_v62  ;;  %9172 = vmatprep.subr.bf16.mxu1 %v15348_v62 }
  0xd9   :  { %3473 = vmatpush1.bf16.msra.mxu0 %v9877_v53  ;;  %9188 = vmatpush1.bf16.msra.mxu1 %v9877_v53  ;;  %v9880_v53 = vld [vmem:[%s15342_s1 + $0x38] sm:$0xff]  }
  0xda   :  { %3474 = vmatprep.subr.bf16.mxu0 %v15348_v62  ;;  %9173 = vmatprep.subr.bf16.mxu1 %v15348_v62 }
  0xdd   :  { %3475 = vmatpush1.bf16.msra.mxu0 %v9878_v54  ;;  %9189 = vmatpush1.bf16.msra.mxu1 %v9878_v54  ;;  %v9882_v54 = vld [vmem:[%s15342_s1 + $0x48] sm:$0xff]  }
  0xde   :  { %3476 = vmatprep.subr.bf16.mxu0 %v15348_v62  ;;  %9174 = vmatprep.subr.bf16.mxu1 %v15348_v62 }
  0xe1   :  { %3477 = vmatpush1.bf16.msra.mxu0 %v9879_v55  ;;  %9190 = vmatpush1.bf16.msra.mxu1 %v9879_v55  ;;  %v9883_v55 = vld [vmem:[%s15342_s1 + $0x50] sm:$0xff]  }
  0xe2   :  { %3478 = vmatprep.subr.bf16.mxu0 %v15348_v62  ;;  %9175 = vmatprep.subr.bf16.mxu1 %v15348_v62 }
  0xe5   :  { %3479 = vmatpush1.bf16.msra.mxu0 %v9880_v53  ;;  %9191 = vmatpush1.bf16.msra.mxu1 %v9880_v53  ;;  %v9884_v53 = vld [vmem:[%s15342_s1 + $0x58] sm:$0xff]  }
  0xe6   :  { %3480 = vmatprep.subr.bf16.mxu0 %v15348_v62  ;;  %9176 = vmatprep.subr.bf16.mxu1 %v15348_v62 }
  0xe9   :  { %3481 = vmatpush1.bf16.msra.mxu0 %v9881_v63  ;;  %9192 = vmatpush1.bf16.msra.mxu1 %v9881_v63  ;;  %v9885_v63 = vld [vmem:[%s15342_s1 + $0x60] sm:$0xff]  }
  0xea   :  { %3482 = vmatprep.subr.bf16.mxu0 %v15348_v62  ;;  %9177 = vmatprep.subr.bf16.mxu1 %v15348_v62 }
  0xed   :  { %3483 = vmatpush1.bf16.msra.mxu0 %v9882_v54  ;;  %9193 = vmatpush1.bf16.msra.mxu1 %v9882_v54  ;;  %v9886_v54 = vld [vmem:[%s15342_s1 + $0x68] sm:$0xff]  }
  0xee   :  { %3484 = vmatprep.subr.bf16.mxu0 %v15348_v62  ;;  %9178 = vmatprep.subr.bf16.mxu1 %v15348_v62 }
  0xf1   :  { %3485 = vmatpush1.bf16.msra.mxu0 %v9883_v55  ;;  %9194 = vmatpush1.bf16.msra.mxu1 %v9883_v55  ;;  %v9887_v55 = vld [vmem:[%s15342_s1 + $0x70] sm:$0xff]  }
  0xf2   :  { %3486 = vmatprep.subr.bf16.mxu0 %v15348_v62  ;;  %9179 = vmatprep.subr.bf16.mxu1 %v15348_v62 }
  0xf5   :  { %3487 = vmatpush1.bf16.msra.mxu0 %v9884_v53  ;;  %9195 = vmatpush1.bf16.msra.mxu1 %v9884_v53  ;;  %v9888_v53 = vld [vmem:[%s15342_s1 + $0x78] sm:$0xff]  }
  0xf6   :  { %3488 = vmatprep.subr.bf16.mxu0 %v15348_v62  ;;  %9180 = vmatprep.subr.bf16.mxu1 %v15348_v62 }
  0xf9   :  { %3489 = vmatpush1.bf16.msra.mxu0 %v9885_v63  ;;  %9196 = vmatpush1.bf16.msra.mxu1 %v9885_v63  ;;  %v9889_v63 = vld [vmem:[%s15341_s0] ss:$16 sps:$4 sm:$0xff]  }
  0xfa   :  { %3490 = vmatprep.subr.bf16.mxu0 %v15348_v62  ;;  %9181 = vmatprep.subr.bf16.mxu1 %v15348_v62 }
  0xfd   :  { %3491 = vmatpush1.bf16.msra.mxu0 %v9886_v54  ;;  %9197 = vmatpush1.bf16.msra.mxu1 %v9886_v54  ;;  %v9892_v54 = vld [vmem:[%s15342_s1 + $0x80] sm:$0xff]  }
  0xfe   :  { %3492 = vmatprep.subr.bf16.mxu0 %v15348_v62  ;;  %9182 = vmatprep.subr.bf16.mxu1 %v15348_v62 }
 0x101   :  { %3493 = vmatpush1.bf16.msra.mxu0 %v9887_v55  ;;  %9198 = vmatpush1.bf16.msra.mxu1 %v9887_v55  ;;  %v9905_v55 = vld [vmem:[%s15342_s1 + $0x88] sm:$0xff]  }
 0x102   :  { %3494 = vmatprep.subr.bf16.mxu0 %v15348_v62  ;;  %9183 = vmatprep.subr.bf16.mxu1 %v15348_v62 }
 0x105   :  { %3495 = vmatpush1.bf16.msra.mxu0 %v9888_v53  ;;  %9199 = vmatpush1.bf16.msra.mxu1 %v9888_v53  ;;  %v9896_v53 = vld [vmem:[%s15341_s0 + $0x44] ss:$16 sps:$4 sm:$0xff]  }
 0x106   :  { %4281 = vmatprep.subr.bf16.mxu0 %v15348_v62  ;;  %6046 = vmatprep.subr.bf16.mxu1 %v15348_v62 }
 0x108   :  { %3497 = vmatmul.mubr.bf16.vlgmr.msra.gmra.mrb[0].mxu0 %v9889_v63  ;;  %v9921_v63 = vld [vmem:[%s15342_s1 + $0x90] sm:$0xff]  }
 0x109   :  { %4282 = vmatpush1.bf16.msra.mxu0 %v9892_v54  ;;  %3504 = vmatprep.mubr.bf16.mxu0 %v9893_v61  ;;  %v9937_v61 = vld [vmem:[%s15342_s1 + $0x98] sm:$0xff]   ;;  %v9898_v54 = vld [vmem:[%s15341_s0 + $0x40] ss:$16 sps:$4 sm:$0xff]  }
 0x10a   :  { %4283 = vmatprep.subr.bf16.mxu0 %v15348_v62 }
 0x10d   :  { %4284 = vmatpush1.bf16.msra.mxu0 %v9905_v55  ;;  %v9901_v55 = vld [vmem:[%s15341_s0 + $0x60] ss:$16 sps:$4 sm:$0xff]  }
 0x10e   :  { %4285 = vmatprep.subr.bf16.mxu0 %v15348_v62 }
 0x110   :  { %3505 = vmatmul.mubr.bf16.gmra.mrb[4].mxu0 %v9895_v52  ;;  %v9950_v52 = vld [vmem:[%s15342_s1 + $0xa0] sm:$0xff]  }
 0x111   :  { %3512 = vmatprep.mubr.bf16.mxu0 %v9896_v53  ;;  %4286 = vmatpush1.bf16.msra.mxu0 %v9921_v63  ;;  %v9902_v53 = vld [vmem:[%s15341_s0 + $0x84] ss:$16 sps:$4 sm:$0xff]   ;;  %v9904_v63 = vld [vmem:[%s15341_s0 + $0x80] ss:$16 sps:$4 sm:$0xff]  }
 0x112   :  { %4287 = vmatprep.subr.bf16.mxu0 %v15348_v62 }
 0x115   :  { %4288 = vmatpush1.bf16.msra.mxu0 %v9937_v61  ;;  %v9908_v61 = vld [vmem:[%s15341_s0 + $0xa0] ss:$16 sps:$4 sm:$0xff]  }
 0x116   :  { %4289 = vmatprep.subr.bf16.mxu0 %v15348_v62 }
 0x118   :  { %3513 = vmatmul.mubr.bf16.gmra.mrb[8].mxu0 %v9898_v54  ;;  %v9909_v54 = vld [vmem:[%s15341_s0 + $0xc4] ss:$16 sps:$4 sm:$0xff]  }
 0x119   :  { %3520 = vmatprep.mubr.bf16.mxu0 %v9899_v60  ;;  %4290 = vmatpush1.bf16.msra.mxu0 %v9950_v52  ;;  %v9906_v60 = vld [vmem:[%s15341_s0 + $0xa4] ss:$16 sps:$4 sm:$0xff]   ;;  %v9911_v52 = vld [vmem:[%s15341_s0 + $0xc0] ss:$16 sps:$4 sm:$0xff]  }
 0x11a   :  { %4291 = vmatprep.subr.bf16.mxu0 %v15348_v62 }
 0x120   :  { %3521 = vmatmul.mubr.bf16.gmra.mrb[12].mxu0 %v9901_v55  ;;  %v9912_v55 = vld [vmem:[%s15341_s0 + $0xe4] ss:$16 sps:$4 sm:$0xff]  }
 0x121   :  { %3528 = vmatprep.mubr.bf16.mxu0 %v9902_v53  ;;  %v9914_v53 = vld [vmem:[%s15341_s0 + $0xe0] ss:$16 sps:$4 sm:$0xff]  }
 0x128   :  { %3529 = vmatmul.mubr.bf16.gmra.mrb[16].mxu0 %v9904_v63  ;;  %v9915_v63 = vld [vmem:[%s15341_s0 + $0x104] ss:$16 sps:$4 sm:$0xff]  }
 0x129   :  { %3536 = vmatprep.mubr.bf16.mxu0 %v9906_v60  ;;  %v9966_v60 = vld [vmem:[%s15342_s1 + $0xa8] sm:$0xff]  }
 0x12a   :  { %4292 = vmatpush1.bf16.msra.mxu0 %v9966_v60  ;;  %v9927_v60 = vld [vmem:[%s15341_s0 + $0x160] ss:$16 sps:$4 sm:$0xff]  }
 0x12b   :  { %4293 = vmatprep.subr.bf16.mxu0 %v15348_v62 }
 0x130   :  { %3537 = vmatmul.mubr.bf16.gmra.mrb[20].mxu0 %v9908_v61  ;;  %v9917_v61 = vld [vmem:[%s15341_s0 + $0x100] ss:$16 sps:$4 sm:$0xff]  }
 0x131   :  { %3544 = vmatprep.mubr.bf16.mxu0 %v9909_v54  ;;  %v9918_v54 = vld [vmem:[%s15341_s0 + $0x124] ss:$16 sps:$4 sm:$0xff]  }
 0x138   :  { %3545 = vmatmul.mubr.bf16.gmra.mrb[24].mxu0 %v9911_v52  ;;  %v9920_v52 = vld [vmem:[%s15341_s0 + $0x120] ss:$16 sps:$4 sm:$0xff]  }
 0x139   :  { %3552 = vmatprep.mubr.bf16.mxu0 %v9912_v55  ;;  %v9922_v55 = vld [vmem:[%s15341_s0 + $0x144] ss:$16 sps:$4 sm:$0xff]  }
 0x140   :  { %3553 = vmatmul.mubr.bf16.gmra.mrb[28].mxu0 %v9914_v53  ;;  %v9924_v53 = vld [vmem:[%s15341_s0 + $0x140] ss:$16 sps:$4 sm:$0xff]  }
 0x141   :  { %3560 = vmatprep.mubr.bf16.mxu0 %v9915_v63  ;;  %v9925_v63 = vld [vmem:[%s15341_s0 + $0x164] ss:$16 sps:$4 sm:$0xff]  }
 0x148   :  { %3561 = vmatmul.mubr.bf16.gmra.mrb[32].mxu0 %v9917_v61  ;;  %v9928_v61 = vld [vmem:[%s15341_s0 + $0x184] ss:$16 sps:$4 sm:$0xff]  }
 0x149   :  { %3568 = vmatprep.mubr.bf16.mxu0 %v9918_v54  ;;  %v9981_v54 = vld [vmem:[%s15342_s1 + $0xb0] sm:$0xff]  }
 0x14a   :  { %4294 = vmatpush1.bf16.msra.mxu0 %v9981_v54  ;;  %v9940_v54 = vld [vmem:[%s15341_s0 + $0x1e0] ss:$16 sps:$4 sm:$0xff]  }
 0x14b   :  { %4295 = vmatprep.subr.bf16.mxu0 %v15348_v62 }
 0x150   :  { %3569 = vmatmul.mubr.bf16.gmra.mrb[36].mxu0 %v9920_v52  ;;  %v9930_v52 = vld [vmem:[%s15341_s0 + $0x180] ss:$16 sps:$4 sm:$0xff]  }
 0x151   :  { %3576 = vmatprep.mubr.bf16.mxu0 %v9922_v55  ;;  %v9931_v55 = vld [vmem:[%s15341_s0 + $0x1a4] ss:$16 sps:$4 sm:$0xff]  }
 0x158   :  { %3577 = vmatmul.mubr.bf16.gmra.mrb[40].mxu0 %v9924_v53  ;;  %v9933_v53 = vld [vmem:[%s15341_s0 + $0x1a0] ss:$16 sps:$4 sm:$0xff]  }
 0x159   :  { %3584 = vmatprep.mubr.bf16.mxu0 %v9925_v63  ;;  %v9934_v63 = vld [vmem:[%s15341_s0 + $0x1c4] ss:$16 sps:$4 sm:$0xff]  }
 0x160   :  { %3585 = vmatmul.mubr.bf16.gmra.mrb[44].mxu0 %v9927_v60  ;;  %v9936_v60 = vld [vmem:[%s15341_s0 + $0x1c0] ss:$16 sps:$4 sm:$0xff]  }
 0x161   :  { %3592 = vmatprep.mubr.bf16.mxu0 %v9928_v61  ;;  %v9938_v61 = vld [vmem:[%s15341_s0 + $0x1e4] ss:$16 sps:$4 sm:$0xff]  }
 0x168   :  { %3593 = vmatmul.mubr.bf16.gmra.mrb[48].mxu0 %v9930_v52  ;;  %v9941_v52 = vld [vmem:[%s15341_s0 + $0x204] ss:$16 sps:$4 sm:$0xff]  }
 0x169   :  { %3600 = vmatprep.mubr.bf16.mxu0 %v9931_v55  ;;  %v9943_v55 = vld [vmem:[%s15341_s0 + $0x200] ss:$16 sps:$4 sm:$0xff]  }
 0x170   :  { %3601 = vmatmul.mubr.bf16.gmra.mrb[52].mxu0 %v9933_v53  ;;  %v9944_v53 = vld [vmem:[%s15341_s0 + $0x224] ss:$16 sps:$4 sm:$0xff]  }
 0x171   :  { %3608 = vmatprep.mubr.bf16.mxu0 %v9934_v63  ;;  %v9995_v63 = vld [vmem:[%s15342_s1 + $0xb8] sm:$0xff]  }
 0x172   :  { %4296 = vmatpush1.bf16.msra.mxu0 %v9995_v63  ;;  %v9956_v63 = vld [vmem:[%s15341_s0 + $0x280] ss:$16 sps:$4 sm:$0xff]  }
 0x173   :  { %4297 = vmatprep.subr.bf16.mxu0 %v15348_v62 }
 0x178   :  { %3609 = vmatmul.mubr.bf16.gmra.mrb[56].mxu0 %v9936_v60  ;;  %v9946_v60 = vld [vmem:[%s15341_s0 + $0x220] ss:$16 sps:$4 sm:$0xff]  }
 0x179   :  { %3616 = vmatprep.mubr.bf16.mxu0 %v9938_v61  ;;  %v9947_v61 = vld [vmem:[%s15341_s0 + $0x244] ss:$16 sps:$4 sm:$0xff]  }
 0x180   :  { %3617 = vmatmul.mubr.bf16.gmra.mrb[60].mxu0 %v9940_v54  ;;  %v9949_v54 = vld [vmem:[%s15341_s0 + $0x240] ss:$16 sps:$4 sm:$0xff]  }
 0x181   :  { %3624 = vmatprep.mubr.bf16.mxu0 %v9941_v52  ;;  %v9951_v52 = vld [vmem:[%s15341_s0 + $0x264] ss:$16 sps:$4 sm:$0xff]  }
 0x188   :  { %3625 = vmatmul.mubr.bf16.gmra.mrb[64].mxu0 %v9943_v55  ;;  %v9953_v55 = vld [vmem:[%s15341_s0 + $0x260] ss:$16 sps:$4 sm:$0xff]  }
 0x189   :  { %3632 = vmatprep.mubr.bf16.mxu0 %v9944_v53  ;;  %v9954_v53 = vld [vmem:[%s15341_s0 + $0x284] ss:$16 sps:$4 sm:$0xff]  }
 0x190   :  { %3633 = vmatmul.mubr.bf16.gmra.mrb[68].mxu0 %v9946_v60  ;;  %v9957_v60 = vld [vmem:[%s15341_s0 + $0x2a4] ss:$16 sps:$4 sm:$0xff]  }
 0x191   :  { %3640 = vmatprep.mubr.bf16.mxu0 %v9947_v61  ;;  %v9959_v61 = vld [vmem:[%s15341_s0 + $0x2a0] ss:$16 sps:$4 sm:$0xff]  }
 0x198   :  { %3641 = vmatmul.mubr.bf16.gmra.mrb[72].mxu0 %v9949_v54  ;;  %v9960_v54 = vld [vmem:[%s15341_s0 + $0x2c4] ss:$16 sps:$4 sm:$0xff]  }
 0x199   :  { %3648 = vmatprep.mubr.bf16.mxu0 %v9951_v52  ;;  %v10011_v52 = vld [vmem:[%s15342_s1 + $0xc0] sm:$0xff]  }
 0x19a   :  { %4298 = vmatpush1.bf16.msra.mxu0 %v10011_v52  ;;  %v9972_v52 = vld [vmem:[%s15341_s0 + $0x320] ss:$16 sps:$4 sm:$0xff]  }
 0x19b   :  { %4299 = vmatprep.subr.bf16.mxu0 %v15348_v62 }
 0x1a0   :  { %3649 = vmatmul.mubr.bf16.gmra.mrb[76].mxu0 %v9953_v55  ;;  %v9962_v55 = vld [vmem:[%s15341_s0 + $0x2c0] ss:$16 sps:$4 sm:$0xff]  }
 0x1a1   :  { %3656 = vmatprep.mubr.bf16.mxu0 %v9954_v53  ;;  %v9963_v53 = vld [vmem:[%s15341_s0 + $0x2e4] ss:$16 sps:$4 sm:$0xff]  }
 0x1a8   :  { %3657 = vmatmul.mubr.bf16.gmra.mrb[80].mxu0 %v9956_v63  ;;  %v9965_v63 = vld [vmem:[%s15341_s0 + $0x2e0] ss:$16 sps:$4 sm:$0xff]  }
 0x1a9   :  { %3664 = vmatprep.mubr.bf16.mxu0 %v9957_v60  ;;  %v9967_v60 = vld [vmem:[%s15341_s0 + $0x304] ss:$16 sps:$4 sm:$0xff]  }
 0x1b0   :  { %3665 = vmatmul.mubr.bf16.gmra.mrb[84].mxu0 %v9959_v61  ;;  %v9969_v61 = vld [vmem:[%s15341_s0 + $0x300] ss:$16 sps:$4 sm:$0xff]  }
 0x1b1   :  { %3672 = vmatprep.mubr.bf16.mxu0 %v9960_v54  ;;  %v9970_v54 = vld [vmem:[%s15341_s0 + $0x324] ss:$16 sps:$4 sm:$0xff]  }
 0x1b8   :  { %3673 = vmatmul.mubr.bf16.gmra.mrb[88].mxu0 %v9962_v55  ;;  %v9973_v55 = vld [vmem:[%s15341_s0 + $0x344] ss:$16 sps:$4 sm:$0xff]  }
 0x1b9   :  { %3680 = vmatprep.mubr.bf16.mxu0 %v9963_v53  ;;  %v10024_v53 = vld [vmem:[%s15342_s1 + $0xc8] sm:$0xff]  }
 0x1ba   :  { %4300 = vmatpush1.bf16.msra.mxu0 %v10024_v53  ;;  %v9985_v53 = vld [vmem:[%s15341_s0 + $0x3a0] ss:$16 sps:$4 sm:$0xff]  }
 0x1bb   :  { %4301 = vmatprep.subr.bf16.mxu0 %v15348_v62 }
 0x1c0   :  { %3681 = vmatmul.mubr.bf16.gmra.mrb[92].mxu0 %v9965_v63  ;;  %v9975_v63 = vld [vmem:[%s15341_s0 + $0x340] ss:$16 sps:$4 sm:$0xff]  }
 0x1c1   :  { %3688 = vmatprep.mubr.bf16.mxu0 %v9967_v60  ;;  %v9976_v60 = vld [vmem:[%s15341_s0 + $0x364] ss:$16 sps:$4 sm:$0xff]  }
 0x1c8   :  { %3689 = vmatmul.mubr.bf16.gmra.mrb[96].mxu0 %v9969_v61  ;;  %v9978_v61 = vld [vmem:[%s15341_s0 + $0x360] ss:$16 sps:$4 sm:$0xff]  }
 0x1c9   :  { %3696 = vmatprep.mubr.bf16.mxu0 %v9970_v54  ;;  %v9979_v54 = vld [vmem:[%s15341_s0 + $0x384] ss:$16 sps:$4 sm:$0xff]  }
 0x1d0   :  { %3697 = vmatmul.mubr.bf16.gmra.mrb[100].mxu0 %v9972_v52  ;;  %v9982_v52 = vld [vmem:[%s15341_s0 + $0x380] ss:$16 sps:$4 sm:$0xff]  }
 0x1d1   :  { %3704 = vmatprep.mubr.bf16.mxu0 %v9973_v55  ;;  %v9983_v55 = vld [vmem:[%s15341_s0 + $0x3a4] ss:$16 sps:$4 sm:$0xff]  }
 0x1d8   :  { %3705 = vmatmul.mubr.bf16.gmra.mrb[104].mxu0 %v9975_v63  ;;  %v9986_v63 = vld [vmem:[%s15341_s0 + $0x3c4] ss:$16 sps:$4 sm:$0xff]  }
 0x1d9   :  { %3712 = vmatprep.mubr.bf16.mxu0 %v9976_v60  ;;  %v9988_v60 = vld [vmem:[%s15341_s0 + $0x3c0] ss:$16 sps:$4 sm:$0xff]  }
 0x1e0   :  { %3713 = vmatmul.mubr.bf16.gmra.mrb[108].mxu0 %v9978_v61  ;;  %v9989_v61 = vld [vmem:[%s15341_s0 + $0x3e4] ss:$16 sps:$4 sm:$0xff]  }
 0x1e1   :  { %3720 = vmatprep.mubr.bf16.mxu0 %v9979_v54  ;;  %v10040_v54 = vld [vmem:[%s15342_s1 + $0xd0] sm:$0xff]  }
 0x1e2   :  { %4302 = vmatpush1.bf16.msra.mxu0 %v10040_v54  ;;  %v10001_v54 = vld [vmem:[%s15341_s0 + $0x440] ss:$16 sps:$4 sm:$0xff]  }
 0x1e3   :  { %4303 = vmatprep.subr.bf16.mxu0 %v15348_v62 }
 0x1e8   :  { %3721 = vmatmul.mubr.bf16.gmra.mrb[112].mxu0 %v9982_v52  ;;  %v9991_v52 = vld [vmem:[%s15341_s0 + $0x3e0] ss:$16 sps:$4 sm:$0xff]  }
 0x1e9   :  { %3728 = vmatprep.mubr.bf16.mxu0 %v9983_v55  ;;  %v9992_v55 = vld [vmem:[%s15341_s0 + $0x404] ss:$16 sps:$4 sm:$0xff]  }
 0x1f0   :  { %3729 = vmatmul.mubr.bf16.gmra.mrb[116].mxu0 %v9985_v53  ;;  %v9994_v53 = vld [vmem:[%s15341_s0 + $0x400] ss:$16 sps:$4 sm:$0xff]  }
 0x1f1   :  { %3736 = vmatprep.mubr.bf16.mxu0 %v9986_v63  ;;  %v9996_v63 = vld [vmem:[%s15341_s0 + $0x424] ss:$16 sps:$4 sm:$0xff]  }
 0x1f8   :  { %3737 = vmatmul.mubr.bf16.gmra.mrb[120].mxu0 %v9988_v60  ;;  %v9998_v60 = vld [vmem:[%s15341_s0 + $0x420] ss:$16 sps:$4 sm:$0xff]  }
 0x1f9   :  { %3744 = vmatprep.mubr.bf16.mxu0 %v9989_v61  ;;  %v9999_v61 = vld [vmem:[%s15341_s0 + $0x444] ss:$16 sps:$4 sm:$0xff]  }
 0x200   :  { %3745 = vmatmul.mubr.bf16.gmra.mrb[124].mxu0 %v9991_v52  ;;  %v10002_v52 = vld [vmem:[%s15341_s0 + $0x464] ss:$16 sps:$4 sm:$0xff]  }
 0x201   :  { %3752 = vmatprep.mubr.bf16.mxu0 %v9992_v55  ;;  %v10004_v55 = vld [vmem:[%s15341_s0 + $0x460] ss:$16 sps:$4 sm:$0xff]  }
 0x208   :  { %3753 = vmatmul.mubr.bf16.gmra.mrb[128].mxu0 %v9994_v53  ;;  %v10005_v53 = vld [vmem:[%s15341_s0 + $0x484] ss:$16 sps:$4 sm:$0xff]  }
 0x209   :  { %3760 = vmatprep.mubr.bf16.mxu0 %v9996_v63  ;;  %v10056_v63 = vld [vmem:[%s15342_s1 + $0xd8] sm:$0xff]  }
 0x20a   :  { %4304 = vmatpush1.bf16.msra.mxu0 %v10056_v63  ;;  %v10017_v63 = vld [vmem:[%s15341_s0 + $0x4e0] ss:$16 sps:$4 sm:$0xff]  }
 0x20b   :  { %4305 = vmatprep.subr.bf16.mxu0 %v15348_v62 }
 0x210   :  { %3761 = vmatmul.mubr.bf16.gmra.mrb[132].mxu0 %v9998_v60  ;;  %v10007_v60 = vld [vmem:[%s15341_s0 + $0x480] ss:$16 sps:$4 sm:$0xff]  }
 0x211   :  { %3768 = vmatprep.mubr.bf16.mxu0 %v9999_v61  ;;  %v10008_v61 = vld [vmem:[%s15341_s0 + $0x4a4] ss:$16 sps:$4 sm:$0xff]  }
 0x218   :  { %3769 = vmatmul.mubr.bf16.gmra.mrb[136].mxu0 %v10001_v54  ;;  %v10010_v54 = vld [vmem:[%s15341_s0 + $0x4a0] ss:$16 sps:$4 sm:$0xff]  }
 0x219   :  { %3776 = vmatprep.mubr.bf16.mxu0 %v10002_v52  ;;  %v10012_v52 = vld [vmem:[%s15341_s0 + $0x4c4] ss:$16 sps:$4 sm:$0xff]  }
 0x220   :  { %3777 = vmatmul.mubr.bf16.gmra.mrb[140].mxu0 %v10004_v55  ;;  %v10014_v55 = vld [vmem:[%s15341_s0 + $0x4c0] ss:$16 sps:$4 sm:$0xff]  }
 0x221   :  { %3784 = vmatprep.mubr.bf16.mxu0 %v10005_v53  ;;  %v10015_v53 = vld [vmem:[%s15341_s0 + $0x4e4] ss:$16 sps:$4 sm:$0xff]  }
 0x228   :  { %3785 = vmatmul.mubr.bf16.gmra.mrb[144].mxu0 %v10007_v60  ;;  %v10018_v60 = vld [vmem:[%s15341_s0 + $0x504] ss:$16 sps:$4 sm:$0xff]  }
 0x229   :  { %3792 = vmatprep.mubr.bf16.mxu0 %v10008_v61  ;;  %v10069_v61 = vld [vmem:[%s15342_s1 + $0xe0] sm:$0xff]  }
 0x22a   :  { %4306 = vmatpush1.bf16.msra.mxu0 %v10069_v61  ;;  %v10030_v61 = vld [vmem:[%s15341_s0 + $0x560] ss:$16 sps:$4 sm:$0xff]  }
 0x22b   :  { %4307 = vmatprep.subr.bf16.mxu0 %v15348_v62 }
 0x230   :  { %3793 = vmatmul.mubr.bf16.gmra.mrb[148].mxu0 %v10010_v54  ;;  %v10020_v54 = vld [vmem:[%s15341_s0 + $0x500] ss:$16 sps:$4 sm:$0xff]  }
 0x231   :  { %3800 = vmatprep.mubr.bf16.mxu0 %v10012_v52  ;;  %v10021_v52 = vld [vmem:[%s15341_s0 + $0x524] ss:$16 sps:$4 sm:$0xff]  }
 0x238   :  { %3801 = vmatmul.mubr.bf16.gmra.mrb[152].mxu0 %v10014_v55  ;;  %v10023_v55 = vld [vmem:[%s15341_s0 + $0x520] ss:$16 sps:$4 sm:$0xff]  }
 0x239   :  { %3808 = vmatprep.mubr.bf16.mxu0 %v10015_v53  ;;  %v10025_v53 = vld [vmem:[%s15341_s0 + $0x544] ss:$16 sps:$4 sm:$0xff]  }
 0x240   :  { %3809 = vmatmul.mubr.bf16.gmra.mrb[156].mxu0 %v10017_v63  ;;  %v10027_v63 = vld [vmem:[%s15341_s0 + $0x540] ss:$16 sps:$4 sm:$0xff]  }
 0x241   :  { %3816 = vmatprep.mubr.bf16.mxu0 %v10018_v60  ;;  %v10028_v60 = vld [vmem:[%s15341_s0 + $0x564] ss:$16 sps:$4 sm:$0xff]  }
 0x248   :  { %3817 = vmatmul.mubr.bf16.gmra.mrb[160].mxu0 %v10020_v54  ;;  %v10031_v54 = vld [vmem:[%s15341_s0 + $0x584] ss:$16 sps:$4 sm:$0xff]  }
 0x249   :  { %3824 = vmatprep.mubr.bf16.mxu0 %v10021_v52  ;;  %v10033_v52 = vld [vmem:[%s15341_s0 + $0x580] ss:$16 sps:$4 sm:$0xff]  }
 0x250   :  { %3825 = vmatmul.mubr.bf16.gmra.mrb[164].mxu0 %v10023_v55  ;;  %v10034_v55 = vld [vmem:[%s15341_s0 + $0x5a4] ss:$16 sps:$4 sm:$0xff]  }
 0x251   :  { %3832 = vmatprep.mubr.bf16.mxu0 %v10025_v53  ;;  %v10085_v53 = vld [vmem:[%s15342_s1 + $0xe8] sm:$0xff]  }
 0x252   :  { %4308 = vmatpush1.bf16.msra.mxu0 %v10085_v53  ;;  %v10046_v53 = vld [vmem:[%s15341_s0 + $0x600] ss:$16 sps:$4 sm:$0xff]  }
 0x253   :  { %4309 = vmatprep.subr.bf16.mxu0 %v15348_v62 }
 0x258   :  { %3833 = vmatmul.mubr.bf16.gmra.mrb[168].mxu0 %v10027_v63  ;;  %v10036_v63 = vld [vmem:[%s15341_s0 + $0x5a0] ss:$16 sps:$4 sm:$0xff]  }
 0x259   :  { %3840 = vmatprep.mubr.bf16.mxu0 %v10028_v60  ;;  %v10037_v60 = vld [vmem:[%s15341_s0 + $0x5c4] ss:$16 sps:$4 sm:$0xff]  }
 0x260   :  { %3841 = vmatmul.mubr.bf16.gmra.mrb[172].mxu0 %v10030_v61  ;;  %v10039_v61 = vld [vmem:[%s15341_s0 + $0x5c0] ss:$16 sps:$4 sm:$0xff]  }
 0x261   :  { %3848 = vmatprep.mubr.bf16.mxu0 %v10031_v54  ;;  %v10041_v54 = vld [vmem:[%s15341_s0 + $0x5e4] ss:$16 sps:$4 sm:$0xff]  }
 0x268   :  { %3849 = vmatmul.mubr.bf16.gmra.mrb[176].mxu0 %v10033_v52  ;;  %v10043_v52 = vld [vmem:[%s15341_s0 + $0x5e0] ss:$16 sps:$4 sm:$0xff]  }
 0x269   :  { %3856 = vmatprep.mubr.bf16.mxu0 %v10034_v55  ;;  %v10044_v55 = vld [vmem:[%s15341_s0 + $0x604] ss:$16 sps:$4 sm:$0xff]  }
 0x270   :  { %3857 = vmatmul.mubr.bf16.gmra.mrb[180].mxu0 %v10036_v63  ;;  %v10047_v63 = vld [vmem:[%s15341_s0 + $0x624] ss:$16 sps:$4 sm:$0xff]  }
 0x271   :  { %3864 = vmatprep.mubr.bf16.mxu0 %v10037_v60  ;;  %v10049_v60 = vld [vmem:[%s15341_s0 + $0x620] ss:$16 sps:$4 sm:$0xff]  }
 0x278   :  { %3865 = vmatmul.mubr.bf16.gmra.mrb[184].mxu0 %v10039_v61  ;;  %v10050_v61 = vld [vmem:[%s15341_s0 + $0x644] ss:$16 sps:$4 sm:$0xff]  }
 0x279   :  { %3872 = vmatprep.mubr.bf16.mxu0 %v10041_v54  ;;  %v10101_v54 = vld [vmem:[%s15342_s1 + $0xf0] sm:$0xff]  }
 0x27a   :  { %4310 = vmatpush1.bf16.msra.mxu0 %v10101_v54  ;;  %v10062_v54 = vld [vmem:[%s15341_s0 + $0x6a0] ss:$16 sps:$4 sm:$0xff]  }
 0x27b   :  { %4311 = vmatprep.subr.bf16.mxu0 %v15348_v62 }
 0x280   :  { %3873 = vmatmul.mubr.bf16.gmra.mrb[188].mxu0 %v10043_v52  ;;  %v10052_v52 = vld [vmem:[%s15341_s0 + $0x640] ss:$16 sps:$4 sm:$0xff]  }
 0x281   :  { %3880 = vmatprep.mubr.bf16.mxu0 %v10044_v55  ;;  %v10053_v55 = vld [vmem:[%s15341_s0 + $0x664] ss:$16 sps:$4 sm:$0xff]  }
 0x288   :  { %3881 = vmatmul.mubr.bf16.gmra.mrb[192].mxu0 %v10046_v53  ;;  %v10055_v53 = vld [vmem:[%s15341_s0 + $0x660] ss:$16 sps:$4 sm:$0xff]  }
 0x289   :  { %3888 = vmatprep.mubr.bf16.mxu0 %v10047_v63  ;;  %v10057_v63 = vld [vmem:[%s15341_s0 + $0x684] ss:$16 sps:$4 sm:$0xff]  }
 0x290   :  { %3889 = vmatmul.mubr.bf16.gmra.mrb[196].mxu0 %v10049_v60  ;;  %v10059_v60 = vld [vmem:[%s15341_s0 + $0x680] ss:$16 sps:$4 sm:$0xff]  }
 0x291   :  { %3896 = vmatprep.mubr.bf16.mxu0 %v10050_v61  ;;  %v10060_v61 = vld [vmem:[%s15341_s0 + $0x6a4] ss:$16 sps:$4 sm:$0xff]  }
 0x298   :  { %3897 = vmatmul.mubr.bf16.gmra.mrb[200].mxu0 %v10052_v52  ;;  %v10063_v52 = vld [vmem:[%s15341_s0 + $0x6c4] ss:$16 sps:$4 sm:$0xff]  }
 0x299   :  { %3904 = vmatprep.mubr.bf16.mxu0 %v10053_v55  ;;  %v10065_v55 = vld [vmem:[%s15341_s0 + $0x6c0] ss:$16 sps:$4 sm:$0xff]  }
 0x2a0   :  { %3905 = vmatmul.mubr.bf16.gmra.mrb[204].mxu0 %v10055_v53  ;;  %v10114_v53 = vld [vmem:[%s15342_s1 + $0xf8] sm:$0xff]  }
 0x2a1   :  { %3912 = vmatprep.mubr.bf16.mxu0 %v10057_v63  ;;  %v10066_v63 = vld [vmem:[%s15341_s0 + $0x6e4] ss:$16 sps:$4 sm:$0xff]   ;;  %4312 = vmatpush1.bf16.msra.mxu0 %v10114_v53 }
 0x2a2   :  { %v10076_v53 = vld [vmem:[%s15341_s0 + $0x744] ss:$16 sps:$4 sm:$0xff]  }
 0x2a8   :  { %3913 = vmatmul.mubr.bf16.gmra.mrb[208].mxu0 %v10059_v60  ;;  %v10068_v60 = vld [vmem:[%s15341_s0 + $0x6e0] ss:$16 sps:$4 sm:$0xff]  }
 0x2a9   :  { %3920 = vmatprep.mubr.bf16.mxu0 %v10060_v61  ;;  %v10070_v61 = vld [vmem:[%s15341_s0 + $0x704] ss:$16 sps:$4 sm:$0xff]  }
 0x2b0   :  { %3921 = vmatmul.mubr.bf16.gmra.mrb[212].mxu0 %v10062_v54  ;;  %v10072_v54 = vld [vmem:[%s15341_s0 + $0x700] ss:$16 sps:$4 sm:$0xff]  }
 0x2b1   :  { %3928 = vmatprep.mubr.bf16.mxu0 %v10063_v52  ;;  %v10073_v52 = vld [vmem:[%s15341_s0 + $0x724] ss:$16 sps:$4 sm:$0xff]  }
 0x2b8   :  { %3929 = vmatmul.mubr.bf16.gmra.mrb[216].mxu0 %v10065_v55  ;;  %v10075_v55 = vld [vmem:[%s15341_s0 + $0x720] ss:$16 sps:$4 sm:$0xff]  }
 0x2b9   :  { %3936 = vmatprep.mubr.bf16.mxu0 %v10066_v63  ;;  %v10078_v63 = vld [vmem:[%s15341_s0 + $0x740] ss:$16 sps:$4 sm:$0xff]  }
 0x2c0   :  { %3937 = vmatmul.mubr.bf16.gmra.mrb[220].mxu0 %v10068_v60  ;;  %v10079_v60 = vld [vmem:[%s15341_s0 + $0x764] ss:$16 sps:$4 sm:$0xff]  }
 0x2c1   :  { %3944 = vmatprep.mubr.bf16.mxu0 %v10070_v61  ;;  %v10081_v61 = vld [vmem:[%s15341_s0 + $0x760] ss:$16 sps:$4 sm:$0xff]  }
 0x2c8   :  { %3945 = vmatmul.mubr.bf16.gmra.mrb[224].mxu0 %v10072_v54  ;;  %v10082_v54 = vld [vmem:[%s15341_s0 + $0x784] ss:$16 sps:$4 sm:$0xff]  }
 0x2c9   :  { %3952 = vmatprep.mubr.bf16.mxu0 %v10073_v52  ;;  %v10084_v52 = vld [vmem:[%s15341_s0 + $0x780] ss:$16 sps:$4 sm:$0xff]  }
 0x2d0   :  { %3953 = vmatmul.mubr.bf16.gmra.mrb[228].mxu0 %v10075_v55  ;;  %v10086_v55 = vld [vmem:[%s15341_s0 + $0x7a4] ss:$16 sps:$4 sm:$0xff]  }
 0x2d1   :  { %3960 = vmatprep.mubr.bf16.mxu0 %v10076_v53  ;;  %v10088_v53 = vld [vmem:[%s15341_s0 + $0x7a0] ss:$16 sps:$4 sm:$0xff]  }
 0x2d8   :  { %3961 = vmatmul.mubr.bf16.gmra.mrb[232].mxu0 %v10078_v63  ;;  %v10089_v63 = vld [vmem:[%s15341_s0 + $0x7c4] ss:$16 sps:$4 sm:$0xff]  }
 0x2d9   :  { %3968 = vmatprep.mubr.bf16.mxu0 %v10079_v60  ;;  %v10091_v60 = vld [vmem:[%s15341_s0 + $0x7c0] ss:$16 sps:$4 sm:$0xff]  }
 0x2e0   :  { %3969 = vmatmul.mubr.bf16.gmra.mrb[236].mxu0 %v10081_v61  ;;  %v10092_v61 = vld [vmem:[%s15341_s0 + $0x7e4] ss:$16 sps:$4 sm:$0xff]  }
 0x2e1   :  { %3976 = vmatprep.mubr.bf16.mxu0 %v10082_v54  ;;  %v10094_v54 = vld [vmem:[%s15341_s0 + $0x7e0] ss:$16 sps:$4 sm:$0xff]  }
 0x2e8   :  { %3977 = vmatmul.mubr.bf16.gmra.mrb[240].mxu0 %v10084_v52  ;;  %v10097_v52 = vld [vmem:[%s15341_s0 + $0x804] ss:$16 sps:$4 sm:$0xff]  }
 0x2e9   :  { %3984 = vmatprep.mubr.bf16.mxu0 %v10086_v55 }
 0x2f0   :  { %3985 = vmatmul.mubr.bf16.gmra.mrb[244].mxu0 %v10088_v53 }
 0x2f1   :  { %3992 = vmatprep.mubr.bf16.mxu0 %v10089_v63  ;;  %v10095_v63 = vld [vmem:[%s15341_s0 + $0x800] ss:$16 sps:$4 sm:$0xff]  }
 0x2f8   :  { %3993 = vmatmul.mubr.bf16.gmra.mrb[248].mxu0 %v10091_v60  ;;  %v10100_v60 = vld [vmem:[%s15341_s0 + $0x824] ss:$16 sps:$4 sm:$0xff]  }
 0x2f9   :  { %4000 = vmatprep.mubr.bf16.mxu0 %v10092_v61 }
 0x300   :  { %4001 = vmatmul.mubr.bf16.gmra.mrb[252].mxu0 %v10094_v54 }
 0x301   :  { %4008 = vmatprep.mubr.bf16.mxu0 %v10097_v52  ;;  %v10098_v52 = vld [vmem:[%s15341_s0 + $0x820] ss:$16 sps:$4 sm:$0xff]  }
 0x303   :  { %v13101_v55 = vpop.f32.mrb[148].mxu0 }
 0x304   :  { %v3796_v53 = vpop.f32.mrb[149].mxu0 }
 0x305   :  { %v13106_v62 = vpop.f32.mrb[150].mxu0 }
 0x306   :  { %v3799_v61 = vpop.f32.mrb[151].mxu0 }
 0x308   :  { %4009 = vmatmul.mubr.bf16.gmra.mrb[148].mxu0 %v10095_v63 }
 0x309   :  { %4016 = vmatprep.mubr.bf16.mxu0 %v10100_v60  ;;  %v10102_v60 = vld [vmem:[%s15341_s0 + $0x840] ss:$16 sps:$4 sm:$0xff]  }
 0x30b   :  { %v13111_v51 = vpop.f32.mrb[152].mxu0 }
 0x30c   :  { %v3804_v54 = vpop.f32.mrb[153].mxu0 }
 0x30d   :  { %v13116_v53 = vpop.f32.mrb[154].mxu0  ;;  %v10107_v54 = vld [vmem:[%s15341_s0 + $0x864] ss:$16 sps:$4 sm:$0xff]  }
 0x30e   :  { %v3807_v50 = vpop.f32.mrb[155].mxu0 }
 0x310   :  { %4017 = vmatmul.mubr.bf16.gmra.mrb[152].mxu0 %v10098_v52 }
 0x311   :  { %4024 = vmatprep.mubr.bf16.mxu0 %v10104_v59  ;;  %v10105_v59 = vld [vmem:[%s15341_s0 + $0x860] ss:$16 sps:$4 sm:$0xff]  }
 0x313   :  { %v13121_v58 = vpop.f32.mrb[156].mxu0 }
 0x314   :  { %v3812_v63 = vpop.f32.mrb[157].mxu0 }
 0x315   :  { %v13126_v61 = vpop.f32.mrb[158].mxu0  ;;  %v10110_v63 = vld [vmem:[%s15341_s0 + $0x884] ss:$16 sps:$4 sm:$0xff]  }
 0x316   :  { %v3815_v49 = vpop.f32.mrb[159].mxu0 }
 0x318   :  { %4025 = vmatmul.mubr.bf16.gmra.mrb[156].mxu0 %v10102_v60  ;;  %v10108_v60 = vld [vmem:[%s15341_s0 + $0x880] ss:$16 sps:$4 sm:$0xff]  }
 0x319   :  { %4032 = vmatprep.mubr.bf16.mxu0 %v10107_v54 }
 0x31b   :  { %v13131_v57 = vpop.f32.mrb[160].mxu0 }
 0x31c   :  { %v3820_v50 = vpop.f32.mrb[161].mxu0 }
 0x31d   :  { %v13136_v52 = vpop.f32.mrb[162].mxu0  ;;  %v10113_v50 = vld [vmem:[%s15341_s0 + $0x8a4] ss:$16 sps:$4 sm:$0xff]  }
 0x31e   :  { %v3823_v48 = vpop.f32.mrb[163].mxu0 }
 0x320   :  { %4033 = vmatmul.mubr.bf16.gmra.mrb[160].mxu0 %v10105_v59  ;;  %v10111_v59 = vld [vmem:[%s15341_s0 + $0x8a0] ss:$16 sps:$4 sm:$0xff]  }
 0x321   :  { %4040 = vmatprep.mubr.bf16.mxu0 %v10110_v63 }
 0x323   :  { %v13141_v56 = vpop.f32.mrb[164].mxu0 }
 0x324   :  { %v3828_v49 = vpop.f32.mrb[165].mxu0 }
 0x325   :  { %v13146_v54 = vpop.f32.mrb[166].mxu0  ;;  %v10117_v49 = vld [vmem:[%s15341_s0 + $0x8c4] ss:$16 sps:$4 sm:$0xff]  }
 0x326   :  { %v3831_v39 = vpop.f32.mrb[167].mxu0 }
 0x328   :  { %4041 = vmatmul.mubr.bf16.gmra.mrb[164].mxu0 %v10108_v60  ;;  %v10115_v60 = vld [vmem:[%s15341_s0 + $0x8c0] ss:$16 sps:$4 sm:$0xff]  }
 0x329   :  { %4048 = vmatprep.mubr.bf16.mxu0 %v10113_v50 }
 0x32b   :  { %v13151_v47 = vpop.f32.mrb[168].mxu0 }
 0x32c   :  { %v3836_v48 = vpop.f32.mrb[169].mxu0 }
 0x32d   :  { %v13156_v63 = vpop.f32.mrb[170].mxu0  ;;  %v10120_v48 = vld [vmem:[%s15341_s0 + $0x8e4] ss:$16 sps:$4 sm:$0xff]  }
 0x32e   :  { %v3839_v38 = vpop.f32.mrb[171].mxu0 }
 0x330   :  { %4049 = vmatmul.mubr.bf16.gmra.mrb[168].mxu0 %v10111_v59  ;;  %v10118_v59 = vld [vmem:[%s15341_s0 + $0x8e0] ss:$16 sps:$4 sm:$0xff]  }
 0x331   :  { %4056 = vmatprep.mubr.bf16.mxu0 %v10117_v49 }
 0x333   :  { %v13161_v46 = vpop.f32.mrb[172].mxu0 }
 0x334   :  { %v3844_v39 = vpop.f32.mrb[173].mxu0 }
 0x335   :  { %v13166_v50 = vpop.f32.mrb[174].mxu0  ;;  %v10123_v39 = vld [vmem:[%s15341_s0 + $0x904] ss:$16 sps:$4 sm:$0xff]  }
 0x336   :  { %v3847_v37 = vpop.f32.mrb[175].mxu0 }
 0x338   :  { %4057 = vmatmul.mubr.bf16.gmra.mrb[172].mxu0 %v10115_v60  ;;  %v10121_v60 = vld [vmem:[%s15341_s0 + $0x900] ss:$16 sps:$4 sm:$0xff]  }
 0x339   :  { %4064 = vmatprep.mubr.bf16.mxu0 %v10120_v48 }
 0x33b   :  { %v13171_v45 = vpop.f32.mrb[176].mxu0 }
 0x33c   :  { %v3852_v38 = vpop.f32.mrb[177].mxu0 }
 0x33d   :  { %v13176_v49 = vpop.f32.mrb[178].mxu0  ;;  %v10126_v38 = vld [vmem:[%s15341_s0 + $0x924] ss:$16 sps:$4 sm:$0xff]  }
 0x33e   :  { %v3855_v36 = vpop.f32.mrb[179].mxu0 }
 0x340   :  { %4065 = vmatmul.mubr.bf16.gmra.mrb[176].mxu0 %v10118_v59  ;;  %v10124_v59 = vld [vmem:[%s15341_s0 + $0x920] ss:$16 sps:$4 sm:$0xff]  }
 0x341   :  { %4072 = vmatprep.mubr.bf16.mxu0 %v10123_v39 }
 0x343   :  { %v13181_v44 = vpop.f32.mrb[180].mxu0 }
 0x344   :  { %v3860_v37 = vpop.f32.mrb[181].mxu0 }
 0x345   :  { %v13186_v48 = vpop.f32.mrb[182].mxu0  ;;  %v10129_v37 = vld [vmem:[%s15341_s0 + $0xc] ss:$16 sps:$4 sm:$0xff]  }
 0x346   :  { %v3863_v35 = vpop.f32.mrb[183].mxu0 }
 0x347   :  { %v10127_v35 = vld [vmem:[%s15341_s0 + $0x8] ss:$16 sps:$4 sm:$0xff]  }
 0x348   :  { %4073 = vmatmul.mubr.bf16.gmra.mrb[180].mxu0 %v10121_v60  ;;  %v10130_v60 = vld [vmem:[%s15341_s0 + $0x2c] ss:$16 sps:$4 sm:$0xff]  }
 0x349   :  { %4080 = vmatprep.mubr.bf16.mxu0 %v10126_v38  ;;  %v10132_v38 = vld [vmem:[%s15341_s0 + $0x28] ss:$16 sps:$4 sm:$0xff]  }
 0x34b   :  { %v13191_v43 = vpop.f32.mrb[184].mxu0 }
 0x34c   :  { %v3868_v36 = vpop.f32.mrb[185].mxu0 }
 0x34d   :  { %v13196_v39 = vpop.f32.mrb[186].mxu0  ;;  %v10135_v36 = vld [vmem:[%s15341_s0 + $0x48] ss:$16 sps:$4 sm:$0xff]  }
 0x34e   :  { %v3871_v34 = vpop.f32.mrb[187].mxu0 }
 0x34f   :  { %v10133_v34 = vld [vmem:[%s15341_s0 + $0x4c] ss:$16 sps:$4 sm:$0xff]  }
 0x350   :  { %4081 = vmatmul.mubr.bf16.gmra.mrb[184].mxu0 %v10124_v59  ;;  %v10136_v59 = vld [vmem:[%s15341_s0 + $0x6c] ss:$16 sps:$4 sm:$0xff]  }
 0x351   :  { %4313 = vmatprep.mubr.bf16.mxu0 %v10129_v37  ;;  %v10138_v37 = vld [vmem:[%s15341_s0 + $0x68] ss:$16 sps:$4 sm:$0xff]  }
 0x358   :  { %4314 = vmatmul.mubr.bf16.vlgmr.msra.gmra.mrb[0].mxu0 %v10127_v35  ;;  %v10139_v35 = vld [vmem:[%s15341_s0 + $0x8c] ss:$16 sps:$4 sm:$0xff]  }
 0x359   :  { %4321 = vmatprep.mubr.bf16.mxu0 %v10130_v60  ;;  %v10141_v60 = vld [vmem:[%s15341_s0 + $0x88] ss:$16 sps:$4 sm:$0xff]  }
 0x360   :  { %4322 = vmatmul.mubr.bf16.gmra.mrb[4].mxu0 %v10132_v38  ;;  %v10142_v38 = vld [vmem:[%s15341_s0 + $0xac] ss:$16 sps:$4 sm:$0xff]  }
 0x361   :  { %4329 = vmatprep.mubr.bf16.mxu0 %v10133_v34  ;;  %v10144_v34 = vld [vmem:[%s15341_s0 + $0xa8] ss:$16 sps:$4 sm:$0xff]  }
 0x368   :  { %4330 = vmatmul.mubr.bf16.gmra.mrb[8].mxu0 %v10135_v36  ;;  %v10145_v36 = vld [vmem:[%s15341_s0 + $0xcc] ss:$16 sps:$4 sm:$0xff]  }
 0x369   :  { %4337 = vmatprep.mubr.bf16.mxu0 %v10136_v59  ;;  %v10147_v59 = vld [vmem:[%s15341_s0 + $0xc8] ss:$16 sps:$4 sm:$0xff]  }
 0x370   :  { %4338 = vmatmul.mubr.bf16.gmra.mrb[12].mxu0 %v10138_v37  ;;  %v10148_v37 = vld [vmem:[%s15341_s0 + $0xec] ss:$16 sps:$4 sm:$0xff]  }
 0x371   :  { %4345 = vmatprep.mubr.bf16.mxu0 %v10139_v35  ;;  %v10150_v35 = vld [vmem:[%s15341_s0 + $0xe8] ss:$16 sps:$4 sm:$0xff]  }
 0x378   :  { %4346 = vmatmul.mubr.bf16.gmra.mrb[16].mxu0 %v10141_v60  ;;  %v10151_v60 = vld [vmem:[%s15341_s0 + $0x10c] ss:$16 sps:$4 sm:$0xff]  }
 0x379   :  { %4353 = vmatprep.mubr.bf16.mxu0 %v10142_v38  ;;  %v10153_v38 = vld [vmem:[%s15341_s0 + $0x108] ss:$16 sps:$4 sm:$0xff]  }
 0x380   :  { %4354 = vmatmul.mubr.bf16.gmra.mrb[20].mxu0 %v10144_v34  ;;  %v10154_v34 = vld [vmem:[%s15341_s0 + $0x12c] ss:$16 sps:$4 sm:$0xff]  }
 0x381   :  { %4361 = vmatprep.mubr.bf16.mxu0 %v10145_v36  ;;  %v10156_v36 = vld [vmem:[%s15341_s0 + $0x128] ss:$16 sps:$4 sm:$0xff]  }
 0x388   :  { %4362 = vmatmul.mubr.bf16.gmra.mrb[24].mxu0 %v10147_v59  ;;  %v10157_v59 = vld [vmem:[%s15341_s0 + $0x14c] ss:$16 sps:$4 sm:$0xff]  }
 0x389   :  { %4369 = vmatprep.mubr.bf16.mxu0 %v10148_v37  ;;  %v10159_v37 = vld [vmem:[%s15341_s0 + $0x148] ss:$16 sps:$4 sm:$0xff]  }
 0x390   :  { %4370 = vmatmul.mubr.bf16.gmra.mrb[28].mxu0 %v10150_v35  ;;  %v10160_v35 = vld [vmem:[%s15341_s0 + $0x16c] ss:$16 sps:$4 sm:$0xff]  }
 0x391   :  { %4377 = vmatprep.mubr.bf16.mxu0 %v10151_v60  ;;  %v10162_v60 = vld [vmem:[%s15341_s0 + $0x168] ss:$16 sps:$4 sm:$0xff]  }
 0x398   :  { %4378 = vmatmul.mubr.bf16.gmra.mrb[32].mxu0 %v10153_v38  ;;  %v10163_v38 = vld [vmem:[%s15341_s0 + $0x18c] ss:$16 sps:$4 sm:$0xff]  }
 0x399   :  { %4385 = vmatprep.mubr.bf16.mxu0 %v10154_v34  ;;  %v10165_v34 = vld [vmem:[%s15341_s0 + $0x188] ss:$16 sps:$4 sm:$0xff]  }
 0x3a0   :  { %4386 = vmatmul.mubr.bf16.gmra.mrb[36].mxu0 %v10156_v36  ;;  %v10166_v36 = vld [vmem:[%s15341_s0 + $0x1ac] ss:$16 sps:$4 sm:$0xff]  }
 0x3a1   :  { %4393 = vmatprep.mubr.bf16.mxu0 %v10157_v59  ;;  %v10214_v59 = vld [vmem:[%s15341_s0 + $0x940] ss:$16 sps:$4 sm:$0xff]  }
 0x3a8   :  { %4394 = vmatmul.mubr.bf16.gmra.mrb[40].mxu0 %v10159_v37  ;;  %v10216_v37 = vld [vmem:[%s15341_s0 + $0x944] ss:$16 sps:$4 sm:$0xff]  }
 0x3a9   :  { %4401 = vmatprep.mubr.bf16.mxu0 %v10160_v35  ;;  %4088 = vmatprep.mubr.bf16.mxu1 %v10216_v37  ;;  %v10168_v35 = vld [vmem:[%s15341_s0 + $0x1a8] ss:$16 sps:$4 sm:$0xff]   ;;  %v10226_v37 = vld [vmem:[%s15341_s0 + $0x984] ss:$16 sps:$4 sm:$0xff]  }
 0x3aa   :  { %4089 = vmatmul.mubr.bf16.vlgmr.msra.gmra.mrb[0].mxu1 %v10214_v59  ;;  %v10172_v59 = vld [vmem:[%s15341_s0 + $0x1ec] ss:$16 sps:$4 sm:$0xff]  }
 0x3b0   :  { %4402 = vmatmul.mubr.bf16.gmra.mrb[44].mxu0 %v10162_v60  ;;  %v10169_v60 = vld [vmem:[%s15341_s0 + $0x1cc] ss:$16 sps:$4 sm:$0xff]  }
 0x3b1   :  { %4409 = vmatprep.mubr.bf16.mxu0 %v10163_v38  ;;  %v10220_v38 = vld [vmem:[%s15341_s0 + $0x964] ss:$16 sps:$4 sm:$0xff]  }
 0x3b2   :  { %4096 = vmatprep.mubr.bf16.mxu1 %v10220_v38  ;;  %v10175_v38 = vld [vmem:[%s15341_s0 + $0x20c] ss:$16 sps:$4 sm:$0xff]  }
 0x3b8   :  { %4410 = vmatmul.mubr.bf16.gmra.mrb[48].mxu0 %v10165_v34  ;;  %v10222_v34 = vld [vmem:[%s15341_s0 + $0x960] ss:$16 sps:$4 sm:$0xff]  }
 0x3b9   :  { %4417 = vmatprep.mubr.bf16.mxu0 %v10166_v36  ;;  %4097 = vmatmul.mubr.bf16.gmra.mrb[4].mxu1 %v10222_v34  ;;  %v10171_v36 = vld [vmem:[%s15341_s0 + $0x1c8] ss:$16 sps:$4 sm:$0xff]   ;;  %v10232_v34 = vld [vmem:[%s15341_s0 + $0x9a4] ss:$16 sps:$4 sm:$0xff]  }
 0x3ba   :  { %4104 = vmatprep.mubr.bf16.mxu1 %v10226_v37  ;;  %v10178_v37 = vld [vmem:[%s15341_s0 + $0x22c] ss:$16 sps:$4 sm:$0xff]  }
 0x3c0   :  { %4418 = vmatmul.mubr.bf16.gmra.mrb[52].mxu0 %v10168_v35  ;;  %v10228_v35 = vld [vmem:[%s15341_s0 + $0x980] ss:$16 sps:$4 sm:$0xff]  }
 0x3c1   :  { %4425 = vmatprep.mubr.bf16.mxu0 %v10169_v60  ;;  %4105 = vmatmul.mubr.bf16.gmra.mrb[8].mxu1 %v10228_v35  ;;  %v10174_v60 = vld [vmem:[%s15341_s0 + $0x1e8] ss:$16 sps:$4 sm:$0xff]   ;;  %v10238_v35 = vld [vmem:[%s15341_s0 + $0x9c4] ss:$16 sps:$4 sm:$0xff]  }
 0x3c2   :  { %4112 = vmatprep.mubr.bf16.mxu1 %v10232_v34  ;;  %v10181_v34 = vld [vmem:[%s15341_s0 + $0x24c] ss:$16 sps:$4 sm:$0xff]  }
 0x3c8   :  { %4426 = vmatmul.mubr.bf16.gmra.mrb[56].mxu0 %v10171_v36  ;;  %v10234_v36 = vld [vmem:[%s15341_s0 + $0x9a0] ss:$16 sps:$4 sm:$0xff]  }
 0x3c9   :  { %4433 = vmatprep.mubr.bf16.mxu0 %v10172_v59  ;;  %4113 = vmatmul.mubr.bf16.gmra.mrb[12].mxu1 %v10234_v36  ;;  %v10177_v59 = vld [vmem:[%s15341_s0 + $0x208] ss:$16 sps:$4 sm:$0xff]   ;;  %v10244_v36 = vld [vmem:[%s15341_s0 + $0x9e4] ss:$16 sps:$4 sm:$0xff]  }
 0x3ca   :  { %4120 = vmatprep.mubr.bf16.mxu1 %v10238_v35  ;;  %v10184_v35 = vld [vmem:[%s15341_s0 + $0x26c] ss:$16 sps:$4 sm:$0xff]  }
 0x3d0   :  { %4434 = vmatmul.mubr.bf16.gmra.mrb[60].mxu0 %v10174_v60  ;;  %v10240_v60 = vld [vmem:[%s15341_s0 + $0x9c0] ss:$16 sps:$4 sm:$0xff]  }
 0x3d1   :  { %4441 = vmatprep.mubr.bf16.mxu0 %v10175_v38  ;;  %4121 = vmatmul.mubr.bf16.gmra.mrb[16].mxu1 %v10240_v60  ;;  %v10180_v38 = vld [vmem:[%s15341_s0 + $0x228] ss:$16 sps:$4 sm:$0xff]   ;;  %v10250_v60 = vld [vmem:[%s15341_s0 + $0xa04] ss:$16 sps:$4 sm:$0xff]  }
 0x3d2   :  { %4128 = vmatprep.mubr.bf16.mxu1 %v10244_v36  ;;  %v10187_v36 = vld [vmem:[%s15341_s0 + $0x28c] ss:$16 sps:$4 sm:$0xff]  }
 0x3d8   :  { %4442 = vmatmul.mubr.bf16.gmra.mrb[64].mxu0 %v10177_v59  ;;  %v10246_v59 = vld [vmem:[%s15341_s0 + $0x9e0] ss:$16 sps:$4 sm:$0xff]  }
 0x3d9   :  { %4449 = vmatprep.mubr.bf16.mxu0 %v10178_v37  ;;  %4129 = vmatmul.mubr.bf16.gmra.mrb[20].mxu1 %v10246_v59  ;;  %v10183_v37 = vld [vmem:[%s15341_s0 + $0x248] ss:$16 sps:$4 sm:$0xff]   ;;  %v10256_v59 = vld [vmem:[%s15341_s0 + $0xa24] ss:$16 sps:$4 sm:$0xff]  }
 0x3da   :  { %4136 = vmatprep.mubr.bf16.mxu1 %v10250_v60  ;;  %v10190_v60 = vld [vmem:[%s15341_s0 + $0x2ac] ss:$16 sps:$4 sm:$0xff]  }
 0x3e0   :  { %4450 = vmatmul.mubr.bf16.gmra.mrb[68].mxu0 %v10180_v38  ;;  %v10252_v38 = vld [vmem:[%s15341_s0 + $0xa00] ss:$16 sps:$4 sm:$0xff]  }
 0x3e1   :  { %4457 = vmatprep.mubr.bf16.mxu0 %v10181_v34  ;;  %4137 = vmatmul.mubr.bf16.gmra.mrb[24].mxu1 %v10252_v38  ;;  %v10186_v34 = vld [vmem:[%s15341_s0 + $0x268] ss:$16 sps:$4 sm:$0xff]   ;;  %v10262_v38 = vld [vmem:[%s15341_s0 + $0xa44] ss:$16 sps:$4 sm:$0xff]  }
 0x3e2   :  { %4144 = vmatprep.mubr.bf16.mxu1 %v10256_v59  ;;  %v10193_v59 = vld [vmem:[%s15341_s0 + $0x2cc] ss:$16 sps:$4 sm:$0xff]  }
 0x3e8   :  { %4458 = vmatmul.mubr.bf16.gmra.mrb[72].mxu0 %v10183_v37  ;;  %v10258_v37 = vld [vmem:[%s15341_s0 + $0xa20] ss:$16 sps:$4 sm:$0xff]  }
 0x3e9   :  { %4465 = vmatprep.mubr.bf16.mxu0 %v10184_v35  ;;  %4145 = vmatmul.mubr.bf16.gmra.mrb[28].mxu1 %v10258_v37  ;;  %v10189_v35 = vld [vmem:[%s15341_s0 + $0x288] ss:$16 sps:$4 sm:$0xff]   ;;  %v10268_v37 = vld [vmem:[%s15341_s0 + $0xa64] ss:$16 sps:$4 sm:$0xff]  }
 0x3ea   :  { %4152 = vmatprep.mubr.bf16.mxu1 %v10262_v38  ;;  %v10196_v38 = vld [vmem:[%s15341_s0 + $0x2ec] ss:$16 sps:$4 sm:$0xff]  }
 0x3f0   :  { %4466 = vmatmul.mubr.bf16.gmra.mrb[76].mxu0 %v10186_v34  ;;  %v10264_v34 = vld [vmem:[%s15341_s0 + $0xa40] ss:$16 sps:$4 sm:$0xff]  }
 0x3f1   :  { %4473 = vmatprep.mubr.bf16.mxu0 %v10187_v36  ;;  %4153 = vmatmul.mubr.bf16.gmra.mrb[32].mxu1 %v10264_v34  ;;  %v10192_v36 = vld [vmem:[%s15341_s0 + $0x2a8] ss:$16 sps:$4 sm:$0xff]   ;;  %v10274_v34 = vld [vmem:[%s15341_s0 + $0xa84] ss:$16 sps:$4 sm:$0xff]  }
 0x3f2   :  { %4160 = vmatprep.mubr.bf16.mxu1 %v10268_v37  ;;  %v10199_v37 = vld [vmem:[%s15341_s0 + $0x30c] ss:$16 sps:$4 sm:$0xff]  }
 0x3f8   :  { %4474 = vmatmul.mubr.bf16.gmra.mrb[80].mxu0 %v10189_v35  ;;  %v10270_v35 = vld [vmem:[%s15341_s0 + $0xa60] ss:$16 sps:$4 sm:$0xff]  }
 0x3f9   :  { %4481 = vmatprep.mubr.bf16.mxu0 %v10190_v60  ;;  %4161 = vmatmul.mubr.bf16.gmra.mrb[36].mxu1 %v10270_v35  ;;  %v10195_v60 = vld [vmem:[%s15341_s0 + $0x2c8] ss:$16 sps:$4 sm:$0xff]   ;;  %v10280_v35 = vld [vmem:[%s15341_s0 + $0xaa4] ss:$16 sps:$4 sm:$0xff]  }
 0x3fa   :  { %4168 = vmatprep.mubr.bf16.mxu1 %v10274_v34  ;;  %v10202_v34 = vld [vmem:[%s15341_s0 + $0x32c] ss:$16 sps:$4 sm:$0xff]  }
 0x400   :  { %4482 = vmatmul.mubr.bf16.gmra.mrb[84].mxu0 %v10192_v36  ;;  %v10276_v36 = vld [vmem:[%s15341_s0 + $0xa80] ss:$16 sps:$4 sm:$0xff]  }
 0x401   :  { %4489 = vmatprep.mubr.bf16.mxu0 %v10193_v59  ;;  %4169 = vmatmul.mubr.bf16.gmra.mrb[40].mxu1 %v10276_v36  ;;  %v10198_v59 = vld [vmem:[%s15341_s0 + $0x2e8] ss:$16 sps:$4 sm:$0xff]   ;;  %v10286_v36 = vld [vmem:[%s15341_s0 + $0xac4] ss:$16 sps:$4 sm:$0xff]  }
 0x402   :  { %4176 = vmatprep.mubr.bf16.mxu1 %v10280_v35  ;;  %v10205_v35 = vld [vmem:[%s15341_s0 + $0x34c] ss:$16 sps:$4 sm:$0xff]  }
 0x408   :  { %4490 = vmatmul.mubr.bf16.gmra.mrb[88].mxu0 %v10195_v60  ;;  %v10282_v60 = vld [vmem:[%s15341_s0 + $0xaa0] ss:$16 sps:$4 sm:$0xff]  }
 0x409   :  { %4497 = vmatprep.mubr.bf16.mxu0 %v10196_v38  ;;  %4177 = vmatmul.mubr.bf16.gmra.mrb[44].mxu1 %v10282_v60  ;;  %v10201_v38 = vld [vmem:[%s15341_s0 + $0x308] ss:$16 sps:$4 sm:$0xff]   ;;  %v10292_v60 = vld [vmem:[%s15341_s0 + $0xae4] ss:$16 sps:$4 sm:$0xff]  }
 0x40a   :  { %4184 = vmatprep.mubr.bf16.mxu1 %v10286_v36  ;;  %v10208_v36 = vld [vmem:[%s15341_s0 + $0x36c] ss:$16 sps:$4 sm:$0xff]  }
 0x410   :  { %4498 = vmatmul.mubr.bf16.gmra.mrb[92].mxu0 %v10198_v59  ;;  %v10288_v59 = vld [vmem:[%s15341_s0 + $0xac0] ss:$16 sps:$4 sm:$0xff]  }
 0x411   :  { %4505 = vmatprep.mubr.bf16.mxu0 %v10199_v37  ;;  %4185 = vmatmul.mubr.bf16.gmra.mrb[48].mxu1 %v10288_v59  ;;  %v10204_v37 = vld [vmem:[%s15341_s0 + $0x328] ss:$16 sps:$4 sm:$0xff]   ;;  %v10298_v59 = vld [vmem:[%s15341_s0 + $0xb04] ss:$16 sps:$4 sm:$0xff]  }
 0x412   :  { %4192 = vmatprep.mubr.bf16.mxu1 %v10292_v60 }
 0x418   :  { %4506 = vmatmul.mubr.bf16.gmra.mrb[96].mxu0 %v10201_v38  ;;  %v10294_v38 = vld [vmem:[%s15341_s0 + $0xae0] ss:$16 sps:$4 sm:$0xff]  }
 0x419   :  { %4513 = vmatprep.mubr.bf16.mxu0 %v10202_v34  ;;  %4193 = vmatmul.mubr.bf16.gmra.mrb[52].mxu1 %v10294_v38  ;;  %v10207_v34 = vld [vmem:[%s15341_s0 + $0x348] ss:$16 sps:$4 sm:$0xff]  }
 0x41a   :  { %4200 = vmatprep.mubr.bf16.mxu1 %v10298_v59 }
 0x420   :  { %4514 = vmatmul.mubr.bf16.gmra.mrb[100].mxu0 %v10204_v37  ;;  %v10300_v37 = vld [vmem:[%s15341_s0 + $0xb00] ss:$16 sps:$4 sm:$0xff]  }
 0x421   :  { %4521 = vmatprep.mubr.bf16.mxu0 %v10205_v35  ;;  %v13456_v35 = vld [vmem:[%s15345_s4] ss:$0 sm:$0xff]  ;;  %4201 = vmatmul.mubr.bf16.gmra.mrb[56].mxu1 %v10300_v37  ;;  %v10304_v37 = vld [vmem:[%s15341_s0 + $0xb24] ss:$16 sps:$4 sm:$0xff]  }
 0x422   :  { %4208 = vmatprep.mubr.bf16.mxu1 %v10304_v37  ;;  %v10312_v37 = vld [vmem:[%s15341_s0 + $0xb40] ss:$16 sps:$4 sm:$0xff]  }
 0x428   :  { %4522 = vmatmul.mubr.bf16.gmra.mrb[104].mxu0 %v10207_v34 }
 0x429   :  { %4529 = vmatprep.mubr.bf16.mxu0 %v10208_v36  ;;  %v10211_v36 = vld [vmem:[%s15341_s0 + $0x38c] ss:$16 sps:$4 sm:$0xff]  }
 0x42b   :  { %v4315_v60 = vpop.f32.mrb[0].mxu0 }
 0x42c   :  { %v9200_v38 = vadd.f32 %v13456_v35, %v4315_v60  ;;  %v4317_v34 = vpop.f32.mrb[1].mxu0  ;;  %v10306_v60 = vld [vmem:[%s15341_s0 + $0xb20] ss:$16 sps:$4 sm:$0xff]  }
 0x42d   :  { %v4318_v33 = vpop.f32.mrb[2].mxu0  ;;  %4209 = vmatmul.mubr.bf16.gmra.mrb[60].mxu1 %v10306_v60  ;;  %v10313_v60 = vld [vmem:[%s15343_s2] sm:$0xff]  }
 0x42e   :  { %v9201_v59 = vadd.f32 %v13456_v35, %v4318_v33  ;;  %v4320_v41 = vpop.f32.mrb[3].mxu0  ;;  %v5098_v32 = vmax.f32 %v9200_v38, 0.0  ;;  %6047 = vmatpush1.bf16.msra.mxu1 %v10313_v60  ;;  %v10318_v60 = vld [vmem:[%s15341_s0 + $0xb64] ss:$16 sps:$4 sm:$0xff]  }
 0x430   :  { %v5099_v40 = vmax.f32 %v9201_v59, 0.0  ;;  %4530 = vmatmul.mubr.bf16.gmra.mrb[108].mxu0 %v10210_v42  ;;  %v10213_v42 = vld [vmem:[%s15341_s0 + $0x388] ss:$16 sps:$4 sm:$0xff]   ;;  %v10217_v59 = vld [vmem:[%s15341_s0 + $0x3ac] ss:$16 sps:$4 sm:$0xff]  }
 0x431   :  { %4537 = vmatprep.mubr.bf16.mxu0 %v10211_v36 }
 0x432   :  { %v13472_v34 = vpack.c.bf16 %v5099_v40, %v5098_v32 }
 0x433   :  { %v4323_v23 = vpop.f32.mrb[4].mxu0 }
 0x434   :  { %v9202_v33 = vadd.f32 %v13456_v35, %v4323_v23  ;;  %v4325_v41 = vpop.f32.mrb[5].mxu0  ;;  %v10310_v23 = vld [vmem:[%s15341_s0 + $0xb44] ss:$16 sps:$4 sm:$0xff]  }
 0x435   :  { %v4326_v38 = vpop.f32.mrb[6].mxu0  ;;  %4216 = vmatprep.mubr.bf16.mxu1 %v10310_v23  ;;  %v15746_v23 = vmov 0  }
 0x436   :  { %v9203_v31 = vadd.f32 %v13456_v35, %v4326_v38  ;;  %v4328_v36 = vpop.f32.mrb[7].mxu0  ;;  %v5100_v32 = vmax.f32 %v9202_v33, 0.0  ;;  %4217 = vmatmul.mubr.bf16.gmra.mrb[64].mxu1 %v10312_v37  ;;  %6048 = vmatprep.subr.bf16.mxu1 %v15746_v23  ;;  %v10317_v37 = vld [vmem:[%s15343_s2 + $0x8] sm:$0xff]  }
 0x437   :  { %6049 = vmatpush1.bf16.msra.mxu1 %v10317_v37  ;;  %4224 = vmatprep.mubr.bf16.mxu1 %v10318_v60  ;;  %v10225_v37 = vld [vmem:[%s15341_s0 + $0x3c8] ss:$16 sps:$4 sm:$0xff]   ;;  %v10229_v60 = vld [vmem:[%s15341_s0 + $0x3ec] ss:$16 sps:$4 sm:$0xff]  }
 0x438   :  { %v5101_v40 = vmax.f32 %v9203_v31, 0.0  ;;  %4538 = vmatmul.mubr.bf16.gmra.mrb[112].mxu0 %v10213_v42  ;;  %v10219_v42 = vld [vmem:[%s15341_s0 + $0x3a8] ss:$16 sps:$4 sm:$0xff]   ;;  %6050 = vmatprep.subr.bf16.mxu1 %v15746_v23 }
 0x439   :  { %4545 = vmatprep.mubr.bf16.mxu0 %v10217_v59  ;;  %v10223_v59 = vld [vmem:[%s15341_s0 + $0x3cc] ss:$16 sps:$4 sm:$0xff]  }
 0x43a   :  { %v13491_v41 = vpack.c.bf16 %v5101_v40, %v5100_v32 }
 0x43b   :  { %v4331_v38 = vpop.f32.mrb[8].mxu0 }
 0x43c   :  { %v9204_v31 = vadd.f32 %v13456_v35, %v4331_v38  ;;  %v4333_v33 = vpop.f32.mrb[9].mxu0 }
 0x43d   :  { %v4334_v36 = vpop.f32.mrb[10].mxu0 }
 0x43e   :  { %v9205_v32 = vadd.f32 %v13456_v35, %v4334_v36  ;;  %v4336_v40 = vpop.f32.mrb[11].mxu0  ;;  %v5102_v38 = vmax.f32 %v9204_v31, 0.0  ;;  %v10321_v36 = vld [vmem:[%s15343_s2 + $0x10] sm:$0xff]   ;;  %4225 = vmatmul.mubr.bf16.gmra.mrb[68].mxu1 %v10320_v22  ;;  %v10325_v22 = vld [vmem:[%s15343_s2 + $0x18] sm:$0xff]  }
 0x43f   :  { %6051 = vmatpush1.bf16.msra.mxu1 %v10321_v36  ;;  %v10326_v36 = vld [vmem:[%s15341_s0 + $0xb84] ss:$16 sps:$4 sm:$0xff]  }
 0x440   :  { %v5103_v33 = vmax.f32 %v9205_v32, 0.0  ;;  %4546 = vmatmul.mubr.bf16.gmra.mrb[116].mxu0 %v10219_v42  ;;  %6052 = vmatprep.subr.bf16.mxu1 %v15746_v23 }
 0x441   :  { %4553 = vmatprep.mubr.bf16.mxu0 %v10223_v59  ;;  %4232 = vmatprep.mubr.bf16.mxu1 %v10326_v36  ;;  %v10235_v36 = vld [vmem:[%s15341_s0 + $0x40c] ss:$16 sps:$4 sm:$0xff]  }
 0x442   :  { %v13515_v31 = vpack.c.bf16 %v5103_v33, %v5102_v38 }
 0x443   :  { %v4339_v42 = vpop.f32.mrb[12].mxu0  ;;  %6053 = vmatpush1.bf16.msra.mxu1 %v10325_v22  ;;  %v10231_v22 = vld [vmem:[%s15341_s0 + $0x3e8] ss:$16 sps:$4 sm:$0xff]  }
 0x444   :  { %v9206_v32 = vadd.f32 %v13456_v35, %v4339_v42  ;;  %v4341_v40 = vpop.f32.mrb[13].mxu0  ;;  %6054 = vmatprep.subr.bf16.mxu1 %v15746_v23 }
 0x445   :  { %v4342_v59 = vpop.f32.mrb[14].mxu0 }
 0x446   :  { %v9207_v38 = vadd.f32 %v13456_v35, %v4342_v59  ;;  %v4344_v33 = vpop.f32.mrb[15].mxu0  ;;  %v5104_v42 = vmax.f32 %v9206_v32, 0.0  ;;  %v10329_v59 = vld [vmem:[%s15343_s2 + $0x20] sm:$0xff]   ;;  %4233 = vmatmul.mubr.bf16.gmra.mrb[72].mxu1 %v10328_v30  ;;  %v10333_v30 = vld [vmem:[%s15343_s2 + $0x28] sm:$0xff]  }
 0x447   :  { %6055 = vmatpush1.bf16.msra.mxu1 %v10329_v59  ;;  %v10334_v59 = vld [vmem:[%s15341_s0 + $0xba4] ss:$16 sps:$4 sm:$0xff]  }
 0x448   :  { %v5105_v40 = vmax.f32 %v9207_v38, 0.0  ;;  %4554 = vmatmul.mubr.bf16.gmra.mrb[120].mxu0 %v10225_v37  ;;  %6056 = vmatprep.subr.bf16.mxu1 %v15746_v23 }
 0x449   :  { %4561 = vmatprep.mubr.bf16.mxu0 %v10229_v60  ;;  %4240 = vmatprep.mubr.bf16.mxu1 %v10334_v59  ;;  %v10241_v59 = vld [vmem:[%s15341_s0 + $0x42c] ss:$16 sps:$4 sm:$0xff]  }
 0x44a   :  { %v13539_v32 = vpack.c.bf16 %v5105_v40, %v5104_v42 }
 0x44b   :  { %v4347_v37 = vpop.f32.mrb[16].mxu0  ;;  %6057 = vmatpush1.bf16.msra.mxu1 %v10333_v30  ;;  %v10237_v30 = vld [vmem:[%s15341_s0 + $0x408] ss:$16 sps:$4 sm:$0xff]  }
 0x44c   :  { %v9208_v38 = vadd.f32 %v13456_v35, %v4347_v37  ;;  %v4349_v33 = vpop.f32.mrb[17].mxu0  ;;  %6058 = vmatprep.subr.bf16.mxu1 %v15746_v23 }
 0x44d   :  { %v4350_v60 = vpop.f32.mrb[18].mxu0 }
 0x44e   :  { %v9209_v42 = vadd.f32 %v13456_v35, %v4350_v60  ;;  %v4352_v40 = vpop.f32.mrb[19].mxu0  ;;  %v5106_v37 = vmax.f32 %v9208_v38, 0.0  ;;  %v10337_v60 = vld [vmem:[%s15343_s2 + $0x30] sm:$0xff]   ;;  %4241 = vmatmul.mubr.bf16.gmra.mrb[76].mxu1 %v10336_v21  ;;  %v10341_v21 = vld [vmem:[%s15343_s2 + $0x38] sm:$0xff]  }
 0x44f   :  { %6059 = vmatpush1.bf16.msra.mxu1 %v10337_v60  ;;  %v10342_v60 = vld [vmem:[%s15341_s0 + $0xbc4] ss:$16 sps:$4 sm:$0xff]  }
 0x450   :  { %v5107_v33 = vmax.f32 %v9209_v42, 0.0  ;;  %4562 = vmatmul.mubr.bf16.gmra.mrb[124].mxu0 %v10231_v22  ;;  %6060 = vmatprep.subr.bf16.mxu1 %v15746_v23 }
 0x451   :  { %4569 = vmatprep.mubr.bf16.mxu0 %v10235_v36  ;;  %4248 = vmatprep.mubr.bf16.mxu1 %v10342_v60  ;;  %v10247_v60 = vld [vmem:[%s15341_s0 + $0x44c] ss:$16 sps:$4 sm:$0xff]  }
 0x452   :  { %v13563_v38 = vpack.c.bf16 %v5107_v33, %v5106_v37 }
 0x453   :  { %v4355_v22 = vpop.f32.mrb[20].mxu0  ;;  %6061 = vmatpush1.bf16.msra.mxu1 %v10341_v21  ;;  %v10243_v21 = vld [vmem:[%s15341_s0 + $0x428] ss:$16 sps:$4 sm:$0xff]  }
 0x454   :  { %v9210_v42 = vadd.f32 %v13456_v35, %v4355_v22  ;;  %v4357_v40 = vpop.f32.mrb[21].mxu0  ;;  %6062 = vmatprep.subr.bf16.mxu1 %v15746_v23 }
 0x455   :  { %v4358_v36 = vpop.f32.mrb[22].mxu0 }
 0x456   :  { %v9211_v37 = vadd.f32 %v13456_v35, %v4358_v36  ;;  %v4360_v33 = vpop.f32.mrb[23].mxu0  ;;  %v5108_v22 = vmax.f32 %v9210_v42, 0.0  ;;  %v10345_v36 = vld [vmem:[%s15343_s2 + $0x40] sm:$0xff]   ;;  %4249 = vmatmul.mubr.bf16.gmra.mrb[80].mxu1 %v10344_v29  ;;  %v10349_v29 = vld [vmem:[%s15343_s2 + $0x48] sm:$0xff]  }
 0x457   :  { %6063 = vmatpush1.bf16.msra.mxu1 %v10345_v36  ;;  %v10350_v36 = vld [vmem:[%s15341_s0 + $0xbe4] ss:$16 sps:$4 sm:$0xff]  }
 0x458   :  { %v5109_v40 = vmax.f32 %v9211_v37, 0.0  ;;  %4570 = vmatmul.mubr.bf16.gmra.mrb[128].mxu0 %v10237_v30  ;;  %6064 = vmatprep.subr.bf16.mxu1 %v15746_v23 }
 0x459   :  { %4577 = vmatprep.mubr.bf16.mxu0 %v10241_v59  ;;  %4256 = vmatprep.mubr.bf16.mxu1 %v10350_v36  ;;  %v10253_v36 = vld [vmem:[%s15341_s0 + $0x46c] ss:$16 sps:$4 sm:$0xff]  }
 0x45a   :  { %v13587_v42 = vpack.c.bf16 %v5109_v40, %v5108_v22 }
 0x45b   :  { %v4363_v30 = vpop.f32.mrb[24].mxu0  ;;  %6065 = vmatpush1.bf16.msra.mxu1 %v10349_v29  ;;  %v10249_v29 = vld [vmem:[%s15341_s0 + $0x448] ss:$16 sps:$4 sm:$0xff]  }
 0x45c   :  { %v9212_v37 = vadd.f32 %v13456_v35, %v4363_v30  ;;  %v4365_v33 = vpop.f32.mrb[25].mxu0  ;;  %6066 = vmatprep.subr.bf16.mxu1 %v15746_v23 }
 0x45d   :  { %v4366_v59 = vpop.f32.mrb[26].mxu0 }
 0x45e   :  { %v9213_v22 = vadd.f32 %v13456_v35, %v4366_v59  ;;  %v4368_v40 = vpop.f32.mrb[27].mxu0  ;;  %v5110_v30 = vmax.f32 %v9212_v37, 0.0  ;;  %v10353_v59 = vld [vmem:[%s15343_s2 + $0x50] sm:$0xff]   ;;  %4257 = vmatmul.mubr.bf16.gmra.mrb[84].mxu1 %v10352_v20  ;;  %v10357_v20 = vld [vmem:[%s15343_s2 + $0x58] sm:$0xff]  }
 0x45f   :  { %6067 = vmatpush1.bf16.msra.mxu1 %v10353_v59  ;;  %v10358_v59 = vld [vmem:[%s15341_s0 + $0xc04] ss:$16 sps:$4 sm:$0xff]  }
 0x460   :  { %v5111_v33 = vmax.f32 %v9213_v22, 0.0  ;;  %4578 = vmatmul.mubr.bf16.gmra.mrb[132].mxu0 %v10243_v21  ;;  %6068 = vmatprep.subr.bf16.mxu1 %v15746_v23 }
 0x461   :  { %4585 = vmatprep.mubr.bf16.mxu0 %v10247_v60  ;;  %4264 = vmatprep.mubr.bf16.mxu1 %v10358_v59  ;;  %v10259_v59 = vld [vmem:[%s15341_s0 + $0x48c] ss:$16 sps:$4 sm:$0xff]  }
 0x462   :  { %v13611_v37 = vpack.c.bf16 %v5111_v33, %v5110_v30 }
 0x463   :  { %v4371_v21 = vpop.f32.mrb[28].mxu0  ;;  %6069 = vmatpush1.bf16.msra.mxu1 %v10357_v20  ;;  %v10255_v20 = vld [vmem:[%s15341_s0 + $0x468] ss:$16 sps:$4 sm:$0xff]  }
 0x464   :  { %v9214_v22 = vadd.f32 %v13456_v35, %v4371_v21  ;;  %v4373_v40 = vpop.f32.mrb[29].mxu0  ;;  %6070 = vmatprep.subr.bf16.mxu1 %v15746_v23 }
 0x465   :  { %v4374_v60 = vpop.f32.mrb[30].mxu0 }
 0x466   :  { %v9215_v30 = vadd.f32 %v13456_v35, %v4374_v60  ;;  %v4376_v33 = vpop.f32.mrb[31].mxu0  ;;  %v5112_v21 = vmax.f32 %v9214_v22, 0.0  ;;  %v10361_v60 = vld [vmem:[%s15343_s2 + $0x60] sm:$0xff]   ;;  %4265 = vmatmul.mubr.bf16.gmra.mrb[88].mxu1 %v10360_v28  ;;  %v10365_v28 = vld [vmem:[%s15343_s2 + $0x68] sm:$0xff]  }
 0x467   :  { %6071 = vmatpush1.bf16.msra.mxu1 %v10361_v60  ;;  %v10366_v60 = vld [vmem:[%s15341_s0 + $0xc24] ss:$16 sps:$4 sm:$0xff]  }
 0x468   :  { %v5113_v40 = vmax.f32 %v9215_v30, 0.0  ;;  %4586 = vmatmul.mubr.bf16.gmra.mrb[136].mxu0 %v10249_v29  ;;  %6072 = vmatprep.subr.bf16.mxu1 %v15746_v23 }
 0x469   :  { %4593 = vmatprep.mubr.bf16.mxu0 %v10253_v36  ;;  %4272 = vmatprep.mubr.bf16.mxu1 %v10366_v60  ;;  %v10267_v60 = vld [vmem:[%s15341_s0 + $0x4ac] ss:$16 sps:$4 sm:$0xff]  }
 0x46a   :  { %v13635_v22 = vpack.c.bf16 %v5113_v40, %v5112_v21 }
 0x46b   :  { %v4379_v29 = vpop.f32.mrb[32].mxu0  ;;  %6073 = vmatpush1.bf16.msra.mxu1 %v10365_v28  ;;  %v10261_v28 = vld [vmem:[%s15341_s0 + $0x488] ss:$16 sps:$4 sm:$0xff]  }
 0x46c   :  { %v9216_v30 = vadd.f32 %v13456_v35, %v4379_v29  ;;  %v4381_v33 = vpop.f32.mrb[33].mxu0  ;;  %6074 = vmatprep.subr.bf16.mxu1 %v15746_v23 }
 0x46d   :  { %v4382_v36 = vpop.f32.mrb[34].mxu0 }
 0x46e   :  { %v9217_v21 = vadd.f32 %v13456_v35, %v4382_v36  ;;  %v4384_v40 = vpop.f32.mrb[35].mxu0  ;;  %v5114_v29 = vmax.f32 %v9216_v30, 0.0  ;;  %v10369_v36 = vld [vmem:[%s15343_s2 + $0x70] sm:$0xff]   ;;  %4273 = vmatmul.mubr.bf16.gmra.mrb[92].mxu1 %v10368_v19  ;;  %v10373_v19 = vld [vmem:[%s15343_s2 + $0x78] sm:$0xff]  }
 0x46f   :  { %6075 = vmatpush1.bf16.msra.mxu1 %v10369_v36 }
 0x470   :  { %v5115_v33 = vmax.f32 %v9217_v21, 0.0  ;;  %4594 = vmatmul.mubr.bf16.gmra.mrb[140].mxu0 %v10255_v20  ;;  %6076 = vmatprep.subr.bf16.mxu1 %v15746_v23 }
 0x471   :  { %4601 = vmatprep.mubr.bf16.mxu0 %v10259_v59 }
 0x472   :  { %v13659_v30 = vpack.c.bf16 %v5115_v33, %v5114_v29 }
 0x473   :  { %v4387_v20 = vpop.f32.mrb[36].mxu0  ;;  %6077 = vmatpush1.bf16.msra.mxu1 %v10373_v19 }
 0x474   :  { %v9218_v21 = vadd.f32 %v13456_v35, %v4387_v20  ;;  %v4389_v40 = vpop.f32.mrb[37].mxu0  ;;  %6278 = vmatprep.subr.bf16.mxu1 %v15746_v23 }
 0x475   :  { %v4390_v59 = vpop.f32.mrb[38].mxu0 }
 0x476   :  { %v9219_v29 = vadd.f32 %v13456_v35, %v4390_v59  ;;  %v4392_v33 = vpop.f32.mrb[39].mxu0  ;;  %v5116_v20 = vmax.f32 %v9218_v21, 0.0  ;;  %v10265_v59 = vld [vmem:[%s15341_s0 + $0x4a8] ss:$16 sps:$4 sm:$0xff]   ;;  %v10273_v21 = vld [vmem:[%s15341_s0 + $0x4cc] ss:$16 sps:$4 sm:$0xff]  }
 0x478   :  { %v5117_v40 = vmax.f32 %v9219_v29, 0.0  ;;  %4602 = vmatmul.mubr.bf16.gmra.mrb[144].mxu0 %v10261_v28 }
 0x479   :  { %4609 = vmatprep.mubr.bf16.mxu0 %v10267_v60 }
 0x47a   :  { %v13674_v36 = vpack.c.bf16 %v5117_v40, %v5116_v20 }
 0x47b   :  { %v4395_v27 = vpop.f32.mrb[40].mxu0 }
 0x47c   :  { %v9220_v18 = vadd.f32 %v13456_v35, %v4395_v27  ;;  %v4397_v26 = vpop.f32.mrb[41].mxu0 }
 0x47d   :  { %v4398_v33 = vpop.f32.mrb[42].mxu0 }
 0x47e   :  { %v9221_v28 = vadd.f32 %v13456_v35, %v4398_v33  ;;  %v4400_v60 = vpop.f32.mrb[43].mxu0  ;;  %v5118_v29 = vmax.f32 %v9220_v18, 0.0  ;;  %v10279_v33 = vld [vmem:[%s15341_s0 + $0x4ec] ss:$16 sps:$4 sm:$0xff]  }
 0x480   :  { %v5119_v19 = vmax.f32 %v9221_v28, 0.0  ;;  %4610 = vmatmul.mubr.bf16.gmra.mrb[0].mxu0 %v10265_v59 }
 0x481   :  { %4617 = vmatprep.mubr.bf16.mxu0 %v10273_v21 }
 0x482   :  { %v13684_v20 = vpack.c.bf16 %v5119_v19, %v5118_v29 }
 0x483   :  { %v4403_v27 = vpop.f32.mrb[44].mxu0 }
 0x484   :  { %v9222_v26 = vadd.f32 %v13456_v35, %v4403_v27  ;;  %v4405_v40 = vpop.f32.mrb[45].mxu0 }
 0x485   :  { %v4406_v25 = vpop.f32.mrb[46].mxu0  ;;  %v10277_v40 = vld [vmem:[%s15341_s0 + $0x4e8] ss:$16 sps:$4 sm:$0xff]  }
 0x486   :  { %v9223_v18 = vadd.f32 %v13456_v35, %v4406_v25  ;;  %v4408_v28 = vpop.f32.mrb[47].mxu0  ;;  %v5120_v59 = vmax.f32 %v9222_v26, 0.0  ;;  %v10285_v25 = vld [vmem:[%s15341_s0 + $0x50c] ss:$16 sps:$4 sm:$0xff]  }
 0x488   :  { %v5121_v21 = vmax.f32 %v9223_v18, 0.0  ;;  %4618 = vmatmul.mubr.bf16.gmra.mrb[4].mxu0 %v10271_v17 }
 0x489   :  { %4625 = vmatprep.mubr.bf16.mxu0 %v10279_v33 }
 0x48a   :  { %v13694_v60 = vpack.c.bf16 %v5121_v21, %v5120_v59 }
 0x48b   :  { %v4411_v29 = vpop.f32.mrb[48].mxu0 }
 0x48c   :  { %v9224_v19 = vadd.f32 %v13456_v35, %v4411_v29  ;;  %v4413_v27 = vpop.f32.mrb[49].mxu0 }
 0x48d   :  { %v4414_v16 = vpop.f32.mrb[50].mxu0  ;;  %v10283_v27 = vld [vmem:[%s15341_s0 + $0x508] ss:$16 sps:$4 sm:$0xff]  }
 0x48e   :  { %v9225_v26 = vadd.f32 %v13456_v35, %v4414_v16  ;;  %v4416_v18 = vpop.f32.mrb[51].mxu0  ;;  %v5122_v17 = vmax.f32 %v9224_v19, 0.0  ;;  %v10291_v16 = vld [vmem:[%s15341_s0 + $0x52c] ss:$16 sps:$4 sm:$0xff]  }
 0x490   :  { %v5123_v33 = vmax.f32 %v9225_v26, 0.0  ;;  %4626 = vmatmul.mubr.bf16.gmra.mrb[8].mxu0 %v10277_v40 }
 0x491   :  { %4633 = vmatprep.mubr.bf16.mxu0 %v10285_v25 }
 0x492   :  { %v13704_v28 = vpack.c.bf16 %v5123_v33, %v5122_v17 }
 0x493   :  { %v4419_v59 = vpop.f32.mrb[52].mxu0 }
 0x494   :  { %v9226_v21 = vadd.f32 %v13456_v35, %v4419_v59  ;;  %v4421_v29 = vpop.f32.mrb[53].mxu0 }
 0x495   :  { %v4422_v24 = vpop.f32.mrb[54].mxu0  ;;  %v10289_v29 = vld [vmem:[%s15341_s0 + $0x528] ss:$16 sps:$4 sm:$0xff]  }
 0x496   :  { %v9227_v19 = vadd.f32 %v13456_v35, %v4422_v24  ;;  %v4424_v26 = vpop.f32.mrb[55].mxu0  ;;  %v5124_v40 = vmax.f32 %v9226_v21, 0.0  ;;  %v10297_v24 = vld [vmem:[%s15341_s0 + $0x54c] ss:$16 sps:$4 sm:$0xff]  }
 0x498   :  { %v5125_v25 = vmax.f32 %v9227_v19, 0.0  ;;  %4634 = vmatmul.mubr.bf16.gmra.mrb[12].mxu0 %v10283_v27 }
 0x499   :  { %4641 = vmatprep.mubr.bf16.mxu0 %v10291_v16 }
 0x49a   :  { %v13714_v18 = vpack.c.bf16 %v5125_v25, %v5124_v40 }
 0x49b   :  { %v4427_v17 = vpop.f32.mrb[56].mxu0 }
 0x49c   :  { %v9228_v33 = vadd.f32 %v13456_v35, %v4427_v17  ;;  %v4429_v59 = vpop.f32.mrb[57].mxu0 }
 0x49d   :  { %v4430_v7 = vpop.f32.mrb[58].mxu0  ;;  %v10295_v59 = vld [vmem:[%s15341_s0 + $0x548] ss:$16 sps:$4 sm:$0xff]  }
 0x49e   :  { %v9229_v21 = vadd.f32 %v13456_v35, %v4430_v7  ;;  %v4432_v19 = vpop.f32.mrb[59].mxu0  ;;  %v5126_v27 = vmax.f32 %v9228_v33, 0.0  ;;  %v10303_v7 = vld [vmem:[%s15341_s0 + $0x56c] ss:$16 sps:$4 sm:$0xff]  }
 0x4a0   :  { %v5127_v16 = vmax.f32 %v9229_v21, 0.0  ;;  %4642 = vmatmul.mubr.bf16.gmra.mrb[16].mxu0 %v10289_v29 }
 0x4a1   :  { %4649 = vmatprep.mubr.bf16.mxu0 %v10297_v24 }
 0x4a2   :  { %v13724_v26 = vpack.c.bf16 %v5127_v16, %v5126_v27 }
 0x4a3   :  { %v4435_v40 = vpop.f32.mrb[60].mxu0 }
 0x4a4   :  { %v9230_v25 = vadd.f32 %v13456_v35, %v4435_v40  ;;  %v4437_v17 = vpop.f32.mrb[61].mxu0 }
 0x4a5   :  { %v4438_v15 = vpop.f32.mrb[62].mxu0  ;;  %v10301_v17 = vld [vmem:[%s15341_s0 + $0x568] ss:$16 sps:$4 sm:$0xff]  }
 0x4a6   :  { %v9231_v33 = vadd.f32 %v13456_v35, %v4438_v15  ;;  %v4440_v21 = vpop.f32.mrb[63].mxu0  ;;  %v5128_v29 = vmax.f32 %v9230_v25, 0.0  ;;  %v10309_v15 = vld [vmem:[%s15341_s0 + $0x58c] ss:$16 sps:$4 sm:$0xff]  }
 0x4a8   :  { %v5129_v24 = vmax.f32 %v9231_v33, 0.0  ;;  %4650 = vmatmul.mubr.bf16.gmra.mrb[20].mxu0 %v10295_v59 }
 0x4a9   :  { %4657 = vmatprep.mubr.bf16.mxu0 %v10303_v7 }
 0x4aa   :  { %v13734_v19 = vpack.c.bf16 %v5129_v24, %v5128_v29 }
 0x4ab   :  { %v4443_v27 = vpop.f32.mrb[64].mxu0 }
 0x4ac   :  { %v9232_v16 = vadd.f32 %v13456_v35, %v4443_v27  ;;  %v4445_v40 = vpop.f32.mrb[65].mxu0 }
 0x4ad   :  { %v4446_v6 = vpop.f32.mrb[66].mxu0  ;;  %v10307_v40 = vld [vmem:[%s15341_s0 + $0x588] ss:$16 sps:$4 sm:$0xff]  }
 0x4ae   :  { %v9233_v25 = vadd.f32 %v13456_v35, %v4446_v6  ;;  %v4448_v33 = vpop.f32.mrb[67].mxu0  ;;  %v5130_v59 = vmax.f32 %v9232_v16, 0.0  ;;  %v10316_v6 = vld [vmem:[%s15341_s0 + $0x5ac] ss:$16 sps:$4 sm:$0xff]  }
 0x4b0   :  { %v5131_v7 = vmax.f32 %v9233_v25, 0.0  ;;  %4658 = vmatmul.mubr.bf16.gmra.mrb[24].mxu0 %v10301_v17 }
 0x4b1   :  { %4665 = vmatprep.mubr.bf16.mxu0 %v10309_v15 }
 0x4b2   :  { %v13744_v21 = vpack.c.bf16 %v5131_v7, %v5130_v59 }
 0x4b3   :  { %v4451_v29 = vpop.f32.mrb[68].mxu0 }
 0x4b4   :  { %v9234_v24 = vadd.f32 %v13456_v35, %v4451_v29  ;;  %v4453_v27 = vpop.f32.mrb[69].mxu0 }
 0x4b5   :  { %v4454_v14 = vpop.f32.mrb[70].mxu0  ;;  %v10314_v27 = vld [vmem:[%s15341_s0 + $0x5a8] ss:$16 sps:$4 sm:$0xff]  }
 0x4b6   :  { %v9235_v16 = vadd.f32 %v13456_v35, %v4454_v14  ;;  %v4456_v25 = vpop.f32.mrb[71].mxu0  ;;  %v5132_v17 = vmax.f32 %v9234_v24, 0.0  ;;  %v10324_v14 = vld [vmem:[%s15341_s0 + $0x5cc] ss:$16 sps:$4 sm:$0xff]  }
 0x4b8   :  { %v5133_v15 = vmax.f32 %v9235_v16, 0.0  ;;  %4666 = vmatmul.mubr.bf16.gmra.mrb[28].mxu0 %v10307_v40 }
 0x4b9   :  { %4673 = vmatprep.mubr.bf16.mxu0 %v10316_v6 }
 0x4ba   :  { %v13754_v33 = vpack.c.bf16 %v5133_v15, %v5132_v17 }
 0x4bb   :  { %v4459_v59 = vpop.f32.mrb[72].mxu0 }
 0x4bc   :  { %v9236_v7 = vadd.f32 %v13456_v35, %v4459_v59  ;;  %v4461_v29 = vpop.f32.mrb[73].mxu0 }
 0x4bd   :  { %v4462_v5 = vpop.f32.mrb[74].mxu0  ;;  %v10322_v29 = vld [vmem:[%s15341_s0 + $0x5c8] ss:$16 sps:$4 sm:$0xff]  }
 0x4be   :  { %v9237_v24 = vadd.f32 %v13456_v35, %v4462_v5  ;;  %v4464_v16 = vpop.f32.mrb[75].mxu0  ;;  %v5134_v40 = vmax.f32 %v9236_v7, 0.0  ;;  %v10330_v5 = vld [vmem:[%s15341_s0 + $0x5ec] ss:$16 sps:$4 sm:$0xff]  }
 0x4c0   :  { %v5135_v6 = vmax.f32 %v9237_v24, 0.0  ;;  %4674 = vmatmul.mubr.bf16.gmra.mrb[32].mxu0 %v10314_v27 }
 0x4c1   :  { %4681 = vmatprep.mubr.bf16.mxu0 %v10324_v14 }
 0x4c2   :  { %v13764_v25 = vpack.c.bf16 %v5135_v6, %v5134_v40 }
 0x4c3   :  { %v4467_v17 = vpop.f32.mrb[76].mxu0 }
 0x4c4   :  { %v9238_v15 = vadd.f32 %v13456_v35, %v4467_v17  ;;  %v4469_v59 = vpop.f32.mrb[77].mxu0 }
 0x4c5   :  { %v4470_v13 = vpop.f32.mrb[78].mxu0  ;;  %v10332_v59 = vld [vmem:[%s15341_s0 + $0x5e8] ss:$16 sps:$4 sm:$0xff]  }
 0x4c6   :  { %v9239_v7 = vadd.f32 %v13456_v35, %v4470_v13  ;;  %v4472_v24 = vpop.f32.mrb[79].mxu0  ;;  %v5136_v27 = vmax.f32 %v9238_v15, 0.0  ;;  %v10338_v13 = vld [vmem:[%s15341_s0 + $0x60c] ss:$16 sps:$4 sm:$0xff]  }
 0x4c8   :  { %v5137_v14 = vmax.f32 %v9239_v7, 0.0  ;;  %4682 = vmatmul.mubr.bf16.gmra.mrb[36].mxu0 %v10322_v29 }
 0x4c9   :  { %4689 = vmatprep.mubr.bf16.mxu0 %v10330_v5 }
 0x4ca   :  { %v13774_v16 = vpack.c.bf16 %v5137_v14, %v5136_v27 }
 0x4cb   :  { %v4475_v40 = vpop.f32.mrb[80].mxu0 }
 0x4cc   :  { %v9240_v6 = vadd.f32 %v13456_v35, %v4475_v40  ;;  %v4477_v17 = vpop.f32.mrb[81].mxu0 }
 0x4cd   :  { %v4478_v4 = vpop.f32.mrb[82].mxu0  ;;  %v10340_v17 = vld [vmem:[%s15341_s0 + $0x608] ss:$16 sps:$4 sm:$0xff]  }
 0x4ce   :  { %v9241_v15 = vadd.f32 %v13456_v35, %v4478_v4  ;;  %v4480_v7 = vpop.f32.mrb[83].mxu0  ;;  %v5138_v29 = vmax.f32 %v9240_v6, 0.0  ;;  %v10346_v4 = vld [vmem:[%s15341_s0 + $0x62c] ss:$16 sps:$4 sm:$0xff]  }
 0x4d0   :  { %v5139_v5 = vmax.f32 %v9241_v15, 0.0  ;;  %4690 = vmatmul.mubr.bf16.gmra.mrb[188].mxu0 %v10332_v59 }
 0x4d1   :  { %4697 = vmatprep.mubr.bf16.mxu0 %v10338_v13 }
 0x4d2   :  { %v13784_v24 = vpack.c.bf16 %v5139_v5, %v5138_v29 }
 0x4d3   :  { %v4483_v27 = vpop.f32.mrb[84].mxu0 }
 0x4d4   :  { %v9242_v14 = vadd.f32 %v13456_v35, %v4483_v27  ;;  %v4485_v40 = vpop.f32.mrb[85].mxu0 }
 0x4d5   :  { %v4486_v12 = vpop.f32.mrb[86].mxu0  ;;  %v10348_v40 = vld [vmem:[%s15341_s0 + $0x628] ss:$16 sps:$4 sm:$0xff]  }
 0x4d6   :  { %v9243_v6 = vadd.f32 %v13456_v35, %v4486_v12  ;;  %v4488_v15 = vpop.f32.mrb[87].mxu0  ;;  %v5140_v59 = vmax.f32 %v9242_v14, 0.0  ;;  %v10354_v12 = vld [vmem:[%s15341_s0 + $0x64c] ss:$16 sps:$4 sm:$0xff]  }
 0x4d8   :  { %v5141_v13 = vmax.f32 %v9243_v6, 0.0  ;;  %4698 = vmatmul.mubr.bf16.gmra.mrb[192].mxu0 %v10340_v17 }
 0x4d9   :  { %4705 = vmatprep.mubr.bf16.mxu0 %v10346_v4 }
 0x4da   :  { %v13794_v7 = vpack.c.bf16 %v5141_v13, %v5140_v59 }
 0x4db   :  { %v4491_v29 = vpop.f32.mrb[88].mxu0 }
 0x4dc   :  { %v9244_v5 = vadd.f32 %v13456_v35, %v4491_v29  ;;  %v4493_v27 = vpop.f32.mrb[89].mxu0 }
 0x4dd   :  { %v4494_v3 = vpop.f32.mrb[90].mxu0  ;;  %v10356_v27 = vld [vmem:[%s15341_s0 + $0x648] ss:$16 sps:$4 sm:$0xff]  }
 0x4de   :  { %v9245_v14 = vadd.f32 %v13456_v35, %v4494_v3  ;;  %v4496_v6 = vpop.f32.mrb[91].mxu0  ;;  %v5142_v17 = vmax.f32 %v9244_v5, 0.0  ;;  %v10362_v3 = vld [vmem:[%s15341_s0 + $0x66c] ss:$16 sps:$4 sm:$0xff]  }
 0x4e0   :  { %v5143_v4 = vmax.f32 %v9245_v14, 0.0  ;;  %4706 = vmatmul.mubr.bf16.gmra.mrb[196].mxu0 %v10348_v40 }
 0x4e1   :  { %4713 = vmatprep.mubr.bf16.mxu0 %v10354_v12 }
 0x4e2   :  { %v13804_v15 = vpack.c.bf16 %v5143_v4, %v5142_v17 }
 0x4e3   :  { %v4499_v59 = vpop.f32.mrb[92].mxu0 }
 0x4e4   :  { %v9246_v13 = vadd.f32 %v13456_v35, %v4499_v59  ;;  %v4501_v29 = vpop.f32.mrb[93].mxu0  ;;  %v10364_v59 = vld [vmem:[%s15341_s0 + $0x668] ss:$16 sps:$4 sm:$0xff]  }
 0x4e5   :  { %v4502_v11 = vpop.f32.mrb[94].mxu0 }
 0x4e6   :  { %v9247_v5 = vadd.f32 %v13456_v35, %v4502_v11  ;;  %v4504_v14 = vpop.f32.mrb[95].mxu0  ;;  %v5144_v40 = vmax.f32 %v9246_v13, 0.0 }
 0x4e7   :  { %v10372_v14 = vld [vmem:[%s15341_s0 + $0x688] ss:$16 sps:$4 sm:$0xff]  }
 0x4e8   :  { %v5145_v12 = vmax.f32 %v9247_v5, 0.0  ;;  %4714 = vmatmul.mubr.bf16.gmra.mrb[200].mxu0 %v10356_v27 }
 0x4e9   :  { %4721 = vmatprep.mubr.bf16.mxu0 %v10362_v3 }
 0x4ea   :  { %v13814_v6 = vpack.c.bf16 %v5145_v12, %v5144_v40  ;;  %v10374_v12 = vld [vmem:[%s15341_s0 + $0x6ac] ss:$16 sps:$4 sm:$0xff]  }
 0x4eb   :  { %v13816_v17 = vpop.f32.mrb[96].mxu0 }
 0x4ec   :  { %v4509_v4 = vpop.f32.mrb[97].mxu0 }
 0x4ed   :  { %v4510_v29 = vpop.f32.mrb[98].mxu0 }
 0x4ee   :  { %v4512_v11 = vpop.f32.mrb[99].mxu0  ;;  %v9249_v13 = vadd.f32 %v13456_v35, %v4510_v29 }
 0x4f0   :  { %4722 = vmatmul.mubr.bf16.gmra.mrb[204].mxu0 %v10364_v59  ;;  %v5147_v4 = vmax.f32 %v9249_v13, 0.0  ;;  %v10377_v13 = vld [vmem:[%s15341_s0 + $0x6cc] ss:$16 sps:$4 sm:$0xff]  }
 0x4f1   :  { %4729 = vmatprep.mubr.bf16.mxu0 %v10370_v2 }
 0x4f3   :  { %v4515_v27 = vpop.f32.mrb[100].mxu0 }
 0x4f4   :  { %v9250_v3 = vadd.f32 %v13456_v35, %v4515_v27  ;;  %v4517_v5 = vpop.f32.mrb[101].mxu0 }
 0x4f5   :  { %v4518_v40 = vpop.f32.mrb[102].mxu0 }
 0x4f6   :  { %v5148_v10 = vmax.f32 %v9250_v3, 0.0  ;;  %v4520_v11 = vpop.f32.mrb[103].mxu0  ;;  %v9251_v59 = vadd.f32 %v13456_v35, %v4518_v40 }
 0x4f8   :  { %4730 = vmatmul.mubr.bf16.gmra.mrb[208].mxu0 %v10372_v14  ;;  %v5687_v2 = vpack.c.bf16 %v5148_v10, %v5147_v4  ;;  %v5149_v10 = vmax.f32 %v9251_v59, 0.0 }
 0x4f9   :  { %4737 = vmatprep.mubr.bf16.mxu0 %v10374_v12 }
 0x4fa   :  { %6078 = vmatprep.mubr.bf16.mxu1 %v5687_v2  ;;  %v10379_v2 = vld [vmem:[%s15341_s0 + $0x6c8] ss:$16 sps:$4 sm:$0xff]  }
 0x4fb   :  { %v4523_v29 = vpop.f32.mrb[104].mxu0  ;;  %6079 = vmatmul.mubr.bf16.vlgmr.msra.gmra.mrb[96].mxu1 %v13472_v34 }
 0x4fc   :  { %v9252_v27 = vadd.f32 %v13456_v35, %v4523_v29  ;;  %v4525_v5 = vpop.f32.mrb[105].mxu0 }
 0x4fd   :  { %v4526_v9 = vpop.f32.mrb[106].mxu0 }
 0x4fe   :  { %v5150_v3 = vmax.f32 %v9252_v27, 0.0  ;;  %v4528_v14 = vpop.f32.mrb[107].mxu0  ;;  %v9253_v34 = vadd.f32 %v13456_v35, %v4526_v9 }
 0x4ff   :  { %v10382_v14 = vld [vmem:[%s15341_s0 + $0x6e8] ss:$16 sps:$4 sm:$0xff]  }
 0x500   :  { %4738 = vmatmul.mubr.bf16.gmra.mrb[212].mxu0 %v10376_v1  ;;  %v5691_v40 = vpack.c.bf16 %v5150_v3, %v5149_v10  ;;  %v10380_v1 = vld [vmem:[%s15341_s0 + $0x6ec] ss:$16 sps:$4 sm:$0xff]   ;;  %v5151_v59 = vmax.f32 %v9253_v34, 0.0 }
 0x501   :  { %4745 = vmatprep.mubr.bf16.mxu0 %v10377_v13  ;;  %v10383_v34 = vld [vmem:[%s15341_s0 + $0x70c] ss:$16 sps:$4 sm:$0xff]  }
 0x502   :  { %6086 = vmatprep.mubr.bf16.mxu1 %v5691_v40 }
 0x503   :  { %v4531_v12 = vpop.f32.mrb[108].mxu0  ;;  %6087 = vmatmul.mubr.bf16.gmra.mrb[100].mxu1 %v13491_v41 }
 0x504   :  { %v9254_v4 = vadd.f32 %v13456_v35, %v4531_v12  ;;  %v4533_v11 = vpop.f32.mrb[109].mxu0 }
 0x505   :  { %v4534_v29 = vpop.f32.mrb[110].mxu0 }
 0x506   :  { %v5152_v27 = vmax.f32 %v9254_v4, 0.0  ;;  %v4536_v5 = vpop.f32.mrb[111].mxu0  ;;  %v9255_v41 = vadd.f32 %v13456_v35, %v4534_v29 }
 0x508   :  { %4746 = vmatmul.mubr.bf16.gmra.mrb[216].mxu0 %v10379_v2  ;;  %v5695_v9 = vpack.c.bf16 %v5152_v27, %v5151_v59  ;;  %v5153_v12 = vmax.f32 %v9255_v41, 0.0  ;;  %v10385_v27 = vld [vmem:[%s15341_s0 + $0x708] ss:$16 sps:$4 sm:$0xff]  }
 0x509   :  { %4753 = vmatprep.mubr.bf16.mxu0 %v10380_v1 }
 0x50a   :  { %6094 = vmatprep.mubr.bf16.mxu1 %v5695_v9  ;;  %v10386_v9 = vld [vmem:[%s15341_s0 + $0x72c] ss:$16 sps:$4 sm:$0xff]  }
 0x50b   :  { %v4539_v13 = vpop.f32.mrb[112].mxu0  ;;  %6095 = vmatmul.mubr.bf16.gmra.mrb[104].mxu1 %v13515_v31 }
 0x50c   :  { %v9256_v10 = vadd.f32 %v13456_v35, %v4539_v13  ;;  %v4541_v3 = vpop.f32.mrb[113].mxu0 }
 0x50d   :  { %v4542_v40 = vpop.f32.mrb[114].mxu0 }
 0x50e   :  { %v5154_v4 = vmax.f32 %v9256_v10, 0.0  ;;  %v4544_v11 = vpop.f32.mrb[115].mxu0  ;;  %v9257_v31 = vadd.f32 %v13456_v35, %v4542_v40 }
 0x50f   :  { %v10389_v11 = vld [vmem:[%s15341_s0 + $0x74c] ss:$16 sps:$4 sm:$0xff]  }
 0x510   :  { %4754 = vmatmul.mubr.bf16.gmra.mrb[220].mxu0 %v10382_v14  ;;  %v5699_v2 = vpack.c.bf16 %v5154_v4, %v5153_v12  ;;  %v5155_v41 = vmax.f32 %v9257_v31, 0.0  ;;  %v10388_v12 = vld [vmem:[%s15341_s0 + $0x728] ss:$16 sps:$4 sm:$0xff]  }
 0x511   :  { %4761 = vmatprep.mubr.bf16.mxu0 %v10383_v34 }
 0x512   :  { %6102 = vmatprep.mubr.bf16.mxu1 %v5699_v2 }
 0x513   :  { %v4547_v29 = vpop.f32.mrb[116].mxu0  ;;  %6103 = vmatmul.mubr.bf16.gmra.mrb[108].mxu1 %v13539_v32 }
 0x514   :  { %v9258_v1 = vadd.f32 %v13456_v35, %v4547_v29  ;;  %v4549_v59 = vpop.f32.mrb[117].mxu0 }
 0x515   :  { %v4550_v5 = vpop.f32.mrb[118].mxu0 }
 0x516   :  { %v5156_v13 = vmax.f32 %v9258_v1, 0.0  ;;  %v4552_v10 = vpop.f32.mrb[119].mxu0  ;;  %v9259_v32 = vadd.f32 %v13456_v35, %v4550_v5 }
 0x518   :  { %4762 = vmatmul.mubr.bf16.gmra.mrb[224].mxu0 %v10385_v27  ;;  %v5703_v3 = vpack.c.bf16 %v5156_v13, %v5155_v41  ;;  %v5157_v2 = vmax.f32 %v9259_v32, 0.0  ;;  %v10392_v13 = vld [vmem:[%s15341_s0 + $0x76c] ss:$16 sps:$4 sm:$0xff]  }
 0x519   :  { %4769 = vmatprep.mubr.bf16.mxu0 %v10386_v9  ;;  %v10391_v9 = vld [vmem:[%s15341_s0 + $0x748] ss:$16 sps:$4 sm:$0xff]  }
 0x51a   :  { %6110 = vmatprep.mubr.bf16.mxu1 %v5703_v3 }
 0x51b   :  { %v4555_v14 = vpop.f32.mrb[120].mxu0  ;;  %6111 = vmatmul.mubr.bf16.gmra.mrb[112].mxu1 %v13563_v38 }
 0x51c   :  { %v9260_v40 = vadd.f32 %v13456_v35, %v4555_v14  ;;  %v4557_v34 = vpop.f32.mrb[121].mxu0 }
 0x51d   :  { %v4558_v4 = vpop.f32.mrb[122].mxu0  ;;  %v13891_v34 = vld [vmem:[%s15345_s4] ss:$0 sm:$0xff] }
 0x51e   :  { %v5158_v31 = vmax.f32 %v9260_v40, 0.0  ;;  %v4560_v29 = vpop.f32.mrb[123].mxu0  ;;  %v9261_v38 = vadd.f32 %v13456_v35, %v4558_v4 }
 0x520   :  { %4770 = vmatmul.mubr.bf16.gmra.mrb[228].mxu0 %v10388_v12  ;;  %v5707_v1 = vpack.c.bf16 %v5158_v31, %v5157_v2  ;;  %v5159_v10 = vmax.f32 %v9261_v38, 0.0 }
 0x521   :  { %4777 = vmatprep.mubr.bf16.mxu0 %v10389_v11  ;;  %v10394_v11 = vld [vmem:[%s15341_s0 + $0x768] ss:$16 sps:$4 sm:$0xff]  }
 0x522   :  { %6118 = vmatprep.mubr.bf16.mxu1 %v5707_v1 }
 0x523   :  { %v4563_v59 = vpop.f32.mrb[124].mxu0  ;;  %6119 = vmatmul.mubr.bf16.gmra.mrb[116].mxu1 %v13587_v42 }
 0x524   :  { %v9262_v27 = vadd.f32 %v13456_v35, %v4563_v59  ;;  %v4565_v5 = vpop.f32.mrb[125].mxu0 }
 0x525   :  { %v4566_v41 = vpop.f32.mrb[126].mxu0 }
 0x526   :  { %v5160_v3 = vmax.f32 %v9262_v27, 0.0  ;;  %v4568_v32 = vpop.f32.mrb[127].mxu0  ;;  %v9263_v42 = vadd.f32 %v13456_v35, %v4566_v41  ;;  %v10395_v35 = vld [vmem:[%s15341_s0 + $0x78c] ss:$16 sps:$4 sm:$0xff]  }
 0x528   :  { %4778 = vmatmul.mubr.bf16.gmra.mrb[232].mxu0 %v10391_v9  ;;  %v5711_v14 = vpack.c.bf16 %v5160_v3, %v5159_v10  ;;  %v5161_v31 = vmax.f32 %v9263_v42, 0.0  ;;  %v10397_v9 = vld [vmem:[%s15341_s0 + $0x788] ss:$16 sps:$4 sm:$0xff]  }
 0x529   :  { %4785 = vmatprep.mubr.bf16.mxu0 %v10392_v13  ;;  %v10398_v13 = vld [vmem:[%s15341_s0 + $0x7ac] ss:$16 sps:$4 sm:$0xff]  }
 0x52a   :  { %6126 = vmatprep.mubr.bf16.mxu1 %v5711_v14 }
 0x52b   :  { %v4571_v40 = vpop.f32.mrb[128].mxu0  ;;  %6127 = vmatmul.mubr.bf16.gmra.mrb[120].mxu1 %v13611_v37 }
 0x52c   :  { %v9264_v12 = vadd.f32 %v13891_v34, %v4571_v40  ;;  %v4573_v4 = vpop.f32.mrb[129].mxu0 }
 0x52d   :  { %v4574_v2 = vpop.f32.mrb[130].mxu0  ;;  %v10400_v4 = vld [vmem:[%s15341_s0 + $0x7a8] ss:$16 sps:$4 sm:$0xff]  }
 0x52e   :  { %v5162_v29 = vmax.f32 %v9264_v12, 0.0  ;;  %v4576_v37 = vpop.f32.mrb[131].mxu0  ;;  %v9265_v38 = vadd.f32 %v13891_v34, %v4574_v2  ;;  %v10401_v2 = vld [vmem:[%s15341_s0 + $0x7cc] ss:$16 sps:$4 sm:$0xff]  }
 0x52f   :  { %v10446_v37 = vld [vmem:[%s15343_s2 + $0x80] sm:$0xff]  }
 0x530   :  { %4786 = vmatmul.mubr.bf16.gmra.mrb[236].mxu0 %v10394_v11  ;;  %v5715_v1 = vpack.c.bf16 %v5162_v29, %v5161_v31  ;;  %v5163_v10 = vmax.f32 %v9265_v38, 0.0  ;;  %6279 = vmatpush1.bf16.msra.mxu1 %v10446_v37 }
 0x531   :  { %4793 = vmatprep.mubr.bf16.mxu0 %v10395_v35  ;;  %6280 = vmatprep.subr.bf16.mxu1 %v15746_v23 }
 0x532   :  { %6134 = vmatprep.mubr.bf16.mxu1 %v5715_v1 }
 0x533   :  { %v4579_v59 = vpop.f32.mrb[132].mxu0  ;;  %6135 = vmatmul.mubr.bf16.gmra.mrb[124].mxu1 %v13635_v22 }
 0x534   :  { %v9266_v27 = vadd.f32 %v13891_v34, %v4579_v59  ;;  %v4581_v5 = vpop.f32.mrb[133].mxu0 }
 0x535   :  { %v4582_v41 = vpop.f32.mrb[134].mxu0  ;;  %v10403_v5 = vld [vmem:[%s15341_s0 + $0x7c8] ss:$16 sps:$4 sm:$0xff]  }
 0x536   :  { %v5164_v3 = vmax.f32 %v9266_v27, 0.0  ;;  %v4584_v32 = vpop.f32.mrb[135].mxu0  ;;  %v9267_v22 = vadd.f32 %v13891_v34, %v4582_v41  ;;  %v10404_v41 = vld [vmem:[%s15341_s0 + $0x7ec] ss:$16 sps:$4 sm:$0xff]  }
 0x538   :  { %4794 = vmatmul.mubr.bf16.gmra.mrb[240].mxu0 %v10397_v9  ;;  %v5719_v14 = vpack.c.bf16 %v5164_v3, %v5163_v10  ;;  %v5165_v35 = vmax.f32 %v9267_v22, 0.0 }
 0x539   :  { %4801 = vmatprep.mubr.bf16.mxu0 %v10398_v13 }
 0x53a   :  { %6142 = vmatprep.mubr.bf16.mxu1 %v5719_v14  ;;  %v10453_v14 = vld [vmem:[%s15343_s2 + $0x88] sm:$0xff]  }
 0x53b   :  { %v4587_v42 = vpop.f32.mrb[136].mxu0  ;;  %6143 = vmatmul.mubr.bf16.gmra.mrb[128].mxu1 %v13659_v30 }
 0x53c   :  { %v9268_v40 = vadd.f32 %v13891_v34, %v4587_v42  ;;  %v4589_v12 = vpop.f32.mrb[137].mxu0  ;;  %v13936_v42 = vpop.f32.mrb[0].mxu1  ;;  %6281 = vmatpush1.bf16.msra.mxu1 %v10453_v14 }
 0x53d   :  { %v4590_v11 = vpop.f32.mrb[138].mxu0  ;;  %6282 = vmatprep.subr.bf16.mxu1 %v15746_v23 }
 0x53e   :  { %v5166_v31 = vmax.f32 %v9268_v40, 0.0  ;;  %v4592_v29 = vpop.f32.mrb[139].mxu0  ;;  %v9269_v1 = vadd.f32 %v13891_v34, %v4590_v11  ;;  %v4092_v11 = vpop.f32.mrb[1].mxu1 }
 0x53f   :  { %v10457_v11 = vld [vmem:[%s15343_s2 + $0x90] sm:$0xff]  }
 0x540   :  { %v5723_v30 = vpack.c.bf16 %v5166_v31, %v5165_v35  ;;  %4802 = vmatmul.mubr.bf16.gmra.mrb[244].mxu0 %v10400_v4  ;;  %v5167_v13 = vmax.f32 %v9269_v1, 0.0  ;;  %v10406_v4 = vld [vmem:[%s15341_s0 + $0x7e8] ss:$16 sps:$4 sm:$0xff]   ;;  %v10409_v35 = vld [vmem:[%s15341_s0 + $0x80c] ss:$16 sps:$4 sm:$0xff]   ;;  %v13945_v31 = vpop.f32.mrb[2].mxu1  ;;  %6283 = vmatpush1.bf16.msra.mxu1 %v10457_v11 }
 0x541   :  { %4809 = vmatprep.mubr.bf16.mxu0 %v10401_v2  ;;  %6284 = vmatprep.subr.bf16.mxu1 %v15746_v23 }
 0x542   :  { %6150 = vmatprep.mubr.bf16.mxu1 %v5723_v30  ;;  %v4095_v30 = vpop.f32.mrb[3].mxu1 }
 0x543   :  { %v4595_v38 = vpop.f32.mrb[140].mxu0  ;;  %6151 = vmatmul.mubr.bf16.gmra.mrb[132].mxu1 %v13674_v36  ;;  %v10410_v30 = vld [vmem:[%s15341_s0 + $0x828] ss:$16 sps:$4 sm:$0xff]  }
 0x544   :  { %v9270_v59 = vadd.f32 %v13891_v34, %v4595_v38  ;;  %v4597_v27 = vpop.f32.mrb[141].mxu0 }
 0x545   :  { %v4598_v9 = vpop.f32.mrb[142].mxu0 }
 0x546   :  { %v5168_v10 = vmax.f32 %v9270_v59, 0.0  ;;  %v4600_v3 = vpop.f32.mrb[143].mxu0  ;;  %v9271_v36 = vadd.f32 %v13891_v34, %v4598_v9  ;;  %v3795_v59 = vadd.f32 %v13891_v34, %v13101_v55  ;;  %v10412_v55 = vld [vmem:[%s15341_s0 + $0x82c] ss:$16 sps:$4 sm:$0xff]  }
 0x548   :  { %v5727_v32 = vpack.c.bf16 %v5168_v10, %v5167_v13  ;;  %4810 = vmatmul.mubr.bf16.gmra.mrb[248].mxu0 %v10403_v5  ;;  %v13952_v5 = vpop.f32.mrb[4].mxu1  ;;  %v3798_v13 = vadd.f32 %v13891_v34, %v13106_v62  ;;  %v10407_v10 = vld [vmem:[%s15341_s0 + $0x808] ss:$16 sps:$4 sm:$0xff]   ;;  %v3803_v62 = vadd.f32 %v13891_v34, %v13111_v51 }
 0x549   :  { %4817 = vmatprep.mubr.bf16.mxu0 %v10404_v41  ;;  %v4100_v3 = vpop.f32.mrb[5].mxu1 }
 0x54a   :  { %6158 = vmatprep.mubr.bf16.mxu1 %v5727_v32  ;;  %v10464_v3 = vld [vmem:[%s15343_s2 + $0x98] sm:$0xff]  }
 0x54b   :  { %v4603_v22 = vpop.f32.mrb[144].mxu0  ;;  %6159 = vmatmul.mubr.bf16.gmra.mrb[136].mxu1 %v13684_v20  ;;  %v5169_v20 = vmax.f32 %v9271_v36, 0.0  ;;  %v13962_v36 = vpop.f32.mrb[6].mxu1 }
 0x54c   :  { %v9272_v40 = vadd.f32 %v13891_v34, %v4603_v22  ;;  %v4605_v12 = vpop.f32.mrb[145].mxu0  ;;  %6285 = vmatpush1.bf16.msra.mxu1 %v10464_v3 }
 0x54d   :  { %v4606_v2 = vpop.f32.mrb[146].mxu0  ;;  %v4103_v12 = vpop.f32.mrb[7].mxu1  ;;  %6286 = vmatprep.subr.bf16.mxu1 %v15746_v23 }
 0x54e   :  { %v5170_v29 = vmax.f32 %v9272_v40, 0.0  ;;  %v4608_v37 = vpop.f32.mrb[147].mxu0  ;;  %v9273_v38 = vadd.f32 %v13891_v34, %v4606_v2 }
 0x54f   :  { %v3806_v37 = vadd.f32 %v13891_v34, %v13116_v53 }
 0x550   :  { %v5731_v1 = vpack.c.bf16 %v5170_v29, %v5169_v20  ;;  %4818 = vmatmul.mubr.bf16.gmra.mrb[252].mxu0 %v10406_v4 }
 0x551   :  { %4825 = vmatprep.mubr.bf16.mxu0 %v10409_v35  ;;  %v13970_v35 = vpop.f32.mrb[8].mxu1 }
 0x552   :  { %6166 = vmatprep.mubr.bf16.mxu1 %v5731_v1  ;;  %v4108_v51 = vpop.f32.mrb[9].mxu1 }
 0x553   :  { %v4611_v27 = vpop.f32.mrb[0].mxu0  ;;  %6167 = vmatmul.mubr.bf16.gmra.mrb[140].mxu1 %v13694_v60  ;;  %v5171_v60 = vmax.f32 %v9273_v38, 0.0  ;;  %v10415_v38 = vld [vmem:[%s15341_s0 + $0x84c] ss:$16 sps:$4 sm:$0xff]  }
 0x554   :  { %v4612_v9 = vadd.f32 %v4611_v27, %v3795_v59  ;;  %v4613_v41 = vpop.f32.mrb[1].mxu0  ;;  %v13980_v59 = vpop.f32.mrb[10].mxu1 }
 0x555   :  { %v4614_v32 = vpop.f32.mrb[2].mxu0  ;;  %v4111_v53 = vpop.f32.mrb[11].mxu1 }
 0x556   :  { %v5172_v14 = vmax.f32 %v4612_v9, 0.0  ;;  %v4615_v22 = vadd.f32 %v4614_v32, %v3798_v13  ;;  %v4616_v40 = vpop.f32.mrb[3].mxu0 }
 0x557   :  { %v10413_v40 = vld [vmem:[%s15341_s0 + $0x848] ss:$16 sps:$4 sm:$0xff]  }
 0x558   :  { %v5735_v4 = vpack.c.bf16 %v5172_v14, %v5171_v60  ;;  %4826 = vmatmul.mubr.bf16.gmra.mrb[148].mxu0 %v10407_v10  ;;  %v3811_v10 = vadd.f32 %v13891_v34, %v13121_v58 }
 0x559   :  { %4833 = vmatprep.mubr.bf16.mxu0 %v10412_v55  ;;  %v13989_v55 = vpop.f32.mrb[12].mxu1 }
 0x55a   :  { %6174 = vmatprep.mubr.bf16.mxu1 %v5735_v4  ;;  %v4116_v58 = vpop.f32.mrb[13].mxu1  ;;  %v10418_v4 = vld [vmem:[%s15341_s0 + $0x86c] ss:$16 sps:$4 sm:$0xff]  }
 0x55b   :  { %v4619_v2 = vpop.f32.mrb[4].mxu0  ;;  %6175 = vmatmul.mubr.bf16.gmra.mrb[144].mxu1 %v13704_v28  ;;  %v5173_v28 = vmax.f32 %v4615_v22, 0.0  ;;  %v3814_v22 = vadd.f32 %v13891_v34, %v13126_v61 }
 0x55c   :  { %v4620_v20 = vadd.f32 %v4619_v2, %v3803_v62  ;;  %v4621_v29 = vpop.f32.mrb[5].mxu0  ;;  %v13999_v62 = vpop.f32.mrb[14].mxu1 }
 0x55d   :  { %v4622_v1 = vpop.f32.mrb[6].mxu0  ;;  %v4119_v61 = vpop.f32.mrb[15].mxu1 }
 0x55e   :  { %v5174_v27 = vmax.f32 %v4620_v20, 0.0  ;;  %v4623_v9 = vadd.f32 %v4622_v1, %v3806_v37  ;;  %v4624_v41 = vpop.f32.mrb[7].mxu0  ;;  %v3819_v37 = vadd.f32 %v13891_v34, %v13131_v57  ;;  %v14005_v51 = vpop.f32.mrb[16].mxu1  ;;  %v10421_v57 = vld [vmem:[%s15341_s0 + $0x88c] ss:$16 sps:$4 sm:$0xff]  }
 0x560   :  { %v5739_v13 = vpack.c.bf16 %v5174_v27, %v5173_v28  ;;  %4834 = vmatmul.mubr.bf16.gmra.mrb[152].mxu0 %v10410_v30  ;;  %v3822_v28 = vadd.f32 %v13891_v34, %v13136_v52  ;;  %v10416_v27 = vld [vmem:[%s15341_s0 + $0x868] ss:$16 sps:$4 sm:$0xff]   ;;  %v3827_v52 = vadd.f32 %v13891_v34, %v13141_v56 }
 0x561   :  { %4841 = vmatprep.mubr.bf16.mxu0 %v10415_v38 }
 0x562   :  { %6182 = vmatprep.mubr.bf16.mxu1 %v5739_v13 }
 0x563   :  { %v4627_v32 = vpop.f32.mrb[8].mxu0  ;;  %6183 = vmatmul.mubr.bf16.gmra.mrb[148].mxu1 %v13714_v18  ;;  %v5175_v18 = vmax.f32 %v4623_v9, 0.0  ;;  %v4124_v9 = vpop.f32.mrb[17].mxu1 }
 0x564   :  { %v4628_v60 = vadd.f32 %v4627_v32, %v3811_v10  ;;  %v4629_v14 = vpop.f32.mrb[9].mxu0  ;;  %v14015_v53 = vpop.f32.mrb[18].mxu1 }
 0x565   :  { %v4630_v12 = vpop.f32.mrb[10].mxu0  ;;  %v4127_v32 = vpop.f32.mrb[19].mxu1  ;;  %v10468_v14 = vld [vmem:[%s15343_s2 + $0xa0] sm:$0xff]  }
 0x566   :  { %v5176_v11 = vmax.f32 %v4628_v60, 0.0  ;;  %v4631_v2 = vadd.f32 %v4630_v12, %v3814_v22  ;;  %v4632_v20 = vpop.f32.mrb[11].mxu0  ;;  %6287 = vmatpush1.bf16.msra.mxu1 %v10468_v14 }
 0x567   :  { %6288 = vmatprep.subr.bf16.mxu1 %v15746_v23 }
 0x568   :  { %v5743_v29 = vpack.c.bf16 %v5176_v11, %v5175_v18  ;;  %4842 = vmatmul.mubr.bf16.gmra.mrb[156].mxu0 %v10413_v40  ;;  %v14023_v40 = vpop.f32.mrb[20].mxu1  ;;  %v10419_v18 = vld [vmem:[%s15341_s0 + $0x888] ss:$16 sps:$4 sm:$0xff]  }
 0x569   :  { %4849 = vmatprep.mubr.bf16.mxu0 %v10418_v4  ;;  %v3830_v4 = vadd.f32 %v13891_v34, %v13146_v54  ;;  %v4132_v56 = vpop.f32.mrb[21].mxu1 }
 0x56a   :  { %6190 = vmatprep.mubr.bf16.mxu1 %v5743_v29  ;;  %v14033_v20 = vpop.f32.mrb[22].mxu1  ;;  %v3846_v56 = vadd.f32 %v13891_v34, %v13166_v50  ;;  %v3851_v50 = vadd.f32 %v13891_v34, %v13171_v45 }
 0x56b   :  { %v4635_v30 = vpop.f32.mrb[12].mxu0  ;;  %6191 = vmatmul.mubr.bf16.gmra.mrb[152].mxu1 %v13724_v26  ;;  %v5177_v26 = vmax.f32 %v4631_v2, 0.0  ;;  %v10424_v2 = vld [vmem:[%s15341_s0 + $0x8ac] ss:$16 sps:$4 sm:$0xff]   ;;  %v4135_v54 = vpop.f32.mrb[23].mxu1 }
 0x56c   :  { %v4636_v1 = vadd.f32 %v4635_v30, %v3819_v37  ;;  %v4637_v38 = vpop.f32.mrb[13].mxu0 }
 0x56d   :  { %v4638_v41 = vpop.f32.mrb[14].mxu0 }
 0x56e   :  { %v5178_v13 = vmax.f32 %v4636_v1, 0.0  ;;  %v4639_v10 = vadd.f32 %v4638_v41, %v3822_v28  ;;  %v4640_v3 = vpop.f32.mrb[15].mxu0  ;;  %v3835_v1 = vadd.f32 %v13891_v34, %v13151_v47  ;;  %v14039_v28 = vpop.f32.mrb[24].mxu1  ;;  %v3838_v41 = vadd.f32 %v13891_v34, %v13156_v63  ;;  %v10427_v47 = vld [vmem:[%s15341_s0 + $0x8cc] ss:$16 sps:$4 sm:$0xff]  }
 0x56f   :  { %v10475_v63 = vld [vmem:[%s15343_s2 + $0xa8] sm:$0xff]  }
 0x570   :  { %v5747_v60 = vpack.c.bf16 %v5178_v13, %v5177_v26  ;;  %4850 = vmatmul.mubr.bf16.gmra.mrb[160].mxu0 %v10416_v27  ;;  %v4140_v26 = vpop.f32.mrb[25].mxu1  ;;  %6289 = vmatpush1.bf16.msra.mxu1 %v10475_v63 }
 0x571   :  { %4857 = vmatprep.mubr.bf16.mxu0 %v10421_v57  ;;  %v10422_v57 = vld [vmem:[%s15341_s0 + $0x8a8] ss:$16 sps:$4 sm:$0xff]   ;;  %6290 = vmatprep.subr.bf16.mxu1 %v15746_v23  ;;  %v3854_v26 = vadd.f32 %v13891_v34, %v13176_v49 }
 0x572   :  { %6198 = vmatprep.mubr.bf16.mxu1 %v5747_v60 }
 0x573   :  { %v4643_v22 = vpop.f32.mrb[16].mxu0  ;;  %6199 = vmatmul.mubr.bf16.gmra.mrb[156].mxu1 %v13734_v19  ;;  %v5179_v19 = vmax.f32 %v4639_v10, 0.0  ;;  %v14049_v10 = vpop.f32.mrb[26].mxu1 }
 0x574   :  { %v4644_v58 = vadd.f32 %v4643_v22, %v3827_v52  ;;  %v4645_v12 = vpop.f32.mrb[17].mxu0  ;;  %v4143_v52 = vpop.f32.mrb[27].mxu1  ;;  %v3843_v22 = vadd.f32 %v13891_v34, %v13161_v46  ;;  %v10430_v46 = vld [vmem:[%s15341_s0 + $0x8ec] ss:$16 sps:$4 sm:$0xff]  }
 0x575   :  { %v4646_v11 = vpop.f32.mrb[18].mxu0  ;;  %v14058_v12 = vpop.f32.mrb[28].mxu1 }
 0x576   :  { %v5180_v61 = vmax.f32 %v4644_v58, 0.0  ;;  %v4647_v29 = vadd.f32 %v4646_v11, %v3830_v4  ;;  %v4648_v37 = vpop.f32.mrb[19].mxu0  ;;  %v10425_v11 = vld [vmem:[%s15341_s0 + $0x8c8] ss:$16 sps:$4 sm:$0xff]  }
 0x578   :  { %v5751_v30 = vpack.c.bf16 %v5180_v61, %v5179_v19  ;;  %4858 = vmatmul.mubr.bf16.gmra.mrb[164].mxu0 %v10419_v18 }
 0x579   :  { %4865 = vmatprep.mubr.bf16.mxu0 %v10424_v2  ;;  %v4148_v2 = vpop.f32.mrb[29].mxu1 }
 0x57a   :  { %6206 = vmatprep.mubr.bf16.mxu1 %v5751_v30  ;;  %v14068_v61 = vpop.f32.mrb[30].mxu1 }
 0x57b   :  { %v4651_v38 = vpop.f32.mrb[20].mxu0  ;;  %6207 = vmatmul.mubr.bf16.gmra.mrb[160].mxu1 %v13744_v21  ;;  %v5181_v21 = vmax.f32 %v4647_v29, 0.0  ;;  %v4151_v30 = vpop.f32.mrb[31].mxu1 }
 0x57c   :  { %v4652_v27 = vadd.f32 %v4651_v38, %v3835_v1  ;;  %v4653_v9 = vpop.f32.mrb[21].mxu0  ;;  %v10482_v38 = vld [vmem:[%s15343_s2 + $0xb0] sm:$0xff]  }
 0x57d   :  { %v4654_v13 = vpop.f32.mrb[22].mxu0  ;;  %v14076_v9 = vpop.f32.mrb[32].mxu1  ;;  %6291 = vmatpush1.bf16.msra.mxu1 %v10482_v38 }
 0x57e   :  { %v5182_v3 = vmax.f32 %v4652_v27, 0.0  ;;  %v4655_v32 = vadd.f32 %v4654_v13, %v3838_v41  ;;  %v4656_v60 = vpop.f32.mrb[23].mxu0  ;;  %v10428_v13 = vld [vmem:[%s15341_s0 + $0x8e8] ss:$16 sps:$4 sm:$0xff]   ;;  %v4156_v45 = vpop.f32.mrb[33].mxu1  ;;  %6292 = vmatprep.subr.bf16.mxu1 %v15746_v23 }
 0x580   :  { %v5755_v14 = vpack.c.bf16 %v5182_v3, %v5181_v21  ;;  %4866 = vmatmul.mubr.bf16.gmra.mrb[168].mxu0 %v10422_v57  ;;  %v10433_v21 = vld [vmem:[%s15341_s0 + $0x90c] ss:$16 sps:$4 sm:$0xff]   ;;  %v14086_v3 = vpop.f32.mrb[34].mxu1 }
 0x581   :  { %4873 = vmatprep.mubr.bf16.mxu0 %v10427_v47  ;;  %v4159_v49 = vpop.f32.mrb[35].mxu1 }
 0x582   :  { %6214 = vmatprep.mubr.bf16.mxu1 %v5755_v14  ;;  %v3859_v14 = vadd.f32 %v13891_v34, %v13181_v44  ;;  %v10436_v44 = vld [vmem:[%s15341_s0 + $0x92c] ss:$16 sps:$4 sm:$0xff]  }
 0x583   :  { %v4659_v58 = vpop.f32.mrb[24].mxu0  ;;  %6215 = vmatmul.mubr.bf16.gmra.mrb[164].mxu1 %v13754_v33  ;;  %v5183_v33 = vmax.f32 %v4655_v32, 0.0 }
 0x584   :  { %v4660_v4 = vadd.f32 %v4659_v58, %v3843_v22  ;;  %v4661_v18 = vpop.f32.mrb[25].mxu0  ;;  %v14092_v58 = vpop.f32.mrb[36].mxu1 }
 0x585   :  { %v4662_v19 = vpop.f32.mrb[26].mxu0  ;;  %v4164_v2 = vpop.f32.mrb[37].mxu1 }
 0x586   :  { %v5184_v29 = vmax.f32 %v4660_v4, 0.0  ;;  %v4663_v37 = vadd.f32 %v4662_v19, %v3846_v56  ;;  %v4664_v54 = vpop.f32.mrb[27].mxu0  ;;  %v3862_v56 = vadd.f32 %v13891_v34, %v13186_v48  ;;  %v10486_v48 = vld [vmem:[%s15343_s2 + $0xb8] sm:$0xff]  }
 0x587   :  { %6293 = vmatpush1.bf16.msra.mxu1 %v10486_v48 }
 0x588   :  { %v5759_v1 = vpack.c.bf16 %v5184_v29, %v5183_v33  ;;  %4874 = vmatmul.mubr.bf16.gmra.mrb[172].mxu0 %v10425_v11  ;;  %v10431_v11 = vld [vmem:[%s15341_s0 + $0x908] ss:$16 sps:$4 sm:$0xff]   ;;  %6294 = vmatprep.subr.bf16.mxu1 %v15746_v23 }
 0x589   :  { %4881 = vmatprep.mubr.bf16.mxu0 %v10430_v46  ;;  %v14102_v46 = vpop.f32.mrb[38].mxu1 }
 0x58a   :  { %6222 = vmatprep.mubr.bf16.mxu1 %v5759_v1  ;;  %v4167_v54 = vpop.f32.mrb[39].mxu1  ;;  %v3867_v1 = vadd.f32 %v13891_v34, %v13191_v43  ;;  %v10439_v43 = vld [vmem:[%s15341_s0 + $0x94c] ss:$16 sps:$4 sm:$0xff]  }
 0x58b   :  { %v4667_v27 = vpop.f32.mrb[28].mxu0  ;;  %6223 = vmatmul.mubr.bf16.gmra.mrb[168].mxu1 %v13764_v25  ;;  %v5185_v25 = vmax.f32 %v4663_v37, 0.0  ;;  %v14111_v38 = vpop.f32.mrb[40].mxu1 }
 0x58c   :  { %v4668_v41 = vadd.f32 %v4667_v27, %v3851_v50  ;;  %v4669_v57 = vpop.f32.mrb[29].mxu0 }
 0x58d   :  { %v4670_v47 = vpop.f32.mrb[30].mxu0  ;;  %v3870_v57 = vadd.f32 %v13891_v34, %v13196_v39  ;;  %v10493_v39 = vld [vmem:[%s15343_s2 + $0xc0] sm:$0xff]  }
 0x58e   :  { %v5186_v32 = vmax.f32 %v4668_v41, 0.0  ;;  %v4671_v60 = vadd.f32 %v4670_v47, %v3854_v26  ;;  %v4672_v63 = vpop.f32.mrb[31].mxu0  ;;  %v10434_v26 = vld [vmem:[%s15341_s0 + $0x928] ss:$16 sps:$4 sm:$0xff]   ;;  %6295 = vmatpush1.bf16.msra.mxu1 %v10493_v39 }
 0x58f   :  { %6296 = vmatprep.subr.bf16.mxu1 %v15746_v23 }
 0x590   :  { %v5763_v52 = vpack.c.bf16 %v5186_v32, %v5185_v25  ;;  %4882 = vmatmul.mubr.bf16.gmra.mrb[176].mxu0 %v10428_v13  ;;  %v4172_v13 = vpop.f32.mrb[41].mxu1 }
 0x591   :  { %4889 = vmatprep.mubr.bf16.mxu0 %v10433_v21  ;;  %v14121_v47 = vpop.f32.mrb[42].mxu1 }
 0x592   :  { %6230 = vmatprep.mubr.bf16.mxu1 %v5763_v52 }
 0x593   :  { %v4675_v22 = vpop.f32.mrb[32].mxu0  ;;  %6231 = vmatmul.mubr.bf16.gmra.mrb[172].mxu1 %v13774_v16  ;;  %v5187_v16 = vmax.f32 %v4671_v60, 0.0  ;;  %v4175_v60 = vpop.f32.mrb[43].mxu1 }
 0x594   :  { %v4676_v4 = vadd.f32 %v4675_v22, %v3859_v14  ;;  %v4677_v18 = vpop.f32.mrb[33].mxu0  ;;  %v14127_v52 = vpop.f32.mrb[44].mxu1  ;;  %v10497_v60 = vld [vmem:[%s15343_s2 + $0xc8] sm:$0xff]  }
 0x595   :  { %v4678_v19 = vpop.f32.mrb[34].mxu0  ;;  %v4180_v18 = vpop.f32.mrb[45].mxu1  ;;  %6297 = vmatpush1.bf16.msra.mxu1 %v10497_v60 }
 0x596   :  { %v5188_v33 = vmax.f32 %v4676_v4, 0.0  ;;  %v4679_v29 = vadd.f32 %v4678_v19, %v3862_v56  ;;  %v4680_v37 = vpop.f32.mrb[35].mxu0  ;;  %v10437_v4 = vld [vmem:[%s15341_s0 + $0x948] ss:$16 sps:$4 sm:$0xff]   ;;  %v14136_v2 = vpop.f32.mrb[46].mxu1  ;;  %6298 = vmatprep.subr.bf16.mxu1 %v15746_v23 }
 0x598   :  { %v5767_v30 = vpack.c.bf16 %v5188_v33, %v5187_v16  ;;  %4890 = vmatmul.mubr.bf16.gmra.mrb[180].mxu0 %v10431_v11  ;;  %v10442_v11 = vld [vmem:[%s15341_s0 + $0x96c] ss:$16 sps:$4 sm:$0xff]   ;;  %v4183_v16 = vpop.f32.mrb[47].mxu1 }
 0x599   :  { %4897 = vmatprep.mubr.bf16.mxu0 %v10436_v44  ;;  %v14141_v48 = vpop.f32.mrb[48].mxu1 }
 0x59a   :  { %6238 = vmatprep.mubr.bf16.mxu1 %v5767_v30 }
 0x59b   :  { %v4683_v50 = vpop.f32.mrb[36].mxu0  ;;  %6239 = vmatmul.mubr.bf16.gmra.mrb[176].mxu1 %v13784_v24  ;;  %v5189_v24 = vmax.f32 %v4679_v29, 0.0 }
 0x59c   :  { %v4684_v27 = vadd.f32 %v4683_v50, %v3867_v1  ;;  %v4685_v41 = vpop.f32.mrb[37].mxu0  ;;  %v10440_v1 = vld [vmem:[%s15341_s0 + $0x968] ss:$16 sps:$4 sm:$0xff]   ;;  %v4188_v50 = vpop.f32.mrb[49].mxu1 }
 0x59d   :  { %v4686_v45 = vpop.f32.mrb[38].mxu0  ;;  %v10445_v41 = vld [vmem:[%s15341_s0 + $0x98c] ss:$16 sps:$4 sm:$0xff]  }
 0x59e   :  { %v5190_v21 = vmax.f32 %v4684_v27, 0.0  ;;  %v4687_v25 = vadd.f32 %v4686_v45, %v3870_v57  ;;  %v4688_v32 = vpop.f32.mrb[39].mxu0  ;;  %v14150_v57 = vpop.f32.mrb[50].mxu1 }
 0x5a0   :  { %v5771_v63 = vpack.c.bf16 %v5190_v21, %v5189_v24  ;;  %4898 = vmatmul.mubr.bf16.gmra.mrb[184].mxu0 %v10434_v26 }
 0x5a1   :  { %4905 = vmatprep.mubr.bf16.mxu0 %v10439_v43  ;;  %v4191_v43 = vpop.f32.mrb[51].mxu1 }
 0x5a2   :  { %6246 = vmatprep.mubr.bf16.mxu1 %v5771_v63  ;;  %v14159_v39 = vpop.f32.mrb[52].mxu1 }
 0x5a3   :  { %v4691_v49 = vpop.f32.mrb[188].mxu0  ;;  %6247 = vmatmul.mubr.bf16.gmra.mrb[180].mxu1 %v13794_v7  ;;  %v5191_v7 = vmax.f32 %v4687_v25, 0.0  ;;  %v9248_v25 = vadd.f32 %v13891_v34, %v13816_v17  ;;  %v10443_v17 = vld [vmem:[%s15341_s0 + $0x988] ss:$16 sps:$4 sm:$0xff]  }
 0x5a4   :  { %v9314_v14 = vadd.f32 %v13891_v34, %v4691_v49  ;;  %v4693_v22 = vpop.f32.mrb[189].mxu0 }
 0x5a5   :  { %v4694_v56 = vpop.f32.mrb[190].mxu0  ;;  %v4196_v22 = vpop.f32.mrb[53].mxu1 }
 0x5a6   :  { %v5192_v19 = vmax.f32 %v9314_v14, 0.0  ;;  %v4696_v44 = vpop.f32.mrb[191].mxu0  ;;  %v9315_v29 = vadd.f32 %v13891_v34, %v4694_v56  ;;  %v10449_v56 = vld [vmem:[%s15341_s0 + $0x9ac] ss:$16 sps:$4 sm:$0xff]  }
 0x5a8   :  { %v5775_v33 = vpack.c.bf16 %v5192_v19, %v5191_v7  ;;  %4906 = vmatmul.mubr.bf16.gmra.mrb[40].mxu0 %v10437_v4  ;;  %v5193_v26 = vmax.f32 %v9315_v29, 0.0  ;;  %v5146_v4 = vmax.f32 %v9248_v25, 0.0 }
 0x5a9   :  { %4913 = vmatprep.mubr.bf16.mxu0 %v10442_v11  ;;  %v14168_v11 = vpop.f32.mrb[54].mxu1 }
 0x5aa   :  { %6254 = vmatprep.mubr.bf16.mxu1 %v5775_v33  ;;  %v4199_v19 = vpop.f32.mrb[55].mxu1  ;;  %v5782_v33 = vpack.c.bf16 %v5146_v4, %v5146_v4 }
 0x5ab   :  { %v4699_v37 = vpop.f32.mrb[192].mxu0  ;;  %6255 = vmatmul.mubr.bf16.gmra.mrb[184].mxu1 %v13804_v15 }
 0x5ac   :  { %v9316_v54 = vadd.f32 %v13891_v34, %v4699_v37  ;;  %v4701_v30 = vpop.f32.mrb[193].mxu0  ;;  %v10504_v37 = vld [vmem:[%s15343_s2 + $0xd0] sm:$0xff]  }
 0x5ad   :  { %v4702_v27 = vpop.f32.mrb[194].mxu0  ;;  %v14177_v30 = vpop.f32.mrb[56].mxu1  ;;  %6299 = vmatpush1.bf16.msra.mxu1 %v10504_v37  ;;  %v10508_v37 = vld [vmem:[%s15343_s2 + $0xd8] sm:$0xff]  }
 0x5ae   :  { %v5194_v13 = vmax.f32 %v9316_v54, 0.0  ;;  %v9317_v15 = vadd.f32 %v13891_v34, %v4702_v27  ;;  %v4704_v45 = vpop.f32.mrb[195].mxu0  ;;  %v10447_v27 = vld [vmem:[%s15341_s0 + $0x9a8] ss:$16 sps:$4 sm:$0xff]   ;;  %6300 = vmatprep.subr.bf16.mxu1 %v15746_v23 }
 0x5b0   :  { %v5779_v24 = vpack.c.bf16 %v5194_v13, %v5193_v26  ;;  %v5195_v21 = vmax.f32 %v9317_v15, 0.0  ;;  %4914 = vmatmul.mubr.bf16.gmra.mrb[44].mxu0 %v10440_v1  ;;  %v10452_v13 = vld [vmem:[%s15341_s0 + $0x9cc] ss:$16 sps:$4 sm:$0xff]  }
 0x5b1   :  { %4921 = vmatprep.mubr.bf16.mxu0 %v10445_v41  ;;  %v4204_v41 = vpop.f32.mrb[57].mxu1  ;;  %6301 = vmatpush1.bf16.msra.mxu1 %v10508_v37 }
 0x5b2   :  { %v5783_v32 = vpack.c.bf16 %v5195_v21, %v5195_v21  ;;  %6262 = vmatprep.mubr.bf16.mxu1 %v5779_v24  ;;  %v14186_v15 = vpop.f32.mrb[58].mxu1  ;;  %v10454_v41 = vld [vmem:[%s15341_s0 + $0x9e8] ss:$16 sps:$4 sm:$0xff]   ;;  %6302 = vmatprep.subr.bf16.mxu1 %v15746_v23 }
 0x5b3   :  { %v4707_v63 = vpop.f32.mrb[196].mxu0  ;;  %6263 = vmatmul.mubr.bf16.gmra.mrb[188].mxu1 %v13814_v6  ;;  %v4207_v24 = vpop.f32.mrb[59].mxu1 }
 0x5b4   :  { %v9318_v49 = vadd.f32 %v13891_v34, %v4707_v63  ;;  %v4709_v14 = vpop.f32.mrb[197].mxu0  ;;  %6270 = vmatprep.mubr.bf16.mxu1 %v5783_v32  ;;  %v14192_v63 = vpop.f32.mrb[60].mxu1 }
 0x5b5   :  { %v4710_v18 = vpop.f32.mrb[198].mxu0  ;;  %v4212_v22 = vpop.f32.mrb[61].mxu1 }
 0x5b6   :  { %v9319_v6 = vadd.f32 %v13891_v34, %v4710_v18  ;;  %v4712_v7 = vpop.f32.mrb[199].mxu0  ;;  %v5196_v44 = vmax.f32 %v9318_v49, 0.0  ;;  %v10456_v18 = vld [vmem:[%s15341_s0 + $0x9ec] ss:$16 sps:$4 sm:$0xff]  }
 0x5b8   :  { %v5197_v16 = vmax.f32 %v9319_v6, 0.0  ;;  %4922 = vmatmul.mubr.bf16.gmra.mrb[48].mxu0 %v10443_v17  ;;  %v10450_v17 = vld [vmem:[%s15341_s0 + $0x9c8] ss:$16 sps:$4 sm:$0xff]  }
 0x5b9   :  { %4929 = vmatprep.mubr.bf16.mxu0 %v10449_v56  ;;  %v14201_v56 = vpop.f32.mrb[62].mxu1 }
 0x5ba   :  { %v14172_v29 = vpack.c.bf16 %v5197_v16, %v5196_v44  ;;  %15747 = vst [vmem:[#allocation406_spill] sm:$0xff] %v14201_v56  ;;  %v4215_v19 = vpop.f32.mrb[63].mxu1 }
 0x5bb   :  { %v4715_v54 = vpop.f32.mrb[200].mxu0  ;;  %6271 = vmatmul.mubr.bf16.gmra.mrb[192].mxu1 %v5782_v33 }
 0x5bc   :  { %v9320_v1 = vadd.f32 %v13891_v34, %v4715_v54  ;;  %v4717_v50 = vpop.f32.mrb[201].mxu0 }
 0x5bd   :  { %v4718_v26 = vpop.f32.mrb[202].mxu0 }
 0x5be   :  { %v9321_v45 = vadd.f32 %v13891_v34, %v4718_v26  ;;  %v4720_v43 = vpop.f32.mrb[203].mxu0  ;;  %v5198_v21 = vmax.f32 %v9320_v1, 0.0  ;;  %v14209_v1 = vpop.f32.mrb[64].mxu1 }
 0x5bf   :  { %15748 = vst [vmem:[#allocation407_spill] sm:$0xff] %v14209_v1  ;;  %v4220_v26 = vpop.f32.mrb[65].mxu1 }
 0x5c0   :  { %v5199_v25 = vmax.f32 %v9321_v45, 0.0  ;;  %4930 = vmatmul.mubr.bf16.gmra.mrb[52].mxu0 %v10447_v27  ;;  %v10460_v45 = vld [vmem:[%s15341_s0 + $0xa0c] ss:$16 sps:$4 sm:$0xff]   ;;  %v14218_v43 = vpop.f32.mrb[66].mxu1 }
 0x5c1   :  { %4937 = vmatprep.mubr.bf16.mxu0 %v10452_v13  ;;  %15749 = vst [vmem:[#allocation408_spill] sm:$0xff] %v14218_v43 }
 0x5c2   :  { %v14190_v32 = vpack.c.bf16 %v5199_v25, %v5198_v21  ;;  %v4223_v25 = vpop.f32.mrb[67].mxu1 }
 0x5c3   :  { %v4723_v60 = vpop.f32.mrb[204].mxu0 }
 0x5c4   :  { %v9322_v49 = vadd.f32 %v13891_v34, %v4723_v60  ;;  %v4725_v14 = vpop.f32.mrb[205].mxu0 }
 0x5c5   :  { %v4726_v4 = vpop.f32.mrb[206].mxu0 }
 0x5c6   :  { %v9323_v6 = vadd.f32 %v13891_v34, %v4726_v4  ;;  %v4728_v7 = vpop.f32.mrb[207].mxu0  ;;  %v5200_v44 = vmax.f32 %v9322_v49, 0.0  ;;  %v14227_v4 = vpop.f32.mrb[68].mxu1 }
 0x5c7   :  { %15750 = vst [vmem:[#allocation409_spill] sm:$0xff] %v14227_v4  ;;  %v10458_v7 = vld [vmem:[%s15341_s0 + $0xa08] ss:$16 sps:$4 sm:$0xff]   ;;  %v4228_v19 = vpop.f32.mrb[69].mxu1 }
 0x5c8   :  { %v5201_v16 = vmax.f32 %v9323_v6, 0.0  ;;  %4938 = vmatmul.mubr.bf16.gmra.mrb[56].mxu0 %v10450_v17  ;;  %v10515_v17 = vld [vmem:[%s15343_s2 + $0xe0] sm:$0xff]   ;;  %v14236_v37 = vpop.f32.mrb[70].mxu1 }
 0x5c9   :  { %4945 = vmatprep.mubr.bf16.mxu0 %v10456_v18  ;;  %6303 = vmatpush1.bf16.msra.mxu1 %v10515_v17  ;;  %15751 = vst [vmem:[#allocation410_spill] sm:$0xff] %v14236_v37 }
 0x5ca   :  { %v14204_v33 = vpack.c.bf16 %v5201_v16, %v5200_v44  ;;  %v10463_v16 = vld [vmem:[%s15341_s0 + $0xa2c] ss:$16 sps:$4 sm:$0xff]   ;;  %6304 = vmatprep.subr.bf16.mxu1 %v15746_v23 }
 0x5cb   :  { %v4731_v54 = vpop.f32.mrb[208].mxu0 }
 0x5cc   :  { %v9324_v50 = vadd.f32 %v13891_v34, %v4731_v54  ;;  %v4733_v27 = vpop.f32.mrb[209].mxu0 }
 0x5cd   :  { %v4734_v13 = vpop.f32.mrb[210].mxu0  ;;  %v4231_v27 = vpop.f32.mrb[71].mxu1 }
 0x5ce   :  { %v9325_v24 = vadd.f32 %v13891_v34, %v4734_v13  ;;  %v4736_v21 = vpop.f32.mrb[211].mxu0  ;;  %v5202_v60 = vmax.f32 %v9324_v50, 0.0 }
 0x5d0   :  { %v5203_v49 = vmax.f32 %v9325_v24, 0.0  ;;  %4946 = vmatmul.mubr.bf16.gmra.mrb[60].mxu0 %v10454_v41  ;;  %v14242_v24 = vpop.f32.mrb[72].mxu1 }
 0x5d1   :  { %4953 = vmatprep.mubr.bf16.mxu0 %v10460_v45  ;;  %15752 = vst [vmem:[#allocation411_spill] sm:$0xff] %v14242_v24 }
 0x5d2   :  { %v14222_v14 = vpack.c.bf16 %v5203_v49, %v5202_v60  ;;  %v10461_v60 = vld [vmem:[%s15341_s0 + $0xa28] ss:$16 sps:$4 sm:$0xff]   ;;  %v4236_v49 = vpop.f32.mrb[73].mxu1 }
 0x5d3   :  { %v4739_v22 = vpop.f32.mrb[212].mxu0  ;;  %v10471_v49 = vld [vmem:[%s15341_s0 + $0xa6c] ss:$16 sps:$4 sm:$0xff]  }
 0x5d4   :  { %v9326_v18 = vadd.f32 %v13891_v34, %v4739_v22  ;;  %v4741_v6 = vpop.f32.mrb[213].mxu0  ;;  %v10467_v22 = vld [vmem:[%s15341_s0 + $0xa4c] ss:$16 sps:$4 sm:$0xff]  }
 0x5d5   :  { %v4742_v44 = vpop.f32.mrb[214].mxu0 }
 0x5d6   :  { %v9327_v54 = vadd.f32 %v13891_v34, %v4742_v44  ;;  %v4744_v50 = vpop.f32.mrb[215].mxu0  ;;  %v5204_v41 = vmax.f32 %v9326_v18, 0.0  ;;  %v14251_v18 = vpop.f32.mrb[74].mxu1 }
 0x5d7   :  { %15753 = vst [vmem:[#allocation412_spill] sm:$0xff] %v14251_v18  ;;  %v4239_v19 = vpop.f32.mrb[75].mxu1  ;;  %v10522_v50 = vld [vmem:[%s15343_s2 + $0xe8] sm:$0xff]  }
 0x5d8   :  { %v5205_v26 = vmax.f32 %v9327_v54, 0.0  ;;  %4954 = vmatmul.mubr.bf16.gmra.mrb[64].mxu0 %v10458_v7  ;;  %6305 = vmatpush1.bf16.msra.mxu1 %v10522_v50 }
 0x5d9   :  { %4961 = vmatprep.mubr.bf16.mxu0 %v10463_v16  ;;  %6306 = vmatprep.subr.bf16.mxu1 %v15746_v23 }
 0x5da   :  { %v14240_v13 = vpack.c.bf16 %v5205_v26, %v5204_v41  ;;  %v14259_v41 = vpop.f32.mrb[76].mxu1 }
 0x5db   :  { %v4747_v45 = vpop.f32.mrb[216].mxu0  ;;  %15754 = vst [vmem:[#allocation413_spill] sm:$0xff] %v14259_v41 }
 0x5dc   :  { %v9328_v21 = vadd.f32 %v13891_v34, %v4747_v45  ;;  %v4749_v25 = vpop.f32.mrb[217].mxu0 }
 0x5dd   :  { %v4750_v17 = vpop.f32.mrb[218].mxu0  ;;  %v10465_v25 = vld [vmem:[%s15341_s0 + $0xa48] ss:$16 sps:$4 sm:$0xff]  }
 0x5de   :  { %v9329_v6 = vadd.f32 %v13891_v34, %v4750_v17  ;;  %v4752_v7 = vpop.f32.mrb[219].mxu0  ;;  %v5206_v44 = vmax.f32 %v9328_v21, 0.0  ;;  %v4244_v21 = vpop.f32.mrb[77].mxu1 }
 0x5df   :  { %v14268_v17 = vpop.f32.mrb[78].mxu1 }
 0x5e0   :  { %v5207_v16 = vmax.f32 %v9329_v6, 0.0  ;;  %4962 = vmatmul.mubr.bf16.gmra.mrb[68].mxu0 %v10461_v60  ;;  %15755 = vst [vmem:[#allocation414_spill] sm:$0xff] %v14268_v17  ;;  %v4247_v7 = vpop.f32.mrb[79].mxu1 }
 0x5e1   :  { %4969 = vmatprep.mubr.bf16.mxu0 %v10467_v22 }
 0x5e2   :  { %v14254_v54 = vpack.c.bf16 %v5207_v16, %v5206_v44 }
 0x5e3   :  { %v4755_v27 = vpop.f32.mrb[220].mxu0 }
 0x5e4   :  { %v9330_v26 = vadd.f32 %v13891_v34, %v4755_v27  ;;  %v4757_v45 = vpop.f32.mrb[221].mxu0  ;;  %v14274_v27 = vpop.f32.mrb[80].mxu1 }
 0x5e5   :  { %v4758_v60 = vpop.f32.mrb[222].mxu0  ;;  %15756 = vst [vmem:[#allocation415_spill] sm:$0xff] %v14274_v27  ;;  %v4252_v8 = vpop.f32.mrb[81].mxu1 }
 0x5e6   :  { %v9331_v22 = vadd.f32 %v13891_v34, %v4758_v60  ;;  %v4760_v6 = vpop.f32.mrb[223].mxu0  ;;  %v5208_v19 = vmax.f32 %v9330_v26, 0.0  ;;  %v10474_v26 = vld [vmem:[%s15341_s0 + $0xa8c] ss:$16 sps:$4 sm:$0xff]  }
 0x5e7   :  { %v10523_v6 = vld [vmem:[%s15343_s2 + $0xf0] sm:$0xff]  }
 0x5e8   :  { %v5209_v44 = vmax.f32 %v9331_v22, 0.0  ;;  %4970 = vmatmul.mubr.bf16.gmra.mrb[72].mxu0 %v10465_v25  ;;  %v14283_v25 = vpop.f32.mrb[82].mxu1  ;;  %6307 = vmatpush1.bf16.msra.mxu1 %v10523_v6 }
 0x5e9   :  { %4977 = vmatprep.mubr.bf16.mxu0 %v10471_v49  ;;  %15757 = vst [vmem:[#allocation416_spill] sm:$0xff] %v14283_v25  ;;  %v4255_v7 = vpop.f32.mrb[83].mxu1  ;;  %6308 = vmatprep.subr.bf16.mxu1 %v15746_v23 }
 0x5ea   :  { %v14272_v16 = vpack.c.bf16 %v5209_v44, %v5208_v19 }
 0x5eb   :  { %v4763_v50 = vpop.f32.mrb[224].mxu0 }
 0x5ec   :  { %v9332_v45 = vadd.f32 %v13891_v34, %v4763_v50  ;;  %v4765_v21 = vpop.f32.mrb[225].mxu0 }
 0x5ed   :  { %v4766_v60 = vpop.f32.mrb[226].mxu0  ;;  %v14292_v21 = vpop.f32.mrb[84].mxu1 }
 0x5ee   :  { %v9333_v49 = vadd.f32 %v13891_v34, %v4766_v60  ;;  %v4768_v22 = vpop.f32.mrb[227].mxu0  ;;  %v5210_v19 = vmax.f32 %v9332_v45, 0.0  ;;  %15758 = vst [vmem:[#allocation417_spill] sm:$0xff] %v14292_v21  ;;  %v14297_v34 = vld [vmem:[%s15345_s4] ss:$0 sm:$0xff]  ;;  %v4260_v45 = vpop.f32.mrb[85].mxu1 }
 0x5ef   :  { %v14306_v6 = vpop.f32.mrb[86].mxu1 }
 0x5f0   :  { %v5211_v44 = vmax.f32 %v9333_v49, 0.0  ;;  %4978 = vmatmul.mubr.bf16.gmra.mrb[76].mxu0 %v10469_v0  ;;  %v10472_v0 = vld [vmem:[%s15341_s0 + $0xa88] ss:$16 sps:$4 sm:$0xff]   ;;  %v10478_v49 = vld [vmem:[%s15341_s0 + $0xaac] ss:$16 sps:$4 sm:$0xff]   ;;  %15759 = vst [vmem:[#allocation418_spill] sm:$0xff] %v14306_v6 }
 0x5f1   :  { %4985 = vmatprep.mubr.bf16.mxu0 %v10474_v26 }
 0x5f2   :  { %v14290_v8 = vpack.c.bf16 %v5211_v44, %v5210_v19  ;;  %v4263_v44 = vpop.f32.mrb[87].mxu1 }
 0x5f3   :  { %v4771_v50 = vpop.f32.mrb[228].mxu0  ;;  %v14314_v25 = vpop.f32.mrb[88].mxu1 }
 0x5f4   :  { %v9334_v60 = vadd.f32 %v14297_v34, %v4771_v50  ;;  %v4773_v22 = vpop.f32.mrb[229].mxu0  ;;  %v10524_v50 = vld [vmem:[%s15343_s2 + $0xf8] sm:$0xff]   ;;  %15760 = vst [vmem:[#allocation419_spill] sm:$0xff] %v14314_v25 }
 0x5f5   :  { %v4774_v26 = vpop.f32.mrb[230].mxu0  ;;  %6309 = vmatpush1.bf16.msra.mxu1 %v10524_v50 }
 0x5f6   :  { %v9335_v7 = vadd.f32 %v14297_v34, %v4774_v26  ;;  %v4776_v19 = vpop.f32.mrb[231].mxu0  ;;  %v5212_v23 = vmax.f32 %v9334_v60, 0.0  ;;  %v10476_v60 = vld [vmem:[%s15341_s0 + $0xaa8] ss:$16 sps:$4 sm:$0xff]   ;;  %v4268_v26 = vpop.f32.mrb[89].mxu1 }
 0x5f8   :  { %v5213_v21 = vmax.f32 %v9335_v7, 0.0  ;;  %4986 = vmatmul.mubr.bf16.gmra.mrb[80].mxu0 %v10472_v0  ;;  %v10481_v7 = vld [vmem:[%s15341_s0 + $0xacc] ss:$16 sps:$4 sm:$0xff]  }
 0x5f9   :  { %4993 = vmatprep.mubr.bf16.mxu0 %v10478_v49  ;;  %v14323_v49 = vpop.f32.mrb[90].mxu1 }
 0x5fa   :  { %v14312_v22 = vpack.c.bf16 %v5213_v21, %v5212_v23  ;;  %15761 = vst [vmem:[#allocation420_spill] sm:$0xff] %v14323_v49  ;;  %v4271_v19 = vpop.f32.mrb[91].mxu1  ;;  %v10479_v49 = vld [vmem:[%s15341_s0 + $0xac8] ss:$16 sps:$4 sm:$0xff]  }
 0x5fb   :  { %v4779_v45 = vpop.f32.mrb[232].mxu0  ;;  %v14328_v25 = vpop.f32.mrb[92].mxu1 }
 0x5fc   :  { %v9336_v6 = vadd.f32 %v14297_v34, %v4779_v45  ;;  %v4781_v27 = vpop.f32.mrb[233].mxu0  ;;  %15762 = vst [vmem:[#allocation421_spill] sm:$0xff] %v14328_v25  ;;  %v4276_v41 = vpop.f32.mrb[93].mxu1  ;;  %v10483_v25 = vld [vmem:[%s15341_s0 + $0xae8] ss:$16 sps:$4 sm:$0xff]  }
 0x5fd   :  { %v4782_v0 = vpop.f32.mrb[234].mxu0 }
 0x5fe   :  { %v9337_v23 = vadd.f32 %v14297_v34, %v4782_v0  ;;  %v4784_v21 = vpop.f32.mrb[235].mxu0  ;;  %v5214_v44 = vmax.f32 %v9336_v6, 0.0  ;;  %v10485_v6 = vld [vmem:[%s15341_s0 + $0xaec] ss:$16 sps:$4 sm:$0xff]  }
 0x600   :  { %v5215_v50 = vmax.f32 %v9337_v23, 0.0  ;;  %4994 = vmatmul.mubr.bf16.gmra.mrb[84].mxu0 %v10476_v60  ;;  %v14337_v60 = vpop.f32.mrb[94].mxu1 }
 0x601   :  { %5001 = vmatprep.mubr.bf16.mxu0 %v10481_v7  ;;  %15763 = vst [vmem:[#allocation422_spill] sm:$0xff] %v14337_v60  ;;  %v4279_v21 = vpop.f32.mrb[95].mxu1 }
 0x602   :  { %v14326_v27 = vpack.c.bf16 %v5215_v50, %v5214_v44 }
 0x603   :  { %v4787_v45 = vpop.f32.mrb[236].mxu0 }
 0x604   :  { %v9338_v26 = vadd.f32 %v14297_v34, %v4787_v45  ;;  %v4789_v17 = vpop.f32.mrb[237].mxu0 }
 0x605   :  { %v4790_v0 = vpop.f32.mrb[238].mxu0 }
 0x606   :  { %v9339_v7 = vadd.f32 %v14297_v34, %v4790_v0  ;;  %v4792_v23 = vpop.f32.mrb[239].mxu0  ;;  %v5216_v19 = vmax.f32 %v9338_v26, 0.0  ;;  %v10489_v0 = vld [vmem:[%s15341_s0 + $0xb0c] ss:$16 sps:$4 sm:$0xff]  }
 0x608   :  { %v5217_v44 = vmax.f32 %v9339_v7, 0.0  ;;  %5002 = vmatmul.mubr.bf16.gmra.mrb[88].mxu0 %v10479_v49 }
 0x609   :  { %5009 = vmatprep.mubr.bf16.mxu0 %v10485_v6 }
 0x60a   :  { %v14340_v17 = vpack.c.bf16 %v5217_v44, %v5216_v19 }
 0x60b   :  { %v4795_v50 = vpop.f32.mrb[240].mxu0 }
 0x60c   :  { %v9340_v41 = vadd.f32 %v14297_v34, %v4795_v50  ;;  %v4797_v45 = vpop.f32.mrb[241].mxu0  ;;  %v10487_v50 = vld [vmem:[%s15341_s0 + $0xb08] ss:$16 sps:$4 sm:$0xff]  }
 0x60d   :  { %v4798_v18 = vpop.f32.mrb[242].mxu0 }
 0x60e   :  { %v9341_v26 = vadd.f32 %v14297_v34, %v4798_v18  ;;  %v4800_v7 = vpop.f32.mrb[243].mxu0  ;;  %v5218_v49 = vmax.f32 %v9340_v41, 0.0  ;;  %v10492_v18 = vld [vmem:[%s15341_s0 + $0xb2c] ss:$16 sps:$4 sm:$0xff]  }
 0x610   :  { %v5219_v6 = vmax.f32 %v9341_v26, 0.0  ;;  %5010 = vmatmul.mubr.bf16.gmra.mrb[92].mxu0 %v10483_v25 }
 0x611   :  { %5017 = vmatprep.mubr.bf16.mxu0 %v10489_v0 }
 0x612   :  { %v14350_v23 = vpack.c.bf16 %v5219_v6, %v5218_v49 }
 0x613   :  { %v4803_v21 = vpop.f32.mrb[244].mxu0 }
 0x614   :  { %v9342_v19 = vadd.f32 %v14297_v34, %v4803_v21  ;;  %v4805_v44 = vpop.f32.mrb[245].mxu0 }
 0x615   :  { %v4806_v45 = vpop.f32.mrb[246].mxu0  ;;  %v10490_v44 = vld [vmem:[%s15341_s0 + $0xb28] ss:$16 sps:$4 sm:$0xff]  }
 0x616   :  { %v9343_v41 = vadd.f32 %v14297_v34, %v4806_v45  ;;  %v4808_v26 = vpop.f32.mrb[247].mxu0  ;;  %v5220_v25 = vmax.f32 %v9342_v19, 0.0  ;;  %v10496_v45 = vld [vmem:[%s15341_s0 + $0xb4c] ss:$16 sps:$4 sm:$0xff]  }
 0x618   :  { %v5221_v0 = vmax.f32 %v9343_v41, 0.0  ;;  %5018 = vmatmul.mubr.bf16.gmra.mrb[96].mxu0 %v10487_v50 }
 0x619   :  { %5025 = vmatprep.mubr.bf16.mxu0 %v10492_v18 }
 0x61a   :  { %v14360_v7 = vpack.c.bf16 %v5221_v0, %v5220_v25 }
 0x61b   :  { %v4811_v49 = vpop.f32.mrb[248].mxu0 }
 0x61c   :  { %v9344_v6 = vadd.f32 %v14297_v34, %v4811_v49  ;;  %v4813_v21 = vpop.f32.mrb[249].mxu0 }
 0x61d   :  { %v4814_v60 = vpop.f32.mrb[250].mxu0  ;;  %v10494_v21 = vld [vmem:[%s15341_s0 + $0xb48] ss:$16 sps:$4 sm:$0xff]  }
 0x61e   :  { %v9345_v19 = vadd.f32 %v14297_v34, %v4814_v60  ;;  %v4816_v41 = vpop.f32.mrb[251].mxu0  ;;  %v5222_v50 = vmax.f32 %v9344_v6, 0.0  ;;  %v10500_v60 = vld [vmem:[%s15341_s0 + $0xb6c] ss:$16 sps:$4 sm:$0xff]  }
 0x620   :  { %v5223_v18 = vmax.f32 %v9345_v19, 0.0  ;;  %5026 = vmatmul.mubr.bf16.gmra.mrb[100].mxu0 %v10490_v44 }
 0x621   :  { %5033 = vmatprep.mubr.bf16.mxu0 %v10496_v45 }
 0x622   :  { %v14370_v26 = vpack.c.bf16 %v5223_v18, %v5222_v50 }
 0x623   :  { %v4819_v25 = vpop.f32.mrb[252].mxu0 }
 0x624   :  { %v9346_v0 = vadd.f32 %v14297_v34, %v4819_v25  ;;  %v4821_v49 = vpop.f32.mrb[253].mxu0 }
 0x625   :  { %v4822_v24 = vpop.f32.mrb[254].mxu0  ;;  %v10498_v49 = vld [vmem:[%s15341_s0 + $0xb68] ss:$16 sps:$4 sm:$0xff]  }
 0x626   :  { %v9347_v6 = vadd.f32 %v14297_v34, %v4822_v24  ;;  %v4824_v19 = vpop.f32.mrb[255].mxu0  ;;  %v5224_v44 = vmax.f32 %v9346_v0, 0.0  ;;  %v10503_v24 = vld [vmem:[%s15341_s0 + $0xb8c] ss:$16 sps:$4 sm:$0xff]  }
 0x628   :  { %v5225_v45 = vmax.f32 %v9347_v6, 0.0  ;;  %5034 = vmatmul.mubr.bf16.gmra.mrb[104].mxu0 %v10494_v21 }
 0x629   :  { %5041 = vmatprep.mubr.bf16.mxu0 %v10500_v60 }
 0x62a   :  { %v14380_v41 = vpack.c.bf16 %v5225_v45, %v5224_v44 }
 0x62b   :  { %v4827_v50 = vpop.f32.mrb[148].mxu0 }
 0x62c   :  { %15764 = vst [vmem:[#allocation423_spill] sm:$0xff] %v14380_v41  ;;  %v9348_v18 = vadd.f32 %v14297_v34, %v4827_v50  ;;  %v4829_v25 = vpop.f32.mrb[149].mxu0 }
 0x62d   :  { %v4830_v37 = vpop.f32.mrb[150].mxu0  ;;  %v10501_v25 = vld [vmem:[%s15341_s0 + $0xb88] ss:$16 sps:$4 sm:$0xff]  }
 0x62e   :  { %v9349_v0 = vadd.f32 %v14297_v34, %v4830_v37  ;;  %v4832_v6 = vpop.f32.mrb[151].mxu0  ;;  %v5226_v21 = vmax.f32 %v9348_v18, 0.0  ;;  %v10507_v37 = vld [vmem:[%s15341_s0 + $0xbac] ss:$16 sps:$4 sm:$0xff]  }
 0x630   :  { %v5227_v60 = vmax.f32 %v9349_v0, 0.0  ;;  %5042 = vmatmul.mubr.bf16.gmra.mrb[108].mxu0 %v10498_v49 }
 0x631   :  { %5049 = vmatprep.mubr.bf16.mxu0 %v10503_v24 }
 0x632   :  { %v14390_v19 = vpack.c.bf16 %v5227_v60, %v5226_v21 }
 0x633   :  { %v4835_v44 = vpop.f32.mrb[152].mxu0 }
 0x634   :  { %15765 = vst [vmem:[#allocation424_spill] sm:$0xff] %v14390_v19  ;;  %v9350_v45 = vadd.f32 %v14297_v34, %v4835_v44  ;;  %v4837_v50 = vpop.f32.mrb[153].mxu0 }
 0x635   :  { %v4838_v4 = vpop.f32.mrb[154].mxu0  ;;  %v10505_v50 = vld [vmem:[%s15341_s0 + $0xba8] ss:$16 sps:$4 sm:$0xff]  }
 0x636   :  { %v9351_v18 = vadd.f32 %v14297_v34, %v4838_v4  ;;  %v4840_v0 = vpop.f32.mrb[155].mxu0  ;;  %v5228_v49 = vmax.f32 %v9350_v45, 0.0  ;;  %v10511_v4 = vld [vmem:[%s15341_s0 + $0xbcc] ss:$16 sps:$4 sm:$0xff]  }
 0x638   :  { %v5229_v24 = vmax.f32 %v9351_v18, 0.0  ;;  %5050 = vmatmul.mubr.bf16.gmra.mrb[112].mxu0 %v10501_v25 }
 0x639   :  { %5057 = vmatprep.mubr.bf16.mxu0 %v10507_v37 }
 0x63a   :  { %v14400_v6 = vpack.c.bf16 %v5229_v24, %v5228_v49 }
 0x63b   :  { %v4843_v21 = vpop.f32.mrb[156].mxu0 }
 0x63c   :  { %15766 = vst [vmem:[#allocation425_spill] sm:$0xff] %v14400_v6  ;;  %v9352_v60 = vadd.f32 %v14297_v34, %v4843_v21  ;;  %v4845_v44 = vpop.f32.mrb[157].mxu0 }
 0x63d   :  { %v4846_v43 = vpop.f32.mrb[158].mxu0  ;;  %v10509_v44 = vld [vmem:[%s15341_s0 + $0xbc8] ss:$16 sps:$4 sm:$0xff]  }
 0x63e   :  { %v9353_v45 = vadd.f32 %v14297_v34, %v4846_v43  ;;  %v4848_v18 = vpop.f32.mrb[159].mxu0  ;;  %v5230_v25 = vmax.f32 %v9352_v60, 0.0  ;;  %v10514_v43 = vld [vmem:[%s15341_s0 + $0xbec] ss:$16 sps:$4 sm:$0xff]  }
 0x640   :  { %v5231_v37 = vmax.f32 %v9353_v45, 0.0  ;;  %5058 = vmatmul.mubr.bf16.gmra.mrb[116].mxu0 %v10505_v50 }
 0x641   :  { %5065 = vmatprep.mubr.bf16.mxu0 %v10511_v4 }
 0x642   :  { %v14410_v0 = vpack.c.bf16 %v5231_v37, %v5230_v25 }
 0x643   :  { %v4851_v49 = vpop.f32.mrb[160].mxu0 }
 0x644   :  { %15767 = vst [vmem:[#allocation426_spill] sm:$0xff] %v14410_v0  ;;  %v9354_v24 = vadd.f32 %v14297_v34, %v4851_v49  ;;  %v4853_v21 = vpop.f32.mrb[161].mxu0 }
 0x645   :  { %v4854_v6 = vpop.f32.mrb[162].mxu0  ;;  %v10512_v21 = vld [vmem:[%s15341_s0 + $0xbe8] ss:$16 sps:$4 sm:$0xff]  }
 0x646   :  { %v9355_v60 = vadd.f32 %v14297_v34, %v4854_v6  ;;  %v4856_v45 = vpop.f32.mrb[163].mxu0  ;;  %v5232_v50 = vmax.f32 %v9354_v24, 0.0  ;;  %v10518_v6 = vld [vmem:[%s15341_s0 + $0xc0c] ss:$16 sps:$4 sm:$0xff]  }
 0x648   :  { %v5233_v4 = vmax.f32 %v9355_v60, 0.0  ;;  %5066 = vmatmul.mubr.bf16.gmra.mrb[120].mxu0 %v10509_v44 }
 0x649   :  { %5073 = vmatprep.mubr.bf16.mxu0 %v10514_v43 }
 0x64a   :  { %v14420_v18 = vpack.c.bf16 %v5233_v4, %v5232_v50 }
 0x64b   :  { %v4859_v25 = vpop.f32.mrb[164].mxu0 }
 0x64c   :  { %15768 = vst [vmem:[#allocation427_spill] sm:$0xff] %v14420_v18  ;;  %v9356_v37 = vadd.f32 %v14297_v34, %v4859_v25  ;;  %v4861_v49 = vpop.f32.mrb[165].mxu0 }
 0x64d   :  { %v4862_v0 = vpop.f32.mrb[166].mxu0  ;;  %v10516_v49 = vld [vmem:[%s15341_s0 + $0xc08] ss:$16 sps:$4 sm:$0xff]  }
 0x64e   :  { %v9357_v24 = vadd.f32 %v14297_v34, %v4862_v0  ;;  %v4864_v60 = vpop.f32.mrb[167].mxu0  ;;  %v5234_v44 = vmax.f32 %v9356_v37, 0.0  ;;  %v10521_v0 = vld [vmem:[%s15341_s0 + $0xc2c] ss:$16 sps:$4 sm:$0xff]  }
 0x650   :  { %v5235_v43 = vmax.f32 %v9357_v24, 0.0  ;;  %5074 = vmatmul.mubr.bf16.gmra.mrb[124].mxu0 %v10512_v21 }
 0x651   :  { %5081 = vmatprep.mubr.bf16.mxu0 %v10518_v6 }
 0x652   :  { %v14430_v45 = vpack.c.bf16 %v5235_v43, %v5234_v44 }
 0x653   :  { %v4867_v50 = vpop.f32.mrb[168].mxu0 }
 0x654   :  { %15769 = vst [vmem:[#allocation428_spill] sm:$0xff] %v14430_v45  ;;  %v9358_v4 = vadd.f32 %v14297_v34, %v4867_v50  ;;  %v4869_v25 = vpop.f32.mrb[169].mxu0 }
 0x655   :  { %v4870_v18 = vpop.f32.mrb[170].mxu0  ;;  %v10519_v25 = vld [vmem:[%s15341_s0 + $0xc28] ss:$16 sps:$4 sm:$0xff]  }
 0x656   :  { %v9359_v37 = vadd.f32 %v14297_v34, %v4870_v18  ;;  %v4872_v24 = vpop.f32.mrb[171].mxu0  ;;  %v5236_v21 = vmax.f32 %v9358_v4, 0.0 }
 0x658   :  { %v5237_v6 = vmax.f32 %v9359_v37, 0.0  ;;  %5082 = vmatmul.mubr.bf16.gmra.mrb[128].mxu0 %v10516_v49 }
 0x659   :  { %5089 = vmatprep.mubr.bf16.mxu0 %v10521_v0 }
 0x65a   :  { %v14440_v60 = vpack.c.bf16 %v5237_v6, %v5236_v21 }
 0x65b   :  { %v4875_v44 = vpop.f32.mrb[172].mxu0 }
 0x65c   :  { %15770 = vst [vmem:[#allocation429_spill] sm:$0xff] %v14440_v60  ;;  %v9360_v43 = vadd.f32 %v14297_v34, %v4875_v44  ;;  %v4877_v50 = vpop.f32.mrb[173].mxu0 }
 0x65d   :  { %v4878_v45 = vpop.f32.mrb[174].mxu0 }
 0x65e   :  { %v9361_v19 = vadd.f32 %v14297_v34, %v4878_v45  ;;  %v4880_v1 = vpop.f32.mrb[175].mxu0  ;;  %v5238_v18 = vmax.f32 %v9360_v43, 0.0 }
 0x660   :  { %v5239_v24 = vmax.f32 %v9361_v19, 0.0  ;;  %5090 = vmatmul.mubr.bf16.gmra.mrb[132].mxu0 %v10519_v25 }
 0x662   :  { %v14447_v4 = vpack.c.bf16 %v5239_v24, %v5238_v18 }
 0x663   :  { %v4883_v49 = vpop.f32.mrb[176].mxu0 }
 0x664   :  { %v9362_v0 = vadd.f32 %v14297_v34, %v4883_v49  ;;  %v4885_v37 = vpop.f32.mrb[177].mxu0 }
 0x665   :  { %v4886_v21 = vpop.f32.mrb[178].mxu0 }
 0x666   :  { %v9363_v6 = vadd.f32 %v14297_v34, %v4886_v21  ;;  %v4888_v44 = vpop.f32.mrb[179].mxu0  ;;  %v5240_v50 = vmax.f32 %v9362_v0, 0.0 }
 0x668   :  { %v5241_v60 = vmax.f32 %v9363_v6, 0.0 }
 0x66a   :  { %v14451_v56 = vpack.c.bf16 %v5241_v60, %v5240_v50  ;;  %v4091_v60 = vadd.f32 %v14297_v34, %v13936_v42  ;;  %v4094_v50 = vadd.f32 %v14297_v34, %v13945_v31  ;;  %v4102_v42 = vadd.f32 %v14297_v34, %v13962_v36 }
 0x66b   :  { %v4891_v41 = vpop.f32.mrb[180].mxu0 }
 0x66c   :  { %v9364_v1 = vadd.f32 %v14297_v34, %v4891_v41  ;;  %v4893_v45 = vpop.f32.mrb[181].mxu0 }
 0x66d   :  { %v4894_v19 = vpop.f32.mrb[182].mxu0 }
 0x66e   :  { %v9365_v43 = vadd.f32 %v14297_v34, %v4894_v19  ;;  %v4896_v25 = vpop.f32.mrb[183].mxu0  ;;  %v5242_v18 = vmax.f32 %v9364_v1, 0.0 }
 0x670   :  { %v5243_v24 = vmax.f32 %v9365_v43, 0.0 }
 0x672   :  { %v14455_v49 = vpack.c.bf16 %v5243_v24, %v5242_v18 }
 0x673   :  { %v14457_v37 = vpop.f32.mrb[184].mxu0 }
 0x674   :  { %15771 = vst [vmem:[#allocation430_spill] sm:$0xff] %v14455_v49  ;;  %v4901_v21 = vpop.f32.mrb[185].mxu0 }
 0x675   :  { %v4902_v44 = vpop.f32.mrb[186].mxu0  ;;  %v4099_v21 = vadd.f32 %v14297_v34, %v13952_v5 }
 0x676   :  { %v4904_v0 = vpop.f32.mrb[187].mxu0  ;;  %v9367_v6 = vadd.f32 %v14297_v34, %v4902_v44 }
 0x678   :  { %v5245_v43 = vmax.f32 %v9367_v6, 0.0 }
 0x67b   :  { %v4907_v41 = vpop.f32.mrb[40].mxu0 }
 0x67c   :  { %v4908_v45 = vadd.f32 %v4907_v41, %v4091_v60  ;;  %v4909_v19 = vpop.f32.mrb[41].mxu0 }
 0x67d   :  { %v4910_v1 = vpop.f32.mrb[42].mxu0 }
 0x67e   :  { %v5246_v25 = vmax.f32 %v4908_v45, 0.0  ;;  %v4911_v18 = vadd.f32 %v4910_v1, %v4094_v50  ;;  %v4912_v24 = vpop.f32.mrb[43].mxu0  ;;  %v4107_v1 = vadd.f32 %v14297_v34, %v13970_v35 }
 0x680   :  { %v5689_v49 = vpack.c.bf16 %v5246_v25, %v5245_v43  ;;  %v5247_v41 = vmax.f32 %v4911_v18, 0.0 }
 0x682   :  { %6310 = vmatprep.mubr.bf16.mxu1 %v5689_v49 }
 0x683   :  { %v4915_v0 = vpop.f32.mrb[44].mxu0  ;;  %6311 = vmatmul.mubr.bf16.vlgmr.msra.gmra.mrb[96].mxu1 %v14172_v29  ;;  %v4110_v29 = vadd.f32 %v14297_v34, %v13980_v59 }
 0x684   :  { %v4916_v44 = vadd.f32 %v4915_v0, %v4099_v21  ;;  %v4917_v31 = vpop.f32.mrb[45].mxu0 }
 0x685   :  { %v4918_v60 = vpop.f32.mrb[46].mxu0 }
 0x686   :  { %v5248_v19 = vmax.f32 %v4916_v44, 0.0  ;;  %v4919_v6 = vadd.f32 %v4918_v60, %v4102_v42  ;;  %v4920_v45 = vpop.f32.mrb[47].mxu0  ;;  %v4115_v42 = vadd.f32 %v14297_v34, %v13989_v55 }
 0x688   :  { %v5693_v50 = vpack.c.bf16 %v5248_v19, %v5247_v41  ;;  %v5249_v25 = vmax.f32 %v4919_v6, 0.0 }
 0x68a   :  { %6318 = vmatprep.mubr.bf16.mxu1 %v5693_v50  ;;  %v4123_v50 = vadd.f32 %v14297_v34, %v14005_v51 }
 0x68b   :  { %v4923_v5 = vpop.f32.mrb[48].mxu0  ;;  %6319 = vmatmul.mubr.bf16.gmra.mrb[100].mxu1 %v14190_v32  ;;  %v4118_v32 = vadd.f32 %v14297_v34, %v13999_v62 }
 0x68c   :  { %v4924_v49 = vadd.f32 %v4923_v5, %v4107_v1  ;;  %v4925_v36 = vpop.f32.mrb[49].mxu0 }
 0x68d   :  { %v4926_v43 = vpop.f32.mrb[50].mxu0 }
 0x68e   :  { %v5250_v24 = vmax.f32 %v4924_v49, 0.0  ;;  %v4927_v18 = vadd.f32 %v4926_v43, %v4110_v29  ;;  %v4928_v21 = vpop.f32.mrb[51].mxu0 }
 0x690   :  { %v5697_v0 = vpack.c.bf16 %v5250_v24, %v5249_v25  ;;  %v5251_v60 = vmax.f32 %v4927_v18, 0.0  ;;  %v4131_v24 = vadd.f32 %v14297_v34, %v14023_v40 }
 0x692   :  { %6326 = vmatprep.mubr.bf16.mxu1 %v5697_v0 }
 0x693   :  { %v4931_v35 = vpop.f32.mrb[52].mxu0  ;;  %6327 = vmatmul.mubr.bf16.gmra.mrb[104].mxu1 %v14204_v33  ;;  %v4126_v33 = vadd.f32 %v14297_v34, %v14015_v53 }
 0x694   :  { %v4932_v44 = vadd.f32 %v4931_v35, %v4115_v42  ;;  %v4933_v59 = vpop.f32.mrb[53].mxu0 }
 0x695   :  { %v4934_v31 = vpop.f32.mrb[54].mxu0  ;;  %v4139_v59 = vadd.f32 %v14297_v34, %v14039_v28 }
 0x696   :  { %v5252_v41 = vmax.f32 %v4932_v44, 0.0  ;;  %v4935_v19 = vadd.f32 %v4934_v31, %v4118_v32  ;;  %v4936_v6 = vpop.f32.mrb[55].mxu0 }
 0x698   :  { %v5701_v45 = vpack.c.bf16 %v5252_v41, %v5251_v60  ;;  %v5253_v29 = vmax.f32 %v4935_v19, 0.0 }
 0x69a   :  { %6334 = vmatprep.mubr.bf16.mxu1 %v5701_v45 }
 0x69b   :  { %v4939_v55 = vpop.f32.mrb[56].mxu0  ;;  %6335 = vmatmul.mubr.bf16.gmra.mrb[108].mxu1 %v14222_v14  ;;  %v4134_v14 = vadd.f32 %v14297_v34, %v14033_v20 }
 0x69c   :  { %v4940_v1 = vadd.f32 %v4939_v55, %v4123_v50  ;;  %v4941_v62 = vpop.f32.mrb[57].mxu0  ;;  %v4147_v55 = vadd.f32 %v14297_v34, %v14058_v12 }
 0x69d   :  { %v4942_v5 = vpop.f32.mrb[58].mxu0 }
 0x69e   :  { %v5254_v49 = vmax.f32 %v4940_v1, 0.0  ;;  %v4943_v36 = vadd.f32 %v4942_v5, %v4126_v33  ;;  %v4944_v43 = vpop.f32.mrb[59].mxu0 }
 0x69f   :  { %v4155_v43 = vadd.f32 %v14297_v34, %v14076_v9 }
 0x6a0   :  { %v5705_v25 = vpack.c.bf16 %v5254_v49, %v5253_v29  ;;  %v5255_v0 = vmax.f32 %v4943_v36, 0.0 }
 0x6a2   :  { %6342 = vmatprep.mubr.bf16.mxu1 %v5705_v25 }
 0x6a3   :  { %v4947_v51 = vpop.f32.mrb[60].mxu0  ;;  %6343 = vmatmul.mubr.bf16.gmra.mrb[112].mxu1 %v14240_v13  ;;  %v4142_v13 = vadd.f32 %v14297_v34, %v14049_v10 }
 0x6a4   :  { %v4948_v18 = vadd.f32 %v4947_v51, %v4131_v24  ;;  %v4949_v53 = vpop.f32.mrb[61].mxu0 }
 0x6a5   :  { %v4950_v21 = vpop.f32.mrb[62].mxu0 }
 0x6a6   :  { %v5256_v42 = vmax.f32 %v4948_v18, 0.0  ;;  %v4951_v35 = vadd.f32 %v4950_v21, %v4134_v14  ;;  %v4952_v32 = vpop.f32.mrb[63].mxu0 }
 0x6a8   :  { %v5709_v44 = vpack.c.bf16 %v5256_v42, %v5255_v0  ;;  %v5257_v41 = vmax.f32 %v4951_v35, 0.0  ;;  %v4163_v0 = vadd.f32 %v14297_v34, %v14092_v58 }
 0x6aa   :  { %6350 = vmatprep.mubr.bf16.mxu1 %v5709_v44 }
 0x6ab   :  { %v4955_v40 = vpop.f32.mrb[64].mxu0  ;;  %6351 = vmatmul.mubr.bf16.gmra.mrb[116].mxu1 %v14254_v54  ;;  %v4150_v54 = vadd.f32 %v14297_v34, %v14068_v61 }
 0x6ac   :  { %v4956_v31 = vadd.f32 %v4955_v40, %v4139_v59  ;;  %v4957_v20 = vpop.f32.mrb[65].mxu0 }
 0x6ad   :  { %v4958_v60 = vpop.f32.mrb[66].mxu0 }
 0x6ae   :  { %v5258_v19 = vmax.f32 %v4956_v31, 0.0  ;;  %v4959_v6 = vadd.f32 %v4958_v60, %v4142_v13  ;;  %v4960_v45 = vpop.f32.mrb[67].mxu0  ;;  %v4171_v31 = vadd.f32 %v14297_v34, %v14111_v38 }
 0x6b0   :  { %v5713_v50 = vpack.c.bf16 %v5258_v19, %v5257_v41  ;;  %v5259_v62 = vmax.f32 %v4959_v6, 0.0 }
 0x6b2   :  { %6358 = vmatprep.mubr.bf16.mxu1 %v5713_v50 }
 0x6b3   :  { %v4963_v28 = vpop.f32.mrb[68].mxu0  ;;  %6359 = vmatmul.mubr.bf16.gmra.mrb[120].mxu1 %v14272_v16  ;;  %v4158_v16 = vadd.f32 %v14297_v34, %v14086_v3 }
 0x6b4   :  { %v4964_v33 = vadd.f32 %v4963_v28, %v4147_v55  ;;  %v4965_v10 = vpop.f32.mrb[69].mxu0  ;;  %v4179_v55 = vadd.f32 %v14297_v34, %v14127_v52 }
 0x6b5   :  { %v4966_v1 = vpop.f32.mrb[70].mxu0 }
 0x6b6   :  { %v5260_v5 = vmax.f32 %v4964_v33, 0.0  ;;  %v4967_v29 = vadd.f32 %v4966_v1, %v4150_v54  ;;  %v4968_v49 = vpop.f32.mrb[71].mxu0 }
 0x6b8   :  { %v5717_v36 = vpack.c.bf16 %v5260_v5, %v5259_v62  ;;  %v5261_v51 = vmax.f32 %v4967_v29, 0.0  ;;  %v4187_v29 = vadd.f32 %v14297_v34, %v14141_v48 }
 0x6ba   :  { %6366 = vmatprep.mubr.bf16.mxu1 %v5717_v36 }
 0x6bb   :  { %v4971_v12 = vpop.f32.mrb[72].mxu0  ;;  %6367 = vmatmul.mubr.bf16.gmra.mrb[124].mxu1 %v14290_v8  ;;  %v4166_v8 = vadd.f32 %v14297_v34, %v14102_v46 }
 0x6bc   :  { %v4972_v25 = vadd.f32 %v4971_v12, %v4155_v43  ;;  %v4973_v61 = vpop.f32.mrb[73].mxu0 }
 0x6bd   :  { %v4974_v24 = vpop.f32.mrb[74].mxu0 }
 0x6be   :  { %v5262_v14 = vmax.f32 %v4972_v25, 0.0  ;;  %v4975_v18 = vadd.f32 %v4974_v24, %v4158_v16  ;;  %v4976_v53 = vpop.f32.mrb[75].mxu0  ;;  %v4195_v24 = vadd.f32 %v14297_v34, %v14159_v39 }
 0x6c0   :  { %v5721_v21 = vpack.c.bf16 %v5262_v14, %v5261_v51  ;;  %v5263_v32 = vmax.f32 %v4975_v18, 0.0 }
 0x6c2   :  { %6374 = vmatprep.mubr.bf16.mxu1 %v5721_v21 }
 0x6c3   :  { %v4979_v9 = vpop.f32.mrb[76].mxu0  ;;  %6375 = vmatmul.mubr.bf16.gmra.mrb[128].mxu1 %v14312_v22  ;;  %v4174_v22 = vadd.f32 %v14297_v34, %v14121_v47 }
 0x6c4   :  { %v4980_v42 = vadd.f32 %v4979_v9, %v4163_v0  ;;  %v4981_v3 = vpop.f32.mrb[77].mxu0 }
 0x6c5   :  { %v4982_v35 = vpop.f32.mrb[78].mxu0 }
 0x6c6   :  { %v5264_v44 = vmax.f32 %v4980_v42, 0.0  ;;  %v4983_v59 = vadd.f32 %v4982_v35, %v4166_v8  ;;  %v4984_v40 = vpop.f32.mrb[79].mxu0  ;;  %v4203_v8 = vadd.f32 %v14297_v34, %v14177_v30 }
 0x6c8   :  { %v5725_v13 = vpack.c.bf16 %v5264_v44, %v5263_v32  ;;  %v5265_v41 = vmax.f32 %v4983_v59, 0.0 }
 0x6ca   :  { %6382 = vmatprep.mubr.bf16.mxu1 %v5725_v13  ;;  %v4211_v13 = vadd.f32 %v14297_v34, %v14192_v63 }
 0x6cb   :  { %v4987_v58 = vpop.f32.mrb[80].mxu0  ;;  %6383 = vmatmul.mubr.bf16.gmra.mrb[132].mxu1 %v14326_v27  ;;  %v4182_v27 = vadd.f32 %v14297_v34, %v14136_v2 }
 0x6cc   :  { %v4988_v20 = vadd.f32 %v4987_v58, %v4171_v31  ;;  %v4989_v46 = vpop.f32.mrb[81].mxu0  ;;  %v15772_v31 = vld [vmem:[#allocation423_spill] sm:$0xff]  ;;  %v15773_v58 = vld [vmem:[#allocation406_spill] sm:$0xff] }
 0x6cd   :  { %v4990_v60 = vpop.f32.mrb[82].mxu0 }
 0x6ce   :  { %v5266_v19 = vmax.f32 %v4988_v20, 0.0  ;;  %v4991_v6 = vadd.f32 %v4990_v60, %v4174_v22  ;;  %v4992_v45 = vpop.f32.mrb[83].mxu0 }
 0x6cf   :  { %v15774_v45 = vld [vmem:[#allocation407_spill] sm:$0xff] }
 0x6d0   :  { %v5729_v50 = vpack.c.bf16 %v5266_v19, %v5265_v41  ;;  %v5267_v33 = vmax.f32 %v4991_v6, 0.0 }
 0x6d2   :  { %6390 = vmatprep.mubr.bf16.mxu1 %v5729_v50  ;;  %v4219_v50 = vadd.f32 %v14297_v34, %v15774_v45  ;;  %v15788_v45 = vld [vmem:[#allocation416_spill] sm:$0xff] }
 0x6d3   :  { %v4995_v38 = vpop.f32.mrb[84].mxu0  ;;  %6391 = vmatmul.mubr.bf16.gmra.mrb[136].mxu1 %v14340_v17  ;;  %v4190_v17 = vadd.f32 %v14297_v34, %v14150_v57 }
 0x6d4   :  { %v4996_v28 = vadd.f32 %v4995_v38, %v4179_v55  ;;  %v4997_v47 = vpop.f32.mrb[85].mxu0  ;;  %v15775_v55 = vld [vmem:[#allocation424_spill] sm:$0xff] }
 0x6d5   :  { %v4998_v54 = vpop.f32.mrb[86].mxu0  ;;  %v15776_v38 = vld [vmem:[#allocation408_spill] sm:$0xff] }
 0x6d6   :  { %v5268_v10 = vmax.f32 %v4996_v28, 0.0  ;;  %v4999_v1 = vadd.f32 %v4998_v54, %v4182_v27  ;;  %v5000_v62 = vpop.f32.mrb[87].mxu0  ;;  %v4222_v27 = vadd.f32 %v14297_v34, %v15776_v38 }
 0x6d8   :  { %v5733_v5 = vpack.c.bf16 %v5268_v10, %v5267_v33  ;;  %v5269_v43 = vmax.f32 %v4999_v1, 0.0 }
 0x6da   :  { %6398 = vmatprep.mubr.bf16.mxu1 %v5733_v5 }
 0x6db   :  { %v5003_v52 = vpop.f32.mrb[88].mxu0  ;;  %6399 = vmatmul.mubr.bf16.gmra.mrb[140].mxu1 %v14350_v23  ;;  %v4198_v23 = vadd.f32 %v14297_v34, %v14168_v11 }
 0x6dc   :  { %v5004_v49 = vadd.f32 %v5003_v52, %v4187_v29  ;;  %v5005_v2 = vpop.f32.mrb[89].mxu0  ;;  %v15777_v29 = vld [vmem:[#allocation409_spill] sm:$0xff] }
 0x6dd   :  { %v5006_v36 = vpop.f32.mrb[90].mxu0  ;;  %v4227_v52 = vadd.f32 %v14297_v34, %v15777_v29  ;;  %v15779_v2 = vld [vmem:[#allocation410_spill] sm:$0xff] }
 0x6de   :  { %v5270_v12 = vmax.f32 %v5004_v49, 0.0  ;;  %v5007_v16 = vadd.f32 %v5006_v36, %v4190_v17  ;;  %v5008_v25 = vpop.f32.mrb[91].mxu0  ;;  %v15778_v49 = vld [vmem:[#allocation425_spill] sm:$0xff]  ;;  %v4230_v36 = vadd.f32 %v14297_v34, %v15779_v2  ;;  %v15791_v29 = vld [vmem:[#allocation418_spill] sm:$0xff] }
 0x6e0   :  { %v5737_v61 = vpack.c.bf16 %v5270_v12, %v5269_v43  ;;  %v5271_v18 = vmax.f32 %v5007_v16, 0.0 }
 0x6e2   :  { %6406 = vmatprep.mubr.bf16.mxu1 %v5737_v61 }
 0x6e3   :  { %v5011_v48 = vpop.f32.mrb[92].mxu0  ;;  %6407 = vmatmul.mubr.bf16.gmra.mrb[144].mxu1 %v14360_v7  ;;  %v4206_v7 = vadd.f32 %v14297_v34, %v14186_v15 }
 0x6e4   :  { %v5012_v51 = vadd.f32 %v5011_v48, %v4195_v24  ;;  %v5013_v57 = vpop.f32.mrb[93].mxu0 }
 0x6e5   :  { %v5014_v14 = vpop.f32.mrb[94].mxu0 }
 0x6e6   :  { %v5272_v53 = vmax.f32 %v5012_v51, 0.0  ;;  %v5015_v21 = vadd.f32 %v5014_v14, %v4198_v23  ;;  %v5016_v0 = vpop.f32.mrb[95].mxu0  ;;  %v15780_v51 = vld [vmem:[#allocation411_spill] sm:$0xff] }
 0x6e7   :  { %v4235_v57 = vadd.f32 %v14297_v34, %v15780_v51 }
 0x6e8   :  { %v5741_v9 = vpack.c.bf16 %v5272_v53, %v5271_v18  ;;  %v5273_v35 = vmax.f32 %v5015_v21, 0.0  ;;  %v15781_v18 = vld [vmem:[#allocation426_spill] sm:$0xff]  ;;  %v15782_v53 = vld [vmem:[#allocation412_spill] sm:$0xff] }
 0x6e9   :  { %v4238_v21 = vadd.f32 %v14297_v34, %v15782_v53 }
 0x6ea   :  { %6414 = vmatprep.mubr.bf16.mxu1 %v5741_v9 }
 0x6eb   :  { %v5019_v39 = vpop.f32.mrb[96].mxu0  ;;  %6415 = vmatmul.mubr.bf16.gmra.mrb[148].mxu1 %v14370_v26  ;;  %v4214_v26 = vadd.f32 %v14297_v34, %v15773_v58 }
 0x6ec   :  { %v5020_v42 = vadd.f32 %v5019_v39, %v4203_v8  ;;  %v5021_v11 = vpop.f32.mrb[97].mxu0 }
 0x6ed   :  { %v5022_v3 = vpop.f32.mrb[98].mxu0 }
 0x6ee   :  { %v5274_v32 = vmax.f32 %v5020_v42, 0.0  ;;  %v5023_v44 = vadd.f32 %v5022_v3, %v4206_v7  ;;  %v5024_v59 = vpop.f32.mrb[99].mxu0 }
 0x6ef   :  { %v15784_v59 = vld [vmem:[#allocation427_spill] sm:$0xff] }
 0x6f0   :  { %v5745_v40 = vpack.c.bf16 %v5274_v32, %v5273_v35  ;;  %v5275_v46 = vmax.f32 %v5023_v44, 0.0  ;;  %v15783_v35 = vld [vmem:[#allocation413_spill] sm:$0xff] }
 0x6f1   :  { %v4243_v32 = vadd.f32 %v14297_v34, %v15783_v35 }
 0x6f2   :  { %6422 = vmatprep.mubr.bf16.mxu1 %v5745_v40  ;;  %v15785_v40 = vld [vmem:[#allocation414_spill] sm:$0xff] }
 0x6f3   :  { %v5027_v30 = vpop.f32.mrb[100].mxu0  ;;  %6423 = vmatmul.mubr.bf16.gmra.mrb[152].mxu1 %v15772_v31 }
 0x6f4   :  { %v5028_v22 = vadd.f32 %v5027_v30, %v4211_v13  ;;  %v5029_v15 = vpop.f32.mrb[101].mxu0  ;;  %v4246_v13 = vadd.f32 %v14297_v34, %v15785_v40 }
 0x6f5   :  { %v5030_v20 = vpop.f32.mrb[102].mxu0 }
 0x6f6   :  { %v5276_v60 = vmax.f32 %v5028_v22, 0.0  ;;  %v5031_v41 = vadd.f32 %v5030_v20, %v4214_v26  ;;  %v5032_v19 = vpop.f32.mrb[103].mxu0 }
 0x6f8   :  { %v5749_v6 = vpack.c.bf16 %v5276_v60, %v5275_v46  ;;  %v5277_v33 = vmax.f32 %v5031_v41, 0.0  ;;  %v15786_v60 = vld [vmem:[#allocation415_spill] sm:$0xff] }
 0x6f9   :  { %v4251_v41 = vadd.f32 %v14297_v34, %v15786_v60 }
 0x6fa   :  { %6430 = vmatprep.mubr.bf16.mxu1 %v5749_v6  ;;  %v15787_v6 = vld [vmem:[#allocation428_spill] sm:$0xff] }
 0x6fb   :  { %v5035_v63 = vpop.f32.mrb[104].mxu0  ;;  %6431 = vmatmul.mubr.bf16.gmra.mrb[156].mxu1 %v15775_v55 }
 0x6fc   :  { %v5036_v28 = vadd.f32 %v5035_v63, %v4219_v50  ;;  %v5037_v47 = vpop.f32.mrb[105].mxu0  ;;  %v4254_v50 = vadd.f32 %v14297_v34, %v15788_v45 }
 0x6fd   :  { %v5038_v54 = vpop.f32.mrb[106].mxu0 }
 0x6fe   :  { %v5278_v10 = vmax.f32 %v5036_v28, 0.0  ;;  %v5039_v1 = vadd.f32 %v5038_v54, %v4222_v27  ;;  %v5040_v62 = vpop.f32.mrb[107].mxu0 }
 0x700   :  { %v5753_v5 = vpack.c.bf16 %v5278_v10, %v5277_v33  ;;  %v5279_v25 = vmax.f32 %v5039_v1, 0.0  ;;  %v15789_v10 = vld [vmem:[#allocation417_spill] sm:$0xff] }
 0x701   :  { %v4259_v1 = vadd.f32 %v14297_v34, %v15789_v10 }
 0x702   :  { %6438 = vmatprep.mubr.bf16.mxu1 %v5753_v5  ;;  %v15790_v5 = vld [vmem:[#allocation429_spill] sm:$0xff] }
 0x703   :  { %v5043_v17 = vpop.f32.mrb[108].mxu0  ;;  %6439 = vmatmul.mubr.bf16.gmra.mrb[160].mxu1 %v15778_v49 }
 0x704   :  { %v5044_v43 = vadd.f32 %v5043_v17, %v4227_v52  ;;  %v5045_v12 = vpop.f32.mrb[109].mxu0  ;;  %v4262_v52 = vadd.f32 %v14297_v34, %v15791_v29 }
 0x705   :  { %v5046_v16 = vpop.f32.mrb[110].mxu0 }
 0x706   :  { %v5280_v61 = vmax.f32 %v5044_v43, 0.0  ;;  %v5047_v24 = vadd.f32 %v5046_v16, %v4230_v36  ;;  %v5048_v48 = vpop.f32.mrb[111].mxu0 }
 0x708   :  { %v5757_v23 = vpack.c.bf16 %v5280_v61, %v5279_v25  ;;  %v5281_v39 = vmax.f32 %v5047_v24, 0.0  ;;  %v15792_v61 = vld [vmem:[#allocation419_spill] sm:$0xff] }
 0x709   :  { %v4267_v24 = vadd.f32 %v14297_v34, %v15792_v61 }
 0x70a   :  { %6446 = vmatprep.mubr.bf16.mxu1 %v5757_v23  ;;  %v15793_v23 = vld [vmem:[#allocation420_spill] sm:$0xff] }
 0x70b   :  { %v5051_v14 = vpop.f32.mrb[112].mxu0  ;;  %6447 = vmatmul.mubr.bf16.gmra.mrb[164].mxu1 %v15781_v18  ;;  %v4270_v51 = vadd.f32 %v14297_v34, %v15793_v23 }
 0x70c   :  { %v5052_v0 = vadd.f32 %v5051_v14, %v4235_v57  ;;  %v5053_v9 = vpop.f32.mrb[113].mxu0 }
 0x70d   :  { %v5054_v8 = vpop.f32.mrb[114].mxu0 }
 0x70e   :  { %v5282_v7 = vmax.f32 %v5052_v0, 0.0  ;;  %v5055_v42 = vadd.f32 %v5054_v8, %v4238_v21  ;;  %v5056_v11 = vpop.f32.mrb[115].mxu0 }
 0x710   :  { %v5761_v3 = vpack.c.bf16 %v5282_v7, %v5281_v39  ;;  %v5283_v26 = vmax.f32 %v5055_v42, 0.0  ;;  %v10527_v39 = vld [vmem:[%s15345_s4] ss:$0 sm:$0xff]  ;;  %v15794_v7 = vld [vmem:[#allocation421_spill] sm:$0xff] }
 0x711   :  { %v4275_v42 = vadd.f32 %v10527_v39, %v15794_v7 }
 0x712   :  { %6454 = vmatprep.mubr.bf16.mxu1 %v5761_v3 }
 0x713   :  { %v5059_v44 = vpop.f32.mrb[116].mxu0  ;;  %6455 = vmatmul.mubr.bf16.gmra.mrb[168].mxu1 %v15784_v59 }
 0x714   :  { %v5060_v30 = vadd.f32 %v5059_v44, %v4243_v32  ;;  %v5061_v31 = vpop.f32.mrb[117].mxu0 }
 0x715   :  { %v5062_v58 = vpop.f32.mrb[118].mxu0 }
 0x716   :  { %v5284_v22 = vmax.f32 %v5060_v30, 0.0  ;;  %v5063_v15 = vadd.f32 %v5062_v58, %v4246_v13  ;;  %v5064_v20 = vpop.f32.mrb[119].mxu0  ;;  %v9366_v58 = vadd.f32 %v10527_v39, %v14457_v37 }
 0x717   :  { %v14585_v20 = vld [vmem:[%s15345_s4 + $0x1] ss:$0 sm:$0xff] }
 0x718   :  { %v5765_v46 = vpack.c.bf16 %v5284_v22, %v5283_v26  ;;  %v5285_v27 = vmax.f32 %v5063_v15, 0.0  ;;  %v15796_v22 = vld [vmem:[#allocation430_spill] sm:$0xff]  ;;  %v5244_v15 = vmax.f32 %v9366_v58, 0.0 }
 0x71a   :  { %6462 = vmatprep.mubr.bf16.mxu1 %v5765_v46 }
 0x71b   :  { %v5067_v19 = vpop.f32.mrb[120].mxu0  ;;  %6463 = vmatmul.mubr.bf16.gmra.mrb[172].mxu1 %v15787_v6 }
 0x71c   :  { %v5068_v63 = vadd.f32 %v5067_v19, %v4251_v41  ;;  %v5069_v55 = vpop.f32.mrb[121].mxu0 }
 0x71d   :  { %v5070_v38 = vpop.f32.mrb[122].mxu0 }
 0x71e   :  { %v5286_v28 = vmax.f32 %v5068_v63, 0.0  ;;  %v5071_v47 = vadd.f32 %v5070_v38, %v4254_v50  ;;  %v5072_v54 = vpop.f32.mrb[123].mxu0 }
 0x720   :  { %v5769_v33 = vpack.c.bf16 %v5286_v28, %v5285_v27  ;;  %v5287_v36 = vmax.f32 %v5071_v47, 0.0  ;;  %v15797_v28 = vld [vmem:[#allocation19_spill] sm:$0xff] }
 0x721   :  { %8611 = vmatprep.subr.bf16.mxu1 %v15797_v28 }
 0x722   :  { %6470 = vmatprep.mubr.bf16.mxu1 %v5769_v33 }
 0x723   :  { %v5075_v62 = vpop.f32.mrb[124].mxu0  ;;  %6471 = vmatmul.mubr.bf16.gmra.mrb[176].mxu1 %v15790_v5 }
 0x724   :  { %v5076_v17 = vadd.f32 %v5075_v62, %v4259_v1  ;;  %v5077_v49 = vpop.f32.mrb[125].mxu0 }
 0x725   :  { %v5078_v2 = vpop.f32.mrb[126].mxu0 }
 0x726   :  { %v5288_v43 = vmax.f32 %v5076_v17, 0.0  ;;  %v5079_v12 = vadd.f32 %v5078_v2, %v4262_v52  ;;  %v5080_v16 = vpop.f32.mrb[127].mxu0 }
 0x728   :  { %v5773_v25 = vpack.c.bf16 %v5288_v43, %v5287_v36  ;;  %v5289_v53 = vmax.f32 %v5079_v12, 0.0 }
 0x72a   :  { %6478 = vmatprep.mubr.bf16.mxu1 %v5773_v25 }
 0x72b   :  { %v5083_v48 = vpop.f32.mrb[128].mxu0  ;;  %6479 = vmatmul.mubr.bf16.gmra.mrb[180].mxu1 %v14447_v4  ;;  %v15795_v4 = vld [vmem:[#allocation422_spill] sm:$0xff] }
 0x72c   :  { %v5084_v57 = vadd.f32 %v5083_v48, %v4267_v24  ;;  %v5085_v14 = vpop.f32.mrb[129].mxu0  ;;  %v4278_v34 = vadd.f32 %v10527_v39, %v15795_v4 }
 0x72d   :  { %v5086_v18 = vpop.f32.mrb[130].mxu0 }
 0x72e   :  { %v5290_v21 = vmax.f32 %v5084_v57, 0.0  ;;  %v5087_v0 = vadd.f32 %v5086_v18, %v4270_v51  ;;  %v5088_v9 = vpop.f32.mrb[131].mxu0 }
 0x730   :  { %v5777_v8 = vpack.c.bf16 %v5290_v21, %v5289_v53  ;;  %v5291_v44 = vmax.f32 %v5087_v0, 0.0 }
 0x732   :  { %6486 = vmatprep.mubr.bf16.mxu1 %v5777_v8 }
 0x733   :  { %v5091_v11 = vpop.f32.mrb[132].mxu0  ;;  %6487 = vmatmul.mubr.bf16.gmra.mrb[184].mxu1 %v14451_v56  ;;  %v5784_v56 = vpack.c.bf16 %v5244_v15, %v5244_v15 }
 0x734   :  { %v5092_v3 = vadd.f32 %v5091_v11, %v4275_v42  ;;  %v5093_v35 = vpop.f32.mrb[133].mxu0 }
 0x735   :  { %v5094_v32 = vpop.f32.mrb[134].mxu0 }
 0x736   :  { %v5292_v59 = vmax.f32 %v5092_v3, 0.0  ;;  %v5095_v40 = vadd.f32 %v5094_v32, %v4278_v34  ;;  %v5096_v13 = vpop.f32.mrb[135].mxu0 }
 0x738   :  { %v5781_v30 = vpack.c.bf16 %v5292_v59, %v5291_v44  ;;  %v5293_v31 = vmax.f32 %v5095_v40, 0.0 }
 0x73a   :  { %v5785_v26 = vpack.c.bf16 %v5293_v31, %v5293_v31  ;;  %6494 = vmatprep.mubr.bf16.mxu1 %v5781_v30 }
 0x73b   :  { %6495 = vmatmul.mubr.bf16.gmra.mrb[188].mxu1 %v15796_v22 }
 0x73c   :  { %6502 = vmatprep.mubr.bf16.mxu1 %v5785_v26 }
 0x743   :  { %6503 = vmatmul.mubr.bf16.gmra.mrb[192].mxu1 %v5784_v56 }
 0x756   :  { %v6312_v46 = vpop.f32.mrb[96].mxu1 }
 0x757   :  { %v14588_v60 = vadd.f32 %v14585_v20, %v6312_v46  ;;  %v6314_v41 = vpop.f32.mrb[97].mxu1 }
 0x758   :  { %v6315_v19 = vpop.f32.mrb[98].mxu1 }
 0x759   :  { %v6510_v37 = vmax.f32 %v14588_v60, 0.0  ;;  %v14592_v6 = vadd.f32 %v14585_v20, %v6315_v19  ;;  %v6317_v45 = vpop.f32.mrb[99].mxu1 }
 0x75b   :  { %v6511_v50 = vmax.f32 %v14592_v6, 0.0 }
 0x75e   :  { %v6320_v63 = vpop.f32.mrb[100].mxu1 }
 0x75f   :  { %v14596_v55 = vadd.f32 %v14585_v20, %v6320_v63  ;;  %v6322_v38 = vpop.f32.mrb[101].mxu1 }
 0x760   :  { %v6323_v27 = vpop.f32.mrb[102].mxu1 }
 0x761   :  { %v14600_v47 = vadd.f32 %v14585_v20, %v6323_v27  ;;  %v6325_v54 = vpop.f32.mrb[103].mxu1 }
 0x763   :  { %v6513_v33 = vmax.f32 %v14600_v47, 0.0 }
 0x766   :  { %v6328_v10 = vpop.f32.mrb[104].mxu1 }
 0x767   :  { %v14604_v1 = vadd.f32 %v14585_v20, %v6328_v10  ;;  %v6330_v62 = vpop.f32.mrb[105].mxu1 }
 0x768   :  { %v6331_v5 = vpop.f32.mrb[106].mxu1 }
 0x769   :  { %v14608_v52 = vadd.f32 %v14585_v20, %v6331_v5  ;;  %v6333_v17 = vpop.f32.mrb[107].mxu1 }
 0x76e   :  { %v6336_v2 = vpop.f32.mrb[108].mxu1 }
 0x76f   :  { %v14612_v36 = vadd.f32 %v14585_v20, %v6336_v2  ;;  %v6338_v43 = vpop.f32.mrb[109].mxu1 }
 0x770   :  { %v6339_v12 = vpop.f32.mrb[110].mxu1 }
 0x771   :  { %v14616_v25 = vadd.f32 %v14585_v20, %v6339_v12  ;;  %v6341_v61 = vpop.f32.mrb[111].mxu1 }
 0x776   :  { %v6344_v48 = vpop.f32.mrb[112].mxu1 }
 0x777   :  { %v14620_v23 = vadd.f32 %v14585_v20, %v6344_v48  ;;  %v6346_v51 = vpop.f32.mrb[113].mxu1 }
 0x778   :  { %v6347_v57 = vpop.f32.mrb[114].mxu1 }
 0x779   :  { %v14624_v18 = vadd.f32 %v14585_v20, %v6347_v57  ;;  %v6349_v53 = vpop.f32.mrb[115].mxu1 }
 0x77e   :  { %v6352_v0 = vpop.f32.mrb[116].mxu1 }
 0x77f   :  { %v14628_v9 = vadd.f32 %v14585_v20, %v6352_v0  ;;  %v6354_v8 = vpop.f32.mrb[117].mxu1 }
 0x780   :  { %v6355_v39 = vpop.f32.mrb[118].mxu1 }
 0x781   :  { %v14632_v42 = vadd.f32 %v14585_v20, %v6355_v39  ;;  %v6357_v11 = vpop.f32.mrb[119].mxu1 }
 0x786   :  { %v6360_v34 = vpop.f32.mrb[120].mxu1 }
 0x787   :  { %v14636_v3 = vadd.f32 %v14585_v20, %v6360_v34  ;;  %v6362_v35 = vpop.f32.mrb[121].mxu1 }
 0x788   :  { %v6363_v32 = vpop.f32.mrb[122].mxu1 }
 0x789   :  { %v14640_v59 = vadd.f32 %v14585_v20, %v6363_v32  ;;  %v6365_v40 = vpop.f32.mrb[123].mxu1 }
 0x78e   :  { %v6368_v30 = vpop.f32.mrb[124].mxu1 }
 0x78f   :  { %v14644_v31 = vadd.f32 %v14585_v20, %v6368_v30  ;;  %v6370_v58 = vpop.f32.mrb[125].mxu1 }
 0x790   :  { %v6371_v26 = vpop.f32.mrb[126].mxu1 }
 0x791   :  { %v14648_v15 = vadd.f32 %v14585_v20, %v6371_v26  ;;  %v6373_v56 = vpop.f32.mrb[127].mxu1 }
 0x796   :  { %v6376_v41 = vpop.f32.mrb[128].mxu1 }
 0x797   :  { %v14652_v19 = vadd.f32 %v14585_v20, %v6376_v41  ;;  %v6378_v45 = vpop.f32.mrb[129].mxu1 }
 0x798   :  { %v6379_v63 = vpop.f32.mrb[130].mxu1 }
 0x799   :  { %v14656_v27 = vadd.f32 %v14585_v20, %v6379_v63  ;;  %v6381_v54 = vpop.f32.mrb[131].mxu1 }
 0x79e   :  { %v6384_v62 = vpop.f32.mrb[132].mxu1 }
 0x79f   :  { %v14660_v5 = vadd.f32 %v14585_v20, %v6384_v62  ;;  %v6386_v17 = vpop.f32.mrb[133].mxu1 }
 0x7a0   :  { %v6387_v2 = vpop.f32.mrb[134].mxu1 }
 0x7a1   :  { %v14664_v12 = vadd.f32 %v14585_v20, %v6387_v2  ;;  %v6389_v61 = vpop.f32.mrb[135].mxu1 }
 0x7a6   :  { %v6392_v51 = vpop.f32.mrb[136].mxu1 }
 0x7a7   :  { %v14668_v57 = vadd.f32 %v14585_v20, %v6392_v51  ;;  %v6394_v53 = vpop.f32.mrb[137].mxu1 }
 0x7a8   :  { %v6395_v0 = vpop.f32.mrb[138].mxu1 }
 0x7a9   :  { %v14672_v39 = vadd.f32 %v14585_v20, %v6395_v0  ;;  %v6397_v11 = vpop.f32.mrb[139].mxu1 }
 0x7ae   :  { %v6400_v35 = vpop.f32.mrb[140].mxu1 }
 0x7af   :  { %v14676_v32 = vadd.f32 %v14585_v20, %v6400_v35  ;;  %v6402_v40 = vpop.f32.mrb[141].mxu1 }
 0x7b0   :  { %v6403_v30 = vpop.f32.mrb[142].mxu1 }
 0x7b1   :  { %v14680_v26 = vadd.f32 %v14585_v20, %v6403_v30  ;;  %v6405_v56 = vpop.f32.mrb[143].mxu1 }
 0x7b6   :  { %v6408_v45 = vpop.f32.mrb[144].mxu1 }
 0x7b7   :  { %v14684_v63 = vadd.f32 %v14585_v20, %v6408_v45  ;;  %v6410_v54 = vpop.f32.mrb[145].mxu1 }
 0x7b8   :  { %v6411_v62 = vpop.f32.mrb[146].mxu1 }
 0x7b9   :  { %v14688_v2 = vadd.f32 %v14585_v20, %v6411_v62  ;;  %v6413_v61 = vpop.f32.mrb[147].mxu1 }
 0x7be   :  { %v6416_v53 = vpop.f32.mrb[148].mxu1 }
 0x7bf   :  { %v14692_v0 = vadd.f32 %v14585_v20, %v6416_v53  ;;  %v6418_v11 = vpop.f32.mrb[149].mxu1 }
 0x7c0   :  { %v6419_v35 = vpop.f32.mrb[150].mxu1 }
 0x7c1   :  { %v14696_v30 = vadd.f32 %v14585_v20, %v6419_v35  ;;  %v6421_v56 = vpop.f32.mrb[151].mxu1 }
 0x7c6   :  { %v6424_v54 = vpop.f32.mrb[152].mxu1 }
 0x7c7   :  { %v14700_v62 = vadd.f32 %v14585_v20, %v6424_v54  ;;  %v6426_v61 = vpop.f32.mrb[153].mxu1 }
 0x7c8   :  { %v6427_v17 = vpop.f32.mrb[154].mxu1 }
 0x7c9   :  { %v14704_v53 = vadd.f32 %v14585_v20, %v6427_v17  ;;  %v6429_v11 = vpop.f32.mrb[155].mxu1 }
 0x7ce   :  { %v6432_v58 = vpop.f32.mrb[156].mxu1 }
 0x7cf   :  { %v14708_v35 = vadd.f32 %v14585_v20, %v6432_v58  ;;  %v6434_v56 = vpop.f32.mrb[157].mxu1 }
 0x7d0   :  { %v6435_v45 = vpop.f32.mrb[158].mxu1 }
 0x7d1   :  { %v14712_v54 = vadd.f32 %v14585_v20, %v6435_v45  ;;  %v6437_v61 = vpop.f32.mrb[159].mxu1 }
 0x7d6   :  { %v6440_v8 = vpop.f32.mrb[160].mxu1 }
 0x7d7   :  { %v14716_v17 = vadd.f32 %v14585_v20, %v6440_v8  ;;  %v6442_v11 = vpop.f32.mrb[161].mxu1 }
 0x7d8   :  { %v6443_v40 = vpop.f32.mrb[162].mxu1 }
 0x7d9   :  { %v14720_v58 = vadd.f32 %v14585_v20, %v6443_v40  ;;  %v6445_v56 = vpop.f32.mrb[163].mxu1 }
 0x7de   :  { %v6448_v43 = vpop.f32.mrb[164].mxu1 }
 0x7df   :  { %v14724_v45 = vadd.f32 %v14585_v20, %v6448_v43  ;;  %v6450_v61 = vpop.f32.mrb[165].mxu1 }
 0x7e0   :  { %v6451_v51 = vpop.f32.mrb[166].mxu1 }
 0x7e1   :  { %v14728_v8 = vadd.f32 %v14585_v20, %v6451_v51  ;;  %v6453_v11 = vpop.f32.mrb[167].mxu1 }
 0x7e6   :  { %v6456_v38 = vpop.f32.mrb[168].mxu1 }
 0x7e7   :  { %v14732_v40 = vadd.f32 %v14585_v20, %v6456_v38  ;;  %v6458_v56 = vpop.f32.mrb[169].mxu1 }
 0x7e8   :  { %v6459_v41 = vpop.f32.mrb[170].mxu1 }
 0x7e9   :  { %v14736_v43 = vadd.f32 %v14585_v20, %v6459_v41  ;;  %v6461_v61 = vpop.f32.mrb[171].mxu1 }
 0x7ee   :  { %v6464_v22 = vpop.f32.mrb[172].mxu1 }
 0x7ef   :  { %v14740_v51 = vadd.f32 %v14585_v20, %v6464_v22  ;;  %v6466_v11 = vpop.f32.mrb[173].mxu1 }
 0x7f0   :  { %v6467_v34 = vpop.f32.mrb[174].mxu1 }
 0x7f1   :  { %v14744_v38 = vadd.f32 %v14585_v20, %v6467_v34  ;;  %v6469_v56 = vpop.f32.mrb[175].mxu1 }
 0x7f6   :  { %v6472_v44 = vpop.f32.mrb[176].mxu1 }
 0x7f7   :  { %v14748_v41 = vadd.f32 %v14585_v20, %v6472_v44  ;;  %v6474_v61 = vpop.f32.mrb[177].mxu1 }
 0x7f8   :  { %v6475_v48 = vpop.f32.mrb[178].mxu1 }
 0x7f9   :  { %v14752_v22 = vadd.f32 %v14585_v20, %v6475_v48  ;;  %v6477_v11 = vpop.f32.mrb[179].mxu1 }
 0x7fe   :  { %v6480_v7 = vpop.f32.mrb[180].mxu1 }
 0x7ff   :  { %v14756_v34 = vadd.f32 %v14585_v20, %v6480_v7  ;;  %v6482_v56 = vpop.f32.mrb[181].mxu1 }
 0x800   :  { %v6483_v10 = vpop.f32.mrb[182].mxu1 }
 0x801   :  { %v14760_v44 = vadd.f32 %v14585_v20, %v6483_v10  ;;  %v6485_v61 = vpop.f32.mrb[183].mxu1 }
 0x806   :  { %v6488_v14 = vpop.f32.mrb[184].mxu1 }
 0x807   :  { %v14764_v48 = vadd.f32 %v14585_v20, %v6488_v14  ;;  %v6490_v11 = vpop.f32.mrb[185].mxu1 }
 0x808   :  { %v6491_v46 = vpop.f32.mrb[186].mxu1 }
 0x809   :  { %v14768_v7 = vadd.f32 %v14585_v20, %v6491_v46  ;;  %v6493_v56 = vpop.f32.mrb[187].mxu1 }
 0x80e   :  { %v6496_v16 = vpop.f32.mrb[188].mxu1 }
 0x80f   :  { %v14772_v10 = vadd.f32 %v14585_v20, %v6496_v16  ;;  %v6498_v61 = vpop.f32.mrb[189].mxu1 }
 0x810   :  { %v6499_v13 = vpop.f32.mrb[190].mxu1  ;;  %v6662_v61 = vpack.c.bf16 %v6511_v50, %v6511_v50 }
 0x811   :  { %v6556_v24 = vmax.f32 %v14772_v10, 0.0  ;;  %v14776_v14 = vadd.f32 %v14585_v20, %v6499_v13  ;;  %v6501_v11 = vpop.f32.mrb[191].mxu1 }
 0x813   :  { %v6557_v21 = vmax.f32 %v14776_v14, 0.0 }
 0x816   :  { %v6504_v29 = vpop.f32.mrb[192].mxu1 }
 0x817   :  { %v14780_v46 = vadd.f32 %v14585_v20, %v6504_v29  ;;  %v6506_v56 = vpop.f32.mrb[193].mxu1 }
 0x818   :  { %v6507_v4 = vpop.f32.mrb[194].mxu1 }
 0x819   :  { %v6558_v49 = vmax.f32 %v14780_v46, 0.0  ;;  %v6508_v16 = vpop.f32.mrb[195].mxu1 }
 0x81a   :  { %10551 = dma.done.wait [#allocation5], 50176 }
 0x81b   :  { %10552 = vsyncadd [#allocation5], 4294917120  ;;  %v15798_v13 = vld [vmem:[#allocation11_spill] sm:$0xff]  ;;  %v15799_v11 = vld [vmem:[#allocation20_spill] sm:$0xff]  ;;  %7138 = vmatprep.mubr.bf16.mxu1 %v6662_v61  ;;  %v15800_v20 = vmov 0   ;;  %vm10557_vm0 = vmmov 0  }
 0x81c   :  { %8612 = vmatpush3.bf16.msra.mxu1 %v15798_v13  ;;  %10528 = vset.pattern.permute.xlu0 %v15800_v20  ;;  %v15801_v29 = vld [vmem:[#allocation12_spill] sm:$0xff]  ;;  %v15802_v4 = vld [vmem:[#allocation21_spill] sm:$0xff]  ;;  %v15804_v28 = vld [vmem:[#allocation22_spill] sm:$0xff] }
 0x81d   :  { %8613 = vmatprep.subr.bf16.mxu1 %v15799_v11  ;;  %v15803_v56 = vld [vmem:[#allocation13_spill] sm:$0xff]  ;;  %v15805_v6 = vld [vmem:[#allocation14_spill] sm:$0xff]  ;;  %v15806_v50 = vld [vmem:[#allocation23_spill] sm:$0xff] }
 0x81e   :  { %v15807_v16 = vld [vmem:[#allocation15_spill] sm:$0xff]  ;;  %v15808_v13 = vld [vmem:[#allocation24_spill] sm:$0xff]  ;;  %v15810_v61 = vld [vmem:[#allocation25_spill] sm:$0xff] }
 0x81f   :  { %v15809_v11 = vld [vmem:[#allocation16_spill] sm:$0xff]  ;;  %v15811_v20 = vld [vmem:[#allocation17_spill] sm:$0xff]  ;;  %v15822_v47 = vld [vmem:[#allocation39_spill] sm:$0xff] }
 0x820   :  { %8614 = vmatpush3.bf16.msra.mxu1 %v15801_v29  ;;  %v15812_v29 = vld [vmem:[#allocation26_spill] sm:$0xff]  ;;  %v15819_v60 = vld [vmem:[#allocation29_spill] sm:$0xff]  ;;  %v16218_v14 = vld [vmem:[#allocation391_spill] sm:$0xff] }
 0x821   :  { %8615 = vmatprep.subr.bf16.mxu1 %v15802_v4  ;;  %v6661_v4 = vpack.c.bf16 %v6510_v37, %v6510_v37  ;;  %v15820_v37 = vld [vmem:[#allocation38_spill] sm:$0xff] }
 0x824   :  { %8616 = vmatpush3.bf16.msra.mxu1 %v15803_v56  ;;  %v15813_v56 = vld [vmem:[#allocation18_spill] sm:$0xff] }
 0x825   :  { %8617 = vmatprep.subr.bf16.mxu1 %v15804_v28  ;;  %v6664_v28 = vpack.c.bf16 %v6513_v33, %v6513_v33  ;;  %v15823_v33 = vld [vmem:[#allocation31_spill] sm:$0xff] }
 0x828   :  { %8618 = vmatpush3.bf16.msra.mxu1 %v15805_v6  ;;  %v15814_v6 = vld [vmem:[#allocation35_spill] sm:$0xff] }
 0x829   :  { %8619 = vmatprep.subr.bf16.mxu1 %v15806_v50  ;;  %v15815_v50 = vld [vmem:[#allocation27_spill] sm:$0xff] }
 0x82c   :  { %8620 = vmatpush3.bf16.msra.mxu1 %v15807_v16  ;;  %v15816_v16 = vld [vmem:[#allocation36_spill] sm:$0xff] }
 0x82d   :  { %8621 = vmatprep.subr.bf16.mxu1 %v15808_v13  ;;  %v15817_v13 = vld [vmem:[#allocation28_spill] sm:$0xff] }
 0x830   :  { %8622 = vmatpush3.bf16.msra.mxu1 %v15809_v11  ;;  %v15818_v11 = vld [vmem:[#allocation37_spill] sm:$0xff] }
 0x831   :  { %8623 = vmatprep.subr.bf16.mxu1 %v15810_v61  ;;  %v15821_v61 = vld [vmem:[#allocation30_spill] sm:$0xff] }
 0x834   :  { %8624 = vmatpush3.bf16.msra.mxu1 %v15811_v20  ;;  %v15824_v20 = vld [vmem:[#allocation40_spill] sm:$0xff] }
 0x835   :  { %8625 = vmatprep.subr.bf16.mxu1 %v15812_v29  ;;  %v15825_v29 = vld [vmem:[#allocation32_spill] sm:$0xff] }
 0x838   :  { %8626 = vmatpush3.bf16.msra.mxu1 %v15813_v56  ;;  %v15827_v56 = vld [vmem:[#allocation33_spill] sm:$0xff] }
 0x839   :  { %8633 = vmatprep.subr.bf16.mxu1 %v15814_v6  ;;  %v15829_v6 = vmax.f32 %v14596_v55, 0.0  ;;  %v15837_v55 = vld [vmem:[#allocation45_spill] sm:$0xff] }
 0x83b   :  { %7139 = vmatmul.mubr.bf16.vlgmr.msra.gmra.mrb[196].mxu1 %v6661_v4  ;;  %v15826_v4 = vld [vmem:[#allocation41_spill] sm:$0xff] }
 0x83c   :  { %8634 = vmatpush3.bf16.msra.mxu1 %v15815_v50  ;;  %7178 = vmatprep.mubr.bf16.mxu1 %v6664_v28  ;;  %v15828_v28 = vld [vmem:[#allocation42_spill] sm:$0xff]  ;;  %v6663_v50 = vpack.c.bf16 %v15829_v6, %v15829_v6  ;;  %v15844_v6 = vld [vmem:[#allocation57_spill] sm:$0xff] }
 0x83d   :  { %8635 = vmatprep.subr.bf16.mxu1 %v15816_v16  ;;  %v15830_v16 = vld [vmem:[#allocation34_spill] sm:$0xff] }
 0x840   :  { %8636 = vmatpush3.bf16.msra.mxu1 %v15817_v13  ;;  %v15831_v13 = vmax.f32 %v14608_v52, 0.0  ;;  %v15840_v52 = vld [vmem:[#allocation55_spill] sm:$0xff] }
 0x841   :  { %8637 = vmatprep.subr.bf16.mxu1 %v15818_v11 }
 0x842   :  { %v6666_v11 = vpack.c.bf16 %v15831_v13, %v15831_v13  ;;  %v15847_v13 = vmax.f32 %v14604_v1, 0.0  ;;  %v15855_v1 = vld [vmem:[#allocation61_spill] sm:$0xff] }
 0x844   :  { %8638 = vmatpush3.bf16.msra.mxu1 %v15819_v60  ;;  %v15832_v60 = vld [vmem:[#allocation51_spill] sm:$0xff] }
 0x845   :  { %8639 = vmatprep.subr.bf16.mxu1 %v15820_v37  ;;  %v15833_v37 = vld [vmem:[#allocation43_spill] sm:$0xff] }
 0x848   :  { %8640 = vmatpush3.bf16.msra.mxu1 %v15821_v61  ;;  %v15834_v61 = vld [vmem:[#allocation52_spill] sm:$0xff] }
 0x849   :  { %8641 = vmatprep.subr.bf16.mxu1 %v15822_v47  ;;  %v15835_v47 = vld [vmem:[#allocation44_spill] sm:$0xff] }
 0x84c   :  { %8642 = vmatpush3.bf16.msra.mxu1 %v15823_v33  ;;  %v15836_v33 = vld [vmem:[#allocation53_spill] sm:$0xff] }
 0x84d   :  { %8643 = vmatprep.subr.bf16.mxu1 %v15824_v20  ;;  %v15838_v20 = vld [vmem:[#allocation54_spill] sm:$0xff] }
 0x850   :  { %8644 = vmatpush3.bf16.msra.mxu1 %v15825_v29  ;;  %v15839_v29 = vld [vmem:[#allocation46_spill] sm:$0xff] }
 0x851   :  { %8645 = vmatprep.subr.bf16.mxu1 %v15826_v4  ;;  %v15841_v4 = vld [vmem:[#allocation47_spill] sm:$0xff] }
 0x854   :  { %8646 = vmatpush3.bf16.msra.mxu1 %v15827_v56  ;;  %v15842_v56 = vld [vmem:[#allocation56_spill] sm:$0xff] }
 0x855   :  { %8647 = vmatprep.subr.bf16.mxu1 %v15828_v28  ;;  %v15843_v28 = vld [vmem:[#allocation48_spill] sm:$0xff] }
 0x858   :  { %8648 = vmatpush3.bf16.msra.mxu1 %v15830_v16  ;;  %v15846_v16 = vld [vmem:[#allocation58_spill] sm:$0xff] }
 0x859   :  { %8655 = vmatprep.subr.bf16.mxu1 %v15832_v60  ;;  %v15848_v60 = vld [vmem:[#allocation50_spill] sm:$0xff] }
 0x85b   :  { %7179 = vmatmul.mubr.bf16.vlgmr.msra.gmra.mrb[200].mxu1 %v6663_v50  ;;  %v15845_v50 = vld [vmem:[#allocation49_spill] sm:$0xff] }
 0x85c   :  { %8656 = vmatpush3.bf16.msra.mxu1 %v15833_v37  ;;  %7218 = vmatprep.mubr.bf16.mxu1 %v6666_v11  ;;  %v6665_v11 = vpack.c.bf16 %v15847_v13, %v15847_v13  ;;  %v15849_v37 = vmax.f32 %v14616_v25, 0.0  ;;  %v15858_v25 = vld [vmem:[#allocation71_spill] sm:$0xff]  ;;  %v15864_v13 = vld [vmem:[#allocation74_spill] sm:$0xff] }
 0x85d   :  { %8657 = vmatprep.subr.bf16.mxu1 %v15834_v61 }
 0x85e   :  { %v6668_v61 = vpack.c.bf16 %v15849_v37, %v15849_v37  ;;  %v15866_v37 = vld [vmem:[#allocation66_spill] sm:$0xff] }
 0x860   :  { %8658 = vmatpush3.bf16.msra.mxu1 %v15835_v47  ;;  %v15850_v47 = vld [vmem:[#allocation67_spill] sm:$0xff] }
 0x861   :  { %8659 = vmatprep.subr.bf16.mxu1 %v15836_v33  ;;  %v15851_v33 = vld [vmem:[#allocation59_spill] sm:$0xff] }
 0x864   :  { %8660 = vmatpush3.bf16.msra.mxu1 %v15837_v55  ;;  %v15852_v55 = vld [vmem:[#allocation68_spill] sm:$0xff] }
 0x865   :  { %8661 = vmatprep.subr.bf16.mxu1 %v15838_v20  ;;  %v15853_v20 = vld [vmem:[#allocation60_spill] sm:$0xff] }
 0x868   :  { %8662 = vmatpush3.bf16.msra.mxu1 %v15839_v29  ;;  %v15854_v29 = vld [vmem:[#allocation69_spill] sm:$0xff] }
 0x869   :  { %8663 = vmatprep.subr.bf16.mxu1 %v15840_v52  ;;  %v15856_v52 = vld [vmem:[#allocation70_spill] sm:$0xff] }
 0x86c   :  { %8664 = vmatpush3.bf16.msra.mxu1 %v15841_v4  ;;  %v15857_v4 = vld [vmem:[#allocation62_spill] sm:$0xff] }
 0x86d   :  { %8665 = vmatprep.subr.bf16.mxu1 %v15842_v56  ;;  %v15859_v56 = vld [vmem:[#allocation63_spill] sm:$0xff] }
 0x870   :  { %8666 = vmatpush3.bf16.msra.mxu1 %v15843_v28  ;;  %v15860_v28 = vld [vmem:[#allocation72_spill] sm:$0xff] }
 0x871   :  { %8667 = vmatprep.subr.bf16.mxu1 %v15844_v6  ;;  %v15861_v6 = vld [vmem:[#allocation64_spill] sm:$0xff] }
 0x874   :  { %8668 = vmatpush3.bf16.msra.mxu1 %v15845_v50  ;;  %v15862_v50 = vld [vmem:[#allocation73_spill] sm:$0xff] }
 0x875   :  { %8669 = vmatprep.subr.bf16.mxu1 %v15846_v16  ;;  %v15863_v16 = vld [vmem:[#allocation65_spill] sm:$0xff] }
 0x878   :  { %8670 = vmatpush3.bf16.msra.mxu1 %v15848_v60 }
 0x879   :  { %8677 = vmatprep.subr.bf16.mxu1 %v15850_v47 }
 0x87b   :  { %7219 = vmatmul.mubr.bf16.vlgmr.msra.gmra.mrb[204].mxu1 %v6665_v11  ;;  %v15865_v11 = vmax.f32 %v14612_v36, 0.0  ;;  %v15873_v36 = vld [vmem:[#allocation77_spill] sm:$0xff] }
 0x87c   :  { %8678 = vmatpush3.bf16.msra.mxu1 %v15851_v33  ;;  %7258 = vmatprep.mubr.bf16.mxu1 %v6668_v61  ;;  %v15867_v61 = vmax.f32 %v14624_v18, 0.0  ;;  %v15868_v33 = vld [vmem:[#allocation83_spill] sm:$0xff] }
 0x87d   :  { %8679 = vmatprep.subr.bf16.mxu1 %v15852_v55  ;;  %v6667_v60 = vpack.c.bf16 %v15865_v11, %v15865_v11  ;;  %v15869_v55 = vld [vmem:[#allocation75_spill] sm:$0xff] }
 0x87e   :  { %v6670_v47 = vpack.c.bf16 %v15867_v61, %v15867_v61  ;;  %v15876_v18 = vld [vmem:[#allocation87_spill] sm:$0xff] }
 0x880   :  { %8680 = vmatpush3.bf16.msra.mxu1 %v15853_v20  ;;  %v15870_v20 = vld [vmem:[#allocation84_spill] sm:$0xff] }
 0x881   :  { %8681 = vmatprep.subr.bf16.mxu1 %v15854_v29  ;;  %v15871_v29 = vld [vmem:[#allocation76_spill] sm:$0xff] }
 0x884   :  { %8682 = vmatpush3.bf16.msra.mxu1 %v15855_v1  ;;  %v15872_v1 = vld [vmem:[#allocation85_spill] sm:$0xff] }
 0x885   :  { %8683 = vmatprep.subr.bf16.mxu1 %v15856_v52  ;;  %v15874_v52 = vld [vmem:[#allocation86_spill] sm:$0xff] }
 0x888   :  { %8684 = vmatpush3.bf16.msra.mxu1 %v15857_v4  ;;  %v15875_v4 = vld [vmem:[#allocation78_spill] sm:$0xff] }
 0x889   :  { %8685 = vmatprep.subr.bf16.mxu1 %v15858_v25  ;;  %v15877_v25 = vld [vmem:[#allocation79_spill] sm:$0xff] }
 0x88c   :  { %8686 = vmatpush3.bf16.msra.mxu1 %v15859_v56  ;;  %v15878_v56 = vld [vmem:[#allocation88_spill] sm:$0xff] }
 0x88d   :  { %8687 = vmatprep.subr.bf16.mxu1 %v15860_v28  ;;  %v15879_v28 = vld [vmem:[#allocation80_spill] sm:$0xff] }
 0x890   :  { %8688 = vmatpush3.bf16.msra.mxu1 %v15861_v6  ;;  %v15880_v6 = vld [vmem:[#allocation89_spill] sm:$0xff] }
 0x891   :  { %8689 = vmatprep.subr.bf16.mxu1 %v15862_v50  ;;  %v15881_v50 = vld [vmem:[#allocation81_spill] sm:$0xff] }
 0x894   :  { %8690 = vmatpush3.bf16.msra.mxu1 %v15863_v16  ;;  %v15882_v16 = vld [vmem:[#allocation90_spill] sm:$0xff] }
 0x895   :  { %8691 = vmatprep.subr.bf16.mxu1 %v15864_v13  ;;  %v15883_v13 = vmax.f32 %v14620_v23, 0.0  ;;  %v15891_v23 = vld [vmem:[#allocation93_spill] sm:$0xff] }
 0x897   :  { %v6669_v11 = vpack.c.bf16 %v15883_v13, %v15883_v13  ;;  %v15903_v13 = vmax.f32 %v14640_v59, 0.0  ;;  %v15912_v59 = vld [vmem:[#allocation119_spill] sm:$0xff] }
 0x898   :  { %8692 = vmatpush3.bf16.msra.mxu1 %v15866_v37  ;;  %v15885_v37 = vmax.f32 %v14632_v42, 0.0  ;;  %v15894_v42 = vld [vmem:[#allocation103_spill] sm:$0xff] }
 0x899   :  { %8699 = vmatprep.subr.bf16.mxu1 %v15868_v33  ;;  %v15887_v33 = vld [vmem:[#allocation91_spill] sm:$0xff] }
 0x89a   :  { %v6672_v61 = vpack.c.bf16 %v15885_v37, %v15885_v37  ;;  %v15905_v37 = vld [vmem:[#allocation107_spill] sm:$0xff] }
 0x89b   :  { %7259 = vmatmul.mubr.bf16.vlgmr.msra.gmra.mrb[208].mxu1 %v6667_v60  ;;  %v15884_v60 = vld [vmem:[#allocation82_spill] sm:$0xff] }
 0x89c   :  { %8700 = vmatpush3.bf16.msra.mxu1 %v15869_v55  ;;  %7298 = vmatprep.mubr.bf16.mxu1 %v6670_v47  ;;  %v15886_v47 = vld [vmem:[#allocation99_spill] sm:$0xff]  ;;  %v15888_v55 = vld [vmem:[#allocation100_spill] sm:$0xff] }
 0x89d   :  { %8701 = vmatprep.subr.bf16.mxu1 %v15870_v20  ;;  %v15889_v20 = vld [vmem:[#allocation92_spill] sm:$0xff] }
 0x8a0   :  { %8702 = vmatpush3.bf16.msra.mxu1 %v15871_v29  ;;  %v15890_v29 = vld [vmem:[#allocation101_spill] sm:$0xff] }
 0x8a1   :  { %8703 = vmatprep.subr.bf16.mxu1 %v15872_v1  ;;  %v15892_v1 = vld [vmem:[#allocation102_spill] sm:$0xff] }
 0x8a4   :  { %8704 = vmatpush3.bf16.msra.mxu1 %v15873_v36  ;;  %v15893_v36 = vld [vmem:[#allocation94_spill] sm:$0xff] }
 0x8a5   :  { %8705 = vmatprep.subr.bf16.mxu1 %v15874_v52  ;;  %v15895_v52 = vld [vmem:[#allocation95_spill] sm:$0xff] }
 0x8a8   :  { %8706 = vmatpush3.bf16.msra.mxu1 %v15875_v4  ;;  %v15896_v4 = vld [vmem:[#allocation104_spill] sm:$0xff] }
 0x8a9   :  { %8707 = vmatprep.subr.bf16.mxu1 %v15876_v18  ;;  %v15897_v18 = vld [vmem:[#allocation96_spill] sm:$0xff] }
 0x8ac   :  { %8708 = vmatpush3.bf16.msra.mxu1 %v15877_v25  ;;  %v15898_v25 = vld [vmem:[#allocation105_spill] sm:$0xff] }
 0x8ad   :  { %8709 = vmatprep.subr.bf16.mxu1 %v15878_v56  ;;  %v15899_v56 = vld [vmem:[#allocation97_spill] sm:$0xff] }
 0x8b0   :  { %8710 = vmatpush3.bf16.msra.mxu1 %v15879_v28  ;;  %v15900_v28 = vld [vmem:[#allocation106_spill] sm:$0xff] }
 0x8b1   :  { %8711 = vmatprep.subr.bf16.mxu1 %v15880_v6  ;;  %v15901_v6 = vmax.f32 %v14628_v9, 0.0  ;;  %v15909_v9 = vld [vmem:[#allocation109_spill] sm:$0xff] }
 0x8b4   :  { %8712 = vmatpush3.bf16.msra.mxu1 %v15881_v50  ;;  %v6671_v50 = vpack.c.bf16 %v15901_v6, %v15901_v6  ;;  %v15922_v6 = vld [vmem:[#allocation131_spill] sm:$0xff] }
 0x8b5   :  { %8713 = vmatprep.subr.bf16.mxu1 %v15882_v16  ;;  %v15902_v16 = vld [vmem:[#allocation98_spill] sm:$0xff] }
 0x8b8   :  { %8714 = vmatpush3.bf16.msra.mxu1 %v15884_v60  ;;  %v15904_v60 = vld [vmem:[#allocation115_spill] sm:$0xff] }
 0x8b9   :  { %8721 = vmatprep.subr.bf16.mxu1 %v15886_v47  ;;  %v15907_v47 = vld [vmem:[#allocation108_spill] sm:$0xff] }
 0x8bb   :  { %7299 = vmatmul.mubr.bf16.vlgmr.msra.gmra.mrb[212].mxu1 %v6669_v11  ;;  %v6674_v11 = vpack.c.bf16 %v15903_v13, %v15903_v13  ;;  %v15925_v13 = vld [vmem:[#allocation124_spill] sm:$0xff] }
 0x8bc   :  { %8722 = vmatpush3.bf16.msra.mxu1 %v15887_v33  ;;  %7338 = vmatprep.mubr.bf16.mxu1 %v6672_v61  ;;  %v15906_v61 = vld [vmem:[#allocation116_spill] sm:$0xff]  ;;  %v15908_v33 = vld [vmem:[#allocation117_spill] sm:$0xff] }
 0x8bd   :  { %8723 = vmatprep.subr.bf16.mxu1 %v15888_v55  ;;  %v15910_v55 = vld [vmem:[#allocation118_spill] sm:$0xff] }
 0x8c0   :  { %8724 = vmatpush3.bf16.msra.mxu1 %v15889_v20  ;;  %v15911_v20 = vld [vmem:[#allocation110_spill] sm:$0xff] }
 0x8c1   :  { %8725 = vmatprep.subr.bf16.mxu1 %v15890_v29  ;;  %v15913_v29 = vld [vmem:[#allocation111_spill] sm:$0xff] }
 0x8c4   :  { %8726 = vmatpush3.bf16.msra.mxu1 %v15891_v23  ;;  %v15914_v23 = vld [vmem:[#allocation120_spill] sm:$0xff] }
 0x8c5   :  { %8727 = vmatprep.subr.bf16.mxu1 %v15892_v1  ;;  %v15915_v1 = vld [vmem:[#allocation112_spill] sm:$0xff] }
 0x8c8   :  { %8728 = vmatpush3.bf16.msra.mxu1 %v15893_v36  ;;  %v15916_v36 = vld [vmem:[#allocation121_spill] sm:$0xff] }
 0x8c9   :  { %8729 = vmatprep.subr.bf16.mxu1 %v15894_v42  ;;  %v15917_v42 = vld [vmem:[#allocation113_spill] sm:$0xff] }
 0x8cc   :  { %8730 = vmatpush3.bf16.msra.mxu1 %v15895_v52  ;;  %v15918_v52 = vld [vmem:[#allocation122_spill] sm:$0xff] }
 0x8cd   :  { %8731 = vmatprep.subr.bf16.mxu1 %v15896_v4  ;;  %v15919_v4 = vmax.f32 %v14636_v3, 0.0  ;;  %v15927_v3 = vld [vmem:[#allocation125_spill] sm:$0xff] }
 0x8d0   :  { %8732 = vmatpush3.bf16.msra.mxu1 %v15897_v18  ;;  %v6673_v18 = vpack.c.bf16 %v15919_v4, %v15919_v4  ;;  %v15938_v4 = vld [vmem:[#allocation130_spill] sm:$0xff] }
 0x8d1   :  { %8733 = vmatprep.subr.bf16.mxu1 %v15898_v25  ;;  %v15920_v25 = vld [vmem:[#allocation114_spill] sm:$0xff] }
 0x8d4   :  { %8734 = vmatpush3.bf16.msra.mxu1 %v15899_v56  ;;  %v15921_v56 = vmax.f32 %v14648_v15, 0.0  ;;  %v15930_v15 = vld [vmem:[#allocation135_spill] sm:$0xff] }
 0x8d5   :  { %8735 = vmatprep.subr.bf16.mxu1 %v15900_v28 }
 0x8d6   :  { %v6676_v28 = vpack.c.bf16 %v15921_v56, %v15921_v56  ;;  %v15940_v56 = vld [vmem:[#allocation147_spill] sm:$0xff] }
 0x8d8   :  { %8736 = vmatpush3.bf16.msra.mxu1 %v15902_v16  ;;  %v15924_v16 = vld [vmem:[#allocation132_spill] sm:$0xff] }
 0x8d9   :  { %8743 = vmatprep.subr.bf16.mxu1 %v15904_v60  ;;  %v15928_v60 = vld [vmem:[#allocation134_spill] sm:$0xff] }
 0x8db   :  { %7339 = vmatmul.mubr.bf16.vlgmr.msra.gmra.mrb[216].mxu1 %v6671_v50  ;;  %v15923_v50 = vld [vmem:[#allocation123_spill] sm:$0xff] }
 0x8dc   :  { %8744 = vmatpush3.bf16.msra.mxu1 %v15905_v37  ;;  %7378 = vmatprep.mubr.bf16.mxu1 %v6674_v11  ;;  %v15926_v11 = vld [vmem:[#allocation133_spill] sm:$0xff]  ;;  %v15929_v37 = vld [vmem:[#allocation126_spill] sm:$0xff] }
 0x8dd   :  { %8745 = vmatprep.subr.bf16.mxu1 %v15906_v61  ;;  %v15931_v61 = vld [vmem:[#allocation127_spill] sm:$0xff] }
 0x8e0   :  { %8746 = vmatpush3.bf16.msra.mxu1 %v15907_v47  ;;  %v15932_v47 = vld [vmem:[#allocation136_spill] sm:$0xff] }
 0x8e1   :  { %8747 = vmatprep.subr.bf16.mxu1 %v15908_v33 }
 0x8e4   :  { %8748 = vmatpush3.bf16.msra.mxu1 %v15909_v9 }
 0x8e5   :  { %8749 = vmatprep.subr.bf16.mxu1 %v15910_v55 }
 0x8e8   :  { %8750 = vmatpush3.bf16.msra.mxu1 %v15911_v20 }
 0x8e9   :  { %8751 = vmatprep.subr.bf16.mxu1 %v15912_v59  ;;  %v15933_v59 = vld [vmem:[#allocation128_spill] sm:$0xff] }
 0x8ec   :  { %8752 = vmatpush3.bf16.msra.mxu1 %v15913_v29 }
 0x8ed   :  { %8753 = vmatprep.subr.bf16.mxu1 %v15914_v23  ;;  %v15934_v23 = vld [vmem:[#allocation137_spill] sm:$0xff] }
 0x8f0   :  { %8754 = vmatpush3.bf16.msra.mxu1 %v15915_v1  ;;  %v15935_v1 = vld [vmem:[#allocation129_spill] sm:$0xff] }
 0x8f1   :  { %8755 = vmatprep.subr.bf16.mxu1 %v15916_v36  ;;  %v15936_v36 = vld [vmem:[#allocation138_spill] sm:$0xff] }
 0x8f4   :  { %8756 = vmatpush3.bf16.msra.mxu1 %v15917_v42  ;;  %v15937_v42 = vmax.f32 %v14644_v31, 0.0  ;;  %v15945_v31 = vld [vmem:[#allocation141_spill] sm:$0xff] }
 0x8f5   :  { %8757 = vmatprep.subr.bf16.mxu1 %v15918_v52 }
 0x8f6   :  { %v6675_v52 = vpack.c.bf16 %v15937_v42, %v15937_v42  ;;  %v15956_v42 = vmax.f32 %v14652_v19, 0.0  ;;  %v15964_v19 = vld [vmem:[#allocation157_spill] sm:$0xff] }
 0x8f8   :  { %8758 = vmatpush3.bf16.msra.mxu1 %v15920_v25 }
 0x8f9   :  { %8765 = vmatprep.subr.bf16.mxu1 %v15922_v6  ;;  %v15942_v6 = vld [vmem:[#allocation148_spill] sm:$0xff] }
 0x8fb   :  { %7379 = vmatmul.mubr.bf16.vlgmr.msra.gmra.mrb[220].mxu1 %v6673_v18  ;;  %v15939_v18 = vmax.f32 %v14656_v27, 0.0  ;;  %v15948_v27 = vld [vmem:[#allocation151_spill] sm:$0xff] }
 0x8fc   :  { %8766 = vmatpush3.bf16.msra.mxu1 %v15923_v50  ;;  %7418 = vmatprep.mubr.bf16.mxu1 %v6676_v28  ;;  %v15941_v28 = vld [vmem:[#allocation139_spill] sm:$0xff]  ;;  %v15943_v50 = vld [vmem:[#allocation140_spill] sm:$0xff] }
 0x8fd   :  { %8767 = vmatprep.subr.bf16.mxu1 %v15924_v16  ;;  %v6678_v25 = vpack.c.bf16 %v15939_v18, %v15939_v18  ;;  %v15944_v16 = vld [vmem:[#allocation149_spill] sm:$0xff] }
 0x900   :  { %8768 = vmatpush3.bf16.msra.mxu1 %v15925_v13  ;;  %v15946_v13 = vld [vmem:[#allocation150_spill] sm:$0xff] }
 0x901   :  { %8769 = vmatprep.subr.bf16.mxu1 %v15926_v11  ;;  %v15947_v11 = vld [vmem:[#allocation142_spill] sm:$0xff] }
 0x904   :  { %8770 = vmatpush3.bf16.msra.mxu1 %v15927_v3  ;;  %v15949_v3 = vld [vmem:[#allocation143_spill] sm:$0xff] }
 0x905   :  { %8771 = vmatprep.subr.bf16.mxu1 %v15928_v60  ;;  %v15950_v60 = vld [vmem:[#allocation152_spill] sm:$0xff] }
 0x908   :  { %8772 = vmatpush3.bf16.msra.mxu1 %v15929_v37 }
 0x909   :  { %8773 = vmatprep.subr.bf16.mxu1 %v15930_v15 }
 0x90c   :  { %8774 = vmatpush3.bf16.msra.mxu1 %v15931_v61  ;;  %v15951_v61 = vld [vmem:[#allocation403_spill] sm:$0xff] }
 0x90d   :  { %8775 = vmatprep.subr.bf16.mxu1 %v15932_v47 }
 0x90e   :  { %v8627_v33 = vpop.f32.mrb[196].mxu1 }
 0x90f   :  { %v8628_v9 = vpop.f32.mrb[197].mxu1 }
 0x910   :  { %v8629_v55 = vadd.f32 %v8628_v9, %v8627_v33  ;;  %v8630_v20 = vpop.f32.mrb[198].mxu1  ;;  %8776 = vmatpush3.bf16.msra.mxu1 %v15933_v59 }
 0x911   :  { %v8631_v29 = vpop.f32.mrb[199].mxu1  ;;  %8777 = vmatprep.subr.bf16.mxu1 %v15934_v23  ;;  %v15952_v20 = vld [vmem:[#allocation144_spill] sm:$0xff] }
 0x912   :  { %v7141_v47 = vadd.f32 %v8629_v55, %v15951_v61  ;;  %v15953_v29 = vld [vmem:[#allocation153_spill] sm:$0xff]  ;;  %v15958_v55 = vmax.f32 %v14664_v12, 0.0  ;;  %v15967_v12 = vld [vmem:[#allocation167_spill] sm:$0xff] }
 0x914   :  { %8778 = vmatpush3.bf16.msra.mxu1 %v15935_v1  ;;  %v15954_v1 = vld [vmem:[#allocation145_spill] sm:$0xff]  ;;  %v6680_v18 = vpack.c.bf16 %v15958_v55, %v15958_v55  ;;  %v15980_v55 = vld [vmem:[#allocation172_spill] sm:$0xff] }
 0x915   :  { %8779 = vmatprep.subr.bf16.mxu1 %v15936_v36  ;;  %v15955_v36 = vld [vmem:[#allocation154_spill] sm:$0xff] }
 0x918   :  { %8780 = vmatpush3.bf16.msra.mxu1 %v15938_v4  ;;  %v15957_v4 = vld [vmem:[#allocation146_spill] sm:$0xff] }
 0x919   :  { %8787 = vmatprep.subr.bf16.mxu1 %v15940_v56  ;;  %v15960_v56 = vld [vmem:[#allocation155_spill] sm:$0xff] }
 0x91b   :  { %7419 = vmatmul.mubr.bf16.vlgmr.msra.gmra.mrb[224].mxu1 %v6675_v52  ;;  %v6677_v52 = vpack.c.bf16 %v15956_v42, %v15956_v42 }
 0x91c   :  { %8788 = vmatpush3.bf16.msra.mxu1 %v15941_v28  ;;  %7458 = vmatprep.mubr.bf16.mxu1 %v6678_v25  ;;  %v15959_v25 = vld [vmem:[#allocation163_spill] sm:$0xff]  ;;  %v15961_v28 = vld [vmem:[#allocation164_spill] sm:$0xff] }
 0x91d   :  { %8789 = vmatprep.subr.bf16.mxu1 %v15942_v6  ;;  %v15962_v6 = vld [vmem:[#allocation156_spill] sm:$0xff] }
 0x920   :  { %8790 = vmatpush3.bf16.msra.mxu1 %v15943_v50  ;;  %v15963_v50 = vld [vmem:[#allocation165_spill] sm:$0xff] }
 0x921   :  { %8791 = vmatprep.subr.bf16.mxu1 %v15944_v16  ;;  %v15965_v16 = vld [vmem:[#allocation166_spill] sm:$0xff] }
 0x924   :  { %8792 = vmatpush3.bf16.msra.mxu1 %v15945_v31  ;;  %v15966_v31 = vld [vmem:[#allocation158_spill] sm:$0xff] }
 0x925   :  { %8793 = vmatprep.subr.bf16.mxu1 %v15946_v13  ;;  %v15968_v13 = vld [vmem:[#allocation159_spill] sm:$0xff] }
 0x928   :  { %8794 = vmatpush3.bf16.msra.mxu1 %v15947_v11  ;;  %v15969_v11 = vld [vmem:[#allocation168_spill] sm:$0xff] }
 0x929   :  { %8795 = vmatprep.subr.bf16.mxu1 %v15948_v27 }
 0x92c   :  { %8796 = vmatpush3.bf16.msra.mxu1 %v15949_v3 }
 0x92d   :  { %8797 = vmatprep.subr.bf16.mxu1 %v15950_v60 }
 0x92e   :  { %v8649_v37 = vpop.f32.mrb[200].mxu1 }
 0x92f   :  { %v8650_v15 = vpop.f32.mrb[201].mxu1 }
 0x930   :  { %v8651_v33 = vadd.f32 %v8650_v15, %v8649_v37  ;;  %v8652_v9 = vpop.f32.mrb[202].mxu1  ;;  %8798 = vmatpush3.bf16.msra.mxu1 %v15952_v20  ;;  %v15970_v15 = vld [vmem:[#allocation160_spill] sm:$0xff]  ;;  %v15973_v20 = vld [vmem:[#allocation170_spill] sm:$0xff] }
 0x931   :  { %v8653_v59 = vpop.f32.mrb[203].mxu1  ;;  %8799 = vmatprep.subr.bf16.mxu1 %v15953_v29  ;;  %v15972_v9 = vld [vmem:[#allocation161_spill] sm:$0xff] }
 0x932   :  { %v7181_v23 = vadd.f32 %v8651_v33, %v7141_v47  ;;  %v15971_v47 = vld [vmem:[#allocation169_spill] sm:$0xff]  ;;  %v15974_v59 = vmax.f32 %v14660_v5, 0.0 }
 0x933   :  { %v15982_v5 = vld [vmem:[#allocation173_spill] sm:$0xff] }
 0x934   :  { %8800 = vmatpush3.bf16.msra.mxu1 %v15954_v1  ;;  %v6679_v29 = vpack.c.bf16 %v15974_v59, %v15974_v59  ;;  %v15975_v1 = vld [vmem:[#allocation162_spill] sm:$0xff]  ;;  %v15996_v59 = vld [vmem:[#allocation187_spill] sm:$0xff] }
 0x935   :  { %8801 = vmatprep.subr.bf16.mxu1 %v15955_v36  ;;  %v15976_v36 = vmax.f32 %v14672_v39, 0.0  ;;  %v15985_v39 = vld [vmem:[#allocation183_spill] sm:$0xff] }
 0x937   :  { %v6682_v42 = vpack.c.bf16 %v15976_v36, %v15976_v36  ;;  %v16001_v36 = vld [vmem:[#allocation198_spill] sm:$0xff] }
 0x938   :  { %8802 = vmatpush3.bf16.msra.mxu1 %v15957_v4  ;;  %v15978_v4 = vld [vmem:[#allocation171_spill] sm:$0xff] }
 0x939   :  { %8809 = vmatprep.subr.bf16.mxu1 %v15959_v25  ;;  %v15983_v25 = vld [vmem:[#allocation182_spill] sm:$0xff] }
 0x93b   :  { %7459 = vmatmul.mubr.bf16.vlgmr.msra.gmra.mrb[228].mxu1 %v6677_v52  ;;  %v15977_v52 = vld [vmem:[#allocation179_spill] sm:$0xff] }
 0x93c   :  { %8810 = vmatpush3.bf16.msra.mxu1 %v15960_v56  ;;  %7498 = vmatprep.mubr.bf16.mxu1 %v6680_v18  ;;  %v15981_v18 = vld [vmem:[#allocation181_spill] sm:$0xff]  ;;  %v15984_v56 = vld [vmem:[#allocation174_spill] sm:$0xff] }
 0x93d   :  { %8811 = vmatprep.subr.bf16.mxu1 %v15961_v28  ;;  %v15986_v28 = vld [vmem:[#allocation175_spill] sm:$0xff] }
 0x940   :  { %8812 = vmatpush3.bf16.msra.mxu1 %v15962_v6  ;;  %v15987_v6 = vld [vmem:[#allocation184_spill] sm:$0xff] }
 0x941   :  { %8813 = vmatprep.subr.bf16.mxu1 %v15963_v50 }
 0x944   :  { %8814 = vmatpush3.bf16.msra.mxu1 %v15964_v19 }
 0x945   :  { %8815 = vmatprep.subr.bf16.mxu1 %v15965_v16 }
 0x948   :  { %8816 = vmatpush3.bf16.msra.mxu1 %v15966_v31 }
 0x949   :  { %8817 = vmatprep.subr.bf16.mxu1 %v15967_v12  ;;  %v15988_v12 = vld [vmem:[#allocation176_spill] sm:$0xff] }
 0x94c   :  { %8818 = vmatpush3.bf16.msra.mxu1 %v15968_v13 }
 0x94d   :  { %8819 = vmatprep.subr.bf16.mxu1 %v15969_v11  ;;  %v15989_v11 = vld [vmem:[#allocation185_spill] sm:$0xff] }
 0x94e   :  { %v8671_v27 = vpop.f32.mrb[204].mxu1 }
 0x94f   :  { %v8672_v3 = vpop.f32.mrb[205].mxu1 }
 0x950   :  { %v8673_v60 = vadd.f32 %v8672_v3, %v8671_v27  ;;  %v8674_v37 = vpop.f32.mrb[206].mxu1  ;;  %8820 = vmatpush3.bf16.msra.mxu1 %v15970_v15  ;;  %v15990_v3 = vld [vmem:[#allocation177_spill] sm:$0xff] }
 0x951   :  { %v8675_v61 = vpop.f32.mrb[207].mxu1  ;;  %8821 = vmatprep.subr.bf16.mxu1 %v15971_v47  ;;  %v15992_v37 = vmax.f32 %v14668_v57, 0.0  ;;  %v15994_v47 = vmax.f32 %v14680_v26, 0.0  ;;  %v16000_v57 = vld [vmem:[#allocation189_spill] sm:$0xff]  ;;  %v16003_v26 = vld [vmem:[#allocation199_spill] sm:$0xff] }
 0x952   :  { %v7221_v33 = vadd.f32 %v8673_v60, %v7181_v23  ;;  %v15979_v23 = vld [vmem:[#allocation180_spill] sm:$0xff]  ;;  %v15991_v60 = vld [vmem:[#allocation186_spill] sm:$0xff] }
 0x953   :  { %v6681_v15 = vpack.c.bf16 %v15992_v37, %v15992_v37  ;;  %v15993_v61 = vld [vmem:[#allocation178_spill] sm:$0xff]  ;;  %v16017_v37 = vld [vmem:[#allocation213_spill] sm:$0xff] }
 0x954   :  { %8822 = vmatpush3.bf16.msra.mxu1 %v15972_v9  ;;  %v6684_v9 = vpack.c.bf16 %v15994_v47, %v15994_v47  ;;  %v16022_v47 = vld [vmem:[#allocation207_spill] sm:$0xff] }
 0x955   :  { %8823 = vmatprep.subr.bf16.mxu1 %v15973_v20  ;;  %v15995_v20 = vld [vmem:[#allocation195_spill] sm:$0xff] }
 0x958   :  { %8824 = vmatpush3.bf16.msra.mxu1 %v15975_v1  ;;  %v15999_v1 = vld [vmem:[#allocation197_spill] sm:$0xff] }
 0x959   :  { %8831 = vmatprep.subr.bf16.mxu1 %v15977_v52  ;;  %v16004_v52 = vld [vmem:[#allocation191_spill] sm:$0xff] }
 0x95b   :  { %7499 = vmatmul.mubr.bf16.vlgmr.msra.gmra.mrb[232].mxu1 %v6679_v29  ;;  %v15998_v29 = vld [vmem:[#allocation188_spill] sm:$0xff] }
 0x95c   :  { %8832 = vmatpush3.bf16.msra.mxu1 %v15978_v4  ;;  %7538 = vmatprep.mubr.bf16.mxu1 %v6682_v42  ;;  %v16002_v42 = vld [vmem:[#allocation190_spill] sm:$0xff]  ;;  %v16005_v4 = vld [vmem:[#allocation200_spill] sm:$0xff] }
 0x95d   :  { %8833 = vmatprep.subr.bf16.mxu1 %v15979_v23 }
 0x960   :  { %8834 = vmatpush3.bf16.msra.mxu1 %v15980_v55 }
 0x961   :  { %8835 = vmatprep.subr.bf16.mxu1 %v15981_v18 }
 0x964   :  { %8836 = vmatpush3.bf16.msra.mxu1 %v15982_v5 }
 0x965   :  { %8837 = vmatprep.subr.bf16.mxu1 %v15983_v25  ;;  %v16006_v25 = vld [vmem:[#allocation192_spill] sm:$0xff] }
 0x968   :  { %8838 = vmatpush3.bf16.msra.mxu1 %v15984_v56 }
 0x969   :  { %8839 = vmatprep.subr.bf16.mxu1 %v15985_v39  ;;  %v16007_v39 = vld [vmem:[#allocation201_spill] sm:$0xff] }
 0x96c   :  { %8840 = vmatpush3.bf16.msra.mxu1 %v15986_v28 }
 0x96d   :  { %8841 = vmatprep.subr.bf16.mxu1 %v15987_v6  ;;  %v16008_v6 = vld [vmem:[#allocation193_spill] sm:$0xff] }
 0x96e   :  { %v8693_v50 = vpop.f32.mrb[208].mxu1 }
 0x96f   :  { %v8694_v19 = vpop.f32.mrb[209].mxu1 }
 0x970   :  { %v8695_v16 = vadd.f32 %v8694_v19, %v8693_v50  ;;  %v8696_v31 = vpop.f32.mrb[210].mxu1  ;;  %8842 = vmatpush3.bf16.msra.mxu1 %v15988_v12  ;;  %v16009_v50 = vld [vmem:[#allocation202_spill] sm:$0xff]  ;;  %v16010_v19 = vmax.f32 %v14676_v32, 0.0  ;;  %v16012_v12 = vmax.f32 %v14688_v2, 0.0  ;;  %v16018_v32 = vld [vmem:[#allocation205_spill] sm:$0xff]  ;;  %v16021_v2 = vld [vmem:[#allocation215_spill] sm:$0xff] }
 0x971   :  { %v8697_v13 = vpop.f32.mrb[211].mxu1  ;;  %8843 = vmatprep.subr.bf16.mxu1 %v15989_v11  ;;  %v16011_v31 = vld [vmem:[#allocation194_spill] sm:$0xff]  ;;  %v16013_v11 = vld [vmem:[#allocation211_spill] sm:$0xff] }
 0x972   :  { %v7261_v27 = vadd.f32 %v8695_v16, %v7221_v33  ;;  %v15997_v33 = vld [vmem:[#allocation196_spill] sm:$0xff]  ;;  %v6683_v16 = vpack.c.bf16 %v16010_v19, %v16010_v19  ;;  %v6686_v13 = vpack.c.bf16 %v16012_v12, %v16012_v12  ;;  %v16038_v19 = vld [vmem:[#allocation222_spill] sm:$0xff] }
 0x974   :  { %8844 = vmatpush3.bf16.msra.mxu1 %v15990_v3  ;;  %v16014_v3 = vld [vmem:[#allocation203_spill] sm:$0xff] }
 0x975   :  { %8845 = vmatprep.subr.bf16.mxu1 %v15991_v60  ;;  %v16016_v60 = vld [vmem:[#allocation204_spill] sm:$0xff] }
 0x978   :  { %8846 = vmatpush3.bf16.msra.mxu1 %v15993_v61  ;;  %v16020_v61 = vld [vmem:[#allocation206_spill] sm:$0xff] }
 0x979   :  { %8853 = vmatprep.subr.bf16.mxu1 %v15995_v20 }
 0x97b   :  { %7539 = vmatmul.mubr.bf16.vlgmr.msra.gmra.mrb[236].mxu1 %v6681_v15  ;;  %v16019_v15 = vld [vmem:[#allocation214_spill] sm:$0xff] }
 0x97c   :  { %8854 = vmatpush3.bf16.msra.mxu1 %v15996_v59  ;;  %7578 = vmatprep.mubr.bf16.mxu1 %v6684_v9  ;;  %v16023_v9 = vld [vmem:[#allocation216_spill] sm:$0xff] }
 0x97d   :  { %8855 = vmatprep.subr.bf16.mxu1 %v15997_v33 }
 0x980   :  { %8856 = vmatpush3.bf16.msra.mxu1 %v15998_v29 }
 0x981   :  { %8857 = vmatprep.subr.bf16.mxu1 %v15999_v1  ;;  %v16024_v1 = vld [vmem:[#allocation208_spill] sm:$0xff] }
 0x984   :  { %8858 = vmatpush3.bf16.msra.mxu1 %v16000_v57 }
 0x985   :  { %8859 = vmatprep.subr.bf16.mxu1 %v16001_v36  ;;  %v16025_v36 = vld [vmem:[#allocation217_spill] sm:$0xff] }
 0x988   :  { %8860 = vmatpush3.bf16.msra.mxu1 %v16002_v42 }
 0x989   :  { %8861 = vmatprep.subr.bf16.mxu1 %v16003_v26  ;;  %v16026_v26 = vld [vmem:[#allocation209_spill] sm:$0xff] }
 0x98c   :  { %8862 = vmatpush3.bf16.msra.mxu1 %v16004_v52  ;;  %v16027_v52 = vld [vmem:[#allocation218_spill] sm:$0xff] }
 0x98d   :  { %8863 = vmatprep.subr.bf16.mxu1 %v16005_v4  ;;  %v16028_v4 = vmax.f32 %v14684_v63, 0.0  ;;  %v16036_v63 = vld [vmem:[#allocation221_spill] sm:$0xff] }
 0x98e   :  { %v8715_v23 = vpop.f32.mrb[212].mxu1 }
 0x98f   :  { %v8716_v55 = vpop.f32.mrb[213].mxu1 }
 0x990   :  { %v8717_v18 = vadd.f32 %v8716_v55, %v8715_v23  ;;  %v8718_v5 = vpop.f32.mrb[214].mxu1  ;;  %8864 = vmatpush3.bf16.msra.mxu1 %v16006_v25  ;;  %v6685_v23 = vpack.c.bf16 %v16028_v4, %v16028_v4  ;;  %v16029_v55 = vld [vmem:[#allocation210_spill] sm:$0xff]  ;;  %v16031_v25 = vld [vmem:[#allocation227_spill] sm:$0xff]  ;;  %v16059_v4 = vld [vmem:[#allocation248_spill] sm:$0xff] }
 0x991   :  { %v8719_v56 = vpop.f32.mrb[215].mxu1  ;;  %8865 = vmatprep.subr.bf16.mxu1 %v16007_v39  ;;  %v16033_v39 = vld [vmem:[#allocation228_spill] sm:$0xff] }
 0x992   :  { %v7301_v28 = vadd.f32 %v8717_v18, %v7261_v27  ;;  %v16015_v27 = vld [vmem:[#allocation212_spill] sm:$0xff]  ;;  %v16030_v18 = vmax.f32 %v14696_v30, 0.0  ;;  %v16032_v56 = vld [vmem:[#allocation219_spill] sm:$0xff] }
 0x993   :  { %v16039_v30 = vld [vmem:[#allocation231_spill] sm:$0xff] }
 0x994   :  { %8866 = vmatpush3.bf16.msra.mxu1 %v16008_v6  ;;  %v6688_v5 = vpack.c.bf16 %v16030_v18, %v16030_v18  ;;  %v16035_v6 = vld [vmem:[#allocation229_spill] sm:$0xff] }
 0x995   :  { %8867 = vmatprep.subr.bf16.mxu1 %v16009_v50  ;;  %v16037_v50 = vld [vmem:[#allocation230_spill] sm:$0xff] }
 0x998   :  { %8868 = vmatpush3.bf16.msra.mxu1 %v16011_v31  ;;  %v16041_v31 = vld [vmem:[#allocation232_spill] sm:$0xff] }
 0x999   :  { %8875 = vmatprep.subr.bf16.mxu1 %v16013_v11 }
 0x99b   :  { %7579 = vmatmul.mubr.bf16.vlgmr.msra.gmra.mrb[240].mxu1 %v6683_v16  ;;  %v16040_v16 = vld [vmem:[#allocation223_spill] sm:$0xff] }
 0x99c   :  { %8876 = vmatpush3.bf16.msra.mxu1 %v16014_v3  ;;  %7618 = vmatprep.mubr.bf16.mxu1 %v6686_v13 }
 0x99d   :  { %8877 = vmatprep.subr.bf16.mxu1 %v16015_v27  ;;  %v16042_v27 = vld [vmem:[#allocation224_spill] sm:$0xff] }
 0x9a0   :  { %8878 = vmatpush3.bf16.msra.mxu1 %v16016_v60 }
 0x9a1   :  { %8879 = vmatprep.subr.bf16.mxu1 %v16017_v37  ;;  %v16043_v37 = vld [vmem:[#allocation233_spill] sm:$0xff] }
 0x9a4   :  { %8880 = vmatpush3.bf16.msra.mxu1 %v16018_v32 }
 0x9a5   :  { %8881 = vmatprep.subr.bf16.mxu1 %v16019_v15  ;;  %v16044_v15 = vld [vmem:[#allocation225_spill] sm:$0xff] }
 0x9a8   :  { %8882 = vmatpush3.bf16.msra.mxu1 %v16020_v61  ;;  %v16045_v61 = vld [vmem:[#allocation234_spill] sm:$0xff] }
 0x9a9   :  { %8883 = vmatprep.subr.bf16.mxu1 %v16021_v2  ;;  %v16046_v2 = vmax.f32 %v14692_v0, 0.0  ;;  %v16054_v0 = vld [vmem:[#allocation237_spill] sm:$0xff] }
 0x9ac   :  { %8884 = vmatpush3.bf16.msra.mxu1 %v16022_v47  ;;  %v6687_v47 = vpack.c.bf16 %v16046_v2, %v16046_v2 }
 0x9ad   :  { %8885 = vmatprep.subr.bf16.mxu1 %v16023_v9  ;;  %v16047_v9 = vld [vmem:[#allocation226_spill] sm:$0xff] }
 0x9ae   :  { %v8737_v20 = vpop.f32.mrb[216].mxu1 }
 0x9af   :  { %v8738_v59 = vpop.f32.mrb[217].mxu1 }
 0x9b0   :  { %v8739_v33 = vadd.f32 %v8738_v59, %v8737_v20  ;;  %v8740_v29 = vpop.f32.mrb[218].mxu1  ;;  %8886 = vmatpush3.bf16.msra.mxu1 %v16024_v1  ;;  %v16048_v20 = vmax.f32 %v14704_v53, 0.0  ;;  %v16051_v1 = vld [vmem:[#allocation244_spill] sm:$0xff]  ;;  %v16057_v53 = vld [vmem:[#allocation247_spill] sm:$0xff] }
 0x9b1   :  { %v8741_v57 = vpop.f32.mrb[219].mxu1  ;;  %8887 = vmatprep.subr.bf16.mxu1 %v16025_v36  ;;  %v16050_v29 = vld [vmem:[#allocation235_spill] sm:$0xff]  ;;  %v16053_v36 = vld [vmem:[#allocation245_spill] sm:$0xff] }
 0x9b2   :  { %v7341_v42 = vadd.f32 %v8739_v33, %v7301_v28  ;;  %v16034_v28 = vld [vmem:[#allocation220_spill] sm:$0xff]  ;;  %v6690_v59 = vpack.c.bf16 %v16048_v20, %v16048_v20  ;;  %v16049_v33 = vld [vmem:[#allocation243_spill] sm:$0xff] }
 0x9b3   :  { %v16052_v57 = vld [vmem:[#allocation236_spill] sm:$0xff] }
 0x9b4   :  { %8888 = vmatpush3.bf16.msra.mxu1 %v16026_v26  ;;  %v16056_v26 = vld [vmem:[#allocation238_spill] sm:$0xff]  ;;  %v16078_v20 = vld [vmem:[#allocation256_spill] sm:$0xff] }
 0x9b5   :  { %8889 = vmatprep.subr.bf16.mxu1 %v16027_v52  ;;  %v16058_v52 = vld [vmem:[#allocation239_spill] sm:$0xff] }
 0x9b8   :  { %8890 = vmatpush3.bf16.msra.mxu1 %v16029_v55 }
 0x9b9   :  { %8897 = vmatprep.subr.bf16.mxu1 %v16031_v25  ;;  %v16060_v25 = vld [vmem:[#allocation240_spill] sm:$0xff] }
 0x9bb   :  { %7619 = vmatmul.mubr.bf16.vlgmr.msra.gmra.mrb[244].mxu1 %v6685_v23 }
 0x9bc   :  { %8898 = vmatpush3.bf16.msra.mxu1 %v16032_v56  ;;  %7658 = vmatprep.mubr.bf16.mxu1 %v6688_v5 }
 0x9bd   :  { %8899 = vmatprep.subr.bf16.mxu1 %v16033_v39  ;;  %v16061_v39 = vld [vmem:[#allocation249_spill] sm:$0xff] }
 0x9c0   :  { %8900 = vmatpush3.bf16.msra.mxu1 %v16034_v28 }
 0x9c1   :  { %8901 = vmatprep.subr.bf16.mxu1 %v16035_v6  ;;  %v16062_v6 = vld [vmem:[#allocation241_spill] sm:$0xff] }
 0x9c4   :  { %8902 = vmatpush3.bf16.msra.mxu1 %v16036_v63  ;;  %v16063_v63 = vld [vmem:[#allocation250_spill] sm:$0xff] }
 0x9c5   :  { %8903 = vmatprep.subr.bf16.mxu1 %v16037_v50  ;;  %v16064_v50 = vmax.f32 %v14700_v62, 0.0  ;;  %v16072_v62 = vld [vmem:[#allocation253_spill] sm:$0xff] }
 0x9c8   :  { %8904 = vmatpush3.bf16.msra.mxu1 %v16038_v19  ;;  %v6689_v19 = vpack.c.bf16 %v16064_v50, %v16064_v50 }
 0x9c9   :  { %8905 = vmatprep.subr.bf16.mxu1 %v16039_v30  ;;  %v16065_v30 = vld [vmem:[#allocation242_spill] sm:$0xff] }
 0x9cc   :  { %8906 = vmatpush3.bf16.msra.mxu1 %v16040_v16  ;;  %v16066_v16 = vmax.f32 %v14712_v54, 0.0  ;;  %v16075_v54 = vld [vmem:[#allocation263_spill] sm:$0xff] }
 0x9cd   :  { %8907 = vmatprep.subr.bf16.mxu1 %v16041_v31 }
 0x9ce   :  { %v8759_v12 = vpop.f32.mrb[220].mxu1  ;;  %v6692_v31 = vpack.c.bf16 %v16066_v16, %v16066_v16  ;;  %v16097_v16 = vld [vmem:[#allocation281_spill] sm:$0xff] }
 0x9cf   :  { %v8760_v13 = vpop.f32.mrb[221].mxu1 }
 0x9d0   :  { %v8761_v11 = vadd.f32 %v8760_v13, %v8759_v12  ;;  %v8762_v3 = vpop.f32.mrb[222].mxu1  ;;  %8908 = vmatpush3.bf16.msra.mxu1 %v16042_v27  ;;  %v16067_v12 = vld [vmem:[#allocation259_spill] sm:$0xff]  ;;  %v16071_v27 = vld [vmem:[#allocation261_spill] sm:$0xff] }
 0x9d1   :  { %v8763_v60 = vpop.f32.mrb[223].mxu1  ;;  %8909 = vmatprep.subr.bf16.mxu1 %v16043_v37  ;;  %v16068_v13 = vld [vmem:[#allocation251_spill] sm:$0xff]  ;;  %v16070_v3 = vld [vmem:[#allocation252_spill] sm:$0xff]  ;;  %v16074_v37 = vld [vmem:[#allocation254_spill] sm:$0xff] }
 0x9d2   :  { %v7381_v32 = vadd.f32 %v8761_v11, %v7341_v42  ;;  %v16055_v42 = vld [vmem:[#allocation246_spill] sm:$0xff]  ;;  %v16069_v11 = vld [vmem:[#allocation260_spill] sm:$0xff] }
 0x9d3   :  { %v16073_v60 = vld [vmem:[#allocation262_spill] sm:$0xff] }
 0x9d4   :  { %8910 = vmatpush3.bf16.msra.mxu1 %v16044_v15  ;;  %v16077_v15 = vld [vmem:[#allocation264_spill] sm:$0xff] }
 0x9d5   :  { %8911 = vmatprep.subr.bf16.mxu1 %v16045_v61 }
 0x9d8   :  { %8912 = vmatpush3.bf16.msra.mxu1 %v16047_v9 }
 0x9d9   :  { %8919 = vmatprep.subr.bf16.mxu1 %v16049_v33  ;;  %v16079_v33 = vld [vmem:[#allocation265_spill] sm:$0xff] }
 0x9db   :  { %7659 = vmatmul.mubr.bf16.vlgmr.msra.gmra.mrb[248].mxu1 %v6687_v47 }
 0x9dc   :  { %8920 = vmatpush3.bf16.msra.mxu1 %v16050_v29  ;;  %7698 = vmatprep.mubr.bf16.mxu1 %v6690_v59 }
 0x9dd   :  { %8921 = vmatprep.subr.bf16.mxu1 %v16051_v1  ;;  %v16080_v1 = vld [vmem:[#allocation257_spill] sm:$0xff] }
 0x9e0   :  { %8922 = vmatpush3.bf16.msra.mxu1 %v16052_v57  ;;  %v16081_v57 = vld [vmem:[#allocation266_spill] sm:$0xff] }
 0x9e1   :  { %8923 = vmatprep.subr.bf16.mxu1 %v16053_v36  ;;  %v16082_v36 = vmax.f32 %v14708_v35, 0.0  ;;  %v16090_v35 = vld [vmem:[#allocation269_spill] sm:$0xff] }
 0x9e4   :  { %8924 = vmatpush3.bf16.msra.mxu1 %v16054_v0  ;;  %v6691_v0 = vpack.c.bf16 %v16082_v36, %v16082_v36 }
 0x9e5   :  { %8925 = vmatprep.subr.bf16.mxu1 %v16055_v42  ;;  %v16083_v42 = vld [vmem:[#allocation258_spill] sm:$0xff] }
 0x9e8   :  { %8926 = vmatpush3.bf16.msra.mxu1 %v16056_v26  ;;  %v16084_v26 = vmax.f32 %v14720_v58, 0.0  ;;  %v16093_v58 = vld [vmem:[#allocation279_spill] sm:$0xff] }
 0x9e9   :  { %8927 = vmatprep.subr.bf16.mxu1 %v16057_v53 }
 0x9ea   :  { %v6694_v53 = vpack.c.bf16 %v16084_v26, %v16084_v26  ;;  %v16116_v26 = vld [vmem:[#allocation289_spill] sm:$0xff] }
 0x9ec   :  { %8928 = vmatpush3.bf16.msra.mxu1 %v16058_v52  ;;  %v16085_v52 = vld [vmem:[#allocation275_spill] sm:$0xff] }
 0x9ed   :  { %8929 = vmatprep.subr.bf16.mxu1 %v16059_v4  ;;  %v16086_v4 = vld [vmem:[#allocation267_spill] sm:$0xff] }
 0x9ee   :  { %v8781_v23 = vpop.f32.mrb[224].mxu1 }
 0x9ef   :  { %v8782_v55 = vpop.f32.mrb[225].mxu1 }
 0x9f0   :  { %v8783_v18 = vadd.f32 %v8782_v55, %v8781_v23  ;;  %v8784_v5 = vpop.f32.mrb[226].mxu1  ;;  %8930 = vmatpush3.bf16.msra.mxu1 %v16060_v25  ;;  %v16087_v23 = vld [vmem:[#allocation276_spill] sm:$0xff]  ;;  %v16092_v25 = vld [vmem:[#allocation270_spill] sm:$0xff] }
 0x9f1   :  { %v8785_v56 = vpop.f32.mrb[227].mxu1  ;;  %8931 = vmatprep.subr.bf16.mxu1 %v16061_v39  ;;  %v16088_v55 = vld [vmem:[#allocation268_spill] sm:$0xff]  ;;  %v16091_v5 = vld [vmem:[#allocation278_spill] sm:$0xff] }
 0x9f2   :  { %v7421_v28 = vadd.f32 %v8783_v18, %v7381_v32  ;;  %v16076_v32 = vld [vmem:[#allocation255_spill] sm:$0xff]  ;;  %v16089_v18 = vld [vmem:[#allocation277_spill] sm:$0xff]  ;;  %v16095_v39 = vld [vmem:[#allocation280_spill] sm:$0xff] }
 0x9f3   :  { %v16094_v56 = vld [vmem:[#allocation271_spill] sm:$0xff] }
 0x9f4   :  { %8932 = vmatpush3.bf16.msra.mxu1 %v16062_v6 }
 0x9f5   :  { %8933 = vmatprep.subr.bf16.mxu1 %v16063_v63 }
 0x9f8   :  { %8934 = vmatpush3.bf16.msra.mxu1 %v16065_v30 }
 0x9f9   :  { %8941 = vmatprep.subr.bf16.mxu1 %v16067_v12  ;;  %v16098_v12 = vld [vmem:[#allocation273_spill] sm:$0xff] }
 0x9fb   :  { %7699 = vmatmul.mubr.bf16.vlgmr.msra.gmra.mrb[252].mxu1 %v6689_v19  ;;  %v16096_v19 = vld [vmem:[#allocation272_spill] sm:$0xff] }
 0x9fc   :  { %8942 = vmatpush3.bf16.msra.mxu1 %v16068_v13  ;;  %7738 = vmatprep.mubr.bf16.mxu1 %v6692_v31  ;;  %v16099_v13 = vld [vmem:[#allocation282_spill] sm:$0xff] }
 0x9fd   :  { %8943 = vmatprep.subr.bf16.mxu1 %v16069_v11  ;;  %v16100_v11 = vmax.f32 %v14716_v17, 0.0  ;;  %v16108_v17 = vld [vmem:[#allocation285_spill] sm:$0xff] }
 0xa00   :  { %8944 = vmatpush3.bf16.msra.mxu1 %v16070_v3  ;;  %v6693_v3 = vpack.c.bf16 %v16100_v11, %v16100_v11 }
 0xa01   :  { %8945 = vmatprep.subr.bf16.mxu1 %v16071_v27  ;;  %v16101_v27 = vld [vmem:[#allocation274_spill] sm:$0xff] }
 0xa04   :  { %8946 = vmatpush3.bf16.msra.mxu1 %v16072_v62  ;;  %v16102_v62 = vmax.f32 %v14728_v8, 0.0  ;;  %v16111_v8 = vld [vmem:[#allocation295_spill] sm:$0xff] }
 0xa05   :  { %8947 = vmatprep.subr.bf16.mxu1 %v16073_v60 }
 0xa06   :  { %v6696_v60 = vpack.c.bf16 %v16102_v62, %v16102_v62  ;;  %v16136_v62 = vmax.f32 %v14732_v40, 0.0  ;;  %v16144_v40 = vld [vmem:[#allocation317_spill] sm:$0xff] }
 0xa08   :  { %8948 = vmatpush3.bf16.msra.mxu1 %v16074_v37  ;;  %v16103_v37 = vld [vmem:[#allocation291_spill] sm:$0xff] }
 0xa09   :  { %8949 = vmatprep.subr.bf16.mxu1 %v16075_v54  ;;  %v16104_v54 = vld [vmem:[#allocation283_spill] sm:$0xff] }
 0xa0c   :  { %8950 = vmatpush3.bf16.msra.mxu1 %v16076_v32  ;;  %v16105_v32 = vld [vmem:[#allocation292_spill] sm:$0xff] }
 0xa0d   :  { %8951 = vmatprep.subr.bf16.mxu1 %v16077_v15  ;;  %v16106_v15 = vld [vmem:[#allocation284_spill] sm:$0xff] }
 0xa0e   :  { %v8803_v61 = vpop.f32.mrb[228].mxu1 }
 0xa0f   :  { %v8804_v2 = vpop.f32.mrb[229].mxu1 }
 0xa10   :  { %v8805_v47 = vadd.f32 %v8804_v2, %v8803_v61  ;;  %v8806_v9 = vpop.f32.mrb[230].mxu1  ;;  %8952 = vmatpush3.bf16.msra.mxu1 %v16078_v20  ;;  %v16107_v61 = vld [vmem:[#allocation293_spill] sm:$0xff]  ;;  %v16109_v2 = vld [vmem:[#allocation294_spill] sm:$0xff]  ;;  %v16113_v20 = vld [vmem:[#allocation296_spill] sm:$0xff] }
 0xa11   :  { %v8807_v59 = vpop.f32.mrb[231].mxu1  ;;  %8953 = vmatprep.subr.bf16.mxu1 %v16079_v33  ;;  %v16112_v9 = vld [vmem:[#allocation287_spill] sm:$0xff] }
 0xa12   :  { %v7461_v29 = vadd.f32 %v8805_v47, %v7421_v28  ;;  %v16110_v47 = vld [vmem:[#allocation286_spill] sm:$0xff] }
 0xa14   :  { %8954 = vmatpush3.bf16.msra.mxu1 %v16080_v1 }
 0xa15   :  { %8955 = vmatprep.subr.bf16.mxu1 %v16081_v57  ;;  %v16114_v57 = vld [vmem:[#allocation288_spill] sm:$0xff] }
 0xa18   :  { %8956 = vmatpush3.bf16.msra.mxu1 %v16083_v42 }
 0xa19   :  { %8963 = vmatprep.subr.bf16.mxu1 %v16085_v52  ;;  %v16118_v52 = vmax.f32 %v14724_v45, 0.0  ;;  %v16126_v45 = vld [vmem:[#allocation301_spill] sm:$0xff] }
 0xa1b   :  { %7739 = vmatmul.mubr.bf16.vlgmr.msra.gmra.mrb[0].mxu1 %v6691_v0  ;;  %v16115_v0 = vld [vmem:[#allocation297_spill] sm:$0xff] }
 0xa1c   :  { %8964 = vmatpush3.bf16.msra.mxu1 %v16086_v4  ;;  %7778 = vmatprep.mubr.bf16.mxu1 %v6694_v53  ;;  %v16117_v53 = vld [vmem:[#allocation298_spill] sm:$0xff]  ;;  %v6695_v4 = vpack.c.bf16 %v16118_v52, %v16118_v52 }
 0xa1d   :  { %8965 = vmatprep.subr.bf16.mxu1 %v16087_v23  ;;  %v16119_v23 = vld [vmem:[#allocation290_spill] sm:$0xff] }
 0xa1e   :  { %v16153_v52 = vld [vmem:[#allocation330_spill] sm:$0xff] }
 0xa20   :  { %8966 = vmatpush3.bf16.msra.mxu1 %v16088_v55  ;;  %v16120_v55 = vmax.f32 %v14736_v43, 0.0  ;;  %v16129_v43 = vld [vmem:[#allocation311_spill] sm:$0xff] }
 0xa21   :  { %8967 = vmatprep.subr.bf16.mxu1 %v16089_v18 }
 0xa22   :  { %v6698_v18 = vpack.c.bf16 %v16120_v55, %v16120_v55  ;;  %v16155_v55 = vld [vmem:[#allocation322_spill] sm:$0xff] }
 0xa24   :  { %8968 = vmatpush3.bf16.msra.mxu1 %v16090_v35  ;;  %v16121_v35 = vld [vmem:[#allocation307_spill] sm:$0xff] }
 0xa25   :  { %8969 = vmatprep.subr.bf16.mxu1 %v16091_v5  ;;  %v16122_v5 = vld [vmem:[#allocation299_spill] sm:$0xff] }
 0xa28   :  { %8970 = vmatpush3.bf16.msra.mxu1 %v16092_v25  ;;  %v16123_v25 = vld [vmem:[#allocation308_spill] sm:$0xff] }
 0xa29   :  { %8971 = vmatprep.subr.bf16.mxu1 %v16093_v58  ;;  %v16124_v58 = vld [vmem:[#allocation300_spill] sm:$0xff] }
 0xa2c   :  { %8972 = vmatpush3.bf16.msra.mxu1 %v16094_v56  ;;  %v16125_v56 = vld [vmem:[#allocation309_spill] sm:$0xff] }
 0xa2d   :  { %8973 = vmatprep.subr.bf16.mxu1 %v16095_v39  ;;  %v16127_v39 = vld [vmem:[#allocation310_spill] sm:$0xff] }
 0xa2e   :  { %v8825_v28 = vpop.f32.mrb[232].mxu1 }
 0xa2f   :  { %v8826_v6 = vpop.f32.mrb[233].mxu1 }
 0xa30   :  { %v8827_v63 = vadd.f32 %v8826_v6, %v8825_v28  ;;  %v8828_v50 = vpop.f32.mrb[234].mxu1  ;;  %8974 = vmatpush3.bf16.msra.mxu1 %v16096_v19  ;;  %v16128_v28 = vld [vmem:[#allocation302_spill] sm:$0xff]  ;;  %v16130_v6 = vld [vmem:[#allocation303_spill] sm:$0xff] }
 0xa31   :  { %v8829_v30 = vpop.f32.mrb[235].mxu1  ;;  %8975 = vmatprep.subr.bf16.mxu1 %v16097_v16 }
 0xa32   :  { %v7501_v31 = vadd.f32 %v8827_v63, %v7461_v29  ;;  %v16131_v63 = vld [vmem:[#allocation312_spill] sm:$0xff] }
 0xa34   :  { %8976 = vmatpush3.bf16.msra.mxu1 %v16098_v12 }
 0xa35   :  { %8977 = vmatprep.subr.bf16.mxu1 %v16099_v13  ;;  %v16133_v13 = vld [vmem:[#allocation313_spill] sm:$0xff] }
 0xa38   :  { %8978 = vmatpush3.bf16.msra.mxu1 %v16101_v27  ;;  %v16135_v27 = vld [vmem:[#allocation314_spill] sm:$0xff] }
 0xa39   :  { %8985 = vmatprep.subr.bf16.mxu1 %v16103_v37  ;;  %v16137_v37 = vld [vmem:[#allocation306_spill] sm:$0xff] }
 0xa3b   :  { %7779 = vmatmul.mubr.bf16.vlgmr.msra.gmra.mrb[4].mxu1 %v6693_v3  ;;  %v16134_v3 = vld [vmem:[#allocation305_spill] sm:$0xff] }
 0xa3c   :  { %8986 = vmatpush3.bf16.msra.mxu1 %v16104_v54  ;;  %7818 = vmatprep.mubr.bf16.mxu1 %v6696_v60  ;;  %v6697_v60 = vpack.c.bf16 %v16136_v62, %v16136_v62  ;;  %v16138_v54 = vmax.f32 %v14744_v38, 0.0  ;;  %v16147_v38 = vld [vmem:[#allocation327_spill] sm:$0xff] }
 0xa3d   :  { %8987 = vmatprep.subr.bf16.mxu1 %v16105_v32 }
 0xa3e   :  { %v6700_v32 = vpack.c.bf16 %v16138_v54, %v16138_v54 }
 0xa40   :  { %8988 = vmatpush3.bf16.msra.mxu1 %v16106_v15  ;;  %v16139_v15 = vld [vmem:[#allocation323_spill] sm:$0xff] }
 0xa41   :  { %8989 = vmatprep.subr.bf16.mxu1 %v16107_v61  ;;  %v16140_v61 = vld [vmem:[#allocation315_spill] sm:$0xff] }
 0xa44   :  { %8990 = vmatpush3.bf16.msra.mxu1 %v16108_v17  ;;  %v16141_v17 = vld [vmem:[#allocation324_spill] sm:$0xff] }
 0xa45   :  { %8991 = vmatprep.subr.bf16.mxu1 %v16109_v2  ;;  %v16142_v2 = vld [vmem:[#allocation316_spill] sm:$0xff] }
 0xa48   :  { %8992 = vmatpush3.bf16.msra.mxu1 %v16110_v47  ;;  %v16143_v47 = vld [vmem:[#allocation325_spill] sm:$0xff] }
 0xa49   :  { %8993 = vmatprep.subr.bf16.mxu1 %v16111_v8  ;;  %v16145_v8 = vld [vmem:[#allocation326_spill] sm:$0xff] }
 0xa4c   :  { %8994 = vmatpush3.bf16.msra.mxu1 %v16112_v9  ;;  %v16146_v9 = vld [vmem:[#allocation318_spill] sm:$0xff] }
 0xa4d   :  { %8995 = vmatprep.subr.bf16.mxu1 %v16113_v20  ;;  %v16148_v20 = vld [vmem:[#allocation319_spill] sm:$0xff] }
 0xa4e   :  { %v8847_v59 = vpop.f32.mrb[236].mxu1 }
 0xa4f   :  { %v8848_v33 = vpop.f32.mrb[237].mxu1 }
 0xa50   :  { %v8849_v29 = vadd.f32 %v8848_v33, %v8847_v59  ;;  %v8850_v1 = vpop.f32.mrb[238].mxu1  ;;  %8996 = vmatpush3.bf16.msra.mxu1 %v16114_v57  ;;  %v16149_v59 = vld [vmem:[#allocation328_spill] sm:$0xff] }
 0xa51   :  { %v8851_v36 = vpop.f32.mrb[239].mxu1  ;;  %8997 = vmatprep.subr.bf16.mxu1 %v16115_v0 }
 0xa52   :  { %v7541_v42 = vadd.f32 %v8849_v29, %v7501_v31  ;;  %v16132_v31 = vld [vmem:[#allocation304_spill] sm:$0xff] }
 0xa53   :  { %v16150_v36 = vld [vmem:[#allocation320_spill] sm:$0xff] }
 0xa54   :  { %8998 = vmatpush3.bf16.msra.mxu1 %v16116_v26 }
 0xa55   :  { %8999 = vmatprep.subr.bf16.mxu1 %v16117_v53  ;;  %v16152_v53 = vld [vmem:[#allocation321_spill] sm:$0xff] }
 0xa58   :  { %9000 = vmatpush3.bf16.msra.mxu1 %v16119_v23 }
 0xa59   :  { %9007 = vmatprep.subr.bf16.mxu1 %v16121_v35 }
 0xa5b   :  { %7819 = vmatmul.mubr.bf16.vlgmr.msra.gmra.mrb[8].mxu1 %v6695_v4  ;;  %v16154_v4 = vmax.f32 %v14740_v51, 0.0  ;;  %v16162_v51 = vld [vmem:[#allocation333_spill] sm:$0xff] }
 0xa5c   :  { %9008 = vmatpush3.bf16.msra.mxu1 %v16122_v5  ;;  %7858 = vmatprep.mubr.bf16.mxu1 %v6698_v18  ;;  %v16156_v18 = vmax.f32 %v14752_v22, 0.0  ;;  %v16157_v5 = vld [vmem:[#allocation339_spill] sm:$0xff] }
 0xa5d   :  { %9009 = vmatprep.subr.bf16.mxu1 %v16123_v25  ;;  %v6699_v23 = vpack.c.bf16 %v16154_v4, %v16154_v4  ;;  %v16158_v25 = vld [vmem:[#allocation331_spill] sm:$0xff]  ;;  %v16192_v4 = vmax.f32 %v14768_v7, 0.0 }
 0xa5e   :  { %v6702_v35 = vpack.c.bf16 %v16156_v18, %v16156_v18  ;;  %v16165_v22 = vld [vmem:[#allocation343_spill] sm:$0xff] }
 0xa5f   :  { %v16194_v18 = vld [vmem:[#allocation363_spill] sm:$0xff] }
 0xa60   :  { %9010 = vmatpush3.bf16.msra.mxu1 %v16124_v58  ;;  %v16159_v58 = vld [vmem:[#allocation340_spill] sm:$0xff]  ;;  %v16201_v7 = vld [vmem:[#allocation375_spill] sm:$0xff] }
 0xa61   :  { %9011 = vmatprep.subr.bf16.mxu1 %v16125_v56  ;;  %v16160_v56 = vld [vmem:[#allocation332_spill] sm:$0xff] }
 0xa64   :  { %9012 = vmatpush3.bf16.msra.mxu1 %v16126_v45  ;;  %v16161_v45 = vld [vmem:[#allocation341_spill] sm:$0xff] }
 0xa65   :  { %9013 = vmatprep.subr.bf16.mxu1 %v16127_v39  ;;  %v16163_v39 = vld [vmem:[#allocation342_spill] sm:$0xff] }
 0xa68   :  { %9014 = vmatpush3.bf16.msra.mxu1 %v16128_v28  ;;  %v16164_v28 = vld [vmem:[#allocation334_spill] sm:$0xff] }
 0xa69   :  { %9015 = vmatprep.subr.bf16.mxu1 %v16129_v43  ;;  %v16166_v43 = vld [vmem:[#allocation335_spill] sm:$0xff] }
 0xa6c   :  { %9016 = vmatpush3.bf16.msra.mxu1 %v16130_v6  ;;  %v16167_v6 = vld [vmem:[#allocation344_spill] sm:$0xff] }
 0xa6d   :  { %9017 = vmatprep.subr.bf16.mxu1 %v16131_v63 }
 0xa6e   :  { %v8869_v50 = vpop.f32.mrb[240].mxu1 }
 0xa6f   :  { %v8870_v19 = vpop.f32.mrb[241].mxu1 }
 0xa70   :  { %v8871_v30 = vadd.f32 %v8870_v19, %v8869_v50  ;;  %v8872_v16 = vpop.f32.mrb[242].mxu1  ;;  %9018 = vmatpush3.bf16.msra.mxu1 %v16132_v31 }
 0xa71   :  { %v8873_v12 = vpop.f32.mrb[243].mxu1  ;;  %9019 = vmatprep.subr.bf16.mxu1 %v16133_v13  ;;  %v16168_v16 = vld [vmem:[#allocation336_spill] sm:$0xff] }
 0xa72   :  { %v7581_v11 = vadd.f32 %v8871_v30, %v7541_v42  ;;  %v16151_v42 = vld [vmem:[#allocation329_spill] sm:$0xff] }
 0xa73   :  { %v16169_v12 = vld [vmem:[#allocation345_spill] sm:$0xff] }
 0xa74   :  { %9020 = vmatpush3.bf16.msra.mxu1 %v16134_v3  ;;  %v16171_v3 = vld [vmem:[#allocation346_spill] sm:$0xff] }
 0xa75   :  { %9021 = vmatprep.subr.bf16.mxu1 %v16135_v27  ;;  %v16172_v27 = vmax.f32 %v14748_v41, 0.0  ;;  %v16180_v41 = vld [vmem:[#allocation349_spill] sm:$0xff] }
 0xa77   :  { %v6701_v62 = vpack.c.bf16 %v16172_v27, %v16172_v27  ;;  %v16211_v27 = vld [vmem:[#allocation379_spill] sm:$0xff] }
 0xa78   :  { %9022 = vmatpush3.bf16.msra.mxu1 %v16137_v37  ;;  %v16174_v37 = vmax.f32 %v14760_v44, 0.0  ;;  %v16183_v44 = vld [vmem:[#allocation359_spill] sm:$0xff] }
 0xa79   :  { %9029 = vmatprep.subr.bf16.mxu1 %v16139_v15  ;;  %v16176_v15 = vld [vmem:[#allocation347_spill] sm:$0xff] }
 0xa7a   :  { %v6704_v54 = vpack.c.bf16 %v16174_v37, %v16174_v37  ;;  %v16214_v37 = vld [vmem:[#allocation389_spill] sm:$0xff] }
 0xa7b   :  { %7859 = vmatmul.mubr.bf16.vlgmr.msra.gmra.mrb[12].mxu1 %v6697_v60  ;;  %v16173_v60 = vld [vmem:[#allocation338_spill] sm:$0xff] }
 0xa7c   :  { %9030 = vmatpush3.bf16.msra.mxu1 %v16140_v61  ;;  %7898 = vmatprep.mubr.bf16.mxu1 %v6700_v32  ;;  %v16175_v32 = vld [vmem:[#allocation355_spill] sm:$0xff]  ;;  %v16177_v61 = vld [vmem:[#allocation356_spill] sm:$0xff] }
 0xa7d   :  { %9031 = vmatprep.subr.bf16.mxu1 %v16141_v17  ;;  %v16178_v17 = vld [vmem:[#allocation348_spill] sm:$0xff] }
 0xa80   :  { %9032 = vmatpush3.bf16.msra.mxu1 %v16142_v2  ;;  %v16179_v2 = vld [vmem:[#allocation357_spill] sm:$0xff] }
 0xa81   :  { %9033 = vmatprep.subr.bf16.mxu1 %v16143_v47  ;;  %v16181_v47 = vld [vmem:[#allocation358_spill] sm:$0xff] }
 0xa84   :  { %9034 = vmatpush3.bf16.msra.mxu1 %v16144_v40  ;;  %v16182_v40 = vld [vmem:[#allocation350_spill] sm:$0xff] }
 0xa85   :  { %9035 = vmatprep.subr.bf16.mxu1 %v16145_v8  ;;  %v16184_v8 = vld [vmem:[#allocation351_spill] sm:$0xff] }
 0xa88   :  { %9036 = vmatpush3.bf16.msra.mxu1 %v16146_v9  ;;  %v16185_v9 = vld [vmem:[#allocation360_spill] sm:$0xff] }
 0xa89   :  { %9037 = vmatprep.subr.bf16.mxu1 %v16147_v38 }
 0xa8c   :  { %9038 = vmatpush3.bf16.msra.mxu1 %v16148_v20 }
 0xa8d   :  { %9039 = vmatprep.subr.bf16.mxu1 %v16149_v59 }
 0xa8e   :  { %v8891_v33 = vpop.f32.mrb[244].mxu1 }
 0xa8f   :  { %v8892_v29 = vpop.f32.mrb[245].mxu1 }
 0xa90   :  { %v8893_v1 = vadd.f32 %v8892_v29, %v8891_v33  ;;  %v8894_v57 = vpop.f32.mrb[246].mxu1  ;;  %9040 = vmatpush3.bf16.msra.mxu1 %v16150_v36  ;;  %v16186_v29 = vld [vmem:[#allocation352_spill] sm:$0xff] }
 0xa91   :  { %v8895_v0 = vpop.f32.mrb[247].mxu1  ;;  %9041 = vmatprep.subr.bf16.mxu1 %v16151_v42  ;;  %v16187_v57 = vld [vmem:[#allocation361_spill] sm:$0xff]  ;;  %v16189_v42 = vld [vmem:[#allocation362_spill] sm:$0xff] }
 0xa92   :  { %v7621_v26 = vadd.f32 %v8893_v1, %v7581_v11  ;;  %v16170_v11 = vld [vmem:[#allocation337_spill] sm:$0xff] }
 0xa93   :  { %v16188_v0 = vld [vmem:[#allocation353_spill] sm:$0xff] }
 0xa94   :  { %9042 = vmatpush3.bf16.msra.mxu1 %v16152_v53 }
 0xa95   :  { %9043 = vmatprep.subr.bf16.mxu1 %v16153_v52  ;;  %v16191_v52 = vld [vmem:[#allocation354_spill] sm:$0xff] }
 0xa98   :  { %9044 = vmatpush3.bf16.msra.mxu1 %v16155_v55  ;;  %v16193_v55 = vld [vmem:[#allocation371_spill] sm:$0xff] }
 0xa99   :  { %9051 = vmatprep.subr.bf16.mxu1 %v16157_v5  ;;  %v16196_v5 = vld [vmem:[#allocation364_spill] sm:$0xff] }
 0xa9b   :  { %7899 = vmatmul.mubr.bf16.vlgmr.msra.gmra.mrb[16].mxu1 %v6699_v23  ;;  %v6706_v23 = vpack.c.bf16 %v16192_v4, %v16192_v4 }
 0xa9c   :  { %9052 = vmatpush3.bf16.msra.mxu1 %v16158_v25  ;;  %7938 = vmatprep.mubr.bf16.mxu1 %v6702_v35  ;;  %v16195_v35 = vld [vmem:[#allocation372_spill] sm:$0xff]  ;;  %v16197_v25 = vld [vmem:[#allocation373_spill] sm:$0xff] }
 0xa9d   :  { %9053 = vmatprep.subr.bf16.mxu1 %v16159_v58  ;;  %v16199_v58 = vld [vmem:[#allocation374_spill] sm:$0xff] }
 0xaa0   :  { %9054 = vmatpush3.bf16.msra.mxu1 %v16160_v56  ;;  %v16200_v56 = vld [vmem:[#allocation366_spill] sm:$0xff] }
 0xaa1   :  { %9055 = vmatprep.subr.bf16.mxu1 %v16161_v45  ;;  %v16202_v45 = vld [vmem:[#allocation367_spill] sm:$0xff] }
 0xaa4   :  { %9056 = vmatpush3.bf16.msra.mxu1 %v16162_v51  ;;  %v16203_v51 = vld [vmem:[#allocation376_spill] sm:$0xff] }
 0xaa5   :  { %9057 = vmatprep.subr.bf16.mxu1 %v16163_v39 }
 0xaa8   :  { %9058 = vmatpush3.bf16.msra.mxu1 %v16164_v28 }
 0xaa9   :  { %9059 = vmatprep.subr.bf16.mxu1 %v16165_v22 }
 0xaac   :  { %9060 = vmatpush3.bf16.msra.mxu1 %v16166_v43 }
 0xaad   :  { %9061 = vmatprep.subr.bf16.mxu1 %v16167_v6  ;;  %v16204_v6 = vld [vmem:[#allocation368_spill] sm:$0xff] }
 0xaae   :  { %v8913_v63 = vpop.f32.mrb[248].mxu1 }
 0xaaf   :  { %v8914_v50 = vpop.f32.mrb[249].mxu1 }
 0xab0   :  { %v8915_v19 = vadd.f32 %v8914_v50, %v8913_v63  ;;  %v8916_v30 = vpop.f32.mrb[250].mxu1  ;;  %9062 = vmatpush3.bf16.msra.mxu1 %v16168_v16  ;;  %v16205_v50 = vld [vmem:[#allocation377_spill] sm:$0xff]  ;;  %v16207_v16 = vld [vmem:[#allocation378_spill] sm:$0xff] }
 0xab1   :  { %v8917_v31 = vpop.f32.mrb[251].mxu1  ;;  %9063 = vmatprep.subr.bf16.mxu1 %v16169_v12  ;;  %v16206_v30 = vld [vmem:[#allocation369_spill] sm:$0xff] }
 0xab2   :  { %v7661_v13 = vadd.f32 %v8915_v19, %v7621_v26  ;;  %v16190_v26 = vmax.f32 %v14756_v34, 0.0  ;;  %v16198_v34 = vld [vmem:[#allocation365_spill] sm:$0xff]  ;;  %v16208_v31 = vmax.f32 %v14764_v48, 0.0 }
 0xab3   :  { %v16215_v48 = vld [vmem:[#allocation381_spill] sm:$0xff] }
 0xab4   :  { %9064 = vmatpush3.bf16.msra.mxu1 %v16170_v11  ;;  %v6703_v53 = vpack.c.bf16 %v16190_v26, %v16190_v26  ;;  %v6705_v12 = vpack.c.bf16 %v16208_v31, %v16208_v31  ;;  %v6708_v11 = vpack.c.bf16 %v6557_v21, %v6557_v21  ;;  %v16219_v21 = vld [vmem:[#allocation383_spill] sm:$0xff] }
 0xab5   :  { %9065 = vmatprep.subr.bf16.mxu1 %v16171_v3  ;;  %v16210_v3 = vld [vmem:[#allocation387_spill] sm:$0xff] }
 0xab8   :  { %9066 = vmatpush3.bf16.msra.mxu1 %v16173_v60  ;;  %v16213_v60 = vld [vmem:[#allocation380_spill] sm:$0xff] }
 0xab9   :  { %9073 = vmatprep.subr.bf16.mxu1 %v16175_v32  ;;  %v16217_v32 = vld [vmem:[#allocation382_spill] sm:$0xff] }
 0xabb   :  { %7939 = vmatmul.mubr.bf16.vlgmr.msra.gmra.mrb[20].mxu1 %v6701_v62  ;;  %v16212_v62 = vld [vmem:[#allocation388_spill] sm:$0xff] }
 0xabc   :  { %9074 = vmatpush3.bf16.msra.mxu1 %v16176_v15  ;;  %7978 = vmatprep.mubr.bf16.mxu1 %v6704_v54  ;;  %v16216_v54 = vld [vmem:[#allocation390_spill] sm:$0xff]  ;;  %v16220_v15 = vld [vmem:[#allocation392_spill] sm:$0xff] }
 0xabd   :  { %9075 = vmatprep.subr.bf16.mxu1 %v16177_v61 }
 0xac0   :  { %9076 = vmatpush3.bf16.msra.mxu1 %v16178_v17 }
 0xac1   :  { %9077 = vmatprep.subr.bf16.mxu1 %v16179_v2 }
 0xac4   :  { %9078 = vmatpush3.bf16.msra.mxu1 %v16180_v41 }
 0xac5   :  { %9079 = vmatprep.subr.bf16.mxu1 %v16181_v47  ;;  %v16221_v47 = vld [vmem:[#allocation384_spill] sm:$0xff] }
 0xac8   :  { %9080 = vmatpush3.bf16.msra.mxu1 %v16182_v40 }
 0xac9   :  { %9081 = vmatprep.subr.bf16.mxu1 %v16183_v44  ;;  %v16222_v44 = vld [vmem:[#allocation393_spill] sm:$0xff] }
 0xacc   :  { %9082 = vmatpush3.bf16.msra.mxu1 %v16184_v8 }
 0xacd   :  { %9083 = vmatprep.subr.bf16.mxu1 %v16185_v9  ;;  %v8107_v9 = vld [vmem:[%s15346_s5] sm:$0xff]  ;;  %s10558_s5 = smov [#allocation6]  }
 0xace   :  { %v8935_v38 = vpop.f32.mrb[252].mxu1  ;;  %8110 = vperm.xlu0 %10528, %v8107_v9   ;;  %s8129_s14 = sshll.u32 %s10558_s5, 4  ;;  %s8130_s14 = int_to_ptr.vmem [resolvable:$true] %s8129_s14 }
 0xacf   :  { %v8936_v20 = vpop.f32.mrb[253].mxu1  ;;  %s10529_s15 = scalar_lea.vmem %s8130_s14, 16  ;;  %s10533_s16 = scalar_lea.vmem %s8130_s14, 32 }
 0xad0   :  { %v8937_v59 = vadd.f32 %v8936_v20, %v8935_v38  ;;  %v8938_v33 = vpop.f32.mrb[254].mxu1  ;;  %9084 = vmatpush3.bf16.msra.mxu1 %v16186_v29  ;;  %v16223_v38 = vld [vmem:[#allocation385_spill] sm:$0xff]  ;;  %v16224_v20 = vld [vmem:[#allocation394_spill] sm:$0xff]  ;;  %v10556_v29 = vmov 0.0   ;;  %p10530_p0 = scmp.ne.s32.totalorder %s8130_s14, %s10529_s15  ;;  %p10534_p1 = scmp.lt.s32.totalorder %s8130_s14, %s8130_s14 }
 0xad1   :  { %v8939_v1 = vpop.f32.mrb[255].mxu1  ;;  %9085 = vmatprep.subr.bf16.mxu1 %v16187_v57  ;;  %v16225_v33 = vld [vmem:[#allocation386_spill] sm:$0xff]  ;;  %v16227_v57 = vld [vmem:[#allocation396_spill] sm:$0xff]  ;;  %p10535_p2 = scmp.lt.s32.totalorder %s10533_s16, %s10529_s15 }
 0xad2   :  { %v7701_v36 = vadd.f32 %v8937_v59, %v7661_v13  ;;  %v16209_v13 = vld [vmem:[#allocation370_spill] sm:$0xff]  ;;  %v6707_v59 = vpack.c.bf16 %v6556_v24, %v6556_v24  ;;  %v16226_v1 = vld [vmem:[#allocation395_spill] sm:$0xff] }
 0xad3   :  { %v16230_v24 = vld [vmem:[#allocation399_spill] sm:$0xff]  ;;  %p10536_p3 = por %p10535_p2, %p10534_p1 }
 0xad4   :  { %9086 = vmatpush3.bf16.msra.mxu1 %v16188_v0  ;;  %v16229_v0 = vld [vmem:[#allocation398_spill] sm:$0xff] }
 0xad5   :  { %9087 = vmatprep.subr.bf16.mxu1 %v16189_v42  ;;  %p10537_p4 = pnand %p10536_p3, %p10530_p0 }
 0xad8   :  { %9088 = vmatpush3.bf16.msra.mxu1 %v16191_v52  ;;  %v16231_v52 = vld [vmem:[#allocation400_spill] sm:$0xff] }
 0xad9   :  { %9095 = vmatprep.subr.bf16.mxu1 %v16193_v55  ;;  %v16232_v55 = vld [vmem:[#allocation401_spill] sm:$0xff] }
 0xadb   :  { %7979 = vmatmul.mubr.bf16.vlgmr.msra.gmra.mrb[24].mxu1 %v6703_v53 }
 0xadc   :  { %9096 = vmatpush3.bf16.msra.mxu1 %v16194_v18  ;;  %8018 = vmatprep.mubr.bf16.mxu1 %v6706_v23  ;;  %v6709_v18 = vpack.c.bf16 %v6558_v49, %v6558_v49 }
 0xadd   :  { %9097 = vmatprep.subr.bf16.mxu1 %v16195_v35  ;;  %v16233_v35 = vld [vmem:[#allocation402_spill] sm:$0xff] }
 0xae0   :  { %9098 = vmatpush3.bf16.msra.mxu1 %v16196_v5 }
 0xae1   :  { %9099 = vmatprep.subr.bf16.mxu1 %v16197_v25 }
 0xae4   :  { %9100 = vmatpush3.bf16.msra.mxu1 %v16198_v34 }
 0xae5   :  { %9101 = vmatprep.subr.bf16.mxu1 %v16199_v58 }
 0xae8   :  { %9102 = vmatpush3.bf16.msra.mxu1 %v16200_v56 }
 0xae9   :  { %9103 = vmatprep.subr.bf16.mxu1 %v16201_v7 }
 0xaec   :  { %9104 = vmatpush3.bf16.msra.mxu1 %v16202_v45 }
 0xaed   :  { %9105 = vmatprep.subr.bf16.mxu1 %v16203_v51 }
 0xaee   :  { %v8957_v39 = vpop.f32.mrb[0].mxu1 }
 0xaef   :  { %v8958_v28 = vpop.f32.mrb[1].mxu1 }
 0xaf0   :  { %v8959_v22 = vadd.f32 %v8958_v28, %v8957_v39  ;;  %v8960_v43 = vpop.f32.mrb[2].mxu1  ;;  %9106 = vmatpush3.bf16.msra.mxu1 %v16204_v6 }
 0xaf1   :  { %v8961_v63 = vpop.f32.mrb[3].mxu1  ;;  %9107 = vmatprep.subr.bf16.mxu1 %v16205_v50 }
 0xaf2   :  { %v7741_v19 = vadd.f32 %v8959_v22, %v7701_v36  ;;  %v16228_v36 = vld [vmem:[#allocation397_spill] sm:$0xff] }
 0xaf4   :  { %9108 = vmatpush3.bf16.msra.mxu1 %v16206_v30 }
 0xaf5   :  { %9109 = vmatprep.subr.bf16.mxu1 %v16207_v16 }
 0xaf8   :  { %9110 = vmatpush3.bf16.msra.mxu1 %v16209_v13 }
 0xaf9   :  { %9117 = vmatprep.subr.bf16.mxu1 %v16210_v3 }
 0xafb   :  { %8019 = vmatmul.mubr.bf16.vlgmr.msra.gmra.mrb[28].mxu1 %v6705_v12 }
 0xafc   :  { %9118 = vmatpush3.bf16.msra.mxu1 %v16211_v27  ;;  %8058 = vmatprep.mubr.bf16.mxu1 %v6708_v11 }
 0xafd   :  { %9119 = vmatprep.subr.bf16.mxu1 %v16212_v62 }
 0xb00   :  { %9120 = vmatpush3.bf16.msra.mxu1 %v16213_v60 }
 0xb01   :  { %9121 = vmatprep.subr.bf16.mxu1 %v16214_v37 }
 0xb04   :  { %9122 = vmatpush3.bf16.msra.mxu1 %v16215_v48 }
 0xb05   :  { %9123 = vmatprep.subr.bf16.mxu1 %v16216_v54 }
 0xb08   :  { %9124 = vmatpush3.bf16.msra.mxu1 %v16217_v32 }
 0xb09   :  { %9125 = vmatprep.subr.bf16.mxu1 %v16218_v14 }
 0xb0c   :  { %9126 = vmatpush3.bf16.msra.mxu1 %v16219_v21 }
 0xb0d   :  { %9127 = vmatprep.subr.bf16.mxu1 %v16220_v15 }
 0xb0e   :  { %v8979_v61 = vpop.f32.mrb[4].mxu1 }
 0xb0f   :  { %v8980_v17 = vpop.f32.mrb[5].mxu1 }
 0xb10   :  { %v8981_v2 = vadd.f32 %v8980_v17, %v8979_v61  ;;  %v8982_v41 = vpop.f32.mrb[6].mxu1  ;;  %9128 = vmatpush3.bf16.msra.mxu1 %v16221_v47 }
 0xb11   :  { %v8983_v40 = vpop.f32.mrb[7].mxu1  ;;  %9129 = vmatprep.subr.bf16.mxu1 %v16222_v44 }
 0xb12   :  { %v7781_v8 = vadd.f32 %v8981_v2, %v7741_v19 }
 0xb14   :  { %9130 = vmatpush3.bf16.msra.mxu1 %v16223_v38 }
 0xb15   :  { %9131 = vmatprep.subr.bf16.mxu1 %v16224_v20 }
 0xb18   :  { %9132 = vmatpush3.bf16.msra.mxu1 %v16225_v33 }
 0xb19   :  { %9148 = vmatprep.subr.bf16.mxu1 %v10556_v29 }
 0xb1b   :  { %8059 = vmatmul.mubr.bf16.vlgmr.msra.gmra.mrb[32].mxu1 %v6707_v59 }
 0xb1c   :  { %9149 = vmatpush3.bf16.msra.mxu1 %v16226_v1  ;;  %9164 = vmatprep.mubr.msk.bf16.mxu1 %vm10557_vm0, %v10556_v29 }
 0xb1d   :  { %9150 = vmatprep.subr.bf16.mxu1 %v10556_v29 }
 0xb20   :  { %9151 = vmatpush3.bf16.msra.mxu1 %v16227_v57  ;;  %v16234_v57 = vld [vmem:[#allocation404_spill] sm:$0xff] }
 0xb21   :  { %9152 = vmatprep.subr.bf16.mxu1 %v10556_v29 }
 0xb24   :  { %9153 = vmatpush3.bf16.msra.mxu1 %v16228_v36 }
 0xb25   :  { %9154 = vmatprep.subr.bf16.mxu1 %v10556_v29 }
 0xb28   :  { %9155 = vmatpush3.bf16.msra.mxu1 %v16229_v0  ;;  %v16235_v0 = vld [vmem:[#allocation405_spill] sm:$0xff] }
 0xb29   :  { %9156 = vmatprep.subr.bf16.mxu1 %v10556_v29 }
 0xb2c   :  { %9157 = vmatpush3.bf16.msra.mxu1 %v16230_v24 }
 0xb2d   :  { %9158 = vmatprep.subr.bf16.mxu1 %v10556_v29 }
 0xb2e   :  { %v9001_v10 = vpop.f32.mrb[8].mxu1 }
 0xb2f   :  { %v9002_v42 = vpop.f32.mrb[9].mxu1 }
 0xb30   :  { %v9003_v26 = vadd.f32 %v9002_v42, %v9001_v10  ;;  %v9004_v53 = vpop.f32.mrb[10].mxu1  ;;  %9159 = vmatpush3.bf16.msra.mxu1 %v16231_v52 }
 0xb31   :  { %v9005_v4 = vpop.f32.mrb[11].mxu1  ;;  %9160 = vmatprep.subr.bf16.mxu1 %v10556_v29 }
 0xb32   :  { %v7821_v23 = vadd.f32 %v9003_v26, %v7781_v8 }
 0xb34   :  { %9161 = vmatpush3.bf16.msra.mxu1 %v16232_v55 }
 0xb35   :  { %9162 = vmatprep.subr.bf16.mxu1 %v10556_v29 }
 0xb38   :  { %9163 = vmatpush3.bf16.msra.mxu1 %v16233_v35 }
 0xb3b   :  { %9165 = vmatmul.mubr.bf16.vlgmr.msra.gmra.mrb[36].mxu1 %v6709_v18 }
 0xb4d   :  { %v8111_v40 = vpop.permute.xlu0 %8110 }
 0xb4e   :  { %v9023_v5 = vpop.f32.mrb[12].mxu1 }
 0xb4f   :  { %v9024_v25 = vpop.f32.mrb[13].mxu1 }
 0xb50   :  { %v9025_v34 = vadd.f32 %v9024_v25, %v9023_v5  ;;  %v9026_v58 = vpop.f32.mrb[14].mxu1 }
 0xb51   :  { %v9027_v56 = vpop.f32.mrb[15].mxu1 }
 0xb52   :  { %v7861_v7 = vadd.f32 %v9025_v34, %v7821_v23 }
 0xb6e   :  { %v9045_v45 = vpop.f32.mrb[16].mxu1 }
 0xb6f   :  { %v9046_v51 = vpop.f32.mrb[17].mxu1 }
 0xb70   :  { %v9047_v39 = vadd.f32 %v9046_v51, %v9045_v45  ;;  %v9048_v28 = vpop.f32.mrb[18].mxu1 }
 0xb71   :  { %v9049_v22 = vpop.f32.mrb[19].mxu1 }
 0xb72   :  { %v7901_v43 = vadd.f32 %v9047_v39, %v7861_v7 }
 0xb8e   :  { %v9067_v6 = vpop.f32.mrb[20].mxu1 }
 0xb8f   :  { %v9068_v63 = vpop.f32.mrb[21].mxu1 }
 0xb90   :  { %v9069_v46 = vadd.f32 %v9068_v63, %v9067_v6  ;;  %v9070_v50 = vpop.f32.mrb[22].mxu1 }
 0xb91   :  { %v9071_v49 = vpop.f32.mrb[23].mxu1 }
 0xb92   :  { %v7941_v19 = vadd.f32 %v9069_v46, %v7901_v43 }
 0xbae   :  { %v9089_v30 = vpop.f32.mrb[24].mxu1 }
 0xbaf   :  { %v9090_v16 = vpop.f32.mrb[25].mxu1 }
 0xbb0   :  { %v9091_v31 = vadd.f32 %v9090_v16, %v9089_v30  ;;  %v9092_v12 = vpop.f32.mrb[26].mxu1 }
 0xbb1   :  { %v9093_v13 = vpop.f32.mrb[27].mxu1 }
 0xbb2   :  { %v7981_v11 = vadd.f32 %v9091_v31, %v7941_v19 }
 0xbce   :  { %v9111_v3 = vpop.f32.mrb[28].mxu1 }
 0xbcf   :  { %v9112_v27 = vpop.f32.mrb[29].mxu1 }
 0xbd0   :  { %v9113_v62 = vadd.f32 %v9112_v27, %v9111_v3  ;;  %v9114_v60 = vpop.f32.mrb[30].mxu1 }
 0xbd1   :  { %v9115_v37 = vpop.f32.mrb[31].mxu1 }
 0xbd2   :  { %v8021_v48 = vadd.f32 %v9113_v62, %v7981_v11 }
 0xbee   :  { %v9133_v54 = vpop.f32.mrb[32].mxu1 }
 0xbef   :  { %v9134_v32 = vpop.f32.mrb[33].mxu1 }
 0xbf0   :  { %v9135_v14 = vadd.f32 %v9134_v32, %v9133_v54  ;;  %v9136_v21 = vpop.f32.mrb[34].mxu1 }
 0xbf1   :  { %v9137_v15 = vpop.f32.mrb[35].mxu1 }
 0xbf2   :  { %v8061_v61 = vadd.f32 %v9135_v14, %v8021_v48 }
 0xc0e   :  { %v8100_v17 = vpop.f32.mrb[36].mxu1 }
 0xc0f   :  { %v8101_v2 = vadd.f32 %v8100_v17, %v8061_v61  ;;  %v9166_v41 = vpop.f32.mrb[37].mxu1 }
 0xc10   :  { %v8103_v47 = vpop.f32.mrb[38].mxu1 }
 0xc11   :  { %v8106_v44 = vmax.f32 %v8101_v2, 0.0  ;;  %v9167_v8 = vpop.f32.mrb[39].mxu1 }
 0xc13   :  { %v8113_v9 = vmul.f32 %v8111_v40, %v8106_v44 }
 0xc15   :  { %v8114_v38 = vrot.slane %v8113_v9, 4 }
 0xc17   :  { %v8115_v20 = vadd.f32 %v8114_v38, %v8113_v9 }
 0xc19   :  { %v8116_v59 = vrot.slane %v8115_v20, 2 }
 0xc1b   :  { %v8117_v33 = vadd.f32 %v8116_v59, %v8115_v20 }
 0xc1d   :  { %v8118_v29 = vrot.slane %v8117_v33, 1 }
 0xc1f   :  { %v8119_v1 = vadd.f32 %v8118_v29, %v8117_v33 }
 0xc21   :  { %v8120_v36 = vmul.f32 %v8119_v1, %v16234_v57 }
 0xc23   :  { %v8121_v24 = vadd.f32 %v8120_v36, %v16235_v0 }
 0xc25   :  { %8122 = vst [vmem:[#allocation6] sm:$0x1] %v8121_v24 }
 0xc26   :  { %10540 = shalt.err (!%p10537_p4)
}
 0xc27   :  { %s10541_s18 = scalar_lea.hbm %s15347_s6, 16 }
 0xc28   :  { %p10542_p5 = scmp.ne.s32.totalorder %s15347_s6, %s10541_s18  ;;  %p10545_p6 = scmp.lt.u32.totalorder %s10541_s18, %s15347_s6 }
 0xc2a   :  { %p10547_p7 = pnand %p10545_p6, %p10542_p5 }
 0xc2c   :  { %10550 = shalt.err (!%p10547_p7)
}
 0xc2d   :  { %8132 = dma.vmem_to_hbm [thread:$0]  %s8130_s14, 16, %s15347_s6, [#allocation7]  }
 0xc2e   :  { %10553 = dma.done.wait [#allocation7], 16  }
 0xc2f   :  { %10554 = vsyncadd [#allocation7], 4294967280 }
 0xc30   :  { %8136 = vsyncpa [#allocation7], 1 }
 0xc31   :  { %8137 = vsyncmov [#allocation5] }
 0xc34   :  { %s8138_s24 = vpop.sfrf %8137 }
 0xc35   :  { %p8610_p8 = scmp.ne.s32.totalorder %s8138_s24, 0 }
 0xc37   :  { %8142 = shalt.err (%p8610_p8)  }

</bundles_post_ra>
